<compile_context>
chip_gen: v6e
topology: v6e:2x2x1
jax: 0.10.0
libtpu: 0.0.40
codegen_flags: <defaults>
</compile_context>

<pallas_src>
import functools

import jax
import jax.numpy as jnp
from jax.experimental import pallas as pl
from jax.experimental.pallas import tpu as pltpu

NUM_CLASSES = 10   # TODO(synk): len(DRUM_TYPES) is not defined in the snippet; assume 10 drum classes.
LEAKY_SLOPE = 0.01  # F.leaky_relu default
BN_EPS = 1e-5


def _leaky_relu(y):
    return jnp.where(y >= 0, y, LEAKY_SLOPE * y)


# ----------------------------------------------------------------------------
# Kernel A: conv1 + BN1 + maxpool(4,4) + leaky_relu (one image per grid step)
#   a_ref : (1, 16, Hp1*Wp1, 48) bf16   -- 16 pool phases of im2col patches
#   w_ref : (48, 256)           bf16   -- conv1 weight with BN scale folded in
#   b_ref : (1, 256)            f32    -- BN shift (commutes with the max)
#   o_ref : (1, Hp1*Wp1, 256)   bf16
# ----------------------------------------------------------------------------
def _conv1_bn_pool_kernel(a_ref, w_ref, b_ref, o_ref, *, n_phases):
    w = w_ref[...]
    m = None
    for p in range(n_phases):                      # unrolled max over the 4x4 window
        y = jnp.dot(a_ref[0, p], w, preferred_element_type=jnp.float32)
        m = y if m is None else jnp.maximum(m, y)  # VALU max chain (no XLU reduce)
    m = m + b_ref[...]                             # BN shift, f32 epilogue
    o_ref[0] = _leaky_relu(m).astype(o_ref.dtype)


# ----------------------------------------------------------------------------
# Kernel B: conv2 + BN2 + maxpool(4,8) + leaky_relu + flatten + fc1 + fc2
#   x{0..3}_ref : (1, Hp1*W3, 256) bf16  -- stride-2 width-phase views of act1
#   w2_ref      : (4, 4, 256, 256) bf16  -- conv2 taps (kh, kw, cin, cout), BN scaled
#   b2_ref      : (1, 256) f32           -- BN2 shift
#   we/wo_ref   : (256, 128) bf16        -- fc1 weight rows for hp=0 / hp=1 (NCHW flatten)
#   b3_ref      : (1, 128) f32
#   w4_ref      : (128, NUM_CLASSES) bf16
#   b4_ref      : (1, NUM_CLASSES) f32
#   o_ref       : (1, 1, NUM_CLASSES) f32
# ----------------------------------------------------------------------------
def _conv2_tail_kernel(x0_ref, x1_ref, x2_ref, x3_ref, w2_ref, b2_ref,
                       we_ref, wo_ref, b3_ref, w4_ref, b4_ref, o_ref,
                       *, kh, kw, H3, W3, softmax):
    xs = (x0_ref, x1_ref, x2_ref, x3_ref)
    acc = None
    for dh in range(kh):                           # 16 accumulating tap matmuls
        for dw in range(kw):
            patch = xs[dw][0, dh * W3:(dh + H3) * W3, :]          # (H3*W3, 256) bf16
            y = jnp.dot(patch, w2_ref[dh, dw],
                        preferred_element_type=jnp.float32)        # (H3*W3, 256) f32
            acc = y if acc is None else acc + y
    acc = acc + b2_ref[...]                        # BN2 shift (scale folded in weights)

    # max_pool2d((4, 8)) over the (H3=8, W3=8) grid -> two pooled rows, + leaky_relu
    half = 4 * W3
    p0 = _leaky_relu(jnp.max(acc[:half], axis=0, keepdims=True))    # (1, 256) hp = 0
    p1 = _leaky_relu(jnp.max(acc[half:2 * half], axis=0, keepdims=True))  # hp = 1

    # NCHW flatten (feat[2c + hp] = p_hp[c]) folded into the even/odd fc1 weights.
    # Dropout is identity in eval.  TODO(synk): training-mode dropout not implemented.
    h = (jnp.dot(p0.astype(jnp.bfloat16), we_ref[...], preferred_element_type=jnp.float32)
         + jnp.dot(p1.astype(jnp.bfloat16), wo_ref[...], preferred_element_type=jnp.float32)
         + b3_ref[...])
    h = _leaky_relu(h)                                              # (1, 128)

    logits = jnp.dot(h.astype(jnp.bfloat16), w4_ref[...],
                     preferred_element_type=jnp.float32) + b4_ref[...]   # (1, NUM_CLASSES)
    if softmax:
        z = logits - jnp.max(logits, axis=-1, keepdims=True)
        logits = z - jnp.log(jnp.sum(jnp.exp(z), axis=-1, keepdims=True))
    o_ref[0] = logits


# ----------------------------------------------------------------------------
# XLA glue: im2col for conv1 (tiny, K=48) -- channel-last, (cin, kh, kw) ordering
# ----------------------------------------------------------------------------
def _im2col_nhwc(x, kh, kw, sh, sw):
    N, H, W, C = x.shape
    Ho = (H - kh) // sh + 1
    Wo = (W - kw) // sw + 1
    cols = []
    for dh in range(kh):
        for dw in range(kw):
            cols.append(x[:, dh:dh + sh * (Ho - 1) + 1:sh,
                          dw:dw + sw * (Wo - 1) + 1:sw, :])
    patches = jnp.stack(cols, axis=-1)                  # (N, Ho, Wo, C, kh*kw)
    return patches.reshape(N, Ho, Wo, C * kh * kw), Ho, Wo


# ----------------------------------------------------------------------------
# Full forward pass (eval mode: BN uses running stats, dropout is identity)
# ----------------------------------------------------------------------------
def convnet_forward(x_nchw, params, softmax=True):
    N, Cin, H, W = x_nchw.shape
    assert Cin == 1
    x = jnp.transpose(x_nchw, (0, 2, 3, 1)).astype(jnp.bfloat16)    # NHWC bf16

    # ---- BN folding: scale into bf16 weights, shift added in-kernel (f32) ----
    s1 = params["g1"] / jnp.sqrt(params["v1"] + BN_EPS)
    sh1 = params["be1"] + (params["b1"] - params["m1"]) * s1
    w1 = (params["w1"].reshape(256, -1).T * s1[None, :]).astype(jnp.bfloat16)   # (48, 256)

    s2 = params["g2"] / jnp.sqrt(params["v2"] + BN_EPS)
    sh2 = params["be2"] + (params["b2"] - params["m2"]) * s2
    w2 = (jnp.transpose(params["w2"], (2, 3, 1, 0))                 # (kh, kw, cin, cout)
          * s2[None, None, None, :]).astype(jnp.bfloat16)

    fc1_wt = params["fc1_w"].T                                       # (512, 128)
    fc1_we = fc1_wt[0::2].astype(jnp.bfloat16)                       # hp = 0 rows
    fc1_wo = fc1_wt[1::2].astype(jnp.bfloat16)                       # hp = 1 rows
    fc2_wt = params["fc2_w"].T.astype(jnp.bfloat16)                  # (128, NUM_CLASSES)

    # ---- conv1 + pool1 geometry and pool-phase patch matrices ----
    K1 = 12 * 4
    patches, H1, W1 = _im2col_nhwc(x, 12, 4, 2, 2)                   # (N, H1, W1, 48)
    assert H1 % 4 == 0 and W1 % 4 == 0, "pool1 must tile exactly"
    Hp1, Wp1 = H1 // 4, W1 // 4
    a = patches.reshape(N, Hp1, 4, Wp1, 4, K1)
    a = a.transpose(0, 2, 4, 1, 3, 5).reshape(N, 16, Hp1 * Wp1, K1)  # 16 pool phases

    act1 = pl.pallas_call(
        functools.partial(_conv1_bn_pool_kernel, n_phases=16),
        out_shape=jax.ShapeDtypeStruct((N, Hp1 * Wp1, 256), jnp.bfloat16),
        grid=(N,),
        in_specs=[
            pl.BlockSpec((1, 16, Hp1 * Wp1, K1), lambda i: (i, 0, 0, 0)),
            pl.BlockSpec((K1, 256), lambda i: (0, 0)),
            pl.BlockSpec((1, 256), lambda i: (0, 0)),
        ],
        out_specs=pl.BlockSpec((1, Hp1 * Wp1, 256), lambda i: (i, 0, 0)),
        compiler_params=pltpu.CompilerParams(dimension_semantics=("parallel",)),
    )(a, w1, sh1.reshape(1, 256).astype(jnp.float32))

    # ---- conv2 + pool2 + fc geometry ----
    H3 = Hp1 - 4 + 1                      # conv2 stride 1 along H
    W3 = (Wp1 - 4) // 2 + 1               # conv2 stride 2 along W
    Hp2, Wp2 = H3 // 4, W3 // 8
    assert H3 == 8 and W3 == 8 and Hp2 == 2 and Wp2 == 1 and 256 * Hp2 * Wp2 == 512, \
        "specialised to the 512-feature geometry the PyTorch module asserts"
    # TODO(synk): pooled geometries other than (Hp2=2, Wp2=1) are not implemented.

    act1_4d = act1.reshape(N, Hp1, Wp1, 256)
    # Pre-slice the 4 stride-2 width phases of conv2 so every in-kernel slice is
    # contiguous and sublane-tile aligned: xd[n, hr*W3 + wc, :] = act1[n, hr, 2*wc+dw, :]
    xd = [act1_4d[:, :, dw:dw + 2 * W3 - 1:2, :].reshape(N, Hp1 * W3, 256)
          for dw in range(4)]

    out = pl.pallas_call(
        functools.partial(_conv2_tail_kernel, kh=4, kw=4, H3=H3, W3=W3, softmax=softmax),
        out_shape=jax.ShapeDtypeStruct((N, 1, NUM_CLASSES), jnp.float32),
        grid=(N,),
        in_specs=[
            pl.BlockSpec((1, Hp1 * W3, 256), lambda i: (i, 0, 0)),
            pl.BlockSpec((1, Hp1 * W3, 256), lambda i: (i, 0, 0)),
            pl.BlockSpec((1, Hp1 * W3, 256), lambda i: (i, 0, 0)),
            pl.BlockSpec((1, Hp1 * W3, 256), lambda i: (i, 0, 0)),
            pl.BlockSpec((4, 4, 256, 256), lambda i: (0, 0, 0, 0)),
            pl.BlockSpec((1, 256), lambda i: (0, 0)),
            pl.BlockSpec((256, 128), lambda i: (0, 0)),
            pl.BlockSpec((256, 128), lambda i: (0, 0)),
            pl.BlockSpec((1, 128), lambda i: (0, 0)),
            pl.BlockSpec((128, NUM_CLASSES), lambda i: (0, 0)),
            pl.BlockSpec((1, NUM_CLASSES), lambda i: (0, 0)),
        ],
        out_specs=pl.BlockSpec((1, 1, NUM_CLASSES), lambda i: (i, 0, 0)),
        compiler_params=pltpu.CompilerParams(dimension_semantics=("parallel",)),
    )(xd[0], xd[1], xd[2], xd[3], w2, sh2.reshape(1, 256).astype(jnp.float32),
      fc1_we, fc1_wo, params["fc1_b"].reshape(1, 128).astype(jnp.float32),
      fc2_wt, params["fc2_b"].reshape(1, NUM_CLASSES).astype(jnp.float32))

    return out.reshape(N, NUM_CLASSES)


# ----------------------------------------------------------------------------
# Deterministic parameter initialization (shapes from ConvNet.__init__)
# ----------------------------------------------------------------------------
def init_params(key):
    ks = jax.random.split(key, 8)
    p = {}
    p["w1"] = 0.05 * jax.random.normal(ks[0], (256, 1, 12, 4), jnp.float32)
    p["b1"] = 0.05 * jax.random.normal(ks[1], (256,), jnp.float32)
    p["g1"] = jnp.ones((256,), jnp.float32)
    p["be1"] = jnp.zeros((256,), jnp.float32)
    p["m1"] = jnp.zeros((256,), jnp.float32)
    p["v1"] = jnp.ones((256,), jnp.float32)

    p["w2"] = 0.02 * jax.random.normal(ks[2], (256, 256, 4, 4), jnp.float32)
    p["b2"] = 0.02 * jax.random.normal(ks[3], (256,), jnp.float32)
    p["g2"] = jnp.ones((256,), jnp.float32)
    p["be2"] = jnp.zeros((256,), jnp.float32)
    p["m2"] = jnp.zeros((256,), jnp.float32)
    p["v2"] = jnp.ones((256,), jnp.float32)

    p["fc1_w"] = 0.05 * jax.random.normal(ks[4], (128, 512), jnp.float32)
    p["fc1_b"] = 0.05 * jax.random.normal(ks[5], (128,), jnp.float32)
    p["fc2_w"] = 0.05 * jax.random.normal(ks[6], (NUM_CLASSES, 128), jnp.float32)
    p["fc2_b"] = 0.05 * jax.random.normal(ks[7], (NUM_CLASSES,), jnp.float32)
    return p


if __name__ == "__main__":
    key = jax.random.PRNGKey(0)
    k_x, k_p = jax.random.split(key)
    params = init_params(k_p)

    # Smallest NCHW input consistent with the module's `assert prod(shape[1:]) == 512`:
    # (98, 146) -> conv1 -> (44, 72) -> pool(4,4) -> (11, 18) -> conv2 -> (8, 8)
    # -> pool(4,8) -> (2, 1); 256 * 2 * 1 = 512.
    x = jax.random.normal(k_x, (2, 1, 98, 146), jnp.float32)

    fwd = jax.jit(lambda xx, pp: convnet_forward(xx, pp, softmax=True))
    out = jax.block_until_ready(fwd(x, params))

    assert out.shape == (2, NUM_CLASSES)
    assert bool(jnp.all(jnp.isfinite(out)))
    # log_softmax rows should exponentiate to probability distributions
    assert bool(jnp.allclose(jnp.sum(jnp.exp(out), axis=-1), 1.0, atol=1e-3))
    print("KERNEL_OK")
</pallas_src>

<mosaic_0001>
module attributes {stable_mosaic.version = 11 : i64} {
  func.func @_conv1_bn_pool_kernel(%arg0: i32, %arg1: memref<1x16x198x48xbf16, #tpu.memory_space<vmem>>, %arg2: memref<48x256xbf16, #tpu.memory_space<vmem>>, %arg3: memref<1x256xf32, #tpu.memory_space<vmem>>, %arg4: memref<1x198x256xbf16, #tpu.memory_space<vmem>>) attributes {dimension_semantics = [#tpu.dimension_semantics<parallel>], iteration_bounds = array<i64: 2>, scalar_prefetch = 0 : i64, scratch_operands = 0 : i64, tpu.core_type = #tpu.core_type<tc>, window_params = [{transform_indices = @transform_0, window_bounds = array<i64: 1, 16, 198, 48>}, {pipeline_mode = #tpu.pipeline_mode<synchronous>, transform_indices = @transform_1, window_bounds = array<i64: 48, 256>}, {pipeline_mode = #tpu.pipeline_mode<synchronous>, transform_indices = @transform_2, window_bounds = array<i64: 1, 256>}, {transform_indices = @transform_3, window_bounds = array<i64: 1, 198, 256>}]} {
    %c0 = arith.constant 0 : index
    %c0_0 = arith.constant 0 : index
    %0 = vector.load %arg2[%c0, %c0_0] : memref<48x256xbf16, #tpu.memory_space<vmem>>, vector<48x256xbf16>
    %c0_1 = arith.constant 0 : index
    %c0_2 = arith.constant 0 : index
    %c0_3 = arith.constant 0 : index
    %c0_4 = arith.constant 0 : index
    %1 = vector.load %arg1[%c0_1, %c0_2, %c0_3, %c0_4] : memref<1x16x198x48xbf16, #tpu.memory_space<vmem>>, vector<1x1x198x48xbf16>
    %2 = vector.shape_cast %1 : vector<1x1x198x48xbf16> to vector<198x48xbf16>
    %cst = arith.constant dense<0.000000e+00> : vector<198x256xf32>
    %3 = tpu.matmul %2, %0, %cst {dimension_numbers = #tpu.dot_dimension_numbers<[1], [0], [0], [1], [0, 0, 1, 1], [], []>} : vector<198x48xbf16>, vector<48x256xbf16>, vector<198x256xf32> -> vector<198x256xf32>
    %c0_5 = arith.constant 0 : index
    %c1 = arith.constant 1 : index
    %c0_6 = arith.constant 0 : index
    %c0_7 = arith.constant 0 : index
    %4 = vector.load %arg1[%c0_5, %c1, %c0_6, %c0_7] : memref<1x16x198x48xbf16, #tpu.memory_space<vmem>>, vector<1x1x198x48xbf16>
    %5 = vector.shape_cast %4 : vector<1x1x198x48xbf16> to vector<198x48xbf16>
    %cst_8 = arith.constant dense<0.000000e+00> : vector<198x256xf32>
    %6 = tpu.matmul %5, %0, %cst_8 {dimension_numbers = #tpu.dot_dimension_numbers<[1], [0], [0], [1], [0, 0, 1, 1], [], []>} : vector<198x48xbf16>, vector<48x256xbf16>, vector<198x256xf32> -> vector<198x256xf32>
    %7 = arith.maximumf %3, %6 : vector<198x256xf32>
    %c0_9 = arith.constant 0 : index
    %c2 = arith.constant 2 : index
    %c0_10 = arith.constant 0 : index
    %c0_11 = arith.constant 0 : index
    %8 = vector.load %arg1[%c0_9, %c2, %c0_10, %c0_11] : memref<1x16x198x48xbf16, #tpu.memory_space<vmem>>, vector<1x1x198x48xbf16>
    %9 = vector.shape_cast %8 : vector<1x1x198x48xbf16> to vector<198x48xbf16>
    %cst_12 = arith.constant dense<0.000000e+00> : vector<198x256xf32>
    %10 = tpu.matmul %9, %0, %cst_12 {dimension_numbers = #tpu.dot_dimension_numbers<[1], [0], [0], [1], [0, 0, 1, 1], [], []>} : vector<198x48xbf16>, vector<48x256xbf16>, vector<198x256xf32> -> vector<198x256xf32>
    %11 = arith.maximumf %7, %10 : vector<198x256xf32>
    %c0_13 = arith.constant 0 : index
    %c3 = arith.constant 3 : index
    %c0_14 = arith.constant 0 : index
    %c0_15 = arith.constant 0 : index
    %12 = vector.load %arg1[%c0_13, %c3, %c0_14, %c0_15] : memref<1x16x198x48xbf16, #tpu.memory_space<vmem>>, vector<1x1x198x48xbf16>
    %13 = vector.shape_cast %12 : vector<1x1x198x48xbf16> to vector<198x48xbf16>
    %cst_16 = arith.constant dense<0.000000e+00> : vector<198x256xf32>
    %14 = tpu.matmul %13, %0, %cst_16 {dimension_numbers = #tpu.dot_dimension_numbers<[1], [0], [0], [1], [0, 0, 1, 1], [], []>} : vector<198x48xbf16>, vector<48x256xbf16>, vector<198x256xf32> -> vector<198x256xf32>
    %15 = arith.maximumf %11, %14 : vector<198x256xf32>
    %c0_17 = arith.constant 0 : index
    %c4 = arith.constant 4 : index
    %c0_18 = arith.constant 0 : index
    %c0_19 = arith.constant 0 : index
    %16 = vector.load %arg1[%c0_17, %c4, %c0_18, %c0_19] : memref<1x16x198x48xbf16, #tpu.memory_space<vmem>>, vector<1x1x198x48xbf16>
    %17 = vector.shape_cast %16 : vector<1x1x198x48xbf16> to vector<198x48xbf16>
    %cst_20 = arith.constant dense<0.000000e+00> : vector<198x256xf32>
    %18 = tpu.matmul %17, %0, %cst_20 {dimension_numbers = #tpu.dot_dimension_numbers<[1], [0], [0], [1], [0, 0, 1, 1], [], []>} : vector<198x48xbf16>, vector<48x256xbf16>, vector<198x256xf32> -> vector<198x256xf32>
    %19 = arith.maximumf %15, %18 : vector<198x256xf32>
    %c0_21 = arith.constant 0 : index
    %c5 = arith.constant 5 : index
    %c0_22 = arith.constant 0 : index
    %c0_23 = arith.constant 0 : index
    %20 = vector.load %arg1[%c0_21, %c5, %c0_22, %c0_23] : memref<1x16x198x48xbf16, #tpu.memory_space<vmem>>, vector<1x1x198x48xbf16>
    %21 = vector.shape_cast %20 : vector<1x1x198x48xbf16> to vector<198x48xbf16>
    %cst_24 = arith.constant dense<0.000000e+00> : vector<198x256xf32>
    %22 = tpu.matmul %21, %0, %cst_24 {dimension_numbers = #tpu.dot_dimension_numbers<[1], [0], [0], [1], [0, 0, 1, 1], [], []>} : vector<198x48xbf16>, vector<48x256xbf16>, vector<198x256xf32> -> vector<198x256xf32>
    %23 = arith.maximumf %19, %22 : vector<198x256xf32>
    %c0_25 = arith.constant 0 : index
    %c6 = arith.constant 6 : index
    %c0_26 = arith.constant 0 : index
    %c0_27 = arith.constant 0 : index
    %24 = vector.load %arg1[%c0_25, %c6, %c0_26, %c0_27] : memref<1x16x198x48xbf16, #tpu.memory_space<vmem>>, vector<1x1x198x48xbf16>
    %25 = vector.shape_cast %24 : vector<1x1x198x48xbf16> to vector<198x48xbf16>
    %cst_28 = arith.constant dense<0.000000e+00> : vector<198x256xf32>
    %26 = tpu.matmul %25, %0, %cst_28 {dimension_numbers = #tpu.dot_dimension_numbers<[1], [0], [0], [1], [0, 0, 1, 1], [], []>} : vector<198x48xbf16>, vector<48x256xbf16>, vector<198x256xf32> -> vector<198x256xf32>
    %27 = arith.maximumf %23, %26 : vector<198x256xf32>
    %c0_29 = arith.constant 0 : index
    %c7 = arith.constant 7 : index
    %c0_30 = arith.constant 0 : index
    %c0_31 = arith.constant 0 : index
    %28 = vector.load %arg1[%c0_29, %c7, %c0_30, %c0_31] : memref<1x16x198x48xbf16, #tpu.memory_space<vmem>>, vector<1x1x198x48xbf16>
    %29 = vector.shape_cast %28 : vector<1x1x198x48xbf16> to vector<198x48xbf16>
    %cst_32 = arith.constant dense<0.000000e+00> : vector<198x256xf32>
    %30 = tpu.matmul %29, %0, %cst_32 {dimension_numbers = #tpu.dot_dimension_numbers<[1], [0], [0], [1], [0, 0, 1, 1], [], []>} : vector<198x48xbf16>, vector<48x256xbf16>, vector<198x256xf32> -> vector<198x256xf32>
    %31 = arith.maximumf %27, %30 : vector<198x256xf32>
    %c0_33 = arith.constant 0 : index
    %c8 = arith.constant 8 : index
    %c0_34 = arith.constant 0 : index
    %c0_35 = arith.constant 0 : index
    %32 = vector.load %arg1[%c0_33, %c8, %c0_34, %c0_35] : memref<1x16x198x48xbf16, #tpu.memory_space<vmem>>, vector<1x1x198x48xbf16>
    %33 = vector.shape_cast %32 : vector<1x1x198x48xbf16> to vector<198x48xbf16>
    %cst_36 = arith.constant dense<0.000000e+00> : vector<198x256xf32>
    %34 = tpu.matmul %33, %0, %cst_36 {dimension_numbers = #tpu.dot_dimension_numbers<[1], [0], [0], [1], [0, 0, 1, 1], [], []>} : vector<198x48xbf16>, vector<48x256xbf16>, vector<198x256xf32> -> vector<198x256xf32>
    %35 = arith.maximumf %31, %34 : vector<198x256xf32>
    %c0_37 = arith.constant 0 : index
    %c9 = arith.constant 9 : index
    %c0_38 = arith.constant 0 : index
    %c0_39 = arith.constant 0 : index
    %36 = vector.load %arg1[%c0_37, %c9, %c0_38, %c0_39] : memref<1x16x198x48xbf16, #tpu.memory_space<vmem>>, vector<1x1x198x48xbf16>
    %37 = vector.shape_cast %36 : vector<1x1x198x48xbf16> to vector<198x48xbf16>
    %cst_40 = arith.constant dense<0.000000e+00> : vector<198x256xf32>
    %38 = tpu.matmul %37, %0, %cst_40 {dimension_numbers = #tpu.dot_dimension_numbers<[1], [0], [0], [1], [0, 0, 1, 1], [], []>} : vector<198x48xbf16>, vector<48x256xbf16>, vector<198x256xf32> -> vector<198x256xf32>
    %39 = arith.maximumf %35, %38 : vector<198x256xf32>
    %c0_41 = arith.constant 0 : index
    %c10 = arith.constant 10 : index
    %c0_42 = arith.constant 0 : index
    %c0_43 = arith.constant 0 : index
    %40 = vector.load %arg1[%c0_41, %c10, %c0_42, %c0_43] : memref<1x16x198x48xbf16, #tpu.memory_space<vmem>>, vector<1x1x198x48xbf16>
    %41 = vector.shape_cast %40 : vector<1x1x198x48xbf16> to vector<198x48xbf16>
    %cst_44 = arith.constant dense<0.000000e+00> : vector<198x256xf32>
    %42 = tpu.matmul %41, %0, %cst_44 {dimension_numbers = #tpu.dot_dimension_numbers<[1], [0], [0], [1], [0, 0, 1, 1], [], []>} : vector<198x48xbf16>, vector<48x256xbf16>, vector<198x256xf32> -> vector<198x256xf32>
    %43 = arith.maximumf %39, %42 : vector<198x256xf32>
    %c0_45 = arith.constant 0 : index
    %c11 = arith.constant 11 : index
    %c0_46 = arith.constant 0 : index
    %c0_47 = arith.constant 0 : index
    %44 = vector.load %arg1[%c0_45, %c11, %c0_46, %c0_47] : memref<1x16x198x48xbf16, #tpu.memory_space<vmem>>, vector<1x1x198x48xbf16>
    %45 = vector.shape_cast %44 : vector<1x1x198x48xbf16> to vector<198x48xbf16>
    %cst_48 = arith.constant dense<0.000000e+00> : vector<198x256xf32>
    %46 = tpu.matmul %45, %0, %cst_48 {dimension_numbers = #tpu.dot_dimension_numbers<[1], [0], [0], [1], [0, 0, 1, 1], [], []>} : vector<198x48xbf16>, vector<48x256xbf16>, vector<198x256xf32> -> vector<198x256xf32>
    %47 = arith.maximumf %43, %46 : vector<198x256xf32>
    %c0_49 = arith.constant 0 : index
    %c12 = arith.constant 12 : index
    %c0_50 = arith.constant 0 : index
    %c0_51 = arith.constant 0 : index
    %48 = vector.load %arg1[%c0_49, %c12, %c0_50, %c0_51] : memref<1x16x198x48xbf16, #tpu.memory_space<vmem>>, vector<1x1x198x48xbf16>
    %49 = vector.shape_cast %48 : vector<1x1x198x48xbf16> to vector<198x48xbf16>
    %cst_52 = arith.constant dense<0.000000e+00> : vector<198x256xf32>
    %50 = tpu.matmul %49, %0, %cst_52 {dimension_numbers = #tpu.dot_dimension_numbers<[1], [0], [0], [1], [0, 0, 1, 1], [], []>} : vector<198x48xbf16>, vector<48x256xbf16>, vector<198x256xf32> -> vector<198x256xf32>
    %51 = arith.maximumf %47, %50 : vector<198x256xf32>
    %c0_53 = arith.constant 0 : index
    %c13 = arith.constant 13 : index
    %c0_54 = arith.constant 0 : index
    %c0_55 = arith.constant 0 : index
    %52 = vector.load %arg1[%c0_53, %c13, %c0_54, %c0_55] : memref<1x16x198x48xbf16, #tpu.memory_space<vmem>>, vector<1x1x198x48xbf16>
    %53 = vector.shape_cast %52 : vector<1x1x198x48xbf16> to vector<198x48xbf16>
    %cst_56 = arith.constant dense<0.000000e+00> : vector<198x256xf32>
    %54 = tpu.matmul %53, %0, %cst_56 {dimension_numbers = #tpu.dot_dimension_numbers<[1], [0], [0], [1], [0, 0, 1, 1], [], []>} : vector<198x48xbf16>, vector<48x256xbf16>, vector<198x256xf32> -> vector<198x256xf32>
    %55 = arith.maximumf %51, %54 : vector<198x256xf32>
    %c0_57 = arith.constant 0 : index
    %c14 = arith.constant 14 : index
    %c0_58 = arith.constant 0 : index
    %c0_59 = arith.constant 0 : index
    %56 = vector.load %arg1[%c0_57, %c14, %c0_58, %c0_59] : memref<1x16x198x48xbf16, #tpu.memory_space<vmem>>, vector<1x1x198x48xbf16>
    %57 = vector.shape_cast %56 : vector<1x1x198x48xbf16> to vector<198x48xbf16>
    %cst_60 = arith.constant dense<0.000000e+00> : vector<198x256xf32>
    %58 = tpu.matmul %57, %0, %cst_60 {dimension_numbers = #tpu.dot_dimension_numbers<[1], [0], [0], [1], [0, 0, 1, 1], [], []>} : vector<198x48xbf16>, vector<48x256xbf16>, vector<198x256xf32> -> vector<198x256xf32>
    %59 = arith.maximumf %55, %58 : vector<198x256xf32>
    %c0_61 = arith.constant 0 : index
    %c15 = arith.constant 15 : index
    %c0_62 = arith.constant 0 : index
    %c0_63 = arith.constant 0 : index
    %60 = vector.load %arg1[%c0_61, %c15, %c0_62, %c0_63] : memref<1x16x198x48xbf16, #tpu.memory_space<vmem>>, vector<1x1x198x48xbf16>
    %61 = vector.shape_cast %60 : vector<1x1x198x48xbf16> to vector<198x48xbf16>
    %cst_64 = arith.constant dense<0.000000e+00> : vector<198x256xf32>
    %62 = tpu.matmul %61, %0, %cst_64 {dimension_numbers = #tpu.dot_dimension_numbers<[1], [0], [0], [1], [0, 0, 1, 1], [], []>} : vector<198x48xbf16>, vector<48x256xbf16>, vector<198x256xf32> -> vector<198x256xf32>
    %63 = arith.maximumf %59, %62 : vector<198x256xf32>
    %c0_65 = arith.constant 0 : index
    %c0_66 = arith.constant 0 : index
    %64 = vector.load %arg3[%c0_65, %c0_66] : memref<1x256xf32, #tpu.memory_space<vmem>>, vector<1x256xf32>
    %65 = vector.broadcast %64 : vector<1x256xf32> to vector<198x256xf32>
    %66 = arith.addf %63, %65 : vector<198x256xf32>
    %cst_67 = arith.constant 0.000000e+00 : f32
    %67 = vector.broadcast %cst_67 : f32 to vector<198x256xf32>
    %68 = arith.cmpf oge, %66, %67 : vector<198x256xf32>
    %cst_68 = arith.constant 0.00999999977 : f32
    %69 = vector.broadcast %cst_68 : f32 to vector<198x256xf32>
    %70 = arith.mulf %69, %66 : vector<198x256xf32>
    %71 = arith.select %68, %66, %70 : vector<198x256xi1>, vector<198x256xf32>
    %72 = arith.truncf %71 : vector<198x256xf32> to vector<198x256xbf16>
    %c0_69 = arith.constant 0 : index
    %c0_70 = arith.constant 0 : index
    %c0_71 = arith.constant 0 : index
    %73 = vector.load %arg4[%c0_69, %c0_70, %c0_71] : memref<1x198x256xbf16, #tpu.memory_space<vmem>>, vector<1x198x256xbf16>
    %74 = vector.shape_cast %73 : vector<1x198x256xbf16> to vector<198x256xbf16>
    %75 = vector.shape_cast %72 : vector<198x256xbf16> to vector<1x198x256xbf16>
    tpu.vector_store %arg4[%c0_69, %c0_70, %c0_71], %75 {strides = array<i32>} : memref<1x198x256xbf16, #tpu.memory_space<vmem>>, vector<1x198x256xbf16>,
    return
  }
  func.func @transform_0(%arg0: i32) -> (i32, i32, i32, i32) {
    %c0_i32 = arith.constant 0 : i32
    %c0_i32_0 = arith.constant 0 : i32
    %c0_i32_1 = arith.constant 0 : i32
    %c0_i32_2 = arith.constant 0 : i32
    return %arg0, %c0_i32, %c0_i32_0, %c0_i32_1 : i32, i32, i32, i32
  }
  func.func @transform_1(%arg0: i32) -> (i32, i32) {
    %c0_i32 = arith.constant 0 : i32
    %c0_i32_0 = arith.constant 0 : i32
    %c0_i32_1 = arith.constant 0 : i32
    return %c0_i32, %c0_i32_0 : i32, i32
  }
  func.func @transform_2(%arg0: i32) -> (i32, i32) {
    %c0_i32 = arith.constant 0 : i32
    %c0_i32_0 = arith.constant 0 : i32
    %c0_i32_1 = arith.constant 0 : i32
    return %c0_i32, %c0_i32_0 : i32, i32
  }
  func.func @transform_3(%arg0: i32) -> (i32, i32, i32) {
    %c0_i32 = arith.constant 0 : i32
    %c0_i32_0 = arith.constant 0 : i32
    %c0_i32_1 = arith.constant 0 : i32
    return %arg0, %c0_i32, %c0_i32_0 : i32, i32, i32
  }
}

module attributes {stable_mosaic.version = 11 : i64} {
  func.func @_conv2_tail_kernel(%arg0: i32, %arg1: memref<1x88x256xbf16, #tpu.memory_space<vmem>>, %arg2: memref<1x88x256xbf16, #tpu.memory_space<vmem>>, %arg3: memref<1x88x256xbf16, #tpu.memory_space<vmem>>, %arg4: memref<1x88x256xbf16, #tpu.memory_space<vmem>>, %arg5: memref<4x4x256x256xbf16, #tpu.memory_space<vmem>>, %arg6: memref<1x256xf32, #tpu.memory_space<vmem>>, %arg7: memref<256x128xbf16, #tpu.memory_space<vmem>>, %arg8: memref<256x128xbf16, #tpu.memory_space<vmem>>, %arg9: memref<1x128xf32, #tpu.memory_space<vmem>>, %arg10: memref<128x10xbf16, #tpu.memory_space<vmem>>, %arg11: memref<1x10xf32, #tpu.memory_space<vmem>>, %arg12: memref<1x1x10xf32, #tpu.memory_space<vmem>>) attributes {dimension_semantics = [#tpu.dimension_semantics<parallel>], iteration_bounds = array<i64: 2>, scalar_prefetch = 0 : i64, scratch_operands = 0 : i64, tpu.core_type = #tpu.core_type<tc>, window_params = [{transform_indices = @transform_0, window_bounds = array<i64: 1, 88, 256>}, {transform_indices = @transform_1, window_bounds = array<i64: 1, 88, 256>}, {transform_indices = @transform_2, window_bounds = array<i64: 1, 88, 256>}, {transform_indices = @transform_3, window_bounds = array<i64: 1, 88, 256>}, {pipeline_mode = #tpu.pipeline_mode<synchronous>, transform_indices = @transform_4, window_bounds = array<i64: 4, 4, 256, 256>}, {pipeline_mode = #tpu.pipeline_mode<synchronous>, transform_indices = @transform_5, window_bounds = array<i64: 1, 256>}, {pipeline_mode = #tpu.pipeline_mode<synchronous>, transform_indices = @transform_6, window_bounds = array<i64: 256, 128>}, {pipeline_mode = #tpu.pipeline_mode<synchronous>, transform_indices = @transform_7, window_bounds = array<i64: 256, 128>}, {pipeline_mode = #tpu.pipeline_mode<synchronous>, transform_indices = @transform_8, window_bounds = array<i64: 1, 128>}, {pipeline_mode = #tpu.pipeline_mode<synchronous>, transform_indices = @transform_9, window_bounds = array<i64: 128, 10>}, {pipeline_mode = #tpu.pipeline_mode<synchronous>, transform_indices = @transform_10, window_bounds = array<i64: 1, 10>}, {transform_indices = @transform_11, window_bounds = array<i64: 1, 1, 10>}]} {
    %c0 = arith.constant 0 : index
    %c0_0 = arith.constant 0 : index
    %c0_1 = arith.constant 0 : index
    %0 = vector.load %arg1[%c0, %c0_0, %c0_1] : memref<1x88x256xbf16, #tpu.memory_space<vmem>>, vector<1x64x256xbf16>
    %1 = vector.shape_cast %0 : vector<1x64x256xbf16> to vector<64x256xbf16>
    %c0_2 = arith.constant 0 : index
    %c0_3 = arith.constant 0 : index
    %c0_4 = arith.constant 0 : index
    %c0_5 = arith.constant 0 : index
    %2 = vector.load %arg5[%c0_2, %c0_3, %c0_4, %c0_5] : memref<4x4x256x256xbf16, #tpu.memory_space<vmem>>, vector<1x1x256x256xbf16>
    %3 = vector.shape_cast %2 : vector<1x1x256x256xbf16> to vector<256x256xbf16>
    %cst = arith.constant dense<0.000000e+00> : vector<64x256xf32>
    %4 = tpu.matmul %1, %3, %cst {dimension_numbers = #tpu.dot_dimension_numbers<[1], [0], [0], [1], [0, 0, 1, 1], [], []>} : vector<64x256xbf16>, vector<256x256xbf16>, vector<64x256xf32> -> vector<64x256xf32>
    %c0_6 = arith.constant 0 : index
    %c0_7 = arith.constant 0 : index
    %c0_8 = arith.constant 0 : index
    %5 = vector.load %arg2[%c0_6, %c0_7, %c0_8] : memref<1x88x256xbf16, #tpu.memory_space<vmem>>, vector<1x64x256xbf16>
    %6 = vector.shape_cast %5 : vector<1x64x256xbf16> to vector<64x256xbf16>
    %c0_9 = arith.constant 0 : index
    %c1 = arith.constant 1 : index
    %c0_10 = arith.constant 0 : index
    %c0_11 = arith.constant 0 : index
    %7 = vector.load %arg5[%c0_9, %c1, %c0_10, %c0_11] : memref<4x4x256x256xbf16, #tpu.memory_space<vmem>>, vector<1x1x256x256xbf16>
    %8 = vector.shape_cast %7 : vector<1x1x256x256xbf16> to vector<256x256xbf16>
    %cst_12 = arith.constant dense<0.000000e+00> : vector<64x256xf32>
    %9 = tpu.matmul %6, %8, %cst_12 {dimension_numbers = #tpu.dot_dimension_numbers<[1], [0], [0], [1], [0, 0, 1, 1], [], []>} : vector<64x256xbf16>, vector<256x256xbf16>, vector<64x256xf32> -> vector<64x256xf32>
    %10 = arith.addf %4, %9 : vector<64x256xf32>
    %c0_13 = arith.constant 0 : index
    %c0_14 = arith.constant 0 : index
    %c0_15 = arith.constant 0 : index
    %11 = vector.load %arg3[%c0_13, %c0_14, %c0_15] : memref<1x88x256xbf16, #tpu.memory_space<vmem>>, vector<1x64x256xbf16>
    %12 = vector.shape_cast %11 : vector<1x64x256xbf16> to vector<64x256xbf16>
    %c0_16 = arith.constant 0 : index
    %c2 = arith.constant 2 : index
    %c0_17 = arith.constant 0 : index
    %c0_18 = arith.constant 0 : index
    %13 = vector.load %arg5[%c0_16, %c2, %c0_17, %c0_18] : memref<4x4x256x256xbf16, #tpu.memory_space<vmem>>, vector<1x1x256x256xbf16>
    %14 = vector.shape_cast %13 : vector<1x1x256x256xbf16> to vector<256x256xbf16>
    %cst_19 = arith.constant dense<0.000000e+00> : vector<64x256xf32>
    %15 = tpu.matmul %12, %14, %cst_19 {dimension_numbers = #tpu.dot_dimension_numbers<[1], [0], [0], [1], [0, 0, 1, 1], [], []>} : vector<64x256xbf16>, vector<256x256xbf16>, vector<64x256xf32> -> vector<64x256xf32>
    %16 = arith.addf %10, %15 : vector<64x256xf32>
    %c0_20 = arith.constant 0 : index
    %c0_21 = arith.constant 0 : index
    %c0_22 = arith.constant 0 : index
    %17 = vector.load %arg4[%c0_20, %c0_21, %c0_22] : memref<1x88x256xbf16, #tpu.memory_space<vmem>>, vector<1x64x256xbf16>
    %18 = vector.shape_cast %17 : vector<1x64x256xbf16> to vector<64x256xbf16>
    %c0_23 = arith.constant 0 : index
    %c3 = arith.constant 3 : index
    %c0_24 = arith.constant 0 : index
    %c0_25 = arith.constant 0 : index
    %19 = vector.load %arg5[%c0_23, %c3, %c0_24, %c0_25] : memref<4x4x256x256xbf16, #tpu.memory_space<vmem>>, vector<1x1x256x256xbf16>
    %20 = vector.shape_cast %19 : vector<1x1x256x256xbf16> to vector<256x256xbf16>
    %cst_26 = arith.constant dense<0.000000e+00> : vector<64x256xf32>
    %21 = tpu.matmul %18, %20, %cst_26 {dimension_numbers = #tpu.dot_dimension_numbers<[1], [0], [0], [1], [0, 0, 1, 1], [], []>} : vector<64x256xbf16>, vector<256x256xbf16>, vector<64x256xf32> -> vector<64x256xf32>
    %22 = arith.addf %16, %21 : vector<64x256xf32>
    %c0_27 = arith.constant 0 : index
    %c8 = arith.constant 8 : index
    %c0_28 = arith.constant 0 : index
    %23 = vector.load %arg1[%c0_27, %c8, %c0_28] : memref<1x88x256xbf16, #tpu.memory_space<vmem>>, vector<1x64x256xbf16>
    %24 = vector.shape_cast %23 : vector<1x64x256xbf16> to vector<64x256xbf16>
    %c1_29 = arith.constant 1 : index
    %c0_30 = arith.constant 0 : index
    %c0_31 = arith.constant 0 : index
    %c0_32 = arith.constant 0 : index
    %25 = vector.load %arg5[%c1_29, %c0_30, %c0_31, %c0_32] : memref<4x4x256x256xbf16, #tpu.memory_space<vmem>>, vector<1x1x256x256xbf16>
    %26 = vector.shape_cast %25 : vector<1x1x256x256xbf16> to vector<256x256xbf16>
    %cst_33 = arith.constant dense<0.000000e+00> : vector<64x256xf32>
    %27 = tpu.matmul %24, %26, %cst_33 {dimension_numbers = #tpu.dot_dimension_numbers<[1], [0], [0], [1], [0, 0, 1, 1], [], []>} : vector<64x256xbf16>, vector<256x256xbf16>, vector<64x256xf32> -> vector<64x256xf32>
    %28 = arith.addf %22, %27 : vector<64x256xf32>
    %c0_34 = arith.constant 0 : index
    %c8_35 = arith.constant 8 : index
    %c0_36 = arith.constant 0 : index
    %29 = vector.load %arg2[%c0_34, %c8_35, %c0_36] : memref<1x88x256xbf16, #tpu.memory_space<vmem>>, vector<1x64x256xbf16>
    %30 = vector.shape_cast %29 : vector<1x64x256xbf16> to vector<64x256xbf16>
    %c1_37 = arith.constant 1 : index
    %c1_38 = arith.constant 1 : index
    %c0_39 = arith.constant 0 : index
    %c0_40 = arith.constant 0 : index
    %31 = vector.load %arg5[%c1_37, %c1_38, %c0_39, %c0_40] : memref<4x4x256x256xbf16, #tpu.memory_space<vmem>>, vector<1x1x256x256xbf16>
    %32 = vector.shape_cast %31 : vector<1x1x256x256xbf16> to vector<256x256xbf16>
    %cst_41 = arith.constant dense<0.000000e+00> : vector<64x256xf32>
    %33 = tpu.matmul %30, %32, %cst_41 {dimension_numbers = #tpu.dot_dimension_numbers<[1], [0], [0], [1], [0, 0, 1, 1], [], []>} : vector<64x256xbf16>, vector<256x256xbf16>, vector<64x256xf32> -> vector<64x256xf32>
    %34 = arith.addf %28, %33 : vector<64x256xf32>
    %c0_42 = arith.constant 0 : index
    %c8_43 = arith.constant 8 : index
    %c0_44 = arith.constant 0 : index
    %35 = vector.load %arg3[%c0_42, %c8_43, %c0_44] : memref<1x88x256xbf16, #tpu.memory_space<vmem>>, vector<1x64x256xbf16>
    %36 = vector.shape_cast %35 : vector<1x64x256xbf16> to vector<64x256xbf16>
    %c1_45 = arith.constant 1 : index
    %c2_46 = arith.constant 2 : index
    %c0_47 = arith.constant 0 : index
    %c0_48 = arith.constant 0 : index
    %37 = vector.load %arg5[%c1_45, %c2_46, %c0_47, %c0_48] : memref<4x4x256x256xbf16, #tpu.memory_space<vmem>>, vector<1x1x256x256xbf16>
    %38 = vector.shape_cast %37 : vector<1x1x256x256xbf16> to vector<256x256xbf16>
    %cst_49 = arith.constant dense<0.000000e+00> : vector<64x256xf32>
    %39 = tpu.matmul %36, %38, %cst_49 {dimension_numbers = #tpu.dot_dimension_numbers<[1], [0], [0], [1], [0, 0, 1, 1], [], []>} : vector<64x256xbf16>, vector<256x256xbf16>, vector<64x256xf32> -> vector<64x256xf32>
    %40 = arith.addf %34, %39 : vector<64x256xf32>
    %c0_50 = arith.constant 0 : index
    %c8_51 = arith.constant 8 : index
    %c0_52 = arith.constant 0 : index
    %41 = vector.load %arg4[%c0_50, %c8_51, %c0_52] : memref<1x88x256xbf16, #tpu.memory_space<vmem>>, vector<1x64x256xbf16>
    %42 = vector.shape_cast %41 : vector<1x64x256xbf16> to vector<64x256xbf16>
    %c1_53 = arith.constant 1 : index
    %c3_54 = arith.constant 3 : index
    %c0_55 = arith.constant 0 : index
    %c0_56 = arith.constant 0 : index
    %43 = vector.load %arg5[%c1_53, %c3_54, %c0_55, %c0_56] : memref<4x4x256x256xbf16, #tpu.memory_space<vmem>>, vector<1x1x256x256xbf16>
    %44 = vector.shape_cast %43 : vector<1x1x256x256xbf16> to vector<256x256xbf16>
    %cst_57 = arith.constant dense<0.000000e+00> : vector<64x256xf32>
    %45 = tpu.matmul %42, %44, %cst_57 {dimension_numbers = #tpu.dot_dimension_numbers<[1], [0], [0], [1], [0, 0, 1, 1], [], []>} : vector<64x256xbf16>, vector<256x256xbf16>, vector<64x256xf32> -> vector<64x256xf32>
    %46 = arith.addf %40, %45 : vector<64x256xf32>
    %c0_58 = arith.constant 0 : index
    %c16 = arith.constant 16 : index
    %c0_59 = arith.constant 0 : index
    %47 = vector.load %arg1[%c0_58, %c16, %c0_59] : memref<1x88x256xbf16, #tpu.memory_space<vmem>>, vector<1x64x256xbf16>
    %48 = vector.shape_cast %47 : vector<1x64x256xbf16> to vector<64x256xbf16>
    %c2_60 = arith.constant 2 : index
    %c0_61 = arith.constant 0 : index
    %c0_62 = arith.constant 0 : index
    %c0_63 = arith.constant 0 : index
    %49 = vector.load %arg5[%c2_60, %c0_61, %c0_62, %c0_63] : memref<4x4x256x256xbf16, #tpu.memory_space<vmem>>, vector<1x1x256x256xbf16>
    %50 = vector.shape_cast %49 : vector<1x1x256x256xbf16> to vector<256x256xbf16>
    %cst_64 = arith.constant dense<0.000000e+00> : vector<64x256xf32>
    %51 = tpu.matmul %48, %50, %cst_64 {dimension_numbers = #tpu.dot_dimension_numbers<[1], [0], [0], [1], [0, 0, 1, 1], [], []>} : vector<64x256xbf16>, vector<256x256xbf16>, vector<64x256xf32> -> vector<64x256xf32>
    %52 = arith.addf %46, %51 : vector<64x256xf32>
    %c0_65 = arith.constant 0 : index
    %c16_66 = arith.constant 16 : index
    %c0_67 = arith.constant 0 : index
    %53 = vector.load %arg2[%c0_65, %c16_66, %c0_67] : memref<1x88x256xbf16, #tpu.memory_space<vmem>>, vector<1x64x256xbf16>
    %54 = vector.shape_cast %53 : vector<1x64x256xbf16> to vector<64x256xbf16>
    %c2_68 = arith.constant 2 : index
    %c1_69 = arith.constant 1 : index
    %c0_70 = arith.constant 0 : index
    %c0_71 = arith.constant 0 : index
    %55 = vector.load %arg5[%c2_68, %c1_69, %c0_70, %c0_71] : memref<4x4x256x256xbf16, #tpu.memory_space<vmem>>, vector<1x1x256x256xbf16>
    %56 = vector.shape_cast %55 : vector<1x1x256x256xbf16> to vector<256x256xbf16>
    %cst_72 = arith.constant dense<0.000000e+00> : vector<64x256xf32>
    %57 = tpu.matmul %54, %56, %cst_72 {dimension_numbers = #tpu.dot_dimension_numbers<[1], [0], [0], [1], [0, 0, 1, 1], [], []>} : vector<64x256xbf16>, vector<256x256xbf16>, vector<64x256xf32> -> vector<64x256xf32>
    %58 = arith.addf %52, %57 : vector<64x256xf32>
    %c0_73 = arith.constant 0 : index
    %c16_74 = arith.constant 16 : index
    %c0_75 = arith.constant 0 : index
    %59 = vector.load %arg3[%c0_73, %c16_74, %c0_75] : memref<1x88x256xbf16, #tpu.memory_space<vmem>>, vector<1x64x256xbf16>
    %60 = vector.shape_cast %59 : vector<1x64x256xbf16> to vector<64x256xbf16>
    %c2_76 = arith.constant 2 : index
    %c2_77 = arith.constant 2 : index
    %c0_78 = arith.constant 0 : index
    %c0_79 = arith.constant 0 : index
    %61 = vector.load %arg5[%c2_76, %c2_77, %c0_78, %c0_79] : memref<4x4x256x256xbf16, #tpu.memory_space<vmem>>, vector<1x1x256x256xbf16>
    %62 = vector.shape_cast %61 : vector<1x1x256x256xbf16> to vector<256x256xbf16>
    %cst_80 = arith.constant dense<0.000000e+00> : vector<64x256xf32>
    %63 = tpu.matmul %60, %62, %cst_80 {dimension_numbers = #tpu.dot_dimension_numbers<[1], [0], [0], [1], [0, 0, 1, 1], [], []>} : vector<64x256xbf16>, vector<256x256xbf16>, vector<64x256xf32> -> vector<64x256xf32>
    %64 = arith.addf %58, %63 : vector<64x256xf32>
    %c0_81 = arith.constant 0 : index
    %c16_82 = arith.constant 16 : index
    %c0_83 = arith.constant 0 : index
    %65 = vector.load %arg4[%c0_81, %c16_82, %c0_83] : memref<1x88x256xbf16, #tpu.memory_space<vmem>>, vector<1x64x256xbf16>
    %66 = vector.shape_cast %65 : vector<1x64x256xbf16> to vector<64x256xbf16>
    %c2_84 = arith.constant 2 : index
    %c3_85 = arith.constant 3 : index
    %c0_86 = arith.constant 0 : index
    %c0_87 = arith.constant 0 : index
    %67 = vector.load %arg5[%c2_84, %c3_85, %c0_86, %c0_87] : memref<4x4x256x256xbf16, #tpu.memory_space<vmem>>, vector<1x1x256x256xbf16>
    %68 = vector.shape_cast %67 : vector<1x1x256x256xbf16> to vector<256x256xbf16>
    %cst_88 = arith.constant dense<0.000000e+00> : vector<64x256xf32>
    %69 = tpu.matmul %66, %68, %cst_88 {dimension_numbers = #tpu.dot_dimension_numbers<[1], [0], [0], [1], [0, 0, 1, 1], [], []>} : vector<64x256xbf16>, vector<256x256xbf16>, vector<64x256xf32> -> vector<64x256xf32>
    %70 = arith.addf %64, %69 : vector<64x256xf32>
    %c0_89 = arith.constant 0 : index
    %c24 = arith.constant 24 : index
    %c0_90 = arith.constant 0 : index
    %71 = vector.load %arg1[%c0_89, %c24, %c0_90] : memref<1x88x256xbf16, #tpu.memory_space<vmem>>, vector<1x64x256xbf16>
    %72 = vector.shape_cast %71 : vector<1x64x256xbf16> to vector<64x256xbf16>
    %c3_91 = arith.constant 3 : index
    %c0_92 = arith.constant 0 : index
    %c0_93 = arith.constant 0 : index
    %c0_94 = arith.constant 0 : index
    %73 = vector.load %arg5[%c3_91, %c0_92, %c0_93, %c0_94] : memref<4x4x256x256xbf16, #tpu.memory_space<vmem>>, vector<1x1x256x256xbf16>
    %74 = vector.shape_cast %73 : vector<1x1x256x256xbf16> to vector<256x256xbf16>
    %cst_95 = arith.constant dense<0.000000e+00> : vector<64x256xf32>
    %75 = tpu.matmul %72, %74, %cst_95 {dimension_numbers = #tpu.dot_dimension_numbers<[1], [0], [0], [1], [0, 0, 1, 1], [], []>} : vector<64x256xbf16>, vector<256x256xbf16>, vector<64x256xf32> -> vector<64x256xf32>
    %76 = arith.addf %70, %75 : vector<64x256xf32>
    %c0_96 = arith.constant 0 : index
    %c24_97 = arith.constant 24 : index
    %c0_98 = arith.constant 0 : index
    %77 = vector.load %arg2[%c0_96, %c24_97, %c0_98] : memref<1x88x256xbf16, #tpu.memory_space<vmem>>, vector<1x64x256xbf16>
    %78 = vector.shape_cast %77 : vector<1x64x256xbf16> to vector<64x256xbf16>
    %c3_99 = arith.constant 3 : index
    %c1_100 = arith.constant 1 : index
    %c0_101 = arith.constant 0 : index
    %c0_102 = arith.constant 0 : index
    %79 = vector.load %arg5[%c3_99, %c1_100, %c0_101, %c0_102] : memref<4x4x256x256xbf16, #tpu.memory_space<vmem>>, vector<1x1x256x256xbf16>
    %80 = vector.shape_cast %79 : vector<1x1x256x256xbf16> to vector<256x256xbf16>
    %cst_103 = arith.constant dense<0.000000e+00> : vector<64x256xf32>
    %81 = tpu.matmul %78, %80, %cst_103 {dimension_numbers = #tpu.dot_dimension_numbers<[1], [0], [0], [1], [0, 0, 1, 1], [], []>} : vector<64x256xbf16>, vector<256x256xbf16>, vector<64x256xf32> -> vector<64x256xf32>
    %82 = arith.addf %76, %81 : vector<64x256xf32>
    %c0_104 = arith.constant 0 : index
    %c24_105 = arith.constant 24 : index
    %c0_106 = arith.constant 0 : index
    %83 = vector.load %arg3[%c0_104, %c24_105, %c0_106] : memref<1x88x256xbf16, #tpu.memory_space<vmem>>, vector<1x64x256xbf16>
    %84 = vector.shape_cast %83 : vector<1x64x256xbf16> to vector<64x256xbf16>
    %c3_107 = arith.constant 3 : index
    %c2_108 = arith.constant 2 : index
    %c0_109 = arith.constant 0 : index
    %c0_110 = arith.constant 0 : index
    %85 = vector.load %arg5[%c3_107, %c2_108, %c0_109, %c0_110] : memref<4x4x256x256xbf16, #tpu.memory_space<vmem>>, vector<1x1x256x256xbf16>
    %86 = vector.shape_cast %85 : vector<1x1x256x256xbf16> to vector<256x256xbf16>
    %cst_111 = arith.constant dense<0.000000e+00> : vector<64x256xf32>
    %87 = tpu.matmul %84, %86, %cst_111 {dimension_numbers = #tpu.dot_dimension_numbers<[1], [0], [0], [1], [0, 0, 1, 1], [], []>} : vector<64x256xbf16>, vector<256x256xbf16>, vector<64x256xf32> -> vector<64x256xf32>
    %88 = arith.addf %82, %87 : vector<64x256xf32>
    %c0_112 = arith.constant 0 : index
    %c24_113 = arith.constant 24 : index
    %c0_114 = arith.constant 0 : index
    %89 = vector.load %arg4[%c0_112, %c24_113, %c0_114] : memref<1x88x256xbf16, #tpu.memory_space<vmem>>, vector<1x64x256xbf16>
    %90 = vector.shape_cast %89 : vector<1x64x256xbf16> to vector<64x256xbf16>
    %c3_115 = arith.constant 3 : index
    %c3_116 = arith.constant 3 : index
    %c0_117 = arith.constant 0 : index
    %c0_118 = arith.constant 0 : index
    %91 = vector.load %arg5[%c3_115, %c3_116, %c0_117, %c0_118] : memref<4x4x256x256xbf16, #tpu.memory_space<vmem>>, vector<1x1x256x256xbf16>
    %92 = vector.shape_cast %91 : vector<1x1x256x256xbf16> to vector<256x256xbf16>
    %cst_119 = arith.constant dense<0.000000e+00> : vector<64x256xf32>
    %93 = tpu.matmul %90, %92, %cst_119 {dimension_numbers = #tpu.dot_dimension_numbers<[1], [0], [0], [1], [0, 0, 1, 1], [], []>} : vector<64x256xbf16>, vector<256x256xbf16>, vector<64x256xf32> -> vector<64x256xf32>
    %94 = arith.addf %88, %93 : vector<64x256xf32>
    %c0_120 = arith.constant 0 : index
    %c0_121 = arith.constant 0 : index
    %95 = vector.load %arg6[%c0_120, %c0_121] : memref<1x256xf32, #tpu.memory_space<vmem>>, vector<1x256xf32>
    %96 = vector.broadcast %95 : vector<1x256xf32> to vector<64x256xf32>
    %97 = arith.addf %94, %96 : vector<64x256xf32>
    %98 = vector.extract_strided_slice %97 {offsets = [0, 0], sizes = [32, 256], strides = [1, 1]} : vector<64x256xf32> to vector<32x256xf32>
    %cst_122 = arith.constant dense<0xFF800000> : vector<256xf32>
    %99 = vector.multi_reduction <maximumf>, %98, %cst_122 [0] : vector<32x256xf32> to vector<256xf32>
    %100 = vector.shape_cast %99 : vector<256xf32> to vector<1x256xf32>
    %cst_123 = arith.constant 0.000000e+00 : f32
    %101 = vector.broadcast %cst_123 : f32 to vector<1x256xf32>
    %102 = arith.cmpf oge, %100, %101 : vector<1x256xf32>
    %cst_124 = arith.constant 0.00999999977 : f32
    %103 = vector.broadcast %cst_124 : f32 to vector<1x256xf32>
    %104 = arith.mulf %103, %100 : vector<1x256xf32>
    %105 = arith.select %102, %100, %104 : vector<1x256xi1>, vector<1x256xf32>
    %106 = vector.extract_strided_slice %97 {offsets = [32, 0], sizes = [32, 256], strides = [1, 1]} : vector<64x256xf32> to vector<32x256xf32>
    %cst_125 = arith.constant dense<0xFF800000> : vector<256xf32>
    %107 = vector.multi_reduction <maximumf>, %106, %cst_125 [0] : vector<32x256xf32> to vector<256xf32>
    %108 = vector.shape_cast %107 : vector<256xf32> to vector<1x256xf32>
    %cst_126 = arith.constant 0.000000e+00 : f32
    %109 = vector.broadcast %cst_126 : f32 to vector<1x256xf32>
    %110 = arith.cmpf oge, %108, %109 : vector<1x256xf32>
    %cst_127 = arith.constant 0.00999999977 : f32
    %111 = vector.broadcast %cst_127 : f32 to vector<1x256xf32>
    %112 = arith.mulf %111, %108 : vector<1x256xf32>
    %113 = arith.select %110, %108, %112 : vector<1x256xi1>, vector<1x256xf32>
    %114 = arith.truncf %105 : vector<1x256xf32> to vector<1x256xbf16>
    %c0_128 = arith.constant 0 : index
    %c0_129 = arith.constant 0 : index
    %115 = vector.load %arg7[%c0_128, %c0_129] : memref<256x128xbf16, #tpu.memory_space<vmem>>, vector<256x128xbf16>
    %cst_130 = arith.constant dense<0.000000e+00> : vector<1x128xf32>
    %116 = tpu.matmul %114, %115, %cst_130 {dimension_numbers = #tpu.dot_dimension_numbers<[1], [0], [0], [1], [0, 0, 1, 1], [], []>} : vector<1x256xbf16>, vector<256x128xbf16>, vector<1x128xf32> -> vector<1x128xf32>
    %117 = arith.truncf %113 : vector<1x256xf32> to vector<1x256xbf16>
    %c0_131 = arith.constant 0 : index
    %c0_132 = arith.constant 0 : index
    %118 = vector.load %arg8[%c0_131, %c0_132] : memref<256x128xbf16, #tpu.memory_space<vmem>>, vector<256x128xbf16>
    %cst_133 = arith.constant dense<0.000000e+00> : vector<1x128xf32>
    %119 = tpu.matmul %117, %118, %cst_133 {dimension_numbers = #tpu.dot_dimension_numbers<[1], [0], [0], [1], [0, 0, 1, 1], [], []>} : vector<1x256xbf16>, vector<256x128xbf16>, vector<1x128xf32> -> vector<1x128xf32>
    %120 = arith.addf %116, %119 : vector<1x128xf32>
    %c0_134 = arith.constant 0 : index
    %c0_135 = arith.constant 0 : index
    %121 = vector.load %arg9[%c0_134, %c0_135] : memref<1x128xf32, #tpu.memory_space<vmem>>, vector<1x128xf32>
    %122 = arith.addf %120, %121 : vector<1x128xf32>
    %cst_136 = arith.constant 0.000000e+00 : f32
    %123 = vector.broadcast %cst_136 : f32 to vector<1x128xf32>
    %124 = arith.cmpf oge, %122, %123 : vector<1x128xf32>
    %cst_137 = arith.constant 0.00999999977 : f32
    %125 = vector.broadcast %cst_137 : f32 to vector<1x128xf32>
    %126 = arith.mulf %125, %122 : vector<1x128xf32>
    %127 = arith.select %124, %122, %126 : vector<1x128xi1>, vector<1x128xf32>
    %128 = arith.truncf %127 : vector<1x128xf32> to vector<1x128xbf16>
    %c0_138 = arith.constant 0 : index
    %c0_139 = arith.constant 0 : index
    %129 = vector.load %arg10[%c0_138, %c0_139] : memref<128x10xbf16, #tpu.memory_space<vmem>>, vector<128x10xbf16>
    %cst_140 = arith.constant dense<0.000000e+00> : vector<1x10xf32>
    %130 = tpu.matmul %128, %129, %cst_140 {dimension_numbers = #tpu.dot_dimension_numbers<[1], [0], [0], [1], [0, 0, 1, 1], [], []>} : vector<1x128xbf16>, vector<128x10xbf16>, vector<1x10xf32> -> vector<1x10xf32>
    %c0_141 = arith.constant 0 : index
    %c0_142 = arith.constant 0 : index
    %131 = vector.load %arg11[%c0_141, %c0_142] : memref<1x10xf32, #tpu.memory_space<vmem>>, vector<1x10xf32>
    %132 = arith.addf %130, %131 : vector<1x10xf32>
    %cst_143 = arith.constant dense<0xFF800000> : vector<1xf32>
    %133 = vector.multi_reduction <maximumf>, %132, %cst_143 [1] : vector<1x10xf32> to vector<1xf32>
    %134 = vector.shape_cast %133 : vector<1xf32> to vector<1x1xf32>
    %135 = vector.broadcast %134 : vector<1x1xf32> to vector<1x10xf32>
    %136 = arith.subf %132, %135 : vector<1x10xf32>
    %137 = math.exp %136 : vector<1x10xf32>
    %cst_144 = arith.constant dense<0.000000e+00> : vector<1xf32>
    %138 = vector.multi_reduction <add>, %137, %cst_144 [1] : vector<1x10xf32> to vector<1xf32>
    %139 = vector.shape_cast %138 : vector<1xf32> to vector<1x1xf32>
    %140 = math.log %139 : vector<1x1xf32>
    %141 = vector.broadcast %140 : vector<1x1xf32> to vector<1x10xf32>
    %142 = arith.subf %136, %141 : vector<1x10xf32>
    %c0_145 = arith.constant 0 : index
    %c0_146 = arith.constant 0 : index
    %c0_147 = arith.constant 0 : index
    %143 = vector.load %arg12[%c0_145, %c0_146, %c0_147] : memref<1x1x10xf32, #tpu.memory_space<vmem>>, vector<1x1x10xf32>
    %144 = vector.shape_cast %143 : vector<1x1x10xf32> to vector<1x10xf32>
    %145 = vector.shape_cast %142 : vector<1x10xf32> to vector<1x1x10xf32>
    tpu.vector_store %arg12[%c0_145, %c0_146, %c0_147], %145 {strides = array<i32>} : memref<1x1x10xf32, #tpu.memory_space<vmem>>, vector<1x1x10xf32>,
    return
  }
  func.func @transform_0(%arg0: i32) -> (i32, i32, i32) {
    %c0_i32 = arith.constant 0 : i32
    %c0_i32_0 = arith.constant 0 : i32
    %c0_i32_1 = arith.constant 0 : i32
    return %arg0, %c0_i32, %c0_i32_0 : i32, i32, i32
  }
  func.func @transform_1(%arg0: i32) -> (i32, i32, i32) {
    %c0_i32 = arith.constant 0 : i32
    %c0_i32_0 = arith.constant 0 : i32
    %c0_i32_1 = arith.constant 0 : i32
    return %arg0, %c0_i32, %c0_i32_0 : i32, i32, i32
  }
  func.func @transform_2(%arg0: i32) -> (i32, i32, i32) {
    %c0_i32 = arith.constant 0 : i32
    %c0_i32_0 = arith.constant 0 : i32
    %c0_i32_1 = arith.constant 0 : i32
    return %arg0, %c0_i32, %c0_i32_0 : i32, i32, i32
  }
  func.func @transform_3(%arg0: i32) -> (i32, i32, i32) {
    %c0_i32 = arith.constant 0 : i32
    %c0_i32_0 = arith.constant 0 : i32
    %c0_i32_1 = arith.constant 0 : i32
    return %arg0, %c0_i32, %c0_i32_0 : i32, i32, i32
  }
  func.func @transform_4(%arg0: i32) -> (i32, i32, i32, i32) {
    %c0_i32 = arith.constant 0 : i32
    %c0_i32_0 = arith.constant 0 : i32
    %c0_i32_1 = arith.constant 0 : i32
    %c0_i32_2 = arith.constant 0 : i32
    %c0_i32_3 = arith.constant 0 : i32
    return %c0_i32, %c0_i32_0, %c0_i32_1, %c0_i32_2 : i32, i32, i32, i32
  }
  func.func @transform_5(%arg0: i32) -> (i32, i32) {
    %c0_i32 = arith.constant 0 : i32
    %c0_i32_0 = arith.constant 0 : i32
    %c0_i32_1 = arith.constant 0 : i32
    return %c0_i32, %c0_i32_0 : i32, i32
  }
  func.func @transform_6(%arg0: i32) -> (i32, i32) {
    %c0_i32 = arith.constant 0 : i32
    %c0_i32_0 = arith.constant 0 : i32
    %c0_i32_1 = arith.constant 0 : i32
    return %c0_i32, %c0_i32_0 : i32, i32
  }
  func.func @transform_7(%arg0: i32) -> (i32, i32) {
    %c0_i32 = arith.constant 0 : i32
    %c0_i32_0 = arith.constant 0 : i32
    %c0_i32_1 = arith.constant 0 : i32
    return %c0_i32, %c0_i32_0 : i32, i32
  }
  func.func @transform_8(%arg0: i32) -> (i32, i32) {
    %c0_i32 = arith.constant 0 : i32
    %c0_i32_0 = arith.constant 0 : i32
    %c0_i32_1 = arith.constant 0 : i32
    return %c0_i32, %c0_i32_0 : i32, i32
  }
  func.func @transform_9(%arg0: i32) -> (i32, i32) {
    %c0_i32 = arith.constant 0 : i32
    %c0_i32_0 = arith.constant 0 : i32
    %c0_i32_1 = arith.constant 0 : i32
    return %c0_i32, %c0_i32_0 : i32, i32
  }
  func.func @transform_10(%arg0: i32) -> (i32, i32) {
    %c0_i32 = arith.constant 0 : i32
    %c0_i32_0 = arith.constant 0 : i32
    %c0_i32_1 = arith.constant 0 : i32
    return %c0_i32, %c0_i32_0 : i32, i32
  }
  func.func @transform_11(%arg0: i32) -> (i32, i32, i32) {
    %c0_i32 = arith.constant 0 : i32
    %c0_i32_0 = arith.constant 0 : i32
    %c0_i32_1 = arith.constant 0 : i32
    return %arg0, %c0_i32, %c0_i32_0 : i32, i32, i32
  }
}

</mosaic_0001>

<bundles_post_ra>
// kernel: _lambda_.2
= control target key start
LH: loop header
LB: loop body
LE: loop exit
PB: predicated region body
PF: predicated region fallthrough
CT: control target
= control target key end

     0   :  { %s7156_s12 = smov 0   ;;  %s11228_s0 = inlined_call_operand.vmem [shape: bf16[2,16,198,48], index: 0, kind: input, shape index: {}]   ;;  %s11229_s1 = inlined_call_operand.vmem [shape: bf16[48,256], index: 1, kind: input, shape index: {}]   ;;  %s11230_s2 = inlined_call_operand.vmem [shape: f32[1,256], index: 2, kind: input, shape index: {}]   ;;  %s11231_s3 = inlined_call_operand.vmem [shape: bf16[2,198,256], index: 3, kind: output, shape index: {}]  }
   0x1 LB: > { %s6026_s13 = sadd.s32 4294967295, %s7133_s12   ;;  %p6030_p0 = scmp.ge.s32.totalorder %s7133_s12, 1  ;;  %s7133_s12 = sphi %s7156_s12, %s13_s12  }
   0x2   : > { %p137_p1 = scmp.lt.s32.totalorder %s7133_s12, 3 }
   0x4   : > { %p138_p2 = pnand %p6030_p0, %p137_p1 }
   0x6   : > { %141 = sbr.rel (%p138_p2) target bundleno = 1056 (0x420), region = 32 }
   0xb   : > { %v7167_v0 = vld [vmem:[%s11229_s1 + $0x24] ss:$8 sps:$4 sm:$0xff]   ;;  %p161_p3 = scmp.lt.s32.totalorder %s6026_s13, 1  ;;  %v7172_v1 = vld [vmem:[%s11229_s1 + $0x20] ss:$8 sps:$4 sm:$0xff]   ;;  %v11234_v2 = vmov 0  }
   0xc   : > { %368 = vmatprep.mubr.bf16.mxu0 %v11234_v2  ;;  %657 = vmatprep.mubr.bf16.mxu1 %v11234_v2  ;;  %v7181_v3 = vld [vmem:[%s11229_s1 + $0x14] ss:$8 sps:$4 sm:$0xff]   ;;  %v7190_v4 = vld [vmem:[%s11229_s1 + $0x10] ss:$8 sps:$4 sm:$0xff]   ;;  %v7197_v5 = vld [vmem:[%s11229_s1 + $0x4] ss:$8 sps:$4 sm:$0xff]  }
   0xd   : > { %346 = vmatprep.subr.bf16.mxu0 %v7167_v0  ;;  %635 = vmatprep.subr.bf16.mxu1 %v7167_v0  ;;  %s12702_s13 = smov (!%p161_p3, %s6026_s13), 1  ;;  %v7210_v6 = vld [vmem:[%s11229_s1] ss:$8 sps:$4 sm:$0xff]   ;;  %vm296_vm0 = vcmask 392192  }
   0xe   : > { %347 = vmatpush1.bf16.msra.mxu0 %v7172_v1  ;;  %636 = vmatpush1.bf16.msra.mxu1 %v7172_v1  ;;  %s6882_s24 = smul.u32 1600, %s12702_s13 }
   0xf   : > { %348 = vmatprep.subr.bf16.mxu0 %v7181_v3  ;;  %637 = vmatprep.subr.bf16.mxu1 %v7181_v3  ;;  %s6883_s16 = smul.u32 200, %s12702_s13 }
  0x10   : > { %s7203_s27 = scalar_lea.vmem %s11228_s0, %s6882_s24 }
  0x11   : > { %v6902_v7 = vld [vmem:[%s7203_s27] sm:$0xff]   ;;  %v6904_v9 = vld [vmem:[%s7203_s27 + $0x8] sm:$0xff]   ;;  %v6906_v11 = vld [vmem:[%s7203_s27 + $0x10] sm:$0xff]   ;;  %s11016_s18 = scalar_lea.vmem %s11231_s3, %s6883_s16 }
  0x12   : > { %349 = vmatpush1.bf16.msra.mxu0 %v7190_v4  ;;  %638 = vmatpush1.bf16.msra.mxu1 %v7190_v4  ;;  %v6903_v8 = vld [vmem:[%s7203_s27 + $0x64] sm:$0xff]   ;;  %v6905_v10 = vld [vmem:[%s7203_s27 + $0x6c] sm:$0xff]   ;;  %v6907_v12 = vld [vmem:[%s7203_s27 + $0x74] sm:$0xff]  }
  0x13   : > { %350 = vmatprep.subr.bf16.mxu0 %v7197_v5  ;;  %639 = vmatprep.subr.bf16.mxu1 %v7197_v5  ;;  %v6908_v13 = vld [vmem:[%s7203_s27 + $0x18] sm:$0xff]   ;;  %v6910_v15 = vld [vmem:[%s7203_s27 + $0x20] sm:$0xff]   ;;  %v6912_v17 = vld [vmem:[%s7203_s27 + $0x28] sm:$0xff]  }
  0x14   : > { %v6909_v14 = vld [vmem:[%s7203_s27 + $0x7c] sm:$0xff]   ;;  %v6911_v16 = vld [vmem:[%s7203_s27 + $0x84] sm:$0xff]   ;;  %v6913_v18 = vld [vmem:[%s7203_s27 + $0x8c] sm:$0xff]  }
  0x15   : > { %v6914_v19 = vld [vmem:[%s7203_s27 + $0x30] sm:$0xff]   ;;  %v6916_v21 = vld [vmem:[%s7203_s27 + $0x38] sm:$0xff]   ;;  %v6918_v23 = vld [vmem:[%s7203_s27 + $0x40] sm:$0xff]  }
  0x16   : > { %351 = vmatpush1.bf16.msra.mxu0 %v7210_v6  ;;  %640 = vmatpush1.bf16.msra.mxu1 %v7210_v6  ;;  %v6915_v20 = vld [vmem:[%s7203_s27 + $0x94] sm:$0xff]   ;;  %v6917_v22 = vld [vmem:[%s7203_s27 + $0x9c] sm:$0xff]   ;;  %v6919_v24 = vld [vmem:[%s7203_s27 + $0xa4] sm:$0xff]  }
  0x17   : > { %974 = vmatprep.subr.bf16.mxu0 %v7167_v0  ;;  %1313 = vmatprep.subr.bf16.mxu1 %v7167_v0  ;;  %v6920_v25 = vld [vmem:[%s7203_s27 + $0x48] sm:$0xff]   ;;  %v6922_v27 = vld [vmem:[%s7203_s27 + $0x50] sm:$0xff]   ;;  %v6924_v29 = vld [vmem:[%s7203_s27 + $0x58] sm:$0xff]  }
  0x18   : > { %v6921_v26 = vld [vmem:[%s7203_s27 + $0xac] sm:$0xff]   ;;  %v6923_v28 = vld [vmem:[%s7203_s27 + $0xb4] sm:$0xff]   ;;  %v6925_v30 = vld [vmem:[%s7203_s27 + $0xbc] sm:$0xff]  }
  0x19   : > { %6052 = vmatmul.mubr.msk.bf16.vlgmr.msra.gmra.mxu0 %vm296_vm0, %v6902_v7  ;;  %6103 = vmatmul.mubr.msk.bf16.vlgmr.msra.gmra.mxu1 %vm296_vm0, %v6903_v8  ;;  %v6926_v31 = vld [vmem:[%s7203_s27 + $0x60] ss:$0 sps:$4 sm:$0x77]   ;;  %v6927_v32 = vld [vmem:[%s7203_s27 + $0xc4] ss:$0 sps:$4 sm:$0x77]  }
  0x1a   : > { %975 = vmatpush1.bf16.msra.mxu0 %v7172_v1  ;;  %1314 = vmatpush1.bf16.msra.mxu1 %v7172_v1  ;;  %v6928_v33 = vld [vmem:[%s7203_s27 + $0xc8] sm:$0xff]   ;;  %v6930_v35 = vld [vmem:[%s7203_s27 + $0xd0] sm:$0xff]   ;;  %v6932_v37 = vld [vmem:[%s7203_s27 + $0xd8] sm:$0xff]  }
  0x1b   : > { %378 = vmatprep.mubr.bf16.mxu0 %v11234_v2  ;;  %667 = vmatprep.mubr.bf16.mxu1 %v11234_v2  ;;  %v6929_v34 = vld [vmem:[%s7203_s27 + $0x12c] sm:$0xff]   ;;  %v6931_v36 = vld [vmem:[%s7203_s27 + $0x134] sm:$0xff]   ;;  %v6933_v38 = vld [vmem:[%s7203_s27 + $0x13c] sm:$0xff]  }
  0x1c   : > { %976 = vmatprep.subr.bf16.mxu0 %v7181_v3  ;;  %1315 = vmatprep.subr.bf16.mxu1 %v7181_v3  ;;  %v6934_v39 = vld [vmem:[%s7203_s27 + $0xe0] sm:$0xff]   ;;  %v6936_v41 = vld [vmem:[%s7203_s27 + $0xe8] sm:$0xff]   ;;  %v6938_v43 = vld [vmem:[%s7203_s27 + $0xf0] sm:$0xff]  }
  0x1d   : > { %v6935_v40 = vld [vmem:[%s7203_s27 + $0x144] sm:$0xff]   ;;  %v6937_v42 = vld [vmem:[%s7203_s27 + $0x14c] sm:$0xff]   ;;  %v6939_v44 = vld [vmem:[%s7203_s27 + $0x154] sm:$0xff]  }
  0x1e   : > { %977 = vmatpush1.bf16.msra.mxu0 %v7190_v4  ;;  %1316 = vmatpush1.bf16.msra.mxu1 %v7190_v4  ;;  %v6940_v45 = vld [vmem:[%s7203_s27 + $0xf8] sm:$0xff]   ;;  %v6942_v47 = vld [vmem:[%s7203_s27 + $0x100] sm:$0xff]   ;;  %v6944_v49 = vld [vmem:[%s7203_s27 + $0x108] sm:$0xff]  }
  0x1f   : > { %978 = vmatprep.subr.bf16.mxu0 %v7197_v5  ;;  %1317 = vmatprep.subr.bf16.mxu1 %v7197_v5  ;;  %v6941_v46 = vld [vmem:[%s7203_s27 + $0x15c] sm:$0xff]   ;;  %v6943_v48 = vld [vmem:[%s7203_s27 + $0x164] sm:$0xff]   ;;  %v6945_v50 = vld [vmem:[%s7203_s27 + $0x16c] sm:$0xff]  }
  0x20   : > { %v6946_v51 = vld [vmem:[%s7203_s27 + $0x110] sm:$0xff]   ;;  %v6948_v53 = vld [vmem:[%s7203_s27 + $0x118] sm:$0xff]   ;;  %v6950_v55 = vld [vmem:[%s7203_s27 + $0x120] sm:$0xff]  }
  0x21   : > { %6053 = vmatmul.mubr.msk.bf16.gmra.mxu0 %vm296_vm0, %v6904_v9  ;;  %6104 = vmatmul.mubr.msk.bf16.gmra.mxu1 %vm296_vm0, %v6905_v10  ;;  %v6947_v52 = vld [vmem:[%s7203_s27 + $0x174] sm:$0xff]   ;;  %v6949_v54 = vld [vmem:[%s7203_s27 + $0x17c] sm:$0xff]   ;;  %v6951_v56 = vld [vmem:[%s7203_s27 + $0x184] sm:$0xff]  }
  0x22   : > { %388 = vmatprep.mubr.bf16.mxu0 %v11234_v2  ;;  %677 = vmatprep.mubr.bf16.mxu1 %v11234_v2 }
  0x23   : > { %979 = vmatpush1.bf16.msra.mxu0 %v7210_v6  ;;  %1318 = vmatpush1.bf16.msra.mxu1 %v7210_v6 }
  0x24   : > { %1652 = vmatprep.subr.bf16.mxu0 %v7167_v0  ;;  %1991 = vmatprep.subr.bf16.mxu1 %v7167_v0 }
  0x29   : > { %6054 = vmatmul.mubr.msk.bf16.gmra.mxu0 %vm296_vm0, %v6906_v11  ;;  %6105 = vmatmul.mubr.msk.bf16.gmra.mxu1 %vm296_vm0, %v6907_v12 }
  0x2a   : > { %398 = vmatprep.mubr.bf16.mxu0 %v11234_v2  ;;  %687 = vmatprep.mubr.bf16.mxu1 %v11234_v2 }
  0x31   : > { %6055 = vmatmul.mubr.msk.bf16.gmra.mxu0 %vm296_vm0, %v6908_v13  ;;  %6106 = vmatmul.mubr.msk.bf16.gmra.mxu1 %vm296_vm0, %v6909_v14 }
  0x32   : > { %408 = vmatprep.mubr.bf16.mxu0 %v11234_v2  ;;  %697 = vmatprep.mubr.bf16.mxu1 %v11234_v2 }
  0x39   : > { %6056 = vmatmul.mubr.msk.bf16.gmra.mxu0 %vm296_vm0, %v6910_v15  ;;  %6107 = vmatmul.mubr.msk.bf16.gmra.mxu1 %vm296_vm0, %v6911_v16  ;;  %v6954_v16 = vld [vmem:[%s7203_s27 + $0x190] sm:$0xff]  }
  0x3a   : > { %418 = vmatprep.mubr.bf16.mxu0 %v11234_v2  ;;  %707 = vmatprep.mubr.bf16.mxu1 %v11234_v2 }
  0x41   : > { %6057 = vmatmul.mubr.msk.bf16.gmra.mxu0 %vm296_vm0, %v6912_v17  ;;  %6108 = vmatmul.mubr.msk.bf16.gmra.mxu1 %vm296_vm0, %v6913_v18  ;;  %v6955_v17 = vld [vmem:[%s7203_s27 + $0x1f4] sm:$0xff]  }
  0x42   : > { %428 = vmatprep.mubr.bf16.mxu0 %v11234_v2  ;;  %717 = vmatprep.mubr.bf16.mxu1 %v11234_v2 }
  0x49   : > { %6058 = vmatmul.mubr.msk.bf16.gmra.mxu0 %vm296_vm0, %v6914_v19  ;;  %6109 = vmatmul.mubr.msk.bf16.gmra.mxu1 %vm296_vm0, %v6915_v20 }
  0x4a   : > { %438 = vmatprep.mubr.bf16.mxu0 %v11234_v2  ;;  %727 = vmatprep.mubr.bf16.mxu1 %v11234_v2 }
  0x51   : > { %6059 = vmatmul.mubr.msk.bf16.gmra.mxu0 %vm296_vm0, %v6916_v21  ;;  %6110 = vmatmul.mubr.msk.bf16.gmra.mxu1 %vm296_vm0, %v6917_v22 }
  0x52   : > { %448 = vmatprep.mubr.bf16.mxu0 %v11234_v2  ;;  %737 = vmatprep.mubr.bf16.mxu1 %v11234_v2 }
  0x59   : > { %6060 = vmatmul.mubr.msk.bf16.gmra.mxu0 %vm296_vm0, %v6918_v23  ;;  %6111 = vmatmul.mubr.msk.bf16.gmra.mxu1 %vm296_vm0, %v6919_v24 }
  0x5a   : > { %458 = vmatprep.mubr.bf16.mxu0 %v11234_v2  ;;  %747 = vmatprep.mubr.bf16.mxu1 %v11234_v2 }
  0x61   : > { %6061 = vmatmul.mubr.msk.bf16.gmra.mxu0 %vm296_vm0, %v6920_v25  ;;  %6112 = vmatmul.mubr.msk.bf16.gmra.mxu1 %vm296_vm0, %v6921_v26  ;;  %v7459_v25 = vld [vmem:[%s11229_s1 + $0x20] ss:$8 sps:$4 sm:$0xff]  }
  0x62   : > { %468 = vmatprep.mubr.bf16.mxu0 %v11234_v2  ;;  %757 = vmatprep.mubr.bf16.mxu1 %v11234_v2 }
  0x69   : > { %6062 = vmatmul.mubr.msk.bf16.gmra.mxu0 %vm296_vm0, %v6922_v27  ;;  %6113 = vmatmul.mubr.msk.bf16.gmra.mxu1 %vm296_vm0, %v6923_v28 }
  0x6a   : > { %478 = vmatprep.mubr.bf16.mxu0 %v11234_v2  ;;  %767 = vmatprep.mubr.bf16.mxu1 %v11234_v2 }
  0x71   : > { %6063 = vmatmul.mubr.msk.bf16.gmra.mxu0 %vm296_vm0, %v6924_v29  ;;  %6114 = vmatmul.mubr.msk.bf16.gmra.mxu1 %vm296_vm0, %v6925_v30  ;;  %v7474_v29 = vld [vmem:[%s11229_s1 + $0x14] ss:$8 sps:$4 sm:$0xff]  }
  0x72   : > { %488 = vmatprep.mubr.bf16.mxu0 %v11234_v2  ;;  %777 = vmatprep.mubr.bf16.mxu1 %v11234_v2 }
  0x79   : > { %6064 = vmatmul.mubr.msk.bf16.gmra.mxu0 %vm296_vm0, %v6926_v31  ;;  %6115 = vmatmul.mubr.msk.bf16.gmra.mxu1 %vm296_vm0, %v6927_v32  ;;  %v6956_v32 = vld [vmem:[%s7203_s27 + $0x198] sm:$0xff]  }
  0x7a   : > { %996 = vmatprep.mubr.bf16.mxu0 %v11234_v2  ;;  %1335 = vmatprep.mubr.bf16.mxu1 %v11234_v2 }
  0x81   : > { %6154 = vmatmul.mubr.msk.bf16.vlgmr.msra.gmra.mxu0 %vm296_vm0, %v6928_v33  ;;  %6205 = vmatmul.mubr.msk.bf16.vlgmr.msra.gmra.mxu1 %vm296_vm0, %v6929_v34  ;;  %v6957_v33 = vld [vmem:[%s7203_s27 + $0x1fc] sm:$0xff]  }
  0x82   : > { %1653 = vmatpush1.bf16.msra.mxu0 %v7172_v1  ;;  %1992 = vmatpush1.bf16.msra.mxu1 %v7172_v1  ;;  %v6952_v1 = vld [vmem:[%s7203_s27 + $0x128] ss:$0 sps:$4 sm:$0x77]  }
  0x83   : > { %1006 = vmatprep.mubr.bf16.mxu0 %v11234_v2  ;;  %1345 = vmatprep.mubr.bf16.mxu1 %v11234_v2 }
  0x84   : > { %1654 = vmatprep.subr.bf16.mxu0 %v7181_v3  ;;  %1993 = vmatprep.subr.bf16.mxu1 %v7181_v3  ;;  %v6953_v3 = vld [vmem:[%s7203_s27 + $0x18c] ss:$0 sps:$4 sm:$0x77]  }
  0x86   : > { %1655 = vmatpush1.bf16.msra.mxu0 %v7190_v4  ;;  %1994 = vmatpush1.bf16.msra.mxu1 %v7190_v4 }
  0x87   : > { %1656 = vmatprep.subr.bf16.mxu0 %v7197_v5  ;;  %1995 = vmatprep.subr.bf16.mxu1 %v7197_v5 }
  0x89   : > { %6155 = vmatmul.mubr.msk.bf16.gmra.mxu0 %vm296_vm0, %v6930_v35  ;;  %6206 = vmatmul.mubr.msk.bf16.gmra.mxu1 %vm296_vm0, %v6931_v36  ;;  %v7489_v35 = vld [vmem:[%s11229_s1 + $0x10] ss:$8 sps:$4 sm:$0xff]  }
  0x8a   : > { %1016 = vmatprep.mubr.bf16.mxu0 %v11234_v2  ;;  %1355 = vmatprep.mubr.bf16.mxu1 %v11234_v2 }
  0x8b   : > { %1657 = vmatpush1.bf16.msra.mxu0 %v7210_v6  ;;  %1996 = vmatpush1.bf16.msra.mxu1 %v7210_v6 }
  0x8c   : > { %2330 = vmatprep.subr.bf16.mxu0 %v7167_v0  ;;  %2669 = vmatprep.subr.bf16.mxu1 %v7167_v0 }
  0x91   : > { %6156 = vmatmul.mubr.msk.bf16.gmra.mxu0 %vm296_vm0, %v6932_v37  ;;  %6207 = vmatmul.mubr.msk.bf16.gmra.mxu1 %vm296_vm0, %v6933_v38  ;;  %v7500_v38 = vld [vmem:[%s11229_s1 + $0x4] ss:$8 sps:$4 sm:$0xff]  }
  0x92   : > { %1026 = vmatprep.mubr.bf16.mxu0 %v11234_v2  ;;  %1365 = vmatprep.mubr.bf16.mxu1 %v11234_v2 }
  0x99   : > { %6157 = vmatmul.mubr.msk.bf16.gmra.mxu0 %vm296_vm0, %v6934_v39  ;;  %6208 = vmatmul.mubr.msk.bf16.gmra.mxu1 %vm296_vm0, %v6935_v40 }
  0x9a   : > { %1036 = vmatprep.mubr.bf16.mxu0 %v11234_v2  ;;  %1375 = vmatprep.mubr.bf16.mxu1 %v11234_v2 }
  0xa1   : > { %6158 = vmatmul.mubr.msk.bf16.gmra.mxu0 %vm296_vm0, %v6936_v41  ;;  %6209 = vmatmul.mubr.msk.bf16.gmra.mxu1 %vm296_vm0, %v6937_v42 }
  0xa2   : > { %1046 = vmatprep.mubr.bf16.mxu0 %v11234_v2  ;;  %1385 = vmatprep.mubr.bf16.mxu1 %v11234_v2 }
  0xa9   : > { %6159 = vmatmul.mubr.msk.bf16.gmra.mxu0 %vm296_vm0, %v6938_v43  ;;  %6210 = vmatmul.mubr.msk.bf16.gmra.mxu1 %vm296_vm0, %v6939_v44 }
  0xaa   : > { %1056 = vmatprep.mubr.bf16.mxu0 %v11234_v2  ;;  %1395 = vmatprep.mubr.bf16.mxu1 %v11234_v2 }
  0xb1   : > { %6160 = vmatmul.mubr.msk.bf16.gmra.mxu0 %vm296_vm0, %v6940_v45  ;;  %6211 = vmatmul.mubr.msk.bf16.gmra.mxu1 %vm296_vm0, %v6941_v46  ;;  %v7523_v45 = vld [vmem:[%s11229_s1] ss:$8 sps:$4 sm:$0xff]  }
  0xb2   : > { %1066 = vmatprep.mubr.bf16.mxu0 %v11234_v2  ;;  %1405 = vmatprep.mubr.bf16.mxu1 %v11234_v2 }
  0xb9   : > { %6161 = vmatmul.mubr.msk.bf16.gmra.mxu0 %vm296_vm0, %v6942_v47  ;;  %6212 = vmatmul.mubr.msk.bf16.gmra.mxu1 %vm296_vm0, %v6943_v48  ;;  %v7532_v47 = vld [vmem:[%s11229_s1 + $0x24] ss:$8 sps:$4 sm:$0xff]  }
  0xba   : > { %1076 = vmatprep.mubr.bf16.mxu0 %v11234_v2  ;;  %1415 = vmatprep.mubr.bf16.mxu1 %v11234_v2 }
  0xc1   : > { %6162 = vmatmul.mubr.msk.bf16.gmra.mxu0 %vm296_vm0, %v6944_v49  ;;  %6213 = vmatmul.mubr.msk.bf16.gmra.mxu1 %vm296_vm0, %v6945_v50  ;;  %v6958_v50 = vld [vmem:[%s7203_s27 + $0x1a0] sm:$0xff]  }
  0xc2   : > { %1086 = vmatprep.mubr.bf16.mxu0 %v11234_v2  ;;  %1425 = vmatprep.mubr.bf16.mxu1 %v11234_v2 }
  0xc9   : > { %6163 = vmatmul.mubr.msk.bf16.gmra.mxu0 %vm296_vm0, %v6946_v51  ;;  %6214 = vmatmul.mubr.msk.bf16.gmra.mxu1 %vm296_vm0, %v6947_v52  ;;  %v6959_v51 = vld [vmem:[%s7203_s27 + $0x204] sm:$0xff]  }
  0xca   : > { %1096 = vmatprep.mubr.bf16.mxu0 %v11234_v2  ;;  %1435 = vmatprep.mubr.bf16.mxu1 %v11234_v2 }
  0xd1   : > { %6164 = vmatmul.mubr.msk.bf16.gmra.mxu0 %vm296_vm0, %v6948_v53  ;;  %6215 = vmatmul.mubr.msk.bf16.gmra.mxu1 %vm296_vm0, %v6949_v54 }
  0xd2   : > { %1106 = vmatprep.mubr.bf16.mxu0 %v11234_v2  ;;  %1445 = vmatprep.mubr.bf16.mxu1 %v11234_v2 }
  0xd9   : > { %v7388_v57 = vpop.f32.mrf.mxu0  ;;  %v7390_v58 = vpop.f32.mrf.mxu1  ;;  %6165 = vmatmul.mubr.msk.bf16.gmra.mxu0 %vm296_vm0, %v6950_v55  ;;  %6216 = vmatmul.mubr.msk.bf16.gmra.mxu1 %vm296_vm0, %v6951_v56 }
  0xda   : > { %1116 = vmatprep.mubr.bf16.mxu0 %v11234_v2  ;;  %1455 = vmatprep.mubr.bf16.mxu1 %v11234_v2 }
  0xdb   : > { %v7398_v60 = vpop.f32.mrf.mxu0  ;;  %v7400_v61 = vpop.f32.mrf.mxu1 }
  0xdd   : > { %v7404_v63 = vpop.f32.mrf.mxu0  ;;  %v7406_v0 = vpop.f32.mrf.mxu1 }
  0xdf   : > { %v7412_v5 = vpop.f32.mrf.mxu0  ;;  %v7414_v6 = vpop.f32.mrf.mxu1 }
  0xe1   : > { %v7418_v8 = vpop.f32.mrf.mxu0  ;;  %v7420_v9 = vpop.f32.mrf.mxu1  ;;  %6166 = vmatmul.mubr.msk.bf16.gmra.mxu0 %vm296_vm0, %v6952_v1  ;;  %6217 = vmatmul.mubr.msk.bf16.gmra.mxu1 %vm296_vm0, %v6953_v3 }
  0xe2   : > { %1674 = vmatprep.mubr.bf16.mxu0 %v11234_v2  ;;  %2013 = vmatprep.mubr.bf16.mxu1 %v11234_v2 }
  0xe3   : > { %v7428_v11 = vpop.f32.mrf.mxu0  ;;  %v7430_v12 = vpop.f32.mrf.mxu1 }
  0xe5   : > { %v7434_v14 = vpop.f32.mrf.mxu0  ;;  %v7436_v15 = vpop.f32.mrf.mxu1 }
  0xe7   : > { %v7442_v19 = vpop.f32.mrf.mxu0  ;;  %v7444_v20 = vpop.f32.mrf.mxu1 }
  0xe9   : > { %v7448_v22 = vpop.f32.mrf.mxu0  ;;  %v7450_v23 = vpop.f32.mrf.mxu1  ;;  %6256 = vmatmul.mubr.msk.bf16.vlgmr.msra.gmra.mxu0 %vm296_vm0, %v6954_v16  ;;  %6307 = vmatmul.mubr.msk.bf16.vlgmr.msra.gmra.mxu1 %vm296_vm0, %v6955_v17 }
  0xea   : > { %2331 = vmatpush1.bf16.msra.mxu0 %v7459_v25  ;;  %2670 = vmatpush1.bf16.msra.mxu1 %v7459_v25 }
  0xeb   : > { %v7463_v26 = vpop.f32.mrf.mxu0  ;;  %v7465_v27 = vpop.f32.mrf.mxu1  ;;  %1684 = vmatprep.mubr.bf16.mxu0 %v11234_v2  ;;  %2023 = vmatprep.mubr.bf16.mxu1 %v11234_v2 }
  0xec   : > { %2332 = vmatprep.subr.bf16.mxu0 %v7474_v29  ;;  %2671 = vmatprep.subr.bf16.mxu1 %v7474_v29 }
  0xed   : > { %v7478_v30 = vpop.f32.mrf.mxu0  ;;  %v7480_v31 = vpop.f32.mrf.mxu1 }
  0xee   : > { %2333 = vmatpush1.bf16.msra.mxu0 %v7489_v35  ;;  %2672 = vmatpush1.bf16.msra.mxu1 %v7489_v35 }
  0xef   : > { %v7493_v36 = vpop.f32.mrf.mxu0  ;;  %v7495_v37 = vpop.f32.mrf.mxu1  ;;  %2334 = vmatprep.subr.bf16.mxu0 %v7500_v38  ;;  %2673 = vmatprep.subr.bf16.mxu1 %v7500_v38 }
  0xf1   : > { %v7506_v40 = vpop.f32.mrf.mxu0  ;;  %v7508_v41 = vpop.f32.mrf.mxu1  ;;  %6257 = vmatmul.mubr.msk.bf16.gmra.mxu0 %vm296_vm0, %v6956_v32  ;;  %6308 = vmatmul.mubr.msk.bf16.gmra.mxu1 %vm296_vm0, %v6957_v33 }
  0xf2   : > { %1694 = vmatprep.mubr.bf16.mxu0 %v11234_v2  ;;  %2033 = vmatprep.mubr.bf16.mxu1 %v11234_v2 }
  0xf3   : > { %v7516_v43 = vpop.f32.mrf.mxu0  ;;  %v7518_v44 = vpop.f32.mrf.mxu1  ;;  %2335 = vmatpush1.bf16.msra.mxu0 %v7523_v45  ;;  %2674 = vmatpush1.bf16.msra.mxu1 %v7523_v45 }
  0xf4   : > { %3008 = vmatprep.subr.bf16.mxu0 %v7532_v47  ;;  %3347 = vmatprep.subr.bf16.mxu1 %v7532_v47 }
  0xf5   : > { %v7536_v48 = vpop.f32.mrf.mxu0  ;;  %v7538_v49 = vpop.f32.mrf.mxu1 }
  0xf7   : > { %v7544_v53 = vpop.f32.mrf.mxu0  ;;  %v7546_v54 = vpop.f32.mrf.mxu1 }
  0xf9   : > { %v7550_v56 = vpop.f32.mrf.mxu0  ;;  %v7552_v1 = vpop.f32.mrf.mxu1  ;;  %6258 = vmatmul.mubr.msk.bf16.gmra.mxu0 %vm296_vm0, %v6958_v50  ;;  %6309 = vmatmul.mubr.msk.bf16.gmra.mxu1 %vm296_vm0, %v6959_v51  ;;  %v6960_v50 = vld [vmem:[%s7203_s27 + $0x1a8] sm:$0xff]  }
  0xfa   : > { %1704 = vmatprep.mubr.bf16.mxu0 %v11234_v2  ;;  %2043 = vmatprep.mubr.bf16.mxu1 %v11234_v2  ;;  %v6961_v51 = vld [vmem:[%s7203_s27 + $0x20c] sm:$0xff]  }
  0xfb   : > { %v7560_v16 = vpop.f32.mrf.mxu0  ;;  %v7562_v17 = vpop.f32.mrf.mxu1 }
  0xfd   : > { %v7566_v33 = vpop.f32.mrf.mxu0  ;;  %v7568_v55 = vpop.f32.mrf.mxu1 }
  0xff   : > { %v7574_v52 = vpop.f32.mrf.mxu0  ;;  %v7576_v46 = vpop.f32.mrf.mxu1 }
 0x101   : > { %v7580_v39 = vpop.f32.mrf.mxu0  ;;  %v7582_v32 = vpop.f32.mrf.mxu1  ;;  %6259 = vmatmul.mubr.msk.bf16.gmra.mxu0 %vm296_vm0, %v6960_v50  ;;  %6310 = vmatmul.mubr.msk.bf16.gmra.mxu1 %vm296_vm0, %v6961_v51  ;;  %v6962_v50 = vld [vmem:[%s7203_s27 + $0x1b0] sm:$0xff]  }
 0x102   : > { %1714 = vmatprep.mubr.bf16.mxu0 %v11234_v2  ;;  %2053 = vmatprep.mubr.bf16.mxu1 %v11234_v2  ;;  %v6963_v51 = vld [vmem:[%s7203_s27 + $0x214] sm:$0xff]  }
 0x103   : > { %v7590_v34 = vpop.f32.mrf.mxu0  ;;  %v7592_v28 = vpop.f32.mrf.mxu1 }
 0x105   : > { %v7596_v24 = vpop.f32.mrf.mxu0  ;;  %v7598_v21 = vpop.f32.mrf.mxu1 }
 0x106   : > { %11608 = vst [vmem:[#allocation2_spill] sm:$0xff] %v7596_v24  ;;  %11609 = vst [vmem:[#allocation3_spill] sm:$0xff] %v7598_v21 }
 0x107   : > { %v7604_v18 = vpop.f32.mrf.mxu0  ;;  %v7606_v13 = vpop.f32.mrf.mxu1 }
 0x108   : > { %11610 = vst [vmem:[#allocation4_spill] sm:$0xff] %v7604_v18  ;;  %11611 = vst [vmem:[#allocation5_spill] sm:$0xff] %v7606_v13 }
 0x109   : > { %v7610_v7 = vpop.f32.mrf.mxu0  ;;  %v7612_v42 = vpop.f32.mrf.mxu1  ;;  %6260 = vmatmul.mubr.msk.bf16.gmra.mxu0 %vm296_vm0, %v6962_v50  ;;  %6311 = vmatmul.mubr.msk.bf16.gmra.mxu1 %vm296_vm0, %v6963_v51  ;;  %v6964_v50 = vld [vmem:[%s7203_s27 + $0x1b8] sm:$0xff]  }
 0x10a   : > { %11612 = vst [vmem:[#allocation6_spill] sm:$0xff] %v7610_v7  ;;  %11613 = vst [vmem:[#allocation7_spill] sm:$0xff] %v7612_v42  ;;  %1724 = vmatprep.mubr.bf16.mxu0 %v11234_v2  ;;  %2063 = vmatprep.mubr.bf16.mxu1 %v11234_v2  ;;  %v6965_v51 = vld [vmem:[%s7203_s27 + $0x21c] sm:$0xff]  }
 0x10b   : > { %v7620_v4 = vpop.f32.mrf.mxu0  ;;  %v7622_v62 = vpop.f32.mrf.mxu1 }
 0x10c   : > { %11614 = vst [vmem:[#allocation8_spill] sm:$0xff] %v7620_v4  ;;  %11615 = vst [vmem:[#allocation9_spill] sm:$0xff] %v7622_v62 }
 0x10d   : > { %v7626_v59 = vpop.f32.mrf.mxu0  ;;  %v7628_v13 = vpop.f32.mrf.mxu1 }
 0x10e   : > { %11616 = vst [vmem:[#allocation10_spill] sm:$0xff] %v7626_v59  ;;  %11617 = vst [vmem:[#allocation11_spill] sm:$0xff] %v7628_v13  ;;  %v11622_v13 = vmov 0  }
 0x10f   : > { %v7634_v42 = vpop.f32.mrf.mxu0  ;;  %v7636_v2 = vpop.f32.mrf.mxu1 }
 0x110   : > { %11618 = vst [vmem:[#allocation12_spill] sm:$0xff] %v7634_v42  ;;  %11619 = vst [vmem:[#allocation13_spill] sm:$0xff] %v7636_v2 }
 0x111   : > { %v7640_v18 = vpop.f32.mrf.mxu0  ;;  %v7642_v10 = vpop.f32.mrf.mxu1  ;;  %6261 = vmatmul.mubr.msk.bf16.gmra.mxu0 %vm296_vm0, %v6964_v50  ;;  %6312 = vmatmul.mubr.msk.bf16.gmra.mxu1 %vm296_vm0, %v6965_v51  ;;  %v6966_v50 = vld [vmem:[%s7203_s27 + $0x1c0] sm:$0xff]  }
 0x112   : > { %11620 = vst [vmem:[#allocation14_spill] sm:$0xff] %v7640_v18  ;;  %11621 = vst [vmem:[#allocation15_spill] sm:$0xff] %v7642_v10  ;;  %1734 = vmatprep.mubr.bf16.mxu0 %v11622_v13  ;;  %2073 = vmatprep.mubr.bf16.mxu1 %v11622_v13  ;;  %v6967_v51 = vld [vmem:[%s7203_s27 + $0x224] sm:$0xff]  }
 0x113   : > { %v7650_v59 = vpop.f32.mrf.mxu0  ;;  %v7652_v62 = vpop.f32.mrf.mxu1 }
 0x114   : > { %11623 = vst [vmem:[#allocation16_spill] sm:$0xff] %v7650_v59  ;;  %11624 = vst [vmem:[#allocation17_spill] sm:$0xff] %v7652_v62 }
 0x115   : > { %v7656_v2 = vpop.f32.mrf.mxu0  ;;  %v7658_v42 = vpop.f32.mrf.mxu1 }
 0x116   : > { %11625 = vst [vmem:[#allocation18_spill] sm:$0xff] %v7656_v2  ;;  %11626 = vst [vmem:[#allocation19_spill] sm:$0xff] %v7658_v42 }
 0x117   : > { %v7664_v10 = vpop.f32.mrf.mxu0  ;;  %v7666_v18 = vpop.f32.mrf.mxu1 }
 0x118   : > { %11627 = vst [vmem:[#allocation20_spill] sm:$0xff] %v7664_v10  ;;  %11628 = vst [vmem:[#allocation21_spill] sm:$0xff] %v7666_v18 }
 0x119   : > { %v7670_v21 = vpop.f32.mrf.mxu0  ;;  %v7672_v7 = vpop.f32.mrf.mxu1  ;;  %6262 = vmatmul.mubr.msk.bf16.gmra.mxu0 %vm296_vm0, %v6966_v50  ;;  %6313 = vmatmul.mubr.msk.bf16.gmra.mxu1 %vm296_vm0, %v6967_v51  ;;  %v6968_v50 = vld [vmem:[%s7203_s27 + $0x1c8] sm:$0xff]  }
 0x11a   : > { %11629 = vst [vmem:[#allocation22_spill] sm:$0xff] %v7670_v21  ;;  %11630 = vst [vmem:[#allocation23_spill] sm:$0xff] %v7672_v7  ;;  %1744 = vmatprep.mubr.bf16.mxu0 %v11622_v13  ;;  %2083 = vmatprep.mubr.bf16.mxu1 %v11622_v13  ;;  %v6969_v51 = vld [vmem:[%s7203_s27 + $0x22c] sm:$0xff]  }
 0x11b   : > { %v7680_v42 = vpop.f32.mrf.mxu0  ;;  %v7682_v2 = vpop.f32.mrf.mxu1 }
 0x11c   : > { %11631 = vst [vmem:[#allocation24_spill] sm:$0xff] %v7680_v42  ;;  %11632 = vst [vmem:[#allocation25_spill] sm:$0xff] %v7682_v2 }
 0x11d   : > { %v7686_v18 = vpop.f32.mrf.mxu0  ;;  %v7688_v10 = vpop.f32.mrf.mxu1 }
 0x11e   : > { %11633 = vst [vmem:[#allocation26_spill] sm:$0xff] %v7686_v18  ;;  %11634 = vst [vmem:[#allocation27_spill] sm:$0xff] %v7688_v10 }
 0x11f   : > { %v7694_v7 = vpop.f32.mrf.mxu0  ;;  %v7696_v21 = vpop.f32.mrf.mxu1 }
 0x120   : > { %11635 = vst [vmem:[#allocation28_spill] sm:$0xff] %v7694_v7  ;;  %11636 = vst [vmem:[#allocation29_spill] sm:$0xff] %v7696_v21 }
 0x121   : > { %v7700_v59 = vpop.f32.mrf.mxu0  ;;  %v7702_v4 = vpop.f32.mrf.mxu1  ;;  %6263 = vmatmul.mubr.msk.bf16.gmra.mxu0 %vm296_vm0, %v6968_v50  ;;  %6314 = vmatmul.mubr.msk.bf16.gmra.mxu1 %vm296_vm0, %v6969_v51  ;;  %v6970_v50 = vld [vmem:[%s7203_s27 + $0x1d0] sm:$0xff]  }
 0x122   : > { %11637 = vst [vmem:[#allocation30_spill] sm:$0xff] %v7700_v59  ;;  %11638 = vst [vmem:[#allocation31_spill] sm:$0xff] %v7702_v4  ;;  %1754 = vmatprep.mubr.bf16.mxu0 %v11622_v13  ;;  %2093 = vmatprep.mubr.bf16.mxu1 %v11622_v13  ;;  %v6971_v51 = vld [vmem:[%s7203_s27 + $0x234] sm:$0xff]  }
 0x123   : > { %v7710_v10 = vpop.f32.mrf.mxu0  ;;  %v7712_v18 = vpop.f32.mrf.mxu1 }
 0x124   : > { %11639 = vst [vmem:[#allocation32_spill] sm:$0xff] %v7710_v10  ;;  %11640 = vst [vmem:[#allocation33_spill] sm:$0xff] %v7712_v18 }
 0x125   : > { %v7716_v21 = vpop.f32.mrf.mxu0  ;;  %v7718_v7 = vpop.f32.mrf.mxu1 }
 0x126   : > { %11641 = vst [vmem:[#allocation34_spill] sm:$0xff] %v7716_v21  ;;  %11642 = vst [vmem:[#allocation35_spill] sm:$0xff] %v7718_v7 }
 0x127   : > { %v7724_v4 = vpop.f32.mrf.mxu0  ;;  %v7726_v59 = vpop.f32.mrf.mxu1 }
 0x128   : > { %11643 = vst [vmem:[#allocation36_spill] sm:$0xff] %v7724_v4  ;;  %11644 = vst [vmem:[#allocation37_spill] sm:$0xff] %v7726_v59 }
 0x129   : > { %v7730_v42 = vpop.f32.mrf.mxu0  ;;  %v7732_v62 = vpop.f32.mrf.mxu1  ;;  %6264 = vmatmul.mubr.msk.bf16.gmra.mxu0 %vm296_vm0, %v6970_v50  ;;  %6315 = vmatmul.mubr.msk.bf16.gmra.mxu1 %vm296_vm0, %v6971_v51  ;;  %v6972_v50 = vld [vmem:[%s7203_s27 + $0x1d8] sm:$0xff]  }
 0x12a   : > { %11645 = vst [vmem:[#allocation38_spill] sm:$0xff] %v7730_v42  ;;  %11646 = vst [vmem:[#allocation39_spill] sm:$0xff] %v7732_v62  ;;  %1764 = vmatprep.mubr.bf16.mxu0 %v11622_v13  ;;  %2103 = vmatprep.mubr.bf16.mxu1 %v11622_v13  ;;  %v6973_v51 = vld [vmem:[%s7203_s27 + $0x23c] sm:$0xff]  }
 0x12b   : > { %v7740_v7 = vpop.f32.mrf.mxu0  ;;  %v7742_v21 = vpop.f32.mrf.mxu1 }
 0x12c   : > { %11647 = vst [vmem:[#allocation40_spill] sm:$0xff] %v7740_v7  ;;  %11648 = vst [vmem:[#allocation41_spill] sm:$0xff] %v7742_v21 }
 0x12d   : > { %v7746_v59 = vpop.f32.mrf.mxu0  ;;  %v7748_v4 = vpop.f32.mrf.mxu1 }
 0x12e   : > { %11649 = vst [vmem:[#allocation42_spill] sm:$0xff] %v7746_v59  ;;  %11650 = vst [vmem:[#allocation43_spill] sm:$0xff] %v7748_v4 }
 0x12f   : > { %v7754_v62 = vpop.f32.mrf.mxu0  ;;  %v7756_v42 = vpop.f32.mrf.mxu1 }
 0x130   : > { %11651 = vst [vmem:[#allocation44_spill] sm:$0xff] %v7754_v62  ;;  %11652 = vst [vmem:[#allocation45_spill] sm:$0xff] %v7756_v42 }
 0x131   : > { %v7760_v10 = vpop.f32.mrf.mxu0  ;;  %v7762_v2 = vpop.f32.mrf.mxu1  ;;  %6265 = vmatmul.mubr.msk.bf16.gmra.mxu0 %vm296_vm0, %v6972_v50  ;;  %6316 = vmatmul.mubr.msk.bf16.gmra.mxu1 %vm296_vm0, %v6973_v51  ;;  %v6974_v50 = vld [vmem:[%s7203_s27 + $0x1e0] sm:$0xff]  }
 0x132   : > { %11653 = vst [vmem:[#allocation46_spill] sm:$0xff] %v7760_v10  ;;  %11654 = vst [vmem:[#allocation47_spill] sm:$0xff] %v7762_v2  ;;  %1774 = vmatprep.mubr.bf16.mxu0 %v11622_v13  ;;  %2113 = vmatprep.mubr.bf16.mxu1 %v11622_v13  ;;  %v6975_v51 = vld [vmem:[%s7203_s27 + $0x244] sm:$0xff]  }
 0x133   : > { %v7770_v4 = vpop.f32.mrf.mxu0  ;;  %v7772_v59 = vpop.f32.mrf.mxu1 }
 0x134   : > { %11655 = vst [vmem:[#allocation48_spill] sm:$0xff] %v7770_v4  ;;  %11656 = vst [vmem:[#allocation49_spill] sm:$0xff] %v7772_v59  ;;  %v6976_v59 = vld [vmem:[%s7203_s27 + $0x1e8] sm:$0xff]  }
 0x135   : > { %v7776_v42 = vpop.f32.mrf.mxu0  ;;  %v7778_v62 = vpop.f32.mrf.mxu1 }
 0x136   : > { %11657 = vst [vmem:[#allocation50_spill] sm:$0xff] %v7776_v42  ;;  %11658 = vst [vmem:[#allocation51_spill] sm:$0xff] %v7778_v62 }
 0x137   : > { %v7784_v2 = vpop.f32.mrf.mxu0  ;;  %v7786_v10 = vpop.f32.mrf.mxu1 }
 0x138   : > { %11659 = vst [vmem:[#allocation52_spill] sm:$0xff] %v7784_v2  ;;  %11660 = vst [vmem:[#allocation53_spill] sm:$0xff] %v7786_v10 }
 0x139   : > { %v7790_v7 = vpop.f32.mrf.mxu0  ;;  %v7792_v18 = vpop.f32.mrf.mxu1  ;;  %6266 = vmatmul.mubr.msk.bf16.gmra.mxu0 %vm296_vm0, %v6974_v50  ;;  %6317 = vmatmul.mubr.msk.bf16.gmra.mxu1 %vm296_vm0, %v6975_v51  ;;  %v6977_v50 = vld [vmem:[%s7203_s27 + $0x24c] sm:$0xff]  }
 0x13a   : > { %11661 = vst [vmem:[#allocation54_spill] sm:$0xff] %v7790_v7  ;;  %11662 = vst [vmem:[#allocation55_spill] sm:$0xff] %v7792_v18  ;;  %1784 = vmatprep.mubr.bf16.mxu0 %v11622_v13  ;;  %2123 = vmatprep.mubr.bf16.mxu1 %v11622_v13  ;;  %v11665_v7 = vmax.f32 %v7388_v57, %v7390_v58  ;;  %v6978_v57 = vld [vmem:[%s7203_s27 + $0x1f0] ss:$0 sps:$4 sm:$0x77]  }
 0x13b   : > { %v7800_v62 = vpop.f32.mrf.mxu0  ;;  %v7802_v42 = vpop.f32.mrf.mxu1  ;;  %v6979_v58 = vld [vmem:[%s7203_s27 + $0x254] ss:$0 sps:$4 sm:$0x77]  }
 0x13c   : > { %11663 = vst [vmem:[#allocation56_spill] sm:$0xff] %v7800_v62  ;;  %11664 = vst [vmem:[#allocation57_spill] sm:$0xff] %v7802_v42 }
 0x13d   : > { %v494_v10 = vpop.f32.mrf.mxu0  ;;  %v783_v2 = vpop.f32.mrf.mxu1 }
 0x13f   : > { %v495_v51 = vpop.f32.mrf.mxu0  ;;  %v784_v4 = vpop.f32.mrf.mxu1 }
 0x141   : > { %v998_v3 = vpop.f32.mrf.mxu0  ;;  %v7808_v18 = vpop.f32.mrf.mxu1  ;;  %6267 = vmatmul.mubr.msk.bf16.gmra.mxu0 %vm296_vm0, %v6976_v59  ;;  %6318 = vmatmul.mubr.msk.bf16.gmra.mxu1 %vm296_vm0, %v6977_v50  ;;  %v11666_v59 = vmax.f32 %v7398_v60, %v7400_v61  ;;  %v11668_v61 = vmax.f32 %v7412_v5, %v7414_v6 }
 0x142   : > { %v7815_v24 = vmax.f32 %v11665_v7, %v998_v3  ;;  %1794 = vmatprep.mubr.bf16.mxu0 %v11622_v13  ;;  %2133 = vmatprep.mubr.bf16.mxu1 %v11622_v13  ;;  %v11667_v3 = vmax.f32 %v7404_v63, %v7406_v0  ;;  %v11670_v0 = vmax.f32 %v7418_v8, %v7420_v9  ;;  %v6980_v8 = vld [vmem:[%s7203_s27 + $0x258] sm:$0xff]  }
 0x143   : > { %v1000_v2 = vpop.f32.mrf.mxu0  ;;  %v7819_v10 = vpop.f32.mrf.mxu1  ;;  %v6981_v9 = vld [vmem:[%s7203_s27 + $0x2bc] sm:$0xff]  }
 0x144   : > { %v7826_v51 = vmax.f32 %v11666_v59, %v1000_v2 }
 0x145   : > { %v1002_v50 = vpop.f32.mrf.mxu0  ;;  %v7828_v21 = vpop.f32.mrf.mxu1 }
 0x146   : > { %v7837_v42 = vmax.f32 %v11667_v3, %v1002_v50 }
 0x147   : > { %v1004_v62 = vpop.f32.mrf.mxu0  ;;  %v7839_v4 = vpop.f32.mrf.mxu1 }
 0x148   : > { %v7846_v2 = vmax.f32 %v11668_v61, %v1004_v62 }
 0x149   : > { %v1008_v59 = vpop.f32.mrf.mxu0  ;;  %v7848_v7 = vpop.f32.mrf.mxu1  ;;  %6268 = vmatmul.mubr.msk.bf16.gmra.mxu0 %vm296_vm0, %v6978_v57  ;;  %6319 = vmatmul.mubr.msk.bf16.gmra.mxu1 %vm296_vm0, %v6979_v58  ;;  %v11671_v57 = vmax.f32 %v7428_v11, %v7430_v12  ;;  %v11673_v12 = vmax.f32 %v7442_v19, %v7444_v20 }
 0x14a   : > { %11669 = vst [vmem:[#allocation58_spill] sm:$0xff] %v7848_v7  ;;  %v7857_v50 = vmax.f32 %v11670_v0, %v1008_v59  ;;  %2352 = vmatprep.mubr.bf16.mxu0 %v11622_v13  ;;  %2691 = vmatprep.mubr.bf16.mxu1 %v11622_v13  ;;  %v11672_v0 = vmax.f32 %v7434_v14, %v7436_v15  ;;  %v11709_v59 = vld [vmem:[#allocation11_spill] sm:$0xff] }
 0x14b   : > { %v1010_v62 = vpop.f32.mrf.mxu0  ;;  %v7861_v5 = vpop.f32.mrf.mxu1  ;;  %v11674_v15 = vmax.f32 %v7448_v22, %v7450_v23 }
 0x14c   : > { %v7868_v58 = vmax.f32 %v11671_v57, %v1010_v62 }
 0x14d   : > { %v1012_v3 = vpop.f32.mrf.mxu0  ;;  %v7870_v61 = vpop.f32.mrf.mxu1 }
 0x14e   : > { %v7879_v63 = vmax.f32 %v11672_v0, %v1012_v3  ;;  %v6983_v0 = vld [vmem:[%s7203_s27 + $0x2c4] sm:$0xff]  }
 0x14f   : > { %v1014_v60 = vpop.f32.mrf.mxu0  ;;  %v7881_v6 = vpop.f32.mrf.mxu1 }
 0x150   : > { %v7888_v62 = vmax.f32 %v11673_v12, %v1014_v60 }
 0x151   : > { %v1018_v57 = vpop.f32.mrf.mxu0  ;;  %v7890_v7 = vpop.f32.mrf.mxu1  ;;  %6358 = vmatmul.mubr.msk.bf16.vlgmr.msra.gmra.mxu0 %vm296_vm0, %v6980_v8  ;;  %6409 = vmatmul.mubr.msk.bf16.vlgmr.msra.gmra.mxu1 %vm296_vm0, %v6981_v9  ;;  %v11675_v8 = vmax.f32 %v7463_v26, %v7465_v27  ;;  %v6982_v9 = vld [vmem:[%s7203_s27 + $0x260] sm:$0xff]  }
 0x152   : > { %v7899_v3 = vmax.f32 %v11674_v15, %v1018_v57  ;;  %3009 = vmatpush1.bf16.msra.mxu0 %v7459_v25  ;;  %3348 = vmatpush1.bf16.msra.mxu1 %v7459_v25  ;;  %v11676_v57 = vmax.f32 %v7478_v30, %v7480_v31 }
 0x153   : > { %v1020_v19 = vpop.f32.mrf.mxu0  ;;  %v7903_v20 = vpop.f32.mrf.mxu1  ;;  %2362 = vmatprep.mubr.bf16.mxu0 %v11622_v13  ;;  %2701 = vmatprep.mubr.bf16.mxu1 %v11622_v13 }
 0x154   : > { %v7912_v22 = vmax.f32 %v11675_v8, %v1020_v19  ;;  %3010 = vmatprep.subr.bf16.mxu0 %v7474_v29  ;;  %3349 = vmatprep.subr.bf16.mxu1 %v7474_v29  ;;  %v11677_v19 = vmax.f32 %v7493_v36, %v7495_v37 }
 0x155   : > { %v1022_v23 = vpop.f32.mrf.mxu0  ;;  %v7916_v25 = vpop.f32.mrf.mxu1 }
 0x156   : > { %v7925_v15 = vmax.f32 %v11676_v57, %v1022_v23  ;;  %3011 = vmatpush1.bf16.msra.mxu0 %v7489_v35  ;;  %3350 = vmatpush1.bf16.msra.mxu1 %v7489_v35 }
 0x157   : > { %v1024_v26 = vpop.f32.mrf.mxu0  ;;  %v7929_v27 = vpop.f32.mrf.mxu1  ;;  %3012 = vmatprep.subr.bf16.mxu0 %v7500_v38  ;;  %3351 = vmatprep.subr.bf16.mxu1 %v7500_v38  ;;  %v11678_v38 = vmax.f32 %v7506_v40, %v7508_v41 }
 0x158   : > { %v7938_v30 = vmax.f32 %v11677_v19, %v1024_v26  ;;  %v6984_v26 = vld [vmem:[%s7203_s27 + $0x268] sm:$0xff]  }
 0x159   : > { %v1028_v31 = vpop.f32.mrf.mxu0  ;;  %v7940_v8 = vpop.f32.mrf.mxu1  ;;  %6359 = vmatmul.mubr.msk.bf16.gmra.mxu0 %vm296_vm0, %v6982_v9  ;;  %6410 = vmatmul.mubr.msk.bf16.gmra.mxu1 %vm296_vm0, %v6983_v0  ;;  %v11679_v0 = vmax.f32 %v7516_v43, %v7518_v44  ;;  %v6985_v19 = vld [vmem:[%s7203_s27 + $0x2cc] sm:$0xff]  }
 0x15a   : > { %v7949_v23 = vmax.f32 %v11678_v38, %v1028_v31  ;;  %2372 = vmatprep.mubr.bf16.mxu0 %v11622_v13  ;;  %2711 = vmatprep.mubr.bf16.mxu1 %v11622_v13  ;;  %v11680_v31 = vmax.f32 %v7536_v48, %v7538_v49  ;;  %v11682_v49 = vmax.f32 %v7550_v56, %v7552_v1  ;;  %v6986_v56 = vld [vmem:[%s7203_s27 + $0x270] sm:$0xff]  }
 0x15b   : > { %v1030_v36 = vpop.f32.mrf.mxu0  ;;  %v7953_v37 = vpop.f32.mrf.mxu1  ;;  %3013 = vmatpush1.bf16.msra.mxu0 %v7523_v45  ;;  %3352 = vmatpush1.bf16.msra.mxu1 %v7523_v45  ;;  %v6987_v1 = vld [vmem:[%s7203_s27 + $0x2d4] sm:$0xff]  }
 0x15c   : > { %v7962_v40 = vmax.f32 %v11679_v0, %v1030_v36  ;;  %3686 = vmatprep.subr.bf16.mxu0 %v7532_v47  ;;  %4025 = vmatprep.subr.bf16.mxu1 %v7532_v47  ;;  %v11681_v47 = vmax.f32 %v7544_v53, %v7546_v54 }
 0x15d   : > { %v1032_v41 = vpop.f32.mrf.mxu0  ;;  %v7966_v57 = vpop.f32.mrf.mxu1 }
 0x15e   : > { %v7975_v38 = vmax.f32 %v11680_v31, %v1032_v41 }
 0x15f   : > { %v1034_v43 = vpop.f32.mrf.mxu0  ;;  %v7977_v44 = vpop.f32.mrf.mxu1 }
 0x160   : > { %v7984_v0 = vmax.f32 %v11681_v47, %v1034_v43 }
 0x161   : > { %v1038_v9 = vpop.f32.mrf.mxu0  ;;  %v7986_v45 = vpop.f32.mrf.mxu1  ;;  %6360 = vmatmul.mubr.msk.bf16.gmra.mxu0 %vm296_vm0, %v6984_v26  ;;  %6411 = vmatmul.mubr.msk.bf16.gmra.mxu1 %vm296_vm0, %v6985_v19  ;;  %v11683_v19 = vmax.f32 %v7560_v16, %v7562_v17  ;;  %v11685_v17 = vmax.f32 %v7574_v52, %v7576_v46 }
 0x162   : > { %v7995_v41 = vmax.f32 %v11682_v49, %v1038_v9  ;;  %2382 = vmatprep.mubr.bf16.mxu0 %v11622_v13  ;;  %2721 = vmatprep.mubr.bf16.mxu1 %v11622_v13  ;;  %v11684_v49 = vmax.f32 %v7566_v33, %v7568_v55  ;;  %v11686_v33 = vmax.f32 %v7580_v39, %v7582_v32  ;;  %v6988_v39 = vld [vmem:[%s7203_s27 + $0x278] sm:$0xff]   ;;  %v11690_v55 = vld [vmem:[#allocation3_spill] sm:$0xff] }
 0x163   : > { %v1040_v53 = vpop.f32.mrf.mxu0  ;;  %v7999_v54 = vpop.f32.mrf.mxu1  ;;  %v6989_v32 = vld [vmem:[%s7203_s27 + $0x2dc] sm:$0xff]  }
 0x164   : > { %v8006_v31 = vmax.f32 %v11683_v19, %v1040_v53 }
 0x165   : > { %v1042_v43 = vpop.f32.mrf.mxu0  ;;  %v8008_v47 = vpop.f32.mrf.mxu1 }
 0x166   : > { %v8017_v48 = vmax.f32 %v11684_v49, %v1042_v43 }
 0x167   : > { %v1044_v36 = vpop.f32.mrf.mxu0  ;;  %v8019_v26 = vpop.f32.mrf.mxu1 }
 0x168   : > { %v8026_v53 = vmax.f32 %v11685_v17, %v1044_v36 }
 0x169   : > { %v1048_v19 = vpop.f32.mrf.mxu0  ;;  %v8028_v9 = vpop.f32.mrf.mxu1  ;;  %6361 = vmatmul.mubr.msk.bf16.gmra.mxu0 %vm296_vm0, %v6986_v56  ;;  %6412 = vmatmul.mubr.msk.bf16.gmra.mxu1 %vm296_vm0, %v6987_v1  ;;  %v11687_v56 = vmax.f32 %v7590_v34, %v7592_v28  ;;  %v11693_v34 = vld [vmem:[#allocation4_spill] sm:$0xff] }
 0x16a   : > { %v8037_v43 = vmax.f32 %v11686_v33, %v1048_v19  ;;  %2392 = vmatprep.mubr.bf16.mxu0 %v11622_v13  ;;  %2731 = vmatprep.mubr.bf16.mxu1 %v11622_v13  ;;  %v11689_v33 = vld [vmem:[#allocation2_spill] sm:$0xff] }
 0x16b   : > { %v1050_v46 = vpop.f32.mrf.mxu0  ;;  %v8041_v52 = vpop.f32.mrf.mxu1  ;;  %v11691_v16 = vmax.f32 %v11689_v33, %v11690_v55  ;;  %v11698_v55 = vld [vmem:[#allocation6_spill] sm:$0xff] }
 0x16c   : > { %v8048_v1 = vmax.f32 %v11687_v56, %v1050_v46  ;;  %v11694_v46 = vld [vmem:[#allocation5_spill] sm:$0xff] }
 0x16d   : > { %v1052_v49 = vpop.f32.mrf.mxu0  ;;  %v8050_v17 = vpop.f32.mrf.mxu1  ;;  %v11695_v56 = vmax.f32 %v11693_v34, %v11694_v46  ;;  %v11703_v46 = vld [vmem:[#allocation8_spill] sm:$0xff] }
 0x16e   : > { %11688 = vst [vmem:[#allocation59_spill] sm:$0xff] %v8050_v17  ;;  %v8059_v35 = vmax.f32 %v11691_v16, %v1052_v49  ;;  %v11699_v49 = vld [vmem:[#allocation7_spill] sm:$0xff] }
 0x16f   : > { %v1054_v29 = vpop.f32.mrf.mxu0  ;;  %v8061_v36 = vpop.f32.mrf.mxu1  ;;  %v11700_v33 = vmax.f32 %v11698_v55, %v11699_v49  ;;  %v6991_v55 = vld [vmem:[%s7203_s27 + $0x2e4] sm:$0xff]  }
 0x170   : > { %11692 = vst [vmem:[#allocation2_spill] sm:$0xff] %v8061_v36  ;;  %v8068_v12 = vmax.f32 %v11695_v56, %v1054_v29 }
 0x171   : > { %v1058_v60 = vpop.f32.mrf.mxu0  ;;  %v8070_v19 = vpop.f32.mrf.mxu1  ;;  %6362 = vmatmul.mubr.msk.bf16.gmra.mxu0 %vm296_vm0, %v6988_v39  ;;  %6413 = vmatmul.mubr.msk.bf16.gmra.mxu1 %vm296_vm0, %v6989_v32  ;;  %v11704_v32 = vld [vmem:[#allocation9_spill] sm:$0xff] }
 0x172   : > { %11696 = vst [vmem:[#allocation3_spill] sm:$0xff] %v8068_v12  ;;  %11697 = vst [vmem:[#allocation4_spill] sm:$0xff] %v8070_v19  ;;  %v8079_v28 = vmax.f32 %v11700_v33, %v1058_v60  ;;  %2402 = vmatprep.mubr.bf16.mxu0 %v11622_v13  ;;  %2741 = vmatprep.mubr.bf16.mxu1 %v11622_v13  ;;  %v11705_v56 = vmax.f32 %v11703_v46, %v11704_v32  ;;  %v6990_v60 = vld [vmem:[%s7203_s27 + $0x280] sm:$0xff]   ;;  %v11713_v46 = vld [vmem:[#allocation12_spill] sm:$0xff] }
 0x173   : > { %v1060_v29 = vpop.f32.mrf.mxu0  ;;  %v8083_v34 = vpop.f32.mrf.mxu1  ;;  %v11708_v33 = vld [vmem:[#allocation10_spill] sm:$0xff]  ;;  %v11714_v32 = vld [vmem:[#allocation13_spill] sm:$0xff] }
 0x174   : > { %11701 = vst [vmem:[#allocation5_spill] sm:$0xff] %v8079_v28  ;;  %11702 = vst [vmem:[#allocation6_spill] sm:$0xff] %v8083_v34  ;;  %v8090_v14 = vmax.f32 %v11705_v56, %v1060_v29  ;;  %v11710_v36 = vmax.f32 %v11708_v33, %v11709_v59  ;;  %v11715_v56 = vmax.f32 %v11713_v46, %v11714_v32  ;;  %v11723_v32 = vld [vmem:[#allocation16_spill] sm:$0xff] }
 0x175   : > { %v1062_v16 = vpop.f32.mrf.mxu0  ;;  %v8092_v11 = vpop.f32.mrf.mxu1 }
 0x176   : > { %11706 = vst [vmem:[#allocation7_spill] sm:$0xff] %v8090_v14  ;;  %11707 = vst [vmem:[#allocation8_spill] sm:$0xff] %v8092_v11  ;;  %v8101_v12 = vmax.f32 %v11710_v36, %v1062_v16  ;;  %v11718_v36 = vld [vmem:[#allocation14_spill] sm:$0xff]  ;;  %v11719_v16 = vld [vmem:[#allocation15_spill] sm:$0xff] }
 0x177   : > { %v1064_v17 = vpop.f32.mrf.mxu0  ;;  %v8103_v39 = vpop.f32.mrf.mxu1  ;;  %v11720_v33 = vmax.f32 %v11718_v36, %v11719_v16  ;;  %v6993_v36 = vld [vmem:[%s7203_s27 + $0x2ec] sm:$0xff]  }
 0x178   : > { %11711 = vst [vmem:[#allocation9_spill] sm:$0xff] %v8101_v12  ;;  %11712 = vst [vmem:[#allocation10_spill] sm:$0xff] %v8103_v39  ;;  %v8110_v19 = vmax.f32 %v11715_v56, %v1064_v17 }
 0x179   : > { %v1068_v28 = vpop.f32.mrf.mxu0  ;;  %v8112_v49 = vpop.f32.mrf.mxu1  ;;  %6363 = vmatmul.mubr.msk.bf16.gmra.mxu0 %vm296_vm0, %v6990_v60  ;;  %6414 = vmatmul.mubr.msk.bf16.gmra.mxu1 %vm296_vm0, %v6991_v55  ;;  %v11724_v55 = vld [vmem:[#allocation17_spill] sm:$0xff] }
 0x17a   : > { %11716 = vst [vmem:[#allocation11_spill] sm:$0xff] %v8110_v19  ;;  %11717 = vst [vmem:[#allocation12_spill] sm:$0xff] %v8112_v49  ;;  %v8121_v29 = vmax.f32 %v11720_v33, %v1068_v28  ;;  %2412 = vmatprep.mubr.bf16.mxu0 %v11622_v13  ;;  %2751 = vmatprep.mubr.bf16.mxu1 %v11622_v13  ;;  %v11725_v56 = vmax.f32 %v11723_v32, %v11724_v55  ;;  %v6992_v28 = vld [vmem:[%s7203_s27 + $0x288] sm:$0xff]   ;;  %v11728_v33 = vld [vmem:[#allocation18_spill] sm:$0xff] }
 0x17b   : > { %v1070_v17 = vpop.f32.mrf.mxu0  ;;  %v8125_v46 = vpop.f32.mrf.mxu1  ;;  %v11729_v19 = vld [vmem:[#allocation19_spill] sm:$0xff]  ;;  %v11733_v32 = vld [vmem:[#allocation20_spill] sm:$0xff]  ;;  %v11734_v55 = vld [vmem:[#allocation21_spill] sm:$0xff] }
 0x17c   : > { %11721 = vst [vmem:[#allocation13_spill] sm:$0xff] %v8121_v29  ;;  %11722 = vst [vmem:[#allocation14_spill] sm:$0xff] %v8125_v46  ;;  %v8132_v11 = vmax.f32 %v11725_v56, %v1070_v17  ;;  %v11730_v12 = vmax.f32 %v11728_v33, %v11729_v19  ;;  %v11735_v56 = vmax.f32 %v11733_v32, %v11734_v55  ;;  %v11738_v19 = vld [vmem:[#allocation22_spill] sm:$0xff]  ;;  %v11743_v55 = vld [vmem:[#allocation24_spill] sm:$0xff] }
 0x17d   : > { %v1072_v59 = vpop.f32.mrf.mxu0  ;;  %v8134_v39 = vpop.f32.mrf.mxu1 }
 0x17e   : > { %11726 = vst [vmem:[#allocation15_spill] sm:$0xff] %v8132_v11  ;;  %11727 = vst [vmem:[#allocation16_spill] sm:$0xff] %v8134_v39  ;;  %v8143_v34 = vmax.f32 %v11730_v12, %v1072_v59  ;;  %v11739_v59 = vld [vmem:[#allocation23_spill] sm:$0xff] }
 0x17f   : > { %v1074_v14 = vpop.f32.mrf.mxu0  ;;  %v8145_v60 = vpop.f32.mrf.mxu1  ;;  %v11740_v33 = vmax.f32 %v11738_v19, %v11739_v59  ;;  %v6995_v19 = vld [vmem:[%s7203_s27 + $0x2f4] sm:$0xff]  }
 0x180   : > { %11731 = vst [vmem:[#allocation17_spill] sm:$0xff] %v8143_v34  ;;  %11732 = vst [vmem:[#allocation18_spill] sm:$0xff] %v8145_v60  ;;  %v8152_v49 = vmax.f32 %v11735_v56, %v1074_v14 }
 0x181   : > { %v1078_v29 = vpop.f32.mrf.mxu0  ;;  %v8154_v16 = vpop.f32.mrf.mxu1  ;;  %6364 = vmatmul.mubr.msk.bf16.gmra.mxu0 %vm296_vm0, %v6992_v28  ;;  %6415 = vmatmul.mubr.msk.bf16.gmra.mxu1 %vm296_vm0, %v6993_v36  ;;  %v11744_v36 = vld [vmem:[#allocation25_spill] sm:$0xff] }
 0x182   : > { %11736 = vst [vmem:[#allocation19_spill] sm:$0xff] %v8152_v49  ;;  %11737 = vst [vmem:[#allocation20_spill] sm:$0xff] %v8154_v16  ;;  %v8163_v17 = vmax.f32 %v11740_v33, %v1078_v29  ;;  %2422 = vmatprep.mubr.bf16.mxu0 %v11622_v13  ;;  %2761 = vmatprep.mubr.bf16.mxu1 %v11622_v13  ;;  %v11745_v56 = vmax.f32 %v11743_v55, %v11744_v36  ;;  %v6994_v29 = vld [vmem:[%s7203_s27 + $0x290] sm:$0xff]   ;;  %v11748_v33 = vld [vmem:[#allocation26_spill] sm:$0xff] }
 0x183   : > { %v1080_v14 = vpop.f32.mrf.mxu0  ;;  %v8167_v32 = vpop.f32.mrf.mxu1  ;;  %v11749_v49 = vld [vmem:[#allocation27_spill] sm:$0xff]  ;;  %v11753_v55 = vld [vmem:[#allocation28_spill] sm:$0xff]  ;;  %v11754_v36 = vld [vmem:[#allocation29_spill] sm:$0xff] }
 0x184   : > { %11741 = vst [vmem:[#allocation21_spill] sm:$0xff] %v8163_v17  ;;  %11742 = vst [vmem:[#allocation22_spill] sm:$0xff] %v8167_v32  ;;  %v8174_v39 = vmax.f32 %v11745_v56, %v1080_v14  ;;  %v11750_v34 = vmax.f32 %v11748_v33, %v11749_v49  ;;  %v11755_v56 = vmax.f32 %v11753_v55, %v11754_v36  ;;  %v11758_v49 = vld [vmem:[#allocation30_spill] sm:$0xff]  ;;  %v11763_v36 = vld [vmem:[#allocation32_spill] sm:$0xff] }
 0x185   : > { %v1082_v12 = vpop.f32.mrf.mxu0  ;;  %v8176_v60 = vpop.f32.mrf.mxu1 }
 0x186   : > { %11746 = vst [vmem:[#allocation23_spill] sm:$0xff] %v8174_v39  ;;  %11747 = vst [vmem:[#allocation24_spill] sm:$0xff] %v8176_v60  ;;  %v8185_v46 = vmax.f32 %v11750_v34, %v1082_v12  ;;  %v11759_v12 = vld [vmem:[#allocation31_spill] sm:$0xff] }
 0x187   : > { %v1084_v11 = vpop.f32.mrf.mxu0  ;;  %v8187_v28 = vpop.f32.mrf.mxu1  ;;  %v11760_v33 = vmax.f32 %v11758_v49, %v11759_v12  ;;  %v6997_v49 = vld [vmem:[%s7203_s27 + $0x2fc] sm:$0xff]  }
 0x188   : > { %11751 = vst [vmem:[#allocation25_spill] sm:$0xff] %v8185_v46  ;;  %11752 = vst [vmem:[#allocation26_spill] sm:$0xff] %v8187_v28  ;;  %v8194_v16 = vmax.f32 %v11755_v56, %v1084_v11 }
 0x189   : > { %v1088_v17 = vpop.f32.mrf.mxu0  ;;  %v8196_v59 = vpop.f32.mrf.mxu1  ;;  %6365 = vmatmul.mubr.msk.bf16.gmra.mxu0 %vm296_vm0, %v6994_v29  ;;  %6416 = vmatmul.mubr.msk.bf16.gmra.mxu1 %vm296_vm0, %v6995_v19  ;;  %v11764_v19 = vld [vmem:[#allocation33_spill] sm:$0xff] }
 0x18a   : > { %11756 = vst [vmem:[#allocation27_spill] sm:$0xff] %v8194_v16  ;;  %11757 = vst [vmem:[#allocation28_spill] sm:$0xff] %v8196_v59  ;;  %v8205_v14 = vmax.f32 %v11760_v33, %v1088_v17  ;;  %2432 = vmatprep.mubr.bf16.mxu0 %v11622_v13  ;;  %2771 = vmatprep.mubr.bf16.mxu1 %v11622_v13  ;;  %v11765_v56 = vmax.f32 %v11763_v36, %v11764_v19  ;;  %v6996_v17 = vld [vmem:[%s7203_s27 + $0x298] sm:$0xff]   ;;  %v11768_v33 = vld [vmem:[#allocation34_spill] sm:$0xff] }
 0x18b   : > { %v1090_v11 = vpop.f32.mrf.mxu0  ;;  %v8209_v55 = vpop.f32.mrf.mxu1  ;;  %v11769_v16 = vld [vmem:[#allocation35_spill] sm:$0xff]  ;;  %v11773_v36 = vld [vmem:[#allocation36_spill] sm:$0xff]  ;;  %v11774_v19 = vld [vmem:[#allocation37_spill] sm:$0xff] }
 0x18c   : > { %11761 = vst [vmem:[#allocation29_spill] sm:$0xff] %v8205_v14  ;;  %11762 = vst [vmem:[#allocation30_spill] sm:$0xff] %v8209_v55  ;;  %v8216_v60 = vmax.f32 %v11765_v56, %v1090_v11  ;;  %v11770_v46 = vmax.f32 %v11768_v33, %v11769_v16  ;;  %v11775_v56 = vmax.f32 %v11773_v36, %v11774_v19  ;;  %v11778_v16 = vld [vmem:[#allocation38_spill] sm:$0xff]  ;;  %v11783_v19 = vld [vmem:[#allocation40_spill] sm:$0xff] }
 0x18d   : > { %v1092_v34 = vpop.f32.mrf.mxu0  ;;  %v8218_v28 = vpop.f32.mrf.mxu1 }
 0x18e   : > { %11766 = vst [vmem:[#allocation31_spill] sm:$0xff] %v8216_v60  ;;  %11767 = vst [vmem:[#allocation32_spill] sm:$0xff] %v8218_v28  ;;  %v8227_v32 = vmax.f32 %v11770_v46, %v1092_v34  ;;  %v11779_v34 = vld [vmem:[#allocation39_spill] sm:$0xff] }
 0x18f   : > { %v1094_v39 = vpop.f32.mrf.mxu0  ;;  %v8229_v29 = vpop.f32.mrf.mxu1  ;;  %v11780_v33 = vmax.f32 %v11778_v16, %v11779_v34  ;;  %v6999_v16 = vld [vmem:[%s7203_s27 + $0x304] sm:$0xff]  }
 0x190   : > { %11771 = vst [vmem:[#allocation33_spill] sm:$0xff] %v8227_v32  ;;  %11772 = vst [vmem:[#allocation34_spill] sm:$0xff] %v8229_v29  ;;  %v8236_v59 = vmax.f32 %v11775_v56, %v1094_v39 }
 0x191   : > { %v1098_v14 = vpop.f32.mrf.mxu0  ;;  %v8238_v12 = vpop.f32.mrf.mxu1  ;;  %6366 = vmatmul.mubr.msk.bf16.gmra.mxu0 %vm296_vm0, %v6996_v17  ;;  %6417 = vmatmul.mubr.msk.bf16.gmra.mxu1 %vm296_vm0, %v6997_v49  ;;  %v11784_v49 = vld [vmem:[#allocation41_spill] sm:$0xff] }
 0x192   : > { %11776 = vst [vmem:[#allocation35_spill] sm:$0xff] %v8236_v59  ;;  %11777 = vst [vmem:[#allocation36_spill] sm:$0xff] %v8238_v12  ;;  %v8247_v11 = vmax.f32 %v11780_v33, %v1098_v14  ;;  %2442 = vmatprep.mubr.bf16.mxu0 %v11622_v13  ;;  %2781 = vmatprep.mubr.bf16.mxu1 %v11622_v13  ;;  %v11785_v56 = vmax.f32 %v11783_v19, %v11784_v49  ;;  %v6998_v14 = vld [vmem:[%s7203_s27 + $0x2a0] sm:$0xff]   ;;  %v11789_v59 = vld [vmem:[#allocation43_spill] sm:$0xff] }
 0x193   : > { %v1100_v39 = vpop.f32.mrf.mxu0  ;;  %v8251_v36 = vpop.f32.mrf.mxu1  ;;  %v11788_v33 = vld [vmem:[#allocation42_spill] sm:$0xff]  ;;  %v11793_v19 = vld [vmem:[#allocation44_spill] sm:$0xff]  ;;  %v11794_v49 = vld [vmem:[#allocation45_spill] sm:$0xff] }
 0x194   : > { %11781 = vst [vmem:[#allocation37_spill] sm:$0xff] %v8247_v11  ;;  %11782 = vst [vmem:[#allocation38_spill] sm:$0xff] %v8251_v36  ;;  %v8258_v28 = vmax.f32 %v11785_v56, %v1100_v39  ;;  %v11790_v32 = vmax.f32 %v11788_v33, %v11789_v59  ;;  %v11795_v56 = vmax.f32 %v11793_v19, %v11794_v49  ;;  %v11798_v59 = vld [vmem:[#allocation46_spill] sm:$0xff]  ;;  %v11803_v49 = vld [vmem:[#allocation48_spill] sm:$0xff] }
 0x195   : > { %v1102_v46 = vpop.f32.mrf.mxu0  ;;  %v8260_v29 = vpop.f32.mrf.mxu1 }
 0x196   : > { %11786 = vst [vmem:[#allocation39_spill] sm:$0xff] %v8258_v28  ;;  %11787 = vst [vmem:[#allocation40_spill] sm:$0xff] %v8260_v29  ;;  %v8269_v55 = vmax.f32 %v11790_v32, %v1102_v46  ;;  %v11799_v46 = vld [vmem:[#allocation47_spill] sm:$0xff] }
 0x197   : > { %v1104_v60 = vpop.f32.mrf.mxu0  ;;  %v8271_v17 = vpop.f32.mrf.mxu1  ;;  %v11800_v33 = vmax.f32 %v11798_v59, %v11799_v46  ;;  %v7001_v59 = vld [vmem:[%s7203_s27 + $0x30c] sm:$0xff]  }
 0x198   : > { %11791 = vst [vmem:[#allocation41_spill] sm:$0xff] %v8269_v55  ;;  %11792 = vst [vmem:[#allocation42_spill] sm:$0xff] %v8271_v17  ;;  %v8278_v12 = vmax.f32 %v11795_v56, %v1104_v60 }
 0x199   : > { %v1108_v11 = vpop.f32.mrf.mxu0  ;;  %v8280_v34 = vpop.f32.mrf.mxu1  ;;  %6367 = vmatmul.mubr.msk.bf16.gmra.mxu0 %vm296_vm0, %v6998_v14  ;;  %6418 = vmatmul.mubr.msk.bf16.gmra.mxu1 %vm296_vm0, %v6999_v16  ;;  %v11804_v16 = vld [vmem:[#allocation49_spill] sm:$0xff] }
 0x19a   : > { %11796 = vst [vmem:[#allocation43_spill] sm:$0xff] %v8278_v12  ;;  %11797 = vst [vmem:[#allocation44_spill] sm:$0xff] %v8280_v34  ;;  %v8289_v39 = vmax.f32 %v11800_v33, %v1108_v11  ;;  %2452 = vmatprep.mubr.bf16.mxu0 %v11622_v13  ;;  %2791 = vmatprep.mubr.bf16.mxu1 %v11622_v13  ;;  %v11805_v56 = vmax.f32 %v11803_v49, %v11804_v16  ;;  %v7000_v11 = vld [vmem:[%s7203_s27 + $0x2a8] sm:$0xff]   ;;  %v11807_v33 = vld [vmem:[#allocation50_spill] sm:$0xff] }
 0x19b   : > { %v1110_v60 = vpop.f32.mrf.mxu0  ;;  %v8293_v19 = vpop.f32.mrf.mxu1  ;;  %v11808_v12 = vld [vmem:[#allocation51_spill] sm:$0xff]  ;;  %v11812_v49 = vld [vmem:[#allocation52_spill] sm:$0xff]  ;;  %v11813_v16 = vld [vmem:[#allocation53_spill] sm:$0xff] }
 0x19c   : > { %11801 = vst [vmem:[#allocation45_spill] sm:$0xff] %v8289_v39  ;;  %11802 = vst [vmem:[#allocation46_spill] sm:$0xff] %v8293_v19  ;;  %v8300_v29 = vmax.f32 %v11805_v56, %v1110_v60  ;;  %v11809_v55 = vmax.f32 %v11807_v33, %v11808_v12  ;;  %v11814_v56 = vmax.f32 %v11812_v49, %v11813_v16  ;;  %v11816_v12 = vld [vmem:[#allocation54_spill] sm:$0xff]  ;;  %v11819_v16 = vld [vmem:[#allocation56_spill] sm:$0xff] }
 0x19d   : > { %v1112_v32 = vpop.f32.mrf.mxu0  ;;  %v8302_v17 = vpop.f32.mrf.mxu1 }
 0x19e   : > { %11806 = vst [vmem:[#allocation47_spill] sm:$0xff] %v8302_v17  ;;  %v8311_v36 = vmax.f32 %v11809_v55, %v1112_v32  ;;  %v11817_v32 = vld [vmem:[#allocation55_spill] sm:$0xff] }
 0x19f   : > { %v1114_v28 = vpop.f32.mrf.mxu0  ;;  %v8313_v14 = vpop.f32.mrf.mxu1  ;;  %v11818_v33 = vmax.f32 %v11816_v12, %v11817_v32  ;;  %v7002_v12 = vld [vmem:[%s7203_s27 + $0x2b0] sm:$0xff]  }
 0x1a0   : > { %11810 = vst [vmem:[#allocation48_spill] sm:$0xff] %v8311_v36  ;;  %11811 = vst [vmem:[#allocation49_spill] sm:$0xff] %v8313_v14  ;;  %v8320_v34 = vmax.f32 %v11814_v56, %v1114_v28 }
 0x1a1   : > { %v1118_v39 = vpop.f32.mrf.mxu0  ;;  %v8322_v46 = vpop.f32.mrf.mxu1  ;;  %6368 = vmatmul.mubr.msk.bf16.gmra.mxu0 %vm296_vm0, %v7000_v11  ;;  %6419 = vmatmul.mubr.msk.bf16.gmra.mxu1 %vm296_vm0, %v7001_v59  ;;  %v11820_v59 = vld [vmem:[#allocation57_spill] sm:$0xff] }
 0x1a2   : > { %11815 = vst [vmem:[#allocation50_spill] sm:$0xff] %v8320_v34  ;;  %v8331_v60 = vmax.f32 %v11818_v33, %v1118_v39  ;;  %2462 = vmatprep.mubr.bf16.mxu0 %v11622_v13  ;;  %2801 = vmatprep.mubr.bf16.mxu1 %v11622_v13  ;;  %v11821_v56 = vmax.f32 %v11819_v16, %v11820_v59  ;;  %v7003_v39 = vld [vmem:[%s7203_s27 + $0x314] sm:$0xff]  }
 0x1a3   : > { %v1120_v28 = vpop.f32.mrf.mxu0  ;;  %v8335_v49 = vpop.f32.mrf.mxu1  ;;  %v11823_v59 = vmax.f32 %v7826_v51, %v7819_v10  ;;  %v11825_v51 = vmax.f32 %v7846_v2, %v7839_v4 }
 0x1a4   : > { %v8342_v17 = vmax.f32 %v11821_v56, %v1120_v28 }
 0x1a5   : > { %v1122_v55 = vpop.f32.mrf.mxu0  ;;  %v1461_v14 = vpop.f32.mrf.mxu1 }
 0x1a6   : > { %v11822_v55 = vmax.f32 %v7815_v24, %v7808_v18  ;;  %v7004_v18 = vld [vmem:[%s7203_s27 + $0x2b8] ss:$0 sps:$4 sm:$0x77]   ;;  %v7005_v24 = vld [vmem:[%s7203_s27 + $0x31c] ss:$0 sps:$4 sm:$0x77]  }
 0x1a7   : > { %v1123_v33 = vpop.f32.mrf.mxu0  ;;  %v1462_v34 = vpop.f32.mrf.mxu1 }
 0x1a8   : > { %v11824_v33 = vmax.f32 %v7837_v42, %v7828_v21  ;;  %v11827_v42 = vld [vmem:[#allocation58_spill] sm:$0xff] }
 0x1a9   : > { %v1676_v36 = vpop.f32.mrf.mxu0  ;;  %v8348_v19 = vpop.f32.mrf.mxu1  ;;  %6369 = vmatmul.mubr.msk.bf16.gmra.mxu0 %vm296_vm0, %v7002_v12  ;;  %6420 = vmatmul.mubr.msk.bf16.gmra.mxu1 %vm296_vm0, %v7003_v39 }
 0x1aa   : > { %v8355_v14 = vmax.f32 %v11822_v55, %v1676_v36  ;;  %2472 = vmatprep.mubr.bf16.mxu0 %v11622_v13  ;;  %2811 = vmatprep.mubr.bf16.mxu1 %v11622_v13 }
 0x1ab   : > { %v1678_v28 = vpop.f32.mrf.mxu0  ;;  %v8359_v16 = vpop.f32.mrf.mxu1 }
 0x1ac   : > { %v8366_v56 = vmax.f32 %v11823_v59, %v1678_v28 }
 0x1ad   : > { %v1680_v12 = vpop.f32.mrf.mxu0  ;;  %v8368_v39 = vpop.f32.mrf.mxu1 }
 0x1ae   : > { %v8377_v55 = vmax.f32 %v11824_v33, %v1680_v12  ;;  %v11828_v12 = vmax.f32 %v7857_v50, %v11827_v42  ;;  %v7006_v50 = vld [vmem:[%s7203_s27 + $0x320] sm:$0xff]   ;;  %v7011_v42 = vld [vmem:[%s7203_s27 + $0x394] sm:$0xff]  }
 0x1af   : > { %v1682_v32 = vpop.f32.mrf.mxu0  ;;  %v8379_v34 = vpop.f32.mrf.mxu1 }
 0x1b0   : > { %v8386_v28 = vmax.f32 %v11825_v51, %v1682_v32 }
 0x1b1   : > { %v1686_v59 = vpop.f32.mrf.mxu0  ;;  %v8388_v36 = vpop.f32.mrf.mxu1  ;;  %6370 = vmatmul.mubr.msk.bf16.gmra.mxu0 %vm296_vm0, %v7004_v18  ;;  %6421 = vmatmul.mubr.msk.bf16.gmra.mxu1 %vm296_vm0, %v7005_v24  ;;  %v11829_v18 = vmax.f32 %v7868_v58, %v7861_v5  ;;  %v11831_v58 = vmax.f32 %v7888_v62, %v7881_v6  ;;  %v8444_v6 = vld [vmem:[%s11229_s1 + $0x20] ss:$8 sps:$4 sm:$0xff]  }
 0x1b2   : > { %11826 = vst [vmem:[#allocation51_spill] sm:$0xff] %v8388_v36  ;;  %v8397_v33 = vmax.f32 %v11828_v12, %v1686_v59  ;;  %3030 = vmatprep.mubr.bf16.mxu0 %v11622_v13  ;;  %3369 = vmatprep.mubr.bf16.mxu1 %v11622_v13  ;;  %v7007_v59 = vld [vmem:[%s7203_s27 + $0x384] sm:$0xff]   ;;  %v11830_v12 = vmax.f32 %v7879_v63, %v7870_v61 }
 0x1b3   : > { %v1688_v4 = vpop.f32.mrf.mxu0  ;;  %v8401_v2 = vpop.f32.mrf.mxu1  ;;  %v11832_v61 = vmax.f32 %v7899_v3, %v7890_v7  ;;  %v11833_v3 = vmax.f32 %v7912_v22, %v7903_v20  ;;  %v11834_v20 = vmax.f32 %v7925_v15, %v7916_v25  ;;  %v8489_v7 = vld [vmem:[%s11229_s1 + $0x4] ss:$8 sps:$4 sm:$0xff]   ;;  %v11836_v15 = vmax.f32 %v7938_v30, %v7929_v27 }
 0x1b4   : > { %v8408_v24 = vmax.f32 %v11829_v18, %v1688_v4  ;;  %11835 = vst [vmem:[#allocation52_spill] sm:$0xff] %v8489_v7 }
 0x1b5   : > { %v1690_v51 = vpop.f32.mrf.mxu0  ;;  %v8410_v21 = vpop.f32.mrf.mxu1 }
 0x1b6   : > { %v8419_v10 = vmax.f32 %v11830_v12, %v1690_v51 }
 0x1b7   : > { %v1692_v11 = vpop.f32.mrf.mxu0  ;;  %v8421_v32 = vpop.f32.mrf.mxu1 }
 0x1b8   : > { %v8428_v4 = vmax.f32 %v11831_v58, %v1692_v11 }
 0x1b9   : > { %v1696_v18 = vpop.f32.mrf.mxu0  ;;  %v8430_v36 = vpop.f32.mrf.mxu1  ;;  %6460 = vmatmul.mubr.msk.bf16.vlgmr.msra.gmra.mxu0 %vm296_vm0, %v7006_v50  ;;  %6511 = vmatmul.mubr.msk.bf16.vlgmr.msra.gmra.mxu1 %vm296_vm0, %v7007_v59  ;;  %v8462_v59 = vld [vmem:[%s11229_s1 + $0x14] ss:$8 sps:$4 sm:$0xff]  }
 0x1ba   : > { %v8439_v51 = vmax.f32 %v11832_v61, %v1696_v18  ;;  %3687 = vmatpush1.bf16.msra.mxu0 %v8444_v6  ;;  %4026 = vmatpush1.bf16.msra.mxu1 %v8444_v6  ;;  %v7008_v18 = vld [vmem:[%s7203_s27 + $0x328] sm:$0xff]  }
 0x1bb   : > { %v1698_v62 = vpop.f32.mrf.mxu0  ;;  %v8448_v11 = vpop.f32.mrf.mxu1  ;;  %3040 = vmatprep.mubr.bf16.mxu0 %v11622_v13  ;;  %3379 = vmatprep.mubr.bf16.mxu1 %v11622_v13  ;;  %v7009_v61 = vld [vmem:[%s7203_s27 + $0x38c] sm:$0xff]  }
 0x1bc   : > { %v8457_v50 = vmax.f32 %v11833_v3, %v1698_v62  ;;  %3688 = vmatprep.subr.bf16.mxu0 %v8462_v59  ;;  %4027 = vmatprep.subr.bf16.mxu1 %v8462_v59  ;;  %v8480_v62 = vld [vmem:[%s11229_s1 + $0x10] ss:$8 sps:$4 sm:$0xff]  }
 0x1bd   : > { %v1700_v12 = vpop.f32.mrf.mxu0  ;;  %v8466_v58 = vpop.f32.mrf.mxu1 }
 0x1be   : > { %v8475_v22 = vmax.f32 %v11834_v20, %v1700_v12  ;;  %3689 = vmatpush1.bf16.msra.mxu0 %v8480_v62  ;;  %4028 = vmatpush1.bf16.msra.mxu1 %v8480_v62 }
 0x1bf   : > { %v1702_v3 = vpop.f32.mrf.mxu0  ;;  %v8484_v63 = vpop.f32.mrf.mxu1  ;;  %3690 = vmatprep.subr.bf16.mxu0 %v8489_v7  ;;  %4029 = vmatprep.subr.bf16.mxu1 %v8489_v7  ;;  %v11838_v7 = vmax.f32 %v7949_v23, %v7940_v8  ;;  %v11841_v23 = vmax.f32 %v7962_v40, %v7953_v37  ;;  %v11843_v37 = vmax.f32 %v7975_v38, %v7966_v57 }
 0x1c0   : > { %v8498_v12 = vmax.f32 %v11836_v15, %v1702_v3  ;;  %v11845_v38 = vmax.f32 %v7995_v41, %v7986_v45  ;;  %v7012_v45 = vld [vmem:[%s7203_s27 + $0x338] sm:$0xff]  }
 0x1c1   : > { %v1706_v20 = vpop.f32.mrf.mxu0  ;;  %v8500_v5 = vpop.f32.mrf.mxu1  ;;  %6461 = vmatmul.mubr.msk.bf16.gmra.mxu0 %vm296_vm0, %v7008_v18  ;;  %6512 = vmatmul.mubr.msk.bf16.gmra.mxu1 %vm296_vm0, %v7009_v61  ;;  %v8518_v18 = vld [vmem:[%s11229_s1] ss:$8 sps:$4 sm:$0xff]   ;;  %v8532_v61 = vld [vmem:[%s11229_s1 + $0x24] ss:$8 sps:$4 sm:$0xff]  }
 0x1c2   : > { %11837 = vst [vmem:[#allocation53_spill] sm:$0xff] %v8500_v5  ;;  %v8509_v25 = vmax.f32 %v11838_v7, %v1706_v20  ;;  %3050 = vmatprep.mubr.bf16.mxu0 %v11622_v13  ;;  %3389 = vmatprep.mubr.bf16.mxu1 %v11622_v13  ;;  %11840 = vst [vmem:[#allocation55_spill] sm:$0xff] %v8518_v18  ;;  %v7010_v20 = vld [vmem:[%s7203_s27 + $0x330] sm:$0xff]   ;;  %v7013_v41 = vld [vmem:[%s7203_s27 + $0x39c] sm:$0xff]  }
 0x1c3   : > { %v1708_v27 = vpop.f32.mrf.mxu0  ;;  %v8513_v30 = vpop.f32.mrf.mxu1  ;;  %3691 = vmatpush1.bf16.msra.mxu0 %v8518_v18  ;;  %4030 = vmatpush1.bf16.msra.mxu1 %v8518_v18  ;;  %11842 = vst [vmem:[#allocation56_spill] sm:$0xff] %v8532_v61 }
 0x1c4   : > { %11839 = vst [vmem:[#allocation54_spill] sm:$0xff] %v8509_v25  ;;  %v8527_v7 = vmax.f32 %v11841_v23, %v1708_v27  ;;  %4364 = vmatprep.subr.bf16.mxu0 %v8532_v61  ;;  %4703 = vmatprep.subr.bf16.mxu1 %v8532_v61  ;;  %v11844_v61 = vmax.f32 %v7984_v0, %v7977_v44 }
 0x1c5   : > { %v1710_v3 = vpop.f32.mrf.mxu0  ;;  %v8536_v15 = vpop.f32.mrf.mxu1 }
 0x1c6   : > { %v8545_v40 = vmax.f32 %v11843_v37, %v1710_v3 }
 0x1c7   : > { %v1712_v27 = vpop.f32.mrf.mxu0  ;;  %v8547_v23 = vpop.f32.mrf.mxu1 }
 0x1c8   : > { %v8554_v5 = vmax.f32 %v11844_v61, %v1712_v27 }
 0x1c9   : > { %v1716_v25 = vpop.f32.mrf.mxu0  ;;  %v8556_v8 = vpop.f32.mrf.mxu1  ;;  %6462 = vmatmul.mubr.msk.bf16.gmra.mxu0 %vm296_vm0, %v7010_v20  ;;  %6513 = vmatmul.mubr.msk.bf16.gmra.mxu1 %vm296_vm0, %v7011_v42  ;;  %v11846_v42 = vmax.f32 %v8006_v31, %v7999_v54  ;;  %v11849_v31 = vmax.f32 %v8026_v53, %v8019_v26 }
 0x1ca   : > { %v8565_v3 = vmax.f32 %v11845_v38, %v1716_v25  ;;  %3060 = vmatprep.mubr.bf16.mxu0 %v11622_v13  ;;  %3399 = vmatprep.mubr.bf16.mxu1 %v11622_v13  ;;  %v11847_v38 = vmax.f32 %v8017_v48, %v8008_v47  ;;  %v11851_v47 = vmax.f32 %v8037_v43, %v8028_v9  ;;  %v7014_v9 = vld [vmem:[%s7203_s27 + $0x340] sm:$0xff]  }
 0x1cb   : > { %v1718_v44 = vpop.f32.mrf.mxu0  ;;  %v8569_v0 = vpop.f32.mrf.mxu1  ;;  %v7015_v43 = vld [vmem:[%s7203_s27 + $0x3a4] sm:$0xff]  }
 0x1cc   : > { %v8576_v20 = vmax.f32 %v11846_v42, %v1718_v44 }
 0x1cd   : > { %v1720_v37 = vpop.f32.mrf.mxu0  ;;  %v8578_v27 = vpop.f32.mrf.mxu1 }
 0x1ce   : > { %v8587_v57 = vmax.f32 %v11847_v38, %v1720_v37 }
 0x1cf   : > { %v1722_v18 = vpop.f32.mrf.mxu0  ;;  %v8589_v61 = vpop.f32.mrf.mxu1 }
 0x1d0   : > { %11848 = vst [vmem:[#allocation57_spill] sm:$0xff] %v8589_v61  ;;  %v8596_v44 = vmax.f32 %v11849_v31, %v1722_v18 }
 0x1d1   : > { %v1726_v42 = vpop.f32.mrf.mxu0  ;;  %v8598_v25 = vpop.f32.mrf.mxu1  ;;  %6463 = vmatmul.mubr.msk.bf16.gmra.mxu0 %vm296_vm0, %v7012_v45  ;;  %6514 = vmatmul.mubr.msk.bf16.gmra.mxu1 %vm296_vm0, %v7013_v41  ;;  %v11854_v45 = vmax.f32 %v8048_v1, %v8041_v52  ;;  %v11861_v1 = vld [vmem:[#allocation3_spill] sm:$0xff] }
 0x1d2   : > { %11850 = vst [vmem:[#allocation58_spill] sm:$0xff] %v8598_v25  ;;  %v8607_v37 = vmax.f32 %v11851_v47, %v1726_v42  ;;  %3070 = vmatprep.mubr.bf16.mxu0 %v11622_v13  ;;  %3409 = vmatprep.mubr.bf16.mxu1 %v11622_v13  ;;  %v11857_v47 = vld [vmem:[#allocation59_spill] sm:$0xff] }
 0x1d3   : > { %v1728_v26 = vpop.f32.mrf.mxu0  ;;  %v8611_v53 = vpop.f32.mrf.mxu1  ;;  %v11858_v48 = vmax.f32 %v8059_v35, %v11857_v47 }
 0x1d4   : > { %11852 = vst [vmem:[#allocation60_spill] sm:$0xff] %v8607_v37  ;;  %11853 = vst [vmem:[#allocation61_spill] sm:$0xff] %v8611_v53  ;;  %v8618_v41 = vmax.f32 %v11854_v45, %v1728_v26  ;;  %v11862_v26 = vld [vmem:[#allocation2_spill] sm:$0xff] }
 0x1d5   : > { %v1730_v38 = vpop.f32.mrf.mxu0  ;;  %v8620_v31 = vpop.f32.mrf.mxu1  ;;  %v11863_v45 = vmax.f32 %v11861_v1, %v11862_v26  ;;  %v11871_v26 = vld [vmem:[#allocation7_spill] sm:$0xff] }
 0x1d6   : > { %11855 = vst [vmem:[#allocation62_spill] sm:$0xff] %v8618_v41  ;;  %11856 = vst [vmem:[#allocation63_spill] sm:$0xff] %v8620_v31  ;;  %v8629_v54 = vmax.f32 %v11858_v48, %v1730_v38  ;;  %v11866_v48 = vld [vmem:[#allocation5_spill] sm:$0xff]  ;;  %v11867_v38 = vld [vmem:[#allocation4_spill] sm:$0xff] }
 0x1d7   : > { %v1732_v61 = vpop.f32.mrf.mxu0  ;;  %v8631_v18 = vpop.f32.mrf.mxu1  ;;  %v11868_v47 = vmax.f32 %v11866_v48, %v11867_v38  ;;  %v7017_v48 = vld [vmem:[%s7203_s27 + $0x3ac] sm:$0xff]  }
 0x1d8   : > { %11859 = vst [vmem:[#allocation59_spill] sm:$0xff] %v8629_v54  ;;  %11860 = vst [vmem:[#allocation64_spill] sm:$0xff] %v8631_v18  ;;  %v8638_v25 = vmax.f32 %v11863_v45, %v1732_v61 }
 0x1d9   : > { %v1736_v37 = vpop.f32.mrf.mxu0  ;;  %v8640_v42 = vpop.f32.mrf.mxu1  ;;  %6464 = vmatmul.mubr.msk.bf16.gmra.mxu0 %vm296_vm0, %v7014_v9  ;;  %6515 = vmatmul.mubr.msk.bf16.gmra.mxu1 %vm296_vm0, %v7015_v43  ;;  %v11872_v43 = vld [vmem:[#allocation6_spill] sm:$0xff] }
 0x1da   : > { %11864 = vst [vmem:[#allocation3_spill] sm:$0xff] %v8638_v25  ;;  %11865 = vst [vmem:[#allocation2_spill] sm:$0xff] %v8640_v42  ;;  %v8649_v52 = vmax.f32 %v11868_v47, %v1736_v37  ;;  %3080 = vmatprep.mubr.bf16.mxu0 %v11622_v13  ;;  %3419 = vmatprep.mubr.bf16.mxu1 %v11622_v13  ;;  %v11873_v45 = vmax.f32 %v11871_v26, %v11872_v43  ;;  %v7016_v37 = vld [vmem:[%s7203_s27 + $0x348] sm:$0xff]   ;;  %v11876_v47 = vld [vmem:[#allocation9_spill] sm:$0xff] }
 0x1db   : > { %v1738_v61 = vpop.f32.mrf.mxu0  ;;  %v8653_v1 = vpop.f32.mrf.mxu1  ;;  %v11877_v25 = vld [vmem:[#allocation8_spill] sm:$0xff]  ;;  %v11881_v26 = vld [vmem:[#allocation11_spill] sm:$0xff]  ;;  %v11882_v43 = vld [vmem:[#allocation10_spill] sm:$0xff] }
 0x1dc   : > { %11869 = vst [vmem:[#allocation5_spill] sm:$0xff] %v8649_v52  ;;  %11870 = vst [vmem:[#allocation4_spill] sm:$0xff] %v8653_v1  ;;  %v8660_v31 = vmax.f32 %v11873_v45, %v1738_v61  ;;  %v11878_v54 = vmax.f32 %v11876_v47, %v11877_v25  ;;  %v11883_v45 = vmax.f32 %v11881_v26, %v11882_v43  ;;  %v11891_v43 = vld [vmem:[#allocation15_spill] sm:$0xff] }
 0x1dd   : > { %v1740_v35 = vpop.f32.mrf.mxu0  ;;  %v8662_v18 = vpop.f32.mrf.mxu1 }
 0x1de   : > { %11874 = vst [vmem:[#allocation7_spill] sm:$0xff] %v8660_v31  ;;  %11875 = vst [vmem:[#allocation6_spill] sm:$0xff] %v8662_v18  ;;  %v8671_v53 = vmax.f32 %v11878_v54, %v1740_v35  ;;  %v11886_v54 = vld [vmem:[#allocation13_spill] sm:$0xff]  ;;  %v11887_v35 = vld [vmem:[#allocation12_spill] sm:$0xff] }
 0x1df   : > { %v1742_v41 = vpop.f32.mrf.mxu0  ;;  %v8673_v9 = vpop.f32.mrf.mxu1  ;;  %v11888_v47 = vmax.f32 %v11886_v54, %v11887_v35  ;;  %v7019_v54 = vld [vmem:[%s7203_s27 + $0x3b4] sm:$0xff]  }
 0x1e0   : > { %11879 = vst [vmem:[#allocation9_spill] sm:$0xff] %v8671_v53  ;;  %11880 = vst [vmem:[#allocation8_spill] sm:$0xff] %v8673_v9  ;;  %v8680_v42 = vmax.f32 %v11883_v45, %v1742_v41 }
 0x1e1   : > { %v1746_v52 = vpop.f32.mrf.mxu0  ;;  %v8682_v38 = vpop.f32.mrf.mxu1  ;;  %6465 = vmatmul.mubr.msk.bf16.gmra.mxu0 %vm296_vm0, %v7016_v37  ;;  %6516 = vmatmul.mubr.msk.bf16.gmra.mxu1 %vm296_vm0, %v7017_v48  ;;  %v11892_v48 = vld [vmem:[#allocation14_spill] sm:$0xff] }
 0x1e2   : > { %11884 = vst [vmem:[#allocation11_spill] sm:$0xff] %v8680_v42  ;;  %11885 = vst [vmem:[#allocation10_spill] sm:$0xff] %v8682_v38  ;;  %v8691_v61 = vmax.f32 %v11888_v47, %v1746_v52  ;;  %3090 = vmatprep.mubr.bf16.mxu0 %v11622_v13  ;;  %3429 = vmatprep.mubr.bf16.mxu1 %v11622_v13  ;;  %v11893_v45 = vmax.f32 %v11891_v43, %v11892_v48  ;;  %v7018_v52 = vld [vmem:[%s7203_s27 + $0x350] sm:$0xff]   ;;  %v11896_v47 = vld [vmem:[#allocation17_spill] sm:$0xff] }
 0x1e3   : > { %v1748_v41 = vpop.f32.mrf.mxu0  ;;  %v8695_v26 = vpop.f32.mrf.mxu1  ;;  %v11897_v42 = vld [vmem:[#allocation16_spill] sm:$0xff]  ;;  %v11901_v43 = vld [vmem:[#allocation19_spill] sm:$0xff]  ;;  %v11902_v48 = vld [vmem:[#allocation18_spill] sm:$0xff] }
 0x1e4   : > { %11889 = vst [vmem:[#allocation13_spill] sm:$0xff] %v8691_v61  ;;  %11890 = vst [vmem:[#allocation12_spill] sm:$0xff] %v8695_v26  ;;  %v8702_v18 = vmax.f32 %v11893_v45, %v1748_v41  ;;  %v11898_v53 = vmax.f32 %v11896_v47, %v11897_v42  ;;  %v11903_v45 = vmax.f32 %v11901_v43, %v11902_v48  ;;  %v11906_v42 = vld [vmem:[#allocation21_spill] sm:$0xff]  ;;  %v11911_v48 = vld [vmem:[#allocation23_spill] sm:$0xff] }
 0x1e5   : > { %v1750_v25 = vpop.f32.mrf.mxu0  ;;  %v8704_v9 = vpop.f32.mrf.mxu1 }
 0x1e6   : > { %11894 = vst [vmem:[#allocation15_spill] sm:$0xff] %v8702_v18  ;;  %11895 = vst [vmem:[#allocation14_spill] sm:$0xff] %v8704_v9  ;;  %v8713_v1 = vmax.f32 %v11898_v53, %v1750_v25  ;;  %v11907_v25 = vld [vmem:[#allocation20_spill] sm:$0xff] }
 0x1e7   : > { %v1752_v31 = vpop.f32.mrf.mxu0  ;;  %v8715_v37 = vpop.f32.mrf.mxu1  ;;  %v11908_v47 = vmax.f32 %v11906_v42, %v11907_v25  ;;  %v7021_v42 = vld [vmem:[%s7203_s27 + $0x3bc] sm:$0xff]  }
 0x1e8   : > { %11899 = vst [vmem:[#allocation17_spill] sm:$0xff] %v8713_v1  ;;  %11900 = vst [vmem:[#allocation16_spill] sm:$0xff] %v8715_v37  ;;  %v8722_v38 = vmax.f32 %v11903_v45, %v1752_v31 }
 0x1e9   : > { %v1756_v61 = vpop.f32.mrf.mxu0  ;;  %v8724_v35 = vpop.f32.mrf.mxu1  ;;  %6466 = vmatmul.mubr.msk.bf16.gmra.mxu0 %vm296_vm0, %v7018_v52  ;;  %6517 = vmatmul.mubr.msk.bf16.gmra.mxu1 %vm296_vm0, %v7019_v54  ;;  %v11912_v54 = vld [vmem:[#allocation22_spill] sm:$0xff] }
 0x1ea   : > { %11904 = vst [vmem:[#allocation19_spill] sm:$0xff] %v8722_v38  ;;  %11905 = vst [vmem:[#allocation18_spill] sm:$0xff] %v8724_v35  ;;  %v8733_v41 = vmax.f32 %v11908_v47, %v1756_v61  ;;  %3100 = vmatprep.mubr.bf16.mxu0 %v11622_v13  ;;  %3439 = vmatprep.mubr.bf16.mxu1 %v11622_v13  ;;  %v11913_v45 = vmax.f32 %v11911_v48, %v11912_v54  ;;  %v7020_v61 = vld [vmem:[%s7203_s27 + $0x358] sm:$0xff]   ;;  %v11917_v38 = vld [vmem:[#allocation24_spill] sm:$0xff] }
 0x1eb   : > { %v1758_v31 = vpop.f32.mrf.mxu0  ;;  %v8737_v43 = vpop.f32.mrf.mxu1  ;;  %v11916_v47 = vld [vmem:[#allocation25_spill] sm:$0xff]  ;;  %v11921_v48 = vld [vmem:[#allocation27_spill] sm:$0xff]  ;;  %v11922_v54 = vld [vmem:[#allocation26_spill] sm:$0xff] }
 0x1ec   : > { %11909 = vst [vmem:[#allocation21_spill] sm:$0xff] %v8733_v41  ;;  %11910 = vst [vmem:[#allocation20_spill] sm:$0xff] %v8737_v43  ;;  %v8744_v9 = vmax.f32 %v11913_v45, %v1758_v31  ;;  %v11918_v1 = vmax.f32 %v11916_v47, %v11917_v38  ;;  %v11923_v45 = vmax.f32 %v11921_v48, %v11922_v54  ;;  %v11926_v38 = vld [vmem:[#allocation29_spill] sm:$0xff]  ;;  %v11931_v54 = vld [vmem:[#allocation31_spill] sm:$0xff] }
 0x1ed   : > { %v1760_v53 = vpop.f32.mrf.mxu0  ;;  %v8746_v37 = vpop.f32.mrf.mxu1 }
 0x1ee   : > { %11914 = vst [vmem:[#allocation23_spill] sm:$0xff] %v8744_v9  ;;  %11915 = vst [vmem:[#allocation22_spill] sm:$0xff] %v8746_v37  ;;  %v8755_v26 = vmax.f32 %v11918_v1, %v1760_v53  ;;  %v11927_v53 = vld [vmem:[#allocation28_spill] sm:$0xff] }
 0x1ef   : > { %v1762_v18 = vpop.f32.mrf.mxu0  ;;  %v8757_v52 = vpop.f32.mrf.mxu1  ;;  %v11928_v47 = vmax.f32 %v11926_v38, %v11927_v53  ;;  %v7023_v38 = vld [vmem:[%s7203_s27 + $0x3c4] sm:$0xff]  }
 0x1f0   : > { %11919 = vst [vmem:[#allocation25_spill] sm:$0xff] %v8755_v26  ;;  %11920 = vst [vmem:[#allocation24_spill] sm:$0xff] %v8757_v52  ;;  %v8764_v35 = vmax.f32 %v11923_v45, %v1762_v18 }
 0x1f1   : > { %v1766_v41 = vpop.f32.mrf.mxu0  ;;  %v8766_v25 = vpop.f32.mrf.mxu1  ;;  %6467 = vmatmul.mubr.msk.bf16.gmra.mxu0 %vm296_vm0, %v7020_v61  ;;  %6518 = vmatmul.mubr.msk.bf16.gmra.mxu1 %vm296_vm0, %v7021_v42  ;;  %v11932_v42 = vld [vmem:[#allocation30_spill] sm:$0xff] }
 0x1f2   : > { %11924 = vst [vmem:[#allocation27_spill] sm:$0xff] %v8764_v35  ;;  %11925 = vst [vmem:[#allocation26_spill] sm:$0xff] %v8766_v25  ;;  %v8775_v31 = vmax.f32 %v11928_v47, %v1766_v41  ;;  %3110 = vmatprep.mubr.bf16.mxu0 %v11622_v13  ;;  %3449 = vmatprep.mubr.bf16.mxu1 %v11622_v13  ;;  %v11933_v45 = vmax.f32 %v11931_v54, %v11932_v42  ;;  %v7022_v41 = vld [vmem:[%s7203_s27 + $0x360] sm:$0xff]   ;;  %v11936_v47 = vld [vmem:[#allocation33_spill] sm:$0xff] }
 0x1f3   : > { %v1768_v18 = vpop.f32.mrf.mxu0  ;;  %v8779_v48 = vpop.f32.mrf.mxu1  ;;  %v11937_v35 = vld [vmem:[#allocation32_spill] sm:$0xff]  ;;  %v11941_v54 = vld [vmem:[#allocation35_spill] sm:$0xff]  ;;  %v11942_v42 = vld [vmem:[#allocation34_spill] sm:$0xff] }
 0x1f4   : > { %11929 = vst [vmem:[#allocation29_spill] sm:$0xff] %v8775_v31  ;;  %11930 = vst [vmem:[#allocation28_spill] sm:$0xff] %v8779_v48  ;;  %v8786_v37 = vmax.f32 %v11933_v45, %v1768_v18  ;;  %v11938_v26 = vmax.f32 %v11936_v47, %v11937_v35  ;;  %v11943_v45 = vmax.f32 %v11941_v54, %v11942_v42  ;;  %v11946_v35 = vld [vmem:[#allocation37_spill] sm:$0xff]  ;;  %v11951_v42 = vld [vmem:[#allocation39_spill] sm:$0xff] }
 0x1f5   : > { %v1770_v1 = vpop.f32.mrf.mxu0  ;;  %v8788_v52 = vpop.f32.mrf.mxu1 }
 0x1f6   : > { %11934 = vst [vmem:[#allocation31_spill] sm:$0xff] %v8786_v37  ;;  %11935 = vst [vmem:[#allocation30_spill] sm:$0xff] %v8788_v52  ;;  %v8797_v43 = vmax.f32 %v11938_v26, %v1770_v1  ;;  %v11947_v1 = vld [vmem:[#allocation36_spill] sm:$0xff] }
 0x1f7   : > { %v1772_v9 = vpop.f32.mrf.mxu0  ;;  %v8799_v61 = vpop.f32.mrf.mxu1  ;;  %v11948_v47 = vmax.f32 %v11946_v35, %v11947_v1  ;;  %v7025_v35 = vld [vmem:[%s7203_s27 + $0x3cc] sm:$0xff]  }
 0x1f8   : > { %11939 = vst [vmem:[#allocation33_spill] sm:$0xff] %v8797_v43  ;;  %11940 = vst [vmem:[#allocation32_spill] sm:$0xff] %v8799_v61  ;;  %v8806_v25 = vmax.f32 %v11943_v45, %v1772_v9 }
 0x1f9   : > { %v1776_v31 = vpop.f32.mrf.mxu0  ;;  %v8808_v53 = vpop.f32.mrf.mxu1  ;;  %6468 = vmatmul.mubr.msk.bf16.gmra.mxu0 %vm296_vm0, %v7022_v41  ;;  %6519 = vmatmul.mubr.msk.bf16.gmra.mxu1 %vm296_vm0, %v7023_v38  ;;  %v11952_v38 = vld [vmem:[#allocation38_spill] sm:$0xff] }
 0x1fa   : > { %11944 = vst [vmem:[#allocation35_spill] sm:$0xff] %v8806_v25  ;;  %11945 = vst [vmem:[#allocation34_spill] sm:$0xff] %v8808_v53  ;;  %v8817_v18 = vmax.f32 %v11948_v47, %v1776_v31  ;;  %3120 = vmatprep.mubr.bf16.mxu0 %v11622_v13  ;;  %3459 = vmatprep.mubr.bf16.mxu1 %v11622_v13  ;;  %v11953_v45 = vmax.f32 %v11951_v42, %v11952_v38  ;;  %v7024_v31 = vld [vmem:[%s7203_s27 + $0x368] sm:$0xff]   ;;  %v11955_v47 = vld [vmem:[#allocation41_spill] sm:$0xff] }
 0x1fb   : > { %v1778_v9 = vpop.f32.mrf.mxu0  ;;  %v8821_v54 = vpop.f32.mrf.mxu1  ;;  %v11956_v25 = vld [vmem:[#allocation40_spill] sm:$0xff]  ;;  %v11960_v42 = vld [vmem:[#allocation43_spill] sm:$0xff]  ;;  %v11961_v38 = vld [vmem:[#allocation42_spill] sm:$0xff] }
 0x1fc   : > { %11949 = vst [vmem:[#allocation37_spill] sm:$0xff] %v8817_v18  ;;  %11950 = vst [vmem:[#allocation36_spill] sm:$0xff] %v8821_v54  ;;  %v8828_v52 = vmax.f32 %v11953_v45, %v1778_v9  ;;  %v11957_v43 = vmax.f32 %v11955_v47, %v11956_v25  ;;  %v11962_v45 = vmax.f32 %v11960_v42, %v11961_v38  ;;  %v11965_v25 = vld [vmem:[#allocation45_spill] sm:$0xff] }
 0x1fd   : > { %v1780_v26 = vpop.f32.mrf.mxu0  ;;  %v8830_v61 = vpop.f32.mrf.mxu1 }
 0x1fe   : > { %11954 = vst [vmem:[#allocation39_spill] sm:$0xff] %v8830_v61  ;;  %v8839_v48 = vmax.f32 %v11957_v43, %v1780_v26  ;;  %v11966_v26 = vld [vmem:[#allocation44_spill] sm:$0xff] }
 0x1ff   : > { %v1782_v37 = vpop.f32.mrf.mxu0  ;;  %v8841_v41 = vpop.f32.mrf.mxu1  ;;  %v11967_v47 = vmax.f32 %v11965_v25, %v11966_v26  ;;  %v7027_v25 = vld [vmem:[%s7203_s27 + $0x3d4] sm:$0xff]  }
 0x200   : > { %11958 = vst [vmem:[#allocation38_spill] sm:$0xff] %v8839_v48  ;;  %11959 = vst [vmem:[#allocation41_spill] sm:$0xff] %v8841_v41  ;;  %v8848_v53 = vmax.f32 %v11962_v45, %v1782_v37 }
 0x201   : > { %v1786_v18 = vpop.f32.mrf.mxu0  ;;  %v8850_v1 = vpop.f32.mrf.mxu1  ;;  %6469 = vmatmul.mubr.msk.bf16.gmra.mxu0 %vm296_vm0, %v7024_v31  ;;  %6520 = vmatmul.mubr.msk.bf16.gmra.mxu1 %vm296_vm0, %v7025_v35  ;;  %v11969_v35 = vld [vmem:[#allocation46_spill] sm:$0xff] }
 0x202   : > { %11963 = vst [vmem:[#allocation40_spill] sm:$0xff] %v8848_v53  ;;  %11964 = vst [vmem:[#allocation43_spill] sm:$0xff] %v8850_v1  ;;  %v8859_v9 = vmax.f32 %v11967_v47, %v1786_v18  ;;  %3130 = vmatprep.mubr.bf16.mxu0 %v11622_v13  ;;  %3469 = vmatprep.mubr.bf16.mxu1 %v11622_v13  ;;  %v11970_v38 = vmax.f32 %v8300_v29, %v11969_v35  ;;  %v7026_v18 = vld [vmem:[%s7203_s27 + $0x370] sm:$0xff]   ;;  %v11972_v53 = vld [vmem:[#allocation47_spill] sm:$0xff] }
 0x203   : > { %v1788_v37 = vpop.f32.mrf.mxu0  ;;  %v8863_v42 = vpop.f32.mrf.mxu1  ;;  %v11971_v47 = vld [vmem:[#allocation48_spill] sm:$0xff]  ;;  %v11976_v35 = vld [vmem:[#allocation49_spill] sm:$0xff] }
 0x204   : > { %11968 = vst [vmem:[#allocation42_spill] sm:$0xff] %v8859_v9  ;;  %v8870_v45 = vmax.f32 %v11970_v38, %v1788_v37  ;;  %v11973_v61 = vmax.f32 %v11971_v47, %v11972_v53  ;;  %v11975_v37 = vld [vmem:[#allocation50_spill] sm:$0xff]  ;;  %v11978_v53 = vmax.f32 %v8331_v60, %v8322_v46  ;;  %v7028_v46 = vld [vmem:[%s7203_s27 + $0x378] sm:$0xff]  }
 0x205   : > { %v1790_v43 = vpop.f32.mrf.mxu0  ;;  %v8872_v41 = vpop.f32.mrf.mxu1  ;;  %v11977_v38 = vmax.f32 %v11975_v37, %v11976_v35  ;;  %v7029_v60 = vld [vmem:[%s7203_s27 + $0x3dc] sm:$0xff]  }
 0x206   : > { %v8881_v48 = vmax.f32 %v11973_v61, %v1790_v43 }
 0x207   : > { %v1792_v54 = vpop.f32.mrf.mxu0  ;;  %v8883_v31 = vpop.f32.mrf.mxu1 }
 0x208   : > { %11974 = vst [vmem:[#allocation45_spill] sm:$0xff] %v8883_v31  ;;  %v8890_v1 = vmax.f32 %v11977_v38, %v1792_v54 }
 0x209   : > { %v1796_v9 = vpop.f32.mrf.mxu0  ;;  %v8892_v26 = vpop.f32.mrf.mxu1  ;;  %6470 = vmatmul.mubr.msk.bf16.gmra.mxu0 %vm296_vm0, %v7026_v18  ;;  %6521 = vmatmul.mubr.msk.bf16.gmra.mxu1 %vm296_vm0, %v7027_v25  ;;  %v11979_v25 = vmax.f32 %v8342_v17, %v8335_v49  ;;  %v11980_v17 = vmax.f32 %v8355_v14, %v8348_v19  ;;  %v7030_v19 = vld [vmem:[%s7203_s27 + $0x380] ss:$0 sps:$4 sm:$0x77]   ;;  %v7031_v14 = vld [vmem:[%s7203_s27 + $0x3e4] ss:$0 sps:$4 sm:$0x77]  }
 0x20a   : > { %v8901_v43 = vmax.f32 %v11978_v53, %v1796_v9  ;;  %3140 = vmatprep.mubr.bf16.mxu0 %v11622_v13  ;;  %3479 = vmatprep.mubr.bf16.mxu1 %v11622_v13 }
 0x20b   : > { %v1798_v54 = vpop.f32.mrf.mxu0  ;;  %v8905_v47 = vpop.f32.mrf.mxu1 }
 0x20c   : > { %v8912_v37 = vmax.f32 %v11979_v25, %v1798_v54 }
 0x20d   : > { %v1800_v35 = vpop.f32.mrf.mxu0  ;;  %v2139_v38 = vpop.f32.mrf.mxu1 }
 0x20e   : > { %v11981_v35 = vmax.f32 %v8366_v56, %v8359_v16  ;;  %v11983_v56 = vmax.f32 %v8386_v28, %v8379_v34 }
 0x20f   : > { %v1801_v53 = vpop.f32.mrf.mxu0  ;;  %v2140_v61 = vpop.f32.mrf.mxu1 }
 0x210   : > { %v11982_v53 = vmax.f32 %v8377_v55, %v8368_v39  ;;  %v11985_v55 = vld [vmem:[#allocation51_spill] sm:$0xff] }
 0x211   : > { %v2354_v29 = vpop.f32.mrf.mxu0  ;;  %v8918_v31 = vpop.f32.mrf.mxu1  ;;  %6471 = vmatmul.mubr.msk.bf16.gmra.mxu0 %vm296_vm0, %v7028_v46  ;;  %6522 = vmatmul.mubr.msk.bf16.gmra.mxu1 %vm296_vm0, %v7029_v60 }
 0x212   : > { %v8925_v49 = vmax.f32 %v11980_v17, %v2354_v29  ;;  %3150 = vmatprep.mubr.bf16.mxu0 %v11622_v13  ;;  %3489 = vmatprep.mubr.bf16.mxu1 %v11622_v13 }
 0x213   : > { %v2356_v54 = vpop.f32.mrf.mxu0  ;;  %v8929_v25 = vpop.f32.mrf.mxu1 }
 0x214   : > { %v8936_v38 = vmax.f32 %v11981_v35, %v2356_v54 }
 0x215   : > { %v2358_v46 = vpop.f32.mrf.mxu0  ;;  %v8938_v60 = vpop.f32.mrf.mxu1 }
 0x216   : > { %v8947_v17 = vmax.f32 %v11982_v53, %v2358_v46  ;;  %v11986_v46 = vmax.f32 %v8397_v33, %v11985_v55  ;;  %v7032_v33 = vld [vmem:[%s7203_s27 + $0x3e8] sm:$0xff]  }
 0x217   : > { %v2360_v9 = vpop.f32.mrf.mxu0  ;;  %v8949_v61 = vpop.f32.mrf.mxu1 }
 0x218   : > { %v8956_v54 = vmax.f32 %v11983_v56, %v2360_v9 }
 0x219   : > { %v2364_v35 = vpop.f32.mrf.mxu0  ;;  %v8958_v29 = vpop.f32.mrf.mxu1  ;;  %6472 = vmatmul.mubr.msk.bf16.gmra.mxu0 %vm296_vm0, %v7030_v19  ;;  %6523 = vmatmul.mubr.msk.bf16.gmra.mxu1 %vm296_vm0, %v7031_v14  ;;  %v11987_v19 = vmax.f32 %v8408_v24, %v8401_v2  ;;  %v11989_v24 = vmax.f32 %v8428_v4, %v8421_v32 }
 0x21a   : > { %11984 = vst [vmem:[#allocation44_spill] sm:$0xff] %v8958_v29  ;;  %v8967_v53 = vmax.f32 %v11986_v46, %v2364_v35  ;;  %3708 = vmatprep.mubr.bf16.mxu0 %v11622_v13  ;;  %4047 = vmatprep.mubr.bf16.mxu1 %v11622_v13  ;;  %v7033_v35 = vld [vmem:[%s7203_s27 + $0x44c] sm:$0xff]   ;;  %v11988_v46 = vmax.f32 %v8419_v10, %v8410_v21 }
 0x21b   : > { %v2366_v34 = vpop.f32.mrf.mxu0  ;;  %v8971_v28 = vpop.f32.mrf.mxu1  ;;  %v11990_v21 = vmax.f32 %v8439_v51, %v8430_v36 }
 0x21c   : > { %v8978_v14 = vmax.f32 %v11987_v19, %v2366_v34 }
 0x21d   : > { %v2368_v56 = vpop.f32.mrf.mxu0  ;;  %v8980_v39 = vpop.f32.mrf.mxu1 }
 0x21e   : > { %v8989_v16 = vmax.f32 %v11988_v46, %v2368_v56  ;;  %v7035_v46 = vld [vmem:[%s7203_s27 + $0x454] sm:$0xff]  }
 0x21f   : > { %v2370_v18 = vpop.f32.mrf.mxu0  ;;  %v8991_v9 = vpop.f32.mrf.mxu1 }
 0x220   : > { %v8998_v34 = vmax.f32 %v11989_v24, %v2370_v18 }
 0x221   : > { %v2374_v19 = vpop.f32.mrf.mxu0  ;;  %v9000_v29 = vpop.f32.mrf.mxu1  ;;  %6562 = vmatmul.mubr.msk.bf16.vlgmr.msra.gmra.mxu0 %vm296_vm0, %v7032_v33  ;;  %6613 = vmatmul.mubr.msk.bf16.vlgmr.msra.gmra.mxu1 %vm296_vm0, %v7033_v35  ;;  %v11991_v33 = vmax.f32 %v8457_v50, %v8448_v11  ;;  %v7034_v35 = vld [vmem:[%s7203_s27 + $0x3f0] sm:$0xff]  }
 0x222   : > { %v9009_v56 = vmax.f32 %v11990_v21, %v2374_v19  ;;  %4365 = vmatpush1.bf16.msra.mxu0 %v8444_v6  ;;  %4704 = vmatpush1.bf16.msra.mxu1 %v8444_v6  ;;  %v11992_v19 = vmax.f32 %v8475_v22, %v8466_v58 }
 0x223   : > { %v2376_v32 = vpop.f32.mrf.mxu0  ;;  %v9013_v4 = vpop.f32.mrf.mxu1  ;;  %3718 = vmatprep.mubr.bf16.mxu0 %v11622_v13  ;;  %4057 = vmatprep.mubr.bf16.mxu1 %v11622_v13 }
 0x224   : > { %v9022_v36 = vmax.f32 %v11991_v33, %v2376_v32  ;;  %4366 = vmatprep.subr.bf16.mxu0 %v8462_v59  ;;  %4705 = vmatprep.subr.bf16.mxu1 %v8462_v59  ;;  %v11993_v59 = vld [vmem:[#allocation52_spill] sm:$0xff]  ;;  %v11994_v33 = vmax.f32 %v8498_v12, %v8484_v63 }
 0x225   : > { %v2378_v51 = vpop.f32.mrf.mxu0  ;;  %v9026_v6 = vpop.f32.mrf.mxu1 }
 0x226   : > { %v9035_v21 = vmax.f32 %v11992_v19, %v2378_v51  ;;  %4367 = vmatpush1.bf16.msra.mxu0 %v8480_v62  ;;  %4706 = vmatpush1.bf16.msra.mxu1 %v8480_v62  ;;  %v11995_v19 = vld [vmem:[#allocation54_spill] sm:$0xff] }
 0x227   : > { %v2380_v11 = vpop.f32.mrf.mxu0  ;;  %v9039_v50 = vpop.f32.mrf.mxu1  ;;  %4368 = vmatprep.subr.bf16.mxu0 %v11993_v59  ;;  %4707 = vmatprep.subr.bf16.mxu1 %v11993_v59  ;;  %v11996_v59 = vld [vmem:[#allocation53_spill] sm:$0xff] }
 0x228   : > { %v9048_v58 = vmax.f32 %v11994_v33, %v2380_v11  ;;  %v11997_v32 = vmax.f32 %v11995_v19, %v11996_v59  ;;  %v11999_v11 = vmax.f32 %v8527_v7, %v8513_v30  ;;  %v7036_v59 = vld [vmem:[%s7203_s27 + $0x3f8] sm:$0xff]  }
 0x229   : > { %v2384_v22 = vpop.f32.mrf.mxu0  ;;  %v9050_v51 = vpop.f32.mrf.mxu1  ;;  %6563 = vmatmul.mubr.msk.bf16.gmra.mxu0 %vm296_vm0, %v7034_v35  ;;  %6614 = vmatmul.mubr.msk.bf16.gmra.mxu1 %vm296_vm0, %v7035_v46  ;;  %v11998_v35 = vld [vmem:[#allocation55_spill] sm:$0xff]  ;;  %v7037_v62 = vld [vmem:[%s7203_s27 + $0x45c] sm:$0xff]   ;;  %v12001_v46 = vmax.f32 %v8545_v40, %v8536_v15  ;;  %v12003_v40 = vmax.f32 %v8565_v3, %v8556_v8 }
 0x22a   : > { %v9059_v24 = vmax.f32 %v11997_v32, %v2384_v22  ;;  %3728 = vmatprep.mubr.bf16.mxu0 %v11622_v13  ;;  %4067 = vmatprep.mubr.bf16.mxu1 %v11622_v13  ;;  %v12000_v32 = vld [vmem:[#allocation56_spill] sm:$0xff]  ;;  %v7038_v8 = vld [vmem:[%s7203_s27 + $0x400] sm:$0xff]  }
 0x22b   : > { %v2386_v63 = vpop.f32.mrf.mxu0  ;;  %v9063_v12 = vpop.f32.mrf.mxu1  ;;  %4369 = vmatpush1.bf16.msra.mxu0 %v11998_v35  ;;  %4708 = vmatpush1.bf16.msra.mxu1 %v11998_v35  ;;  %v7039_v3 = vld [vmem:[%s7203_s27 + $0x464] sm:$0xff]  }
 0x22c   : > { %v9072_v33 = vmax.f32 %v11999_v11, %v2386_v63  ;;  %5042 = vmatprep.subr.bf16.mxu0 %v12000_v32  ;;  %5381 = vmatprep.subr.bf16.mxu1 %v12000_v32  ;;  %v12002_v11 = vmax.f32 %v8554_v5, %v8547_v23 }
 0x22d   : > { %v2388_v22 = vpop.f32.mrf.mxu0  ;;  %v9076_v19 = vpop.f32.mrf.mxu1 }
 0x22e   : > { %v9085_v18 = vmax.f32 %v12001_v46, %v2388_v22 }
 0x22f   : > { %v2390_v30 = vpop.f32.mrf.mxu0  ;;  %v9087_v7 = vpop.f32.mrf.mxu1 }
 0x230   : > { %v9094_v32 = vmax.f32 %v12002_v11, %v2390_v30 }
 0x231   : > { %v2394_v10 = vpop.f32.mrf.mxu0  ;;  %v9096_v35 = vpop.f32.mrf.mxu1  ;;  %6564 = vmatmul.mubr.msk.bf16.gmra.mxu0 %vm296_vm0, %v7036_v59  ;;  %6615 = vmatmul.mubr.msk.bf16.gmra.mxu1 %vm296_vm0, %v7037_v62  ;;  %v12005_v62 = vmax.f32 %v8576_v20, %v8569_v0  ;;  %v12010_v20 = vld [vmem:[#allocation57_spill] sm:$0xff] }
 0x232   : > { %v9105_v46 = vmax.f32 %v12003_v40, %v2394_v10  ;;  %3738 = vmatprep.mubr.bf16.mxu0 %v11622_v13  ;;  %4077 = vmatprep.mubr.bf16.mxu1 %v11622_v13  ;;  %v12007_v40 = vmax.f32 %v8587_v57, %v8578_v27  ;;  %v12014_v27 = vld [vmem:[#allocation60_spill] sm:$0xff] }
 0x233   : > { %v2396_v5 = vpop.f32.mrf.mxu0  ;;  %v9109_v23 = vpop.f32.mrf.mxu1 }
 0x234   : > { %12004 = vst [vmem:[#allocation46_spill] sm:$0xff] %v9109_v23  ;;  %v9116_v59 = vmax.f32 %v12005_v62, %v2396_v5  ;;  %v12011_v5 = vmax.f32 %v8596_v44, %v12010_v20  ;;  %v12019_v20 = vld [vmem:[#allocation62_spill] sm:$0xff] }
 0x235   : > { %v2398_v30 = vpop.f32.mrf.mxu0  ;;  %v9118_v11 = vpop.f32.mrf.mxu1 }
 0x236   : > { %12006 = vst [vmem:[#allocation48_spill] sm:$0xff] %v9118_v11  ;;  %v9127_v15 = vmax.f32 %v12007_v40, %v2398_v30  ;;  %v12015_v30 = vld [vmem:[#allocation58_spill] sm:$0xff] }
 0x237   : > { %v2400_v63 = vpop.f32.mrf.mxu0  ;;  %v9129_v22 = vpop.f32.mrf.mxu1  ;;  %v12016_v40 = vmax.f32 %v12014_v27, %v12015_v30  ;;  %v7041_v27 = vld [vmem:[%s7203_s27 + $0x46c] sm:$0xff]  }
 0x238   : > { %12008 = vst [vmem:[#allocation47_spill] sm:$0xff] %v9127_v15  ;;  %12009 = vst [vmem:[#allocation50_spill] sm:$0xff] %v9129_v22  ;;  %v9136_v62 = vmax.f32 %v12011_v5, %v2400_v63 }
 0x239   : > { %v2404_v2 = vpop.f32.mrf.mxu0  ;;  %v9138_v10 = vpop.f32.mrf.mxu1  ;;  %6565 = vmatmul.mubr.msk.bf16.gmra.mxu0 %vm296_vm0, %v7038_v8  ;;  %6616 = vmatmul.mubr.msk.bf16.gmra.mxu1 %vm296_vm0, %v7039_v3  ;;  %v12020_v3 = vld [vmem:[#allocation61_spill] sm:$0xff] }
 0x23a   : > { %12012 = vst [vmem:[#allocation49_spill] sm:$0xff] %v9136_v62  ;;  %12013 = vst [vmem:[#allocation51_spill] sm:$0xff] %v9138_v10  ;;  %v9147_v0 = vmax.f32 %v12016_v40, %v2404_v2  ;;  %3748 = vmatprep.mubr.bf16.mxu0 %v11622_v13  ;;  %4087 = vmatprep.mubr.bf16.mxu1 %v11622_v13  ;;  %v12021_v5 = vmax.f32 %v12019_v20, %v12020_v3  ;;  %v7040_v2 = vld [vmem:[%s7203_s27 + $0x408] sm:$0xff]   ;;  %v12030_v3 = vld [vmem:[#allocation64_spill] sm:$0xff] }
 0x23b   : > { %v2406_v44 = vpop.f32.mrf.mxu0  ;;  %v9151_v63 = vpop.f32.mrf.mxu1  ;;  %v12024_v40 = vld [vmem:[#allocation59_spill] sm:$0xff] }
 0x23c   : > { %12017 = vst [vmem:[#allocation52_spill] sm:$0xff] %v9147_v0  ;;  %12018 = vst [vmem:[#allocation54_spill] sm:$0xff] %v9151_v63  ;;  %v9158_v55 = vmax.f32 %v12021_v5, %v2406_v44  ;;  %v12025_v62 = vld [vmem:[#allocation63_spill] sm:$0xff] }
 0x23d   : > { %v2408_v57 = vpop.f32.mrf.mxu0  ;;  %v9160_v22 = vpop.f32.mrf.mxu1  ;;  %v12026_v11 = vmax.f32 %v12024_v40, %v12025_v62  ;;  %v12029_v20 = vld [vmem:[#allocation3_spill] sm:$0xff]  ;;  %v12034_v62 = vld [vmem:[#allocation5_spill] sm:$0xff] }
 0x23e   : > { %12022 = vst [vmem:[#allocation53_spill] sm:$0xff] %v9158_v55  ;;  %12023 = vst [vmem:[#allocation55_spill] sm:$0xff] %v9160_v22  ;;  %v12031_v5 = vmax.f32 %v12029_v20, %v12030_v3  ;;  %v12039_v3 = vld [vmem:[#allocation7_spill] sm:$0xff] }
 0x23f   : > { %v9169_v15 = vmax.f32 %v12026_v11, %v2408_v57  ;;  %v2410_v23 = vpop.f32.mrf.mxu0  ;;  %v9171_v8 = vpop.f32.mrf.mxu1  ;;  %v12035_v57 = vld [vmem:[#allocation2_spill] sm:$0xff] }
 0x240   : > { %12028 = vst [vmem:[#allocation57_spill] sm:$0xff] %v9171_v8  ;;  %v9178_v10 = vmax.f32 %v12031_v5, %v2410_v23  ;;  %v12036_v40 = vmax.f32 %v12034_v62, %v12035_v57  ;;  %v7043_v62 = vld [vmem:[%s7203_s27 + $0x474] sm:$0xff]  }
 0x241   : > { %12027 = vst [vmem:[#allocation56_spill] sm:$0xff] %v9169_v15  ;;  %v2414_v0 = vpop.f32.mrf.mxu0  ;;  %v9180_v30 = vpop.f32.mrf.mxu1  ;;  %6566 = vmatmul.mubr.msk.bf16.gmra.mxu0 %vm296_vm0, %v7040_v2  ;;  %6617 = vmatmul.mubr.msk.bf16.gmra.mxu1 %vm296_vm0, %v7041_v27  ;;  %v12040_v27 = vld [vmem:[#allocation4_spill] sm:$0xff] }
 0x242   : > { %12032 = vst [vmem:[#allocation60_spill] sm:$0xff] %v9178_v10  ;;  %12033 = vst [vmem:[#allocation58_spill] sm:$0xff] %v9180_v30  ;;  %v9189_v44 = vmax.f32 %v12036_v40, %v2414_v0  ;;  %3758 = vmatprep.mubr.bf16.mxu0 %v11622_v13  ;;  %4097 = vmatprep.mubr.bf16.mxu1 %v11622_v13  ;;  %v12041_v5 = vmax.f32 %v12039_v3, %v12040_v27  ;;  %v7042_v0 = vld [vmem:[%s7203_s27 + $0x410] sm:$0xff]   ;;  %v12044_v40 = vld [vmem:[#allocation9_spill] sm:$0xff] }
 0x243   : > { %v2416_v23 = vpop.f32.mrf.mxu0  ;;  %v9193_v20 = vpop.f32.mrf.mxu1  ;;  %v12045_v10 = vld [vmem:[#allocation6_spill] sm:$0xff]  ;;  %v12049_v3 = vld [vmem:[#allocation11_spill] sm:$0xff]  ;;  %v12050_v27 = vld [vmem:[#allocation8_spill] sm:$0xff] }
 0x244   : > { %12037 = vst [vmem:[#allocation62_spill] sm:$0xff] %v9189_v44  ;;  %12038 = vst [vmem:[#allocation61_spill] sm:$0xff] %v9193_v20  ;;  %v9200_v22 = vmax.f32 %v12041_v5, %v2416_v23  ;;  %v12046_v15 = vmax.f32 %v12044_v40, %v12045_v10  ;;  %v12051_v5 = vmax.f32 %v12049_v3, %v12050_v27  ;;  %v12054_v10 = vld [vmem:[#allocation13_spill] sm:$0xff]  ;;  %v12059_v27 = vld [vmem:[#allocation15_spill] sm:$0xff] }
 0x245   : > { %v2418_v11 = vpop.f32.mrf.mxu0  ;;  %v9202_v8 = vpop.f32.mrf.mxu1 }
 0x246   : > { %12042 = vst [vmem:[#allocation59_spill] sm:$0xff] %v9200_v22  ;;  %12043 = vst [vmem:[#allocation63_spill] sm:$0xff] %v9202_v8  ;;  %v9211_v63 = vmax.f32 %v12046_v15, %v2418_v11  ;;  %v12055_v11 = vld [vmem:[#allocation10_spill] sm:$0xff] }
 0x247   : > { %v2420_v55 = vpop.f32.mrf.mxu0  ;;  %v9213_v2 = vpop.f32.mrf.mxu1  ;;  %v12056_v40 = vmax.f32 %v12054_v10, %v12055_v11  ;;  %v7045_v10 = vld [vmem:[%s7203_s27 + $0x47c] sm:$0xff]  }
 0x248   : > { %12047 = vst [vmem:[#allocation3_spill] sm:$0xff] %v9211_v63  ;;  %12048 = vst [vmem:[#allocation64_spill] sm:$0xff] %v9213_v2  ;;  %v9220_v30 = vmax.f32 %v12051_v5, %v2420_v55 }
 0x249   : > { %v2424_v44 = vpop.f32.mrf.mxu0  ;;  %v9222_v57 = vpop.f32.mrf.mxu1  ;;  %6567 = vmatmul.mubr.msk.bf16.gmra.mxu0 %vm296_vm0, %v7042_v0  ;;  %6618 = vmatmul.mubr.msk.bf16.gmra.mxu1 %vm296_vm0, %v7043_v62  ;;  %v12060_v62 = vld [vmem:[#allocation12_spill] sm:$0xff] }
 0x24a   : > { %12052 = vst [vmem:[#allocation5_spill] sm:$0xff] %v9220_v30  ;;  %12053 = vst [vmem:[#allocation2_spill] sm:$0xff] %v9222_v57  ;;  %v9231_v23 = vmax.f32 %v12056_v40, %v2424_v44  ;;  %3768 = vmatprep.mubr.bf16.mxu0 %v11622_v13  ;;  %4107 = vmatprep.mubr.bf16.mxu1 %v11622_v13  ;;  %v12061_v5 = vmax.f32 %v12059_v27, %v12060_v62  ;;  %v7044_v44 = vld [vmem:[%s7203_s27 + $0x418] sm:$0xff]   ;;  %v12065_v30 = vld [vmem:[#allocation14_spill] sm:$0xff] }
 0x24b   : > { %v2426_v55 = vpop.f32.mrf.mxu0  ;;  %v9235_v3 = vpop.f32.mrf.mxu1  ;;  %v12064_v40 = vld [vmem:[#allocation17_spill] sm:$0xff]  ;;  %v12069_v27 = vld [vmem:[#allocation19_spill] sm:$0xff]  ;;  %v12070_v62 = vld [vmem:[#allocation16_spill] sm:$0xff] }
 0x24c   : > { %12057 = vst [vmem:[#allocation7_spill] sm:$0xff] %v9231_v23  ;;  %12058 = vst [vmem:[#allocation4_spill] sm:$0xff] %v9235_v3  ;;  %v9242_v8 = vmax.f32 %v12061_v5, %v2426_v55  ;;  %v12066_v63 = vmax.f32 %v12064_v40, %v12065_v30  ;;  %v12071_v5 = vmax.f32 %v12069_v27, %v12070_v62  ;;  %v12074_v30 = vld [vmem:[#allocation21_spill] sm:$0xff]  ;;  %v12079_v62 = vld [vmem:[#allocation23_spill] sm:$0xff] }
 0x24d   : > { %v2428_v15 = vpop.f32.mrf.mxu0  ;;  %v9244_v2 = vpop.f32.mrf.mxu1 }
 0x24e   : > { %12062 = vst [vmem:[#allocation9_spill] sm:$0xff] %v9242_v8  ;;  %12063 = vst [vmem:[#allocation6_spill] sm:$0xff] %v9244_v2  ;;  %v9253_v20 = vmax.f32 %v12066_v63, %v2428_v15  ;;  %v12075_v15 = vld [vmem:[#allocation18_spill] sm:$0xff] }
 0x24f   : > { %v2430_v22 = vpop.f32.mrf.mxu0  ;;  %v9255_v0 = vpop.f32.mrf.mxu1  ;;  %v12076_v40 = vmax.f32 %v12074_v30, %v12075_v15  ;;  %v7047_v30 = vld [vmem:[%s7203_s27 + $0x484] sm:$0xff]  }
 0x250   : > { %12067 = vst [vmem:[#allocation11_spill] sm:$0xff] %v9253_v20  ;;  %12068 = vst [vmem:[#allocation8_spill] sm:$0xff] %v9255_v0  ;;  %v9262_v57 = vmax.f32 %v12071_v5, %v2430_v22 }
 0x251   : > { %v2434_v23 = vpop.f32.mrf.mxu0  ;;  %v9264_v11 = vpop.f32.mrf.mxu1  ;;  %6568 = vmatmul.mubr.msk.bf16.gmra.mxu0 %vm296_vm0, %v7044_v44  ;;  %6619 = vmatmul.mubr.msk.bf16.gmra.mxu1 %vm296_vm0, %v7045_v10  ;;  %v12080_v10 = vld [vmem:[#allocation20_spill] sm:$0xff] }
 0x252   : > { %12072 = vst [vmem:[#allocation13_spill] sm:$0xff] %v9262_v57  ;;  %12073 = vst [vmem:[#allocation10_spill] sm:$0xff] %v9264_v11  ;;  %v9273_v55 = vmax.f32 %v12076_v40, %v2434_v23  ;;  %3778 = vmatprep.mubr.bf16.mxu0 %v11622_v13  ;;  %4117 = vmatprep.mubr.bf16.mxu1 %v11622_v13  ;;  %v12081_v5 = vmax.f32 %v12079_v62, %v12080_v10  ;;  %v7046_v23 = vld [vmem:[%s7203_s27 + $0x420] sm:$0xff]   ;;  %v12084_v40 = vld [vmem:[#allocation25_spill] sm:$0xff] }
 0x253   : > { %v2436_v22 = vpop.f32.mrf.mxu0  ;;  %v9277_v27 = vpop.f32.mrf.mxu1  ;;  %v12085_v57 = vld [vmem:[#allocation22_spill] sm:$0xff]  ;;  %v12089_v62 = vld [vmem:[#allocation27_spill] sm:$0xff]  ;;  %v12090_v10 = vld [vmem:[#allocation24_spill] sm:$0xff] }
 0x254   : > { %12077 = vst [vmem:[#allocation15_spill] sm:$0xff] %v9273_v55  ;;  %12078 = vst [vmem:[#allocation12_spill] sm:$0xff] %v9277_v27  ;;  %v9284_v2 = vmax.f32 %v12081_v5, %v2436_v22  ;;  %v12086_v20 = vmax.f32 %v12084_v40, %v12085_v57  ;;  %v12091_v5 = vmax.f32 %v12089_v62, %v12090_v10  ;;  %v12094_v57 = vld [vmem:[#allocation29_spill] sm:$0xff]  ;;  %v12099_v10 = vld [vmem:[#allocation31_spill] sm:$0xff] }
 0x255   : > { %v2438_v63 = vpop.f32.mrf.mxu0  ;;  %v9286_v0 = vpop.f32.mrf.mxu1 }
 0x256   : > { %12082 = vst [vmem:[#allocation17_spill] sm:$0xff] %v9284_v2  ;;  %12083 = vst [vmem:[#allocation14_spill] sm:$0xff] %v9286_v0  ;;  %v9295_v3 = vmax.f32 %v12086_v20, %v2438_v63  ;;  %v12095_v63 = vld [vmem:[#allocation26_spill] sm:$0xff] }
 0x257   : > { %v2440_v8 = vpop.f32.mrf.mxu0  ;;  %v9297_v44 = vpop.f32.mrf.mxu1  ;;  %v12096_v40 = vmax.f32 %v12094_v57, %v12095_v63  ;;  %v7049_v57 = vld [vmem:[%s7203_s27 + $0x48c] sm:$0xff]  }
 0x258   : > { %12087 = vst [vmem:[#allocation19_spill] sm:$0xff] %v9295_v3  ;;  %12088 = vst [vmem:[#allocation16_spill] sm:$0xff] %v9297_v44  ;;  %v9304_v11 = vmax.f32 %v12091_v5, %v2440_v8 }
 0x259   : > { %v2444_v55 = vpop.f32.mrf.mxu0  ;;  %v9306_v15 = vpop.f32.mrf.mxu1  ;;  %6569 = vmatmul.mubr.msk.bf16.gmra.mxu0 %vm296_vm0, %v7046_v23  ;;  %6620 = vmatmul.mubr.msk.bf16.gmra.mxu1 %vm296_vm0, %v7047_v30  ;;  %v12100_v30 = vld [vmem:[#allocation28_spill] sm:$0xff] }
 0x25a   : > { %12092 = vst [vmem:[#allocation21_spill] sm:$0xff] %v9304_v11  ;;  %12093 = vst [vmem:[#allocation18_spill] sm:$0xff] %v9306_v15  ;;  %v9315_v22 = vmax.f32 %v12096_v40, %v2444_v55  ;;  %3788 = vmatprep.mubr.bf16.mxu0 %v11622_v13  ;;  %4127 = vmatprep.mubr.bf16.mxu1 %v11622_v13  ;;  %v12101_v5 = vmax.f32 %v12099_v10, %v12100_v30  ;;  %v7048_v55 = vld [vmem:[%s7203_s27 + $0x428] sm:$0xff]   ;;  %v12103_v40 = vld [vmem:[#allocation33_spill] sm:$0xff] }
 0x25b   : > { %v2446_v8 = vpop.f32.mrf.mxu0  ;;  %v9319_v62 = vpop.f32.mrf.mxu1  ;;  %v12104_v11 = vld [vmem:[#allocation30_spill] sm:$0xff]  ;;  %v12108_v10 = vld [vmem:[#allocation35_spill] sm:$0xff]  ;;  %v12109_v30 = vld [vmem:[#allocation32_spill] sm:$0xff] }
 0x25c   : > { %12097 = vst [vmem:[#allocation23_spill] sm:$0xff] %v9315_v22  ;;  %12098 = vst [vmem:[#allocation20_spill] sm:$0xff] %v9319_v62  ;;  %v9326_v0 = vmax.f32 %v12101_v5, %v2446_v8  ;;  %v12105_v3 = vmax.f32 %v12103_v40, %v12104_v11  ;;  %v12110_v5 = vmax.f32 %v12108_v10, %v12109_v30  ;;  %v12113_v11 = vld [vmem:[#allocation37_spill] sm:$0xff] }
 0x25d   : > { %v2448_v20 = vpop.f32.mrf.mxu0  ;;  %v9328_v44 = vpop.f32.mrf.mxu1 }
 0x25e   : > { %12102 = vst [vmem:[#allocation25_spill] sm:$0xff] %v9328_v44  ;;  %v9337_v27 = vmax.f32 %v12105_v3, %v2448_v20  ;;  %v12114_v20 = vld [vmem:[#allocation34_spill] sm:$0xff] }
 0x25f   : > { %v2450_v2 = vpop.f32.mrf.mxu0  ;;  %v9339_v23 = vpop.f32.mrf.mxu1  ;;  %v12115_v40 = vmax.f32 %v12113_v11, %v12114_v20  ;;  %v7051_v11 = vld [vmem:[%s7203_s27 + $0x494] sm:$0xff]  }
 0x260   : > { %12106 = vst [vmem:[#allocation22_spill] sm:$0xff] %v9337_v27  ;;  %12107 = vst [vmem:[#allocation27_spill] sm:$0xff] %v9339_v23  ;;  %v9346_v15 = vmax.f32 %v12110_v5, %v2450_v2 }
 0x261   : > { %v2454_v22 = vpop.f32.mrf.mxu0  ;;  %v9348_v63 = vpop.f32.mrf.mxu1  ;;  %6570 = vmatmul.mubr.msk.bf16.gmra.mxu0 %vm296_vm0, %v7048_v55  ;;  %6621 = vmatmul.mubr.msk.bf16.gmra.mxu1 %vm296_vm0, %v7049_v57  ;;  %v12117_v57 = vld [vmem:[#allocation36_spill] sm:$0xff] }
 0x262   : > { %12111 = vst [vmem:[#allocation24_spill] sm:$0xff] %v9346_v15  ;;  %12112 = vst [vmem:[#allocation29_spill] sm:$0xff] %v9348_v63  ;;  %v9357_v8 = vmax.f32 %v12115_v40, %v2454_v22  ;;  %3798 = vmatprep.mubr.bf16.mxu0 %v11622_v13  ;;  %4137 = vmatprep.mubr.bf16.mxu1 %v11622_v13  ;;  %v12118_v30 = vmax.f32 %v8828_v52, %v12117_v57  ;;  %v7050_v22 = vld [vmem:[%s7203_s27 + $0x430] sm:$0xff]   ;;  %v12119_v40 = vld [vmem:[#allocation38_spill] sm:$0xff] }
 0x263   : > { %v2456_v2 = vpop.f32.mrf.mxu0  ;;  %v9361_v10 = vpop.f32.mrf.mxu1  ;;  %v12120_v15 = vld [vmem:[#allocation39_spill] sm:$0xff]  ;;  %v12124_v57 = vld [vmem:[#allocation41_spill] sm:$0xff] }
 0x264   : > { %12116 = vst [vmem:[#allocation26_spill] sm:$0xff] %v9357_v8  ;;  %v9368_v5 = vmax.f32 %v12118_v30, %v2456_v2  ;;  %v12121_v44 = vmax.f32 %v12119_v40, %v12120_v15  ;;  %v12123_v2 = vld [vmem:[#allocation40_spill] sm:$0xff]  ;;  %v12128_v15 = vld [vmem:[#allocation42_spill] sm:$0xff] }
 0x265   : > { %v2458_v3 = vpop.f32.mrf.mxu0  ;;  %v9370_v23 = vpop.f32.mrf.mxu1  ;;  %v12125_v30 = vmax.f32 %v12123_v2, %v12124_v57 }
 0x266   : > { %v9379_v27 = vmax.f32 %v12121_v44, %v2458_v3  ;;  %v12129_v3 = vld [vmem:[#allocation43_spill] sm:$0xff] }
 0x267   : > { %v2460_v62 = vpop.f32.mrf.mxu0  ;;  %v9381_v55 = vpop.f32.mrf.mxu1  ;;  %v12130_v40 = vmax.f32 %v12128_v15, %v12129_v3  ;;  %v7053_v15 = vld [vmem:[%s7203_s27 + $0x49c] sm:$0xff]  }
 0x268   : > { %12122 = vst [vmem:[#allocation31_spill] sm:$0xff] %v9381_v55  ;;  %v9388_v63 = vmax.f32 %v12125_v30, %v2460_v62 }
 0x269   : > { %v2464_v8 = vpop.f32.mrf.mxu0  ;;  %v9390_v20 = vpop.f32.mrf.mxu1  ;;  %6571 = vmatmul.mubr.msk.bf16.gmra.mxu0 %vm296_vm0, %v7050_v22  ;;  %6622 = vmatmul.mubr.msk.bf16.gmra.mxu1 %vm296_vm0, %v7051_v11  ;;  %v12131_v11 = vmax.f32 %v8870_v45, %v8863_v42  ;;  %v12134_v45 = vld [vmem:[#allocation45_spill] sm:$0xff] }
 0x26a   : > { %12126 = vst [vmem:[#allocation28_spill] sm:$0xff] %v9388_v63  ;;  %12127 = vst [vmem:[#allocation33_spill] sm:$0xff] %v9390_v20  ;;  %v9399_v52 = vmax.f32 %v12130_v40, %v2464_v8  ;;  %3808 = vmatprep.mubr.bf16.mxu0 %v11622_v13  ;;  %4147 = vmatprep.mubr.bf16.mxu1 %v11622_v13  ;;  %v7052_v8 = vld [vmem:[%s7203_s27 + $0x438] sm:$0xff]   ;;  %v12132_v40 = vmax.f32 %v8881_v48, %v8872_v41 }
 0x26b   : > { %v2466_v62 = vpop.f32.mrf.mxu0  ;;  %v9403_v2 = vpop.f32.mrf.mxu1  ;;  %v12136_v41 = vmax.f32 %v8901_v43, %v8892_v26  ;;  %v7054_v26 = vld [vmem:[%s7203_s27 + $0x440] sm:$0xff]  }
 0x26c   : > { %v9410_v57 = vmax.f32 %v12131_v11, %v2466_v62  ;;  %v12135_v62 = vmax.f32 %v8890_v1, %v12134_v45  ;;  %v7055_v43 = vld [vmem:[%s7203_s27 + $0x4a4] sm:$0xff]  }
 0x26d   : > { %v2468_v30 = vpop.f32.mrf.mxu0  ;;  %v9412_v44 = vpop.f32.mrf.mxu1 }
 0x26e   : > { %v9421_v55 = vmax.f32 %v12132_v40, %v2468_v30 }
 0x26f   : > { %v2470_v63 = vpop.f32.mrf.mxu0  ;;  %v9423_v22 = vpop.f32.mrf.mxu1 }
 0x270   : > { %12133 = vst [vmem:[#allocation30_spill] sm:$0xff] %v9423_v22  ;;  %v9430_v11 = vmax.f32 %v12135_v62, %v2470_v63 }
 0x271   : > { %v2474_v20 = vpop.f32.mrf.mxu0  ;;  %v9432_v3 = vpop.f32.mrf.mxu1  ;;  %6572 = vmatmul.mubr.msk.bf16.gmra.mxu0 %vm296_vm0, %v7052_v8  ;;  %6623 = vmatmul.mubr.msk.bf16.gmra.mxu1 %vm296_vm0, %v7053_v15  ;;  %v12137_v15 = vmax.f32 %v8912_v37, %v8905_v47  ;;  %v12138_v47 = vmax.f32 %v8925_v49, %v8918_v31  ;;  %v7056_v31 = vld [vmem:[%s7203_s27 + $0x448] ss:$0 sps:$4 sm:$0x77]   ;;  %v7057_v49 = vld [vmem:[%s7203_s27 + $0x4ac] ss:$0 sps:$4 sm:$0x77]  }
 0x272   : > { %v9441_v30 = vmax.f32 %v12136_v41, %v2474_v20  ;;  %3818 = vmatprep.mubr.bf16.mxu0 %v11622_v13  ;;  %4157 = vmatprep.mubr.bf16.mxu1 %v11622_v13 }
 0x273   : > { %v2476_v1 = vpop.f32.mrf.mxu0  ;;  %v9445_v63 = vpop.f32.mrf.mxu1 }
 0x274   : > { %v9452_v40 = vmax.f32 %v12137_v15, %v2476_v1 }
 0x275   : > { %v2478_v45 = vpop.f32.mrf.mxu0  ;;  %v2817_v62 = vpop.f32.mrf.mxu1 }
 0x276   : > { %v12139_v45 = vmax.f32 %v8936_v38, %v8929_v25  ;;  %v12141_v38 = vmax.f32 %v8956_v54, %v8949_v61 }
 0x277   : > { %v2479_v41 = vpop.f32.mrf.mxu0  ;;  %v2818_v48 = vpop.f32.mrf.mxu1 }
 0x278   : > { %v12140_v41 = vmax.f32 %v8947_v17, %v8938_v60  ;;  %v12143_v17 = vld [vmem:[#allocation44_spill] sm:$0xff] }
 0x279   : > { %v3032_v42 = vpop.f32.mrf.mxu0  ;;  %v9458_v22 = vpop.f32.mrf.mxu1  ;;  %6573 = vmatmul.mubr.msk.bf16.gmra.mxu0 %vm296_vm0, %v7054_v26  ;;  %6624 = vmatmul.mubr.msk.bf16.gmra.mxu1 %vm296_vm0, %v7055_v43 }
 0x27a   : > { %v9465_v37 = vmax.f32 %v12138_v47, %v3032_v42  ;;  %3828 = vmatprep.mubr.bf16.mxu0 %v11622_v13  ;;  %4167 = vmatprep.mubr.bf16.mxu1 %v11622_v13 }
 0x27b   : > { %v3034_v1 = vpop.f32.mrf.mxu0  ;;  %v9469_v15 = vpop.f32.mrf.mxu1 }
 0x27c   : > { %v9476_v62 = vmax.f32 %v12139_v45, %v3034_v1 }
 0x27d   : > { %v3036_v26 = vpop.f32.mrf.mxu0  ;;  %v9478_v43 = vpop.f32.mrf.mxu1 }
 0x27e   : > { %v9487_v47 = vmax.f32 %v12140_v41, %v3036_v26  ;;  %v12144_v26 = vmax.f32 %v8967_v53, %v12143_v17  ;;  %v7058_v53 = vld [vmem:[%s7203_s27 + $0x4b0] sm:$0xff]  }
 0x27f   : > { %v3038_v20 = vpop.f32.mrf.mxu0  ;;  %v9489_v48 = vpop.f32.mrf.mxu1 }
 0x280   : > { %v9496_v1 = vmax.f32 %v12141_v38, %v3038_v20 }
 0x281   : > { %v3042_v45 = vpop.f32.mrf.mxu0  ;;  %v9498_v42 = vpop.f32.mrf.mxu1  ;;  %6574 = vmatmul.mubr.msk.bf16.gmra.mxu0 %vm296_vm0, %v7056_v31  ;;  %6625 = vmatmul.mubr.msk.bf16.gmra.mxu1 %vm296_vm0, %v7057_v49  ;;  %v12145_v31 = vmax.f32 %v8978_v14, %v8971_v28  ;;  %v12147_v14 = vmax.f32 %v8998_v34, %v8991_v9  ;;  %v7122_v9 = vld [vmem:[%s11229_s1 + $0x20] ss:$8 sps:$4 sm:$0xff]  }
 0x282   : > { %12142 = vst [vmem:[#allocation35_spill] sm:$0xff] %v9498_v42  ;;  %v9507_v41 = vmax.f32 %v12144_v26, %v3042_v45  ;;  %4386 = vmatprep.mubr.bf16.mxu0 %v11622_v13  ;;  %4725 = vmatprep.mubr.bf16.mxu1 %v11622_v13  ;;  %v7059_v45 = vld [vmem:[%s7203_s27 + $0x514] sm:$0xff]   ;;  %v12146_v26 = vmax.f32 %v8989_v16, %v8980_v39 }
 0x283   : > { %v3044_v61 = vpop.f32.mrf.mxu0  ;;  %v9511_v54 = vpop.f32.mrf.mxu1  ;;  %v12148_v39 = vmax.f32 %v9009_v56, %v9000_v29  ;;  %v12149_v56 = vmax.f32 %v9022_v36, %v9013_v4  ;;  %v12150_v29 = vmax.f32 %v9035_v21, %v9026_v6  ;;  %v7124_v36 = vld [vmem:[%s11229_s1 + $0x10] ss:$8 sps:$4 sm:$0xff]   ;;  %v12151_v21 = vmax.f32 %v9048_v58, %v9039_v50 }
 0x284   : > { %v9518_v49 = vmax.f32 %v12145_v31, %v3044_v61  ;;  %v12154_v16 = vmax.f32 %v9085_v18, %v9076_v19  ;;  %v12159_v19 = vmax.f32 %v9105_v46, %v9096_v35  ;;  %v7064_v35 = vld [vmem:[%s7203_s27 + $0x4c8] sm:$0xff]  }
 0x285   : > { %v3046_v38 = vpop.f32.mrf.mxu0  ;;  %v9520_v60 = vpop.f32.mrf.mxu1  ;;  %v7065_v46 = vld [vmem:[%s7203_s27 + $0x52c] sm:$0xff]  }
 0x286   : > { %v9529_v25 = vmax.f32 %v12146_v26, %v3046_v38 }
 0x287   : > { %v3048_v8 = vpop.f32.mrf.mxu0  ;;  %v9531_v20 = vpop.f32.mrf.mxu1 }
 0x288   : > { %v9538_v61 = vmax.f32 %v12147_v14, %v3048_v8 }
 0x289   : > { %v3052_v31 = vpop.f32.mrf.mxu0  ;;  %v9540_v42 = vpop.f32.mrf.mxu1  ;;  %6664 = vmatmul.mubr.msk.bf16.vlgmr.msra.gmra.mxu0 %vm296_vm0, %v7058_v53  ;;  %6715 = vmatmul.mubr.msk.bf16.vlgmr.msra.gmra.mxu1 %vm296_vm0, %v7059_v45  ;;  %v7123_v45 = vld [vmem:[%s11229_s1 + $0x14] ss:$8 sps:$4 sm:$0xff]  }
 0x28a   : > { %v9549_v38 = vmax.f32 %v12148_v39, %v3052_v31  ;;  %5043 = vmatpush1.bf16.msra.mxu0 %v7122_v9  ;;  %5382 = vmatpush1.bf16.msra.mxu1 %v7122_v9  ;;  %v7060_v31 = vld [vmem:[%s7203_s27 + $0x4b8] sm:$0xff]  }
 0x28b   : > { %v3054_v34 = vpop.f32.mrf.mxu0  ;;  %v9554_v8 = vpop.f32.mrf.mxu1  ;;  %4396 = vmatprep.mubr.bf16.mxu0 %v11622_v13  ;;  %4735 = vmatprep.mubr.bf16.mxu1 %v11622_v13  ;;  %v7061_v39 = vld [vmem:[%s7203_s27 + $0x51c] sm:$0xff]  }
 0x28c   : > { %v9563_v53 = vmax.f32 %v12149_v56, %v3054_v34  ;;  %5044 = vmatprep.subr.bf16.mxu0 %v7123_v45  ;;  %5383 = vmatprep.subr.bf16.mxu1 %v7123_v45  ;;  %v7125_v45 = vld [vmem:[%s11229_s1 + $0x4] ss:$8 sps:$4 sm:$0xff]  }
 0x28d   : > { %v3056_v26 = vpop.f32.mrf.mxu0  ;;  %v9568_v14 = vpop.f32.mrf.mxu1 }
 0x28e   : > { %v9577_v4 = vmax.f32 %v12150_v29, %v3056_v26  ;;  %5045 = vmatpush1.bf16.msra.mxu0 %v7124_v36  ;;  %5384 = vmatpush1.bf16.msra.mxu1 %v7124_v36 }
 0x28f   : > { %v3058_v34 = vpop.f32.mrf.mxu0  ;;  %v9582_v56 = vpop.f32.mrf.mxu1  ;;  %5046 = vmatprep.subr.bf16.mxu0 %v7125_v45  ;;  %5385 = vmatprep.subr.bf16.mxu1 %v7125_v45  ;;  %v12152_v45 = vmax.f32 %v9059_v24, %v9050_v51  ;;  %v12153_v24 = vmax.f32 %v9072_v33, %v9063_v12  ;;  %v12156_v33 = vmax.f32 %v9094_v32, %v9087_v7  ;;  %v12167_v12 = vld [vmem:[#allocation48_spill] sm:$0xff] }
 0x290   : > { %v9592_v29 = vmax.f32 %v12151_v21, %v3058_v34 }
 0x291   : > { %v3062_v26 = vpop.f32.mrf.mxu0  ;;  %v9594_v9 = vpop.f32.mrf.mxu1  ;;  %6665 = vmatmul.mubr.msk.bf16.gmra.mxu0 %vm296_vm0, %v7060_v31  ;;  %6716 = vmatmul.mubr.msk.bf16.gmra.mxu1 %vm296_vm0, %v7061_v39  ;;  %v7126_v31 = vld [vmem:[%s11229_s1] ss:$8 sps:$4 sm:$0xff]  }
 0x292   : > { %v9603_v6 = vmax.f32 %v12152_v45, %v3062_v26  ;;  %4406 = vmatprep.mubr.bf16.mxu0 %v11622_v13  ;;  %4745 = vmatprep.mubr.bf16.mxu1 %v11622_v13  ;;  %v7062_v26 = vld [vmem:[%s7203_s27 + $0x4c0] sm:$0xff]  }
 0x293   : > { %v3064_v50 = vpop.f32.mrf.mxu0  ;;  %v9607_v58 = vpop.f32.mrf.mxu1  ;;  %5047 = vmatpush1.bf16.msra.mxu0 %v7126_v31  ;;  %5386 = vmatpush1.bf16.msra.mxu1 %v7126_v31  ;;  %v7063_v45 = vld [vmem:[%s7203_s27 + $0x524] sm:$0xff]  }
 0x294   : > { %v9617_v51 = vmax.f32 %v12153_v24, %v3064_v50 }
 0x295   : > { %v3066_v34 = vpop.f32.mrf.mxu0  ;;  %v9619_v21 = vpop.f32.mrf.mxu1 }
 0x296   : > { %v9628_v31 = vmax.f32 %v12154_v16, %v3066_v34  ;;  %v12162_v34 = vld [vmem:[#allocation46_spill] sm:$0xff] }
 0x297   : > { %v3068_v28 = vpop.f32.mrf.mxu0  ;;  %v9630_v39 = vpop.f32.mrf.mxu1 }
 0x298   : > { %12155 = vst [vmem:[#allocation32_spill] sm:$0xff] %v9630_v39  ;;  %v9637_v50 = vmax.f32 %v12156_v33, %v3068_v28 }
 0x299   : > { %v3072_v24 = vpop.f32.mrf.mxu0  ;;  %v9639_v36 = vpop.f32.mrf.mxu1  ;;  %6666 = vmatmul.mubr.msk.bf16.gmra.mxu0 %vm296_vm0, %v7062_v26  ;;  %6717 = vmatmul.mubr.msk.bf16.gmra.mxu1 %vm296_vm0, %v7063_v45  ;;  %v12163_v26 = vmax.f32 %v9116_v59, %v12162_v34  ;;  %v12172_v34 = vld [vmem:[#allocation50_spill] sm:$0xff] }
 0x29a   : > { %12157 = vst [vmem:[#allocation37_spill] sm:$0xff] %v9637_v50  ;;  %12158 = vst [vmem:[#allocation34_spill] sm:$0xff] %v9639_v36  ;;  %v9648_v16 = vmax.f32 %v12159_v19, %v3072_v24  ;;  %4416 = vmatprep.mubr.bf16.mxu0 %v11622_v13  ;;  %4755 = vmatprep.mubr.bf16.mxu1 %v11622_v13  ;;  %v12166_v19 = vld [vmem:[#allocation47_spill] sm:$0xff] }
 0x29b   : > { %v3074_v7 = vpop.f32.mrf.mxu0  ;;  %v9652_v32 = vpop.f32.mrf.mxu1  ;;  %v12168_v17 = vmax.f32 %v12166_v19, %v12167_v12  ;;  %v12176_v12 = vld [vmem:[#allocation52_spill] sm:$0xff] }
 0x29c   : > { %12160 = vst [vmem:[#allocation36_spill] sm:$0xff] %v9648_v16  ;;  %12161 = vst [vmem:[#allocation38_spill] sm:$0xff] %v9652_v32  ;;  %v9659_v45 = vmax.f32 %v12163_v26, %v3074_v7  ;;  %v12171_v7 = vld [vmem:[#allocation49_spill] sm:$0xff] }
 0x29d   : > { %v3076_v33 = vpop.f32.mrf.mxu0  ;;  %v9661_v18 = vpop.f32.mrf.mxu1  ;;  %v12173_v26 = vmax.f32 %v12171_v7, %v12172_v34  ;;  %v12181_v34 = vld [vmem:[#allocation53_spill] sm:$0xff] }
 0x29e   : > { %12164 = vst [vmem:[#allocation39_spill] sm:$0xff] %v9659_v45  ;;  %12165 = vst [vmem:[#allocation40_spill] sm:$0xff] %v9661_v18  ;;  %v9670_v39 = vmax.f32 %v12168_v17, %v3076_v33  ;;  %v12177_v33 = vld [vmem:[#allocation51_spill] sm:$0xff] }
 0x29f   : > { %v3078_v50 = vpop.f32.mrf.mxu0  ;;  %v9672_v28 = vpop.f32.mrf.mxu1  ;;  %v12178_v19 = vmax.f32 %v12176_v12, %v12177_v33  ;;  %v7067_v12 = vld [vmem:[%s7203_s27 + $0x534] sm:$0xff]  }
 0x2a0   : > { %12169 = vst [vmem:[#allocation41_spill] sm:$0xff] %v9670_v39  ;;  %12170 = vst [vmem:[#allocation42_spill] sm:$0xff] %v9672_v28  ;;  %v9679_v36 = vmax.f32 %v12173_v26, %v3078_v50 }
 0x2a1   : > { %v3082_v16 = vpop.f32.mrf.mxu0  ;;  %v9681_v24 = vpop.f32.mrf.mxu1  ;;  %6667 = vmatmul.mubr.msk.bf16.gmra.mxu0 %vm296_vm0, %v7064_v35  ;;  %6718 = vmatmul.mubr.msk.bf16.gmra.mxu1 %vm296_vm0, %v7065_v46  ;;  %v12182_v46 = vld [vmem:[#allocation54_spill] sm:$0xff] }
 0x2a2   : > { %12174 = vst [vmem:[#allocation43_spill] sm:$0xff] %v9679_v36  ;;  %12175 = vst [vmem:[#allocation45_spill] sm:$0xff] %v9681_v24  ;;  %v9690_v59 = vmax.f32 %v12178_v19, %v3082_v16  ;;  %4426 = vmatprep.mubr.bf16.mxu0 %v11622_v13  ;;  %4765 = vmatprep.mubr.bf16.mxu1 %v11622_v13  ;;  %v12183_v26 = vmax.f32 %v12181_v34, %v12182_v46  ;;  %v7066_v16 = vld [vmem:[%s7203_s27 + $0x4d0] sm:$0xff]   ;;  %v12187_v36 = vld [vmem:[#allocation55_spill] sm:$0xff] }
 0x2a3   : > { %v3084_v50 = vpop.f32.mrf.mxu0  ;;  %v9694_v7 = vpop.f32.mrf.mxu1  ;;  %v12186_v19 = vld [vmem:[#allocation56_spill] sm:$0xff]  ;;  %v12192_v46 = vld [vmem:[#allocation57_spill] sm:$0xff] }
 0x2a4   : > { %12179 = vst [vmem:[#allocation44_spill] sm:$0xff] %v9690_v59  ;;  %12180 = vst [vmem:[#allocation46_spill] sm:$0xff] %v9694_v7  ;;  %v9701_v18 = vmax.f32 %v12183_v26, %v3084_v50  ;;  %v12188_v39 = vmax.f32 %v12186_v19, %v12187_v36  ;;  %v12191_v34 = vld [vmem:[#allocation60_spill] sm:$0xff] }
 0x2a5   : > { %v3086_v17 = vpop.f32.mrf.mxu0  ;;  %v9703_v28 = vpop.f32.mrf.mxu1  ;;  %v12193_v26 = vmax.f32 %v12191_v34, %v12192_v46  ;;  %v12201_v46 = vld [vmem:[#allocation59_spill] sm:$0xff] }
 0x2a6   : > { %12184 = vst [vmem:[#allocation47_spill] sm:$0xff] %v9701_v18  ;;  %12185 = vst [vmem:[#allocation48_spill] sm:$0xff] %v9703_v28  ;;  %v9712_v32 = vmax.f32 %v12188_v39, %v3086_v17  ;;  %v12196_v39 = vld [vmem:[#allocation62_spill] sm:$0xff] }
 0x2a7   : > { %v3088_v45 = vpop.f32.mrf.mxu0  ;;  %v9714_v35 = vpop.f32.mrf.mxu1  ;;  %v12197_v17 = vld [vmem:[#allocation58_spill] sm:$0xff] }
 0x2a8   : > { %12189 = vst [vmem:[#allocation49_spill] sm:$0xff] %v9712_v32  ;;  %12190 = vst [vmem:[#allocation50_spill] sm:$0xff] %v9714_v35  ;;  %v9721_v24 = vmax.f32 %v12193_v26, %v3088_v45  ;;  %v12198_v19 = vmax.f32 %v12196_v39, %v12197_v17  ;;  %v7069_v39 = vld [vmem:[%s7203_s27 + $0x53c] sm:$0xff]  }
 0x2a9   : > { %v3092_v59 = vpop.f32.mrf.mxu0  ;;  %v9723_v33 = vpop.f32.mrf.mxu1  ;;  %6668 = vmatmul.mubr.msk.bf16.gmra.mxu0 %vm296_vm0, %v7066_v16  ;;  %6719 = vmatmul.mubr.msk.bf16.gmra.mxu1 %vm296_vm0, %v7067_v12  ;;  %v12202_v12 = vld [vmem:[#allocation61_spill] sm:$0xff] }
 0x2aa   : > { %12194 = vst [vmem:[#allocation52_spill] sm:$0xff] %v9721_v24  ;;  %12195 = vst [vmem:[#allocation51_spill] sm:$0xff] %v9723_v33  ;;  %v9732_v50 = vmax.f32 %v12198_v19, %v3092_v59  ;;  %4436 = vmatprep.mubr.bf16.mxu0 %v11622_v13  ;;  %4775 = vmatprep.mubr.bf16.mxu1 %v11622_v13  ;;  %v12203_v26 = vmax.f32 %v12201_v46, %v12202_v12  ;;  %v7068_v59 = vld [vmem:[%s7203_s27 + $0x4d8] sm:$0xff]   ;;  %v12206_v19 = vld [vmem:[#allocation3_spill] sm:$0xff] }
 0x2ab   : > { %v3094_v45 = vpop.f32.mrf.mxu0  ;;  %v9736_v34 = vpop.f32.mrf.mxu1  ;;  %v12207_v24 = vld [vmem:[#allocation63_spill] sm:$0xff]  ;;  %v12211_v46 = vld [vmem:[#allocation5_spill] sm:$0xff]  ;;  %v12212_v12 = vld [vmem:[#allocation64_spill] sm:$0xff] }
 0x2ac   : > { %12199 = vst [vmem:[#allocation53_spill] sm:$0xff] %v9732_v50  ;;  %12200 = vst [vmem:[#allocation54_spill] sm:$0xff] %v9736_v34  ;;  %v9743_v28 = vmax.f32 %v12203_v26, %v3094_v45  ;;  %v12208_v32 = vmax.f32 %v12206_v19, %v12207_v24  ;;  %v12213_v26 = vmax.f32 %v12211_v46, %v12212_v12  ;;  %v12216_v24 = vld [vmem:[#allocation7_spill] sm:$0xff]  ;;  %v12221_v12 = vld [vmem:[#allocation9_spill] sm:$0xff] }
 0x2ad   : > { %v3096_v36 = vpop.f32.mrf.mxu0  ;;  %v9745_v35 = vpop.f32.mrf.mxu1 }
 0x2ae   : > { %12204 = vst [vmem:[#allocation56_spill] sm:$0xff] %v9743_v28  ;;  %12205 = vst [vmem:[#allocation55_spill] sm:$0xff] %v9745_v35  ;;  %v9754_v7 = vmax.f32 %v12208_v32, %v3096_v36  ;;  %v12217_v36 = vld [vmem:[#allocation2_spill] sm:$0xff] }
 0x2af   : > { %v3098_v18 = vpop.f32.mrf.mxu0  ;;  %v9756_v16 = vpop.f32.mrf.mxu1  ;;  %v12218_v19 = vmax.f32 %v12216_v24, %v12217_v36  ;;  %v7071_v24 = vld [vmem:[%s7203_s27 + $0x544] sm:$0xff]  }
 0x2b0   : > { %12209 = vst [vmem:[#allocation60_spill] sm:$0xff] %v9754_v7  ;;  %12210 = vst [vmem:[#allocation57_spill] sm:$0xff] %v9756_v16  ;;  %v9763_v33 = vmax.f32 %v12213_v26, %v3098_v18 }
 0x2b1   : > { %v3102_v50 = vpop.f32.mrf.mxu0  ;;  %v9765_v17 = vpop.f32.mrf.mxu1  ;;  %6669 = vmatmul.mubr.msk.bf16.gmra.mxu0 %vm296_vm0, %v7068_v59  ;;  %6720 = vmatmul.mubr.msk.bf16.gmra.mxu1 %vm296_vm0, %v7069_v39  ;;  %v12222_v39 = vld [vmem:[#allocation4_spill] sm:$0xff] }
 0x2b2   : > { %12214 = vst [vmem:[#allocation62_spill] sm:$0xff] %v9763_v33  ;;  %12215 = vst [vmem:[#allocation58_spill] sm:$0xff] %v9765_v17  ;;  %v9774_v45 = vmax.f32 %v12218_v19, %v3102_v50  ;;  %4446 = vmatprep.mubr.bf16.mxu0 %v11622_v13  ;;  %4785 = vmatprep.mubr.bf16.mxu1 %v11622_v13  ;;  %v12223_v26 = vmax.f32 %v12221_v12, %v12222_v39  ;;  %v7070_v50 = vld [vmem:[%s7203_s27 + $0x4e0] sm:$0xff]   ;;  %v12226_v19 = vld [vmem:[#allocation11_spill] sm:$0xff] }
 0x2b3   : > { %v3104_v18 = vpop.f32.mrf.mxu0  ;;  %v9778_v46 = vpop.f32.mrf.mxu1  ;;  %v12227_v33 = vld [vmem:[#allocation6_spill] sm:$0xff]  ;;  %v12231_v12 = vld [vmem:[#allocation13_spill] sm:$0xff]  ;;  %v12232_v39 = vld [vmem:[#allocation8_spill] sm:$0xff] }
 0x2b4   : > { %12219 = vst [vmem:[#allocation59_spill] sm:$0xff] %v9774_v45  ;;  %12220 = vst [vmem:[#allocation61_spill] sm:$0xff] %v9778_v46  ;;  %v9785_v35 = vmax.f32 %v12223_v26, %v3104_v18  ;;  %v12228_v7 = vmax.f32 %v12226_v19, %v12227_v33  ;;  %v12233_v26 = vmax.f32 %v12231_v12, %v12232_v39  ;;  %v12236_v33 = vld [vmem:[#allocation15_spill] sm:$0xff]  ;;  %v12241_v39 = vld [vmem:[#allocation17_spill] sm:$0xff] }
 0x2b5   : > { %v3106_v32 = vpop.f32.mrf.mxu0  ;;  %v9787_v16 = vpop.f32.mrf.mxu1 }
 0x2b6   : > { %12224 = vst [vmem:[#allocation3_spill] sm:$0xff] %v9785_v35  ;;  %12225 = vst [vmem:[#allocation63_spill] sm:$0xff] %v9787_v16  ;;  %v9796_v34 = vmax.f32 %v12228_v7, %v3106_v32  ;;  %v12237_v32 = vld [vmem:[#allocation10_spill] sm:$0xff] }
 0x2b7   : > { %v3108_v28 = vpop.f32.mrf.mxu0  ;;  %v9798_v59 = vpop.f32.mrf.mxu1  ;;  %v12238_v19 = vmax.f32 %v12236_v33, %v12237_v32  ;;  %v7073_v33 = vld [vmem:[%s7203_s27 + $0x54c] sm:$0xff]  }
 0x2b8   : > { %12229 = vst [vmem:[#allocation5_spill] sm:$0xff] %v9796_v34  ;;  %12230 = vst [vmem:[#allocation64_spill] sm:$0xff] %v9798_v59  ;;  %v9805_v17 = vmax.f32 %v12233_v26, %v3108_v28 }
 0x2b9   : > { %v3112_v45 = vpop.f32.mrf.mxu0  ;;  %v9807_v36 = vpop.f32.mrf.mxu1  ;;  %6670 = vmatmul.mubr.msk.bf16.gmra.mxu0 %vm296_vm0, %v7070_v50  ;;  %6721 = vmatmul.mubr.msk.bf16.gmra.mxu1 %vm296_vm0, %v7071_v24  ;;  %v12242_v24 = vld [vmem:[#allocation12_spill] sm:$0xff] }
 0x2ba   : > { %12234 = vst [vmem:[#allocation7_spill] sm:$0xff] %v9805_v17  ;;  %12235 = vst [vmem:[#allocation2_spill] sm:$0xff] %v9807_v36  ;;  %v9816_v18 = vmax.f32 %v12238_v19, %v3112_v45  ;;  %4456 = vmatprep.mubr.bf16.mxu0 %v11622_v13  ;;  %4795 = vmatprep.mubr.bf16.mxu1 %v11622_v13  ;;  %v12243_v26 = vmax.f32 %v12241_v39, %v12242_v24  ;;  %v7072_v45 = vld [vmem:[%s7203_s27 + $0x4e8] sm:$0xff]   ;;  %v12246_v17 = vld [vmem:[#allocation14_spill] sm:$0xff] }
 0x2bb   : > { %v3114_v28 = vpop.f32.mrf.mxu0  ;;  %v9820_v12 = vpop.f32.mrf.mxu1  ;;  %v12245_v19 = vld [vmem:[#allocation19_spill] sm:$0xff]  ;;  %v12250_v39 = vld [vmem:[#allocation21_spill] sm:$0xff]  ;;  %v12251_v24 = vld [vmem:[#allocation16_spill] sm:$0xff] }
 0x2bc   : > { %12239 = vst [vmem:[#allocation9_spill] sm:$0xff] %v9816_v18  ;;  %12240 = vst [vmem:[#allocation4_spill] sm:$0xff] %v9820_v12  ;;  %v9827_v16 = vmax.f32 %v12243_v26, %v3114_v28  ;;  %v12247_v34 = vmax.f32 %v12245_v19, %v12246_v17  ;;  %v12252_v26 = vmax.f32 %v12250_v39, %v12251_v24  ;;  %v12255_v17 = vld [vmem:[#allocation23_spill] sm:$0xff] }
 0x2bd   : > { %v3116_v7 = vpop.f32.mrf.mxu0  ;;  %v9829_v59 = vpop.f32.mrf.mxu1 }
 0x2be   : > { %12244 = vst [vmem:[#allocation11_spill] sm:$0xff] %v9829_v59  ;;  %v9838_v46 = vmax.f32 %v12247_v34, %v3116_v7  ;;  %v12256_v7 = vld [vmem:[#allocation18_spill] sm:$0xff] }
 0x2bf   : > { %v3118_v35 = vpop.f32.mrf.mxu0  ;;  %v9840_v50 = vpop.f32.mrf.mxu1  ;;  %v12257_v19 = vmax.f32 %v12255_v17, %v12256_v7  ;;  %v7075_v17 = vld [vmem:[%s7203_s27 + $0x554] sm:$0xff]  }
 0x2c0   : > { %12248 = vst [vmem:[#allocation6_spill] sm:$0xff] %v9838_v46  ;;  %12249 = vst [vmem:[#allocation13_spill] sm:$0xff] %v9840_v50  ;;  %v9847_v36 = vmax.f32 %v12252_v26, %v3118_v35 }
 0x2c1   : > { %v3122_v18 = vpop.f32.mrf.mxu0  ;;  %v9849_v32 = vpop.f32.mrf.mxu1  ;;  %6671 = vmatmul.mubr.msk.bf16.gmra.mxu0 %vm296_vm0, %v7072_v45  ;;  %6722 = vmatmul.mubr.msk.bf16.gmra.mxu1 %vm296_vm0, %v7073_v33  ;;  %v12259_v33 = vld [vmem:[#allocation20_spill] sm:$0xff] }
 0x2c2   : > { %12253 = vst [vmem:[#allocation8_spill] sm:$0xff] %v9847_v36  ;;  %12254 = vst [vmem:[#allocation15_spill] sm:$0xff] %v9849_v32  ;;  %v9858_v28 = vmax.f32 %v12257_v19, %v3122_v18  ;;  %4466 = vmatprep.mubr.bf16.mxu0 %v11622_v13  ;;  %4805 = vmatprep.mubr.bf16.mxu1 %v11622_v13  ;;  %v12260_v24 = vmax.f32 %v9326_v0, %v12259_v33  ;;  %v7074_v18 = vld [vmem:[%s7203_s27 + $0x4f0] sm:$0xff]   ;;  %v12261_v19 = vld [vmem:[#allocation22_spill] sm:$0xff] }
 0x2c3   : > { %v3124_v35 = vpop.f32.mrf.mxu0  ;;  %v9862_v39 = vpop.f32.mrf.mxu1  ;;  %v12262_v36 = vld [vmem:[#allocation25_spill] sm:$0xff]  ;;  %v12266_v33 = vld [vmem:[#allocation27_spill] sm:$0xff] }
 0x2c4   : > { %12258 = vst [vmem:[#allocation10_spill] sm:$0xff] %v9858_v28  ;;  %v9869_v26 = vmax.f32 %v12260_v24, %v3124_v35  ;;  %v12263_v59 = vmax.f32 %v12261_v19, %v12262_v36  ;;  %v12265_v35 = vld [vmem:[#allocation24_spill] sm:$0xff]  ;;  %v12270_v36 = vld [vmem:[#allocation26_spill] sm:$0xff] }
 0x2c5   : > { %v3126_v34 = vpop.f32.mrf.mxu0  ;;  %v9871_v50 = vpop.f32.mrf.mxu1  ;;  %v12267_v24 = vmax.f32 %v12265_v35, %v12266_v33 }
 0x2c6   : > { %v9880_v46 = vmax.f32 %v12263_v59, %v3126_v34  ;;  %v12271_v34 = vld [vmem:[#allocation29_spill] sm:$0xff] }
 0x2c7   : > { %v3128_v12 = vpop.f32.mrf.mxu0  ;;  %v9882_v45 = vpop.f32.mrf.mxu1  ;;  %v12272_v19 = vmax.f32 %v12270_v36, %v12271_v34  ;;  %v7077_v36 = vld [vmem:[%s7203_s27 + $0x55c] sm:$0xff]  }
 0x2c8   : > { %12264 = vst [vmem:[#allocation17_spill] sm:$0xff] %v9882_v45  ;;  %v9889_v32 = vmax.f32 %v12267_v24, %v3128_v12 }
 0x2c9   : > { %v3132_v28 = vpop.f32.mrf.mxu0  ;;  %v9891_v7 = vpop.f32.mrf.mxu1  ;;  %6672 = vmatmul.mubr.msk.bf16.gmra.mxu0 %vm296_vm0, %v7074_v18  ;;  %6723 = vmatmul.mubr.msk.bf16.gmra.mxu1 %vm296_vm0, %v7075_v17  ;;  %v12274_v17 = vmax.f32 %v9368_v5, %v9361_v10  ;;  %v12277_v5 = vld [vmem:[#allocation28_spill] sm:$0xff] }
 0x2ca   : > { %12268 = vst [vmem:[#allocation12_spill] sm:$0xff] %v9889_v32  ;;  %12269 = vst [vmem:[#allocation19_spill] sm:$0xff] %v9891_v7  ;;  %v9900_v0 = vmax.f32 %v12272_v19, %v3132_v28  ;;  %4476 = vmatprep.mubr.bf16.mxu0 %v11622_v13  ;;  %4815 = vmatprep.mubr.bf16.mxu1 %v11622_v13  ;;  %v7076_v28 = vld [vmem:[%s7203_s27 + $0x4f8] sm:$0xff]   ;;  %v12275_v19 = vmax.f32 %v9379_v27, %v9370_v23 }
 0x2cb   : > { %v3134_v12 = vpop.f32.mrf.mxu0  ;;  %v9904_v35 = vpop.f32.mrf.mxu1  ;;  %v12281_v23 = vld [vmem:[#allocation33_spill] sm:$0xff] }
 0x2cc   : > { %12273 = vst [vmem:[#allocation14_spill] sm:$0xff] %v9900_v0  ;;  %v9911_v33 = vmax.f32 %v12274_v17, %v3134_v12  ;;  %v12278_v12 = vld [vmem:[#allocation31_spill] sm:$0xff] }
 0x2cd   : > { %v3136_v24 = vpop.f32.mrf.mxu0  ;;  %v9913_v59 = vpop.f32.mrf.mxu1  ;;  %v12279_v17 = vmax.f32 %v12277_v5, %v12278_v12 }
 0x2ce   : > { %v9922_v45 = vmax.f32 %v12275_v19, %v3136_v24  ;;  %v12282_v24 = vmax.f32 %v9399_v52, %v12281_v23  ;;  %v7078_v52 = vld [vmem:[%s7203_s27 + $0x500] sm:$0xff]  }
 0x2cf   : > { %v3138_v32 = vpop.f32.mrf.mxu0  ;;  %v9924_v18 = vpop.f32.mrf.mxu1 }
 0x2d0   : > { %12276 = vst [vmem:[#allocation21_spill] sm:$0xff] %v9924_v18  ;;  %v9931_v7 = vmax.f32 %v12279_v17, %v3138_v32 }
 0x2d1   : > { %v3142_v0 = vpop.f32.mrf.mxu0  ;;  %v9933_v34 = vpop.f32.mrf.mxu1  ;;  %6673 = vmatmul.mubr.msk.bf16.gmra.mxu0 %vm296_vm0, %v7076_v28  ;;  %6724 = vmatmul.mubr.msk.bf16.gmra.mxu1 %vm296_vm0, %v7077_v36  ;;  %v12283_v36 = vmax.f32 %v9410_v57, %v9403_v2  ;;  %v12286_v57 = vld [vmem:[#allocation30_spill] sm:$0xff] }
 0x2d2   : > { %12280 = vst [vmem:[#allocation16_spill] sm:$0xff] %v9933_v34  ;;  %v9942_v19 = vmax.f32 %v12282_v24, %v3142_v0  ;;  %4486 = vmatprep.mubr.bf16.mxu0 %v11622_v13  ;;  %4825 = vmatprep.mubr.bf16.mxu1 %v11622_v13  ;;  %v7079_v0 = vld [vmem:[%s7203_s27 + $0x564] sm:$0xff]   ;;  %v12284_v24 = vmax.f32 %v9421_v55, %v9412_v44 }
 0x2d3   : > { %v3144_v32 = vpop.f32.mrf.mxu0  ;;  %v9946_v5 = vpop.f32.mrf.mxu1  ;;  %v12288_v44 = vmax.f32 %v9441_v30, %v9432_v3  ;;  %v7080_v3 = vld [vmem:[%s7203_s27 + $0x508] sm:$0xff]  }
 0x2d4   : > { %v9953_v12 = vmax.f32 %v12283_v36, %v3144_v32  ;;  %v12287_v32 = vmax.f32 %v9430_v11, %v12286_v57  ;;  %v7081_v30 = vld [vmem:[%s7203_s27 + $0x56c] sm:$0xff]  }
 0x2d5   : > { %v3146_v17 = vpop.f32.mrf.mxu0  ;;  %v9955_v27 = vpop.f32.mrf.mxu1 }
 0x2d6   : > { %v9964_v10 = vmax.f32 %v12284_v24, %v3146_v17 }
 0x2d7   : > { %v3148_v18 = vpop.f32.mrf.mxu0  ;;  %v9966_v28 = vpop.f32.mrf.mxu1 }
 0x2d8   : > { %12285 = vst [vmem:[#allocation23_spill] sm:$0xff] %v9966_v28  ;;  %v9973_v36 = vmax.f32 %v12287_v32, %v3148_v18 }
 0x2d9   : > { %v3152_v34 = vpop.f32.mrf.mxu0  ;;  %v9975_v23 = vpop.f32.mrf.mxu1  ;;  %6674 = vmatmul.mubr.msk.bf16.gmra.mxu0 %vm296_vm0, %v7078_v52  ;;  %6725 = vmatmul.mubr.msk.bf16.gmra.mxu1 %vm296_vm0, %v7079_v0  ;;  %v12289_v0 = vmax.f32 %v9452_v40, %v9445_v63  ;;  %v12290_v63 = vmax.f32 %v9465_v37, %v9458_v22  ;;  %v7082_v22 = vld [vmem:[%s7203_s27 + $0x510] ss:$0 sps:$4 sm:$0x77]   ;;  %v7083_v37 = vld [vmem:[%s7203_s27 + $0x574] ss:$0 sps:$4 sm:$0x77]  }
 0x2da   : > { %v9984_v17 = vmax.f32 %v12288_v44, %v3152_v34  ;;  %4496 = vmatprep.mubr.bf16.mxu0 %v11622_v13  ;;  %4835 = vmatprep.mubr.bf16.mxu1 %v11622_v13 }
 0x2db   : > { %v3154_v11 = vpop.f32.mrf.mxu0  ;;  %v9988_v18 = vpop.f32.mrf.mxu1 }
 0x2dc   : > { %v9995_v24 = vmax.f32 %v12289_v0, %v3154_v11 }
 0x2dd   : > { %v3156_v57 = vpop.f32.mrf.mxu0  ;;  %v3495_v32 = vpop.f32.mrf.mxu1 }
 0x2de   : > { %v12291_v57 = vmax.f32 %v9476_v62, %v9469_v15  ;;  %v12293_v62 = vmax.f32 %v9496_v1, %v9489_v48 }
 0x2df   : > { %v3157_v44 = vpop.f32.mrf.mxu0  ;;  %v3496_v55 = vpop.f32.mrf.mxu1 }
 0x2e0   : > { %v12292_v44 = vmax.f32 %v9487_v47, %v9478_v43  ;;  %v12294_v47 = vld [vmem:[#allocation35_spill] sm:$0xff] }
 0x2e1   : > { %v3710_v2 = vpop.f32.mrf.mxu0  ;;  %v10001_v28 = vpop.f32.mrf.mxu1  ;;  %6675 = vmatmul.mubr.msk.bf16.gmra.mxu0 %vm296_vm0, %v7080_v3  ;;  %6726 = vmatmul.mubr.msk.bf16.gmra.mxu1 %vm296_vm0, %v7081_v30 }
 0x2e2   : > { %v10008_v40 = vmax.f32 %v12290_v63, %v3710_v2  ;;  %4506 = vmatprep.mubr.bf16.mxu0 %v11622_v13  ;;  %4845 = vmatprep.mubr.bf16.mxu1 %v11622_v13 }
 0x2e3   : > { %v3712_v11 = vpop.f32.mrf.mxu0  ;;  %v10012_v0 = vpop.f32.mrf.mxu1 }
 0x2e4   : > { %v10019_v32 = vmax.f32 %v12291_v57, %v3712_v11 }
 0x2e5   : > { %v3714_v3 = vpop.f32.mrf.mxu0  ;;  %v10021_v30 = vpop.f32.mrf.mxu1 }
 0x2e6   : > { %v10030_v63 = vmax.f32 %v12292_v44, %v3714_v3  ;;  %v12295_v3 = vmax.f32 %v9507_v41, %v12294_v47  ;;  %v7084_v41 = vld [vmem:[%s7203_s27 + $0x578] sm:$0xff]  }
 0x2e7   : > { %v3716_v34 = vpop.f32.mrf.mxu0  ;;  %v10032_v55 = vpop.f32.mrf.mxu1 }
 0x2e8   : > { %v10039_v11 = vmax.f32 %v12293_v62, %v3716_v34 }
 0x2e9   : > { %v3720_v57 = vpop.f32.mrf.mxu0  ;;  %v10041_v2 = vpop.f32.mrf.mxu1  ;;  %6676 = vmatmul.mubr.msk.bf16.gmra.mxu0 %vm296_vm0, %v7082_v22  ;;  %6727 = vmatmul.mubr.msk.bf16.gmra.mxu1 %vm296_vm0, %v7083_v37  ;;  %v12296_v22 = vmax.f32 %v9518_v49, %v9511_v54  ;;  %v12298_v49 = vmax.f32 %v9538_v61, %v9531_v20 }
 0x2ea   : > { %v10050_v44 = vmax.f32 %v12295_v3, %v3720_v57  ;;  %5064 = vmatprep.mubr.bf16.mxu0 %v11622_v13  ;;  %5403 = vmatprep.mubr.bf16.mxu1 %v11622_v13  ;;  %v7085_v57 = vld [vmem:[%s7203_s27 + $0x5dc] sm:$0xff]   ;;  %v12297_v3 = vmax.f32 %v9529_v25, %v9520_v60  ;;  %v12299_v60 = vmax.f32 %v9549_v38, %v9540_v42  ;;  %v7087_v38 = vld [vmem:[%s7203_s27 + $0x5e4] sm:$0xff]  }
 0x2eb   : > { %v3722_v48 = vpop.f32.mrf.mxu0  ;;  %v10054_v1 = vpop.f32.mrf.mxu1  ;;  %v7086_v42 = vld [vmem:[%s7203_s27 + $0x580] sm:$0xff]  }
 0x2ec   : > { %v10061_v37 = vmax.f32 %v12296_v22, %v3722_v48 }
 0x2ed   : > { %v3724_v62 = vpop.f32.mrf.mxu0  ;;  %v10063_v43 = vpop.f32.mrf.mxu1 }
 0x2ee   : > { %v10072_v15 = vmax.f32 %v12297_v3, %v3724_v62 }
 0x2ef   : > { %v3726_v52 = vpop.f32.mrf.mxu0  ;;  %v10074_v34 = vpop.f32.mrf.mxu1 }
 0x2f0   : > { %v10081_v48 = vmax.f32 %v12298_v49, %v3726_v52 }
 0x2f1   : > { %v3730_v22 = vpop.f32.mrf.mxu0  ;;  %v10083_v47 = vpop.f32.mrf.mxu1  ;;  %6766 = vmatmul.mubr.msk.bf16.vlgmr.msra.gmra.mxu0 %vm296_vm0, %v7084_v41  ;;  %6817 = vmatmul.mubr.msk.bf16.vlgmr.msra.gmra.mxu1 %vm296_vm0, %v7085_v57  ;;  %v12300_v41 = vmax.f32 %v9563_v53, %v9554_v8  ;;  %v12302_v53 = vmax.f32 %v9592_v29, %v9582_v56 }
 0x2f2   : > { %v10092_v62 = vmax.f32 %v12299_v60, %v3730_v22  ;;  %5074 = vmatprep.mubr.bf16.mxu0 %v11622_v13  ;;  %5413 = vmatprep.mubr.bf16.mxu1 %v11622_v13  ;;  %v12301_v60 = vmax.f32 %v9577_v4, %v9568_v14  ;;  %v12304_v4 = vmax.f32 %v9603_v6, %v9594_v9  ;;  %v7088_v9 = vld [vmem:[%s7203_s27 + $0x588] sm:$0xff]  }
 0x2f3   : > { %v3732_v20 = vpop.f32.mrf.mxu0  ;;  %v10096_v61 = vpop.f32.mrf.mxu1  ;;  %v7089_v6 = vld [vmem:[%s7203_s27 + $0x5ec] sm:$0xff]  }
 0x2f4   : > { %v10103_v57 = vmax.f32 %v12300_v41, %v3732_v20 }
 0x2f5   : > { %v3734_v3 = vpop.f32.mrf.mxu0  ;;  %v10105_v49 = vpop.f32.mrf.mxu1 }
 0x2f6   : > { %v10114_v25 = vmax.f32 %v12301_v60, %v3734_v3 }
 0x2f7   : > { %v3736_v54 = vpop.f32.mrf.mxu0  ;;  %v10116_v52 = vpop.f32.mrf.mxu1 }
 0x2f8   : > { %v10123_v20 = vmax.f32 %v12302_v53, %v3736_v54 }
 0x2f9   : > { %v3740_v41 = vpop.f32.mrf.mxu0  ;;  %v10125_v22 = vpop.f32.mrf.mxu1  ;;  %6767 = vmatmul.mubr.msk.bf16.gmra.mxu0 %vm296_vm0, %v7086_v42  ;;  %6818 = vmatmul.mubr.msk.bf16.gmra.mxu1 %vm296_vm0, %v7087_v38  ;;  %v12307_v42 = vmax.f32 %v9617_v51, %v9607_v58  ;;  %v12313_v51 = vld [vmem:[#allocation37_spill] sm:$0xff] }
 0x2fa   : > { %12303 = vst [vmem:[#allocation18_spill] sm:$0xff] %v10125_v22  ;;  %v10134_v3 = vmax.f32 %v12304_v4, %v3740_v41  ;;  %5084 = vmatprep.mubr.bf16.mxu0 %v11622_v13  ;;  %5423 = vmatprep.mubr.bf16.mxu1 %v11622_v13  ;;  %v12310_v4 = vmax.f32 %v9628_v31, %v9619_v21  ;;  %v12318_v31 = vld [vmem:[#allocation36_spill] sm:$0xff] }
 0x2fb   : > { %v3742_v56 = vpop.f32.mrf.mxu0  ;;  %v10138_v29 = vpop.f32.mrf.mxu1 }
 0x2fc   : > { %12305 = vst [vmem:[#allocation20_spill] sm:$0xff] %v10134_v3  ;;  %12306 = vst [vmem:[#allocation22_spill] sm:$0xff] %v10138_v29  ;;  %v10145_v38 = vmax.f32 %v12307_v42, %v3742_v56  ;;  %v12314_v56 = vld [vmem:[#allocation32_spill] sm:$0xff] }
 0x2fd   : > { %v3744_v60 = vpop.f32.mrf.mxu0  ;;  %v10147_v53 = vpop.f32.mrf.mxu1  ;;  %v12315_v42 = vmax.f32 %v12313_v51, %v12314_v56  ;;  %v12323_v56 = vld [vmem:[#allocation39_spill] sm:$0xff] }
 0x2fe   : > { %12308 = vst [vmem:[#allocation25_spill] sm:$0xff] %v10145_v38  ;;  %12309 = vst [vmem:[#allocation24_spill] sm:$0xff] %v10147_v53  ;;  %v10156_v14 = vmax.f32 %v12310_v4, %v3744_v60  ;;  %v12319_v60 = vld [vmem:[#allocation34_spill] sm:$0xff] }
 0x2ff   : > { %v3746_v8 = vpop.f32.mrf.mxu0  ;;  %v10158_v54 = vpop.f32.mrf.mxu1  ;;  %v12320_v4 = vmax.f32 %v12318_v31, %v12319_v60  ;;  %v7091_v31 = vld [vmem:[%s7203_s27 + $0x5f4] sm:$0xff]  }
 0x300   : > { %12311 = vst [vmem:[#allocation27_spill] sm:$0xff] %v10156_v14  ;;  %12312 = vst [vmem:[#allocation26_spill] sm:$0xff] %v10158_v54  ;;  %v10165_v22 = vmax.f32 %v12315_v42, %v3746_v8 }
 0x301   : > { %v3750_v3 = vpop.f32.mrf.mxu0  ;;  %v10167_v41 = vpop.f32.mrf.mxu1  ;;  %6768 = vmatmul.mubr.msk.bf16.gmra.mxu0 %vm296_vm0, %v7088_v9  ;;  %6819 = vmatmul.mubr.msk.bf16.gmra.mxu1 %vm296_vm0, %v7089_v6  ;;  %v12324_v6 = vld [vmem:[#allocation38_spill] sm:$0xff] }
 0x302   : > { %12316 = vst [vmem:[#allocation29_spill] sm:$0xff] %v10165_v22  ;;  %12317 = vst [vmem:[#allocation28_spill] sm:$0xff] %v10167_v41  ;;  %v10176_v58 = vmax.f32 %v12320_v4, %v3750_v3  ;;  %5094 = vmatprep.mubr.bf16.mxu0 %v11622_v13  ;;  %5433 = vmatprep.mubr.bf16.mxu1 %v11622_v13  ;;  %v12325_v42 = vmax.f32 %v12323_v56, %v12324_v6  ;;  %v7090_v3 = vld [vmem:[%s7203_s27 + $0x590] sm:$0xff]   ;;  %v12328_v4 = vld [vmem:[#allocation41_spill] sm:$0xff] }
 0x303   : > { %v3752_v8 = vpop.f32.mrf.mxu0  ;;  %v10180_v51 = vpop.f32.mrf.mxu1  ;;  %v12329_v22 = vld [vmem:[#allocation40_spill] sm:$0xff]  ;;  %v12333_v56 = vld [vmem:[#allocation43_spill] sm:$0xff]  ;;  %v12334_v6 = vld [vmem:[#allocation42_spill] sm:$0xff] }
 0x304   : > { %12321 = vst [vmem:[#allocation31_spill] sm:$0xff] %v10176_v58  ;;  %12322 = vst [vmem:[#allocation33_spill] sm:$0xff] %v10180_v51  ;;  %v10187_v53 = vmax.f32 %v12325_v42, %v3752_v8  ;;  %v12330_v14 = vmax.f32 %v12328_v4, %v12329_v22  ;;  %v12335_v42 = vmax.f32 %v12333_v56, %v12334_v6  ;;  %v12343_v6 = vld [vmem:[#allocation47_spill] sm:$0xff] }
 0x305   : > { %v3754_v21 = vpop.f32.mrf.mxu0  ;;  %v10189_v54 = vpop.f32.mrf.mxu1 }
 0x306   : > { %12326 = vst [vmem:[#allocation30_spill] sm:$0xff] %v10187_v53  ;;  %12327 = vst [vmem:[#allocation35_spill] sm:$0xff] %v10189_v54  ;;  %v10198_v29 = vmax.f32 %v12330_v14, %v3754_v21  ;;  %v12338_v14 = vld [vmem:[#allocation44_spill] sm:$0xff]  ;;  %v12339_v21 = vld [vmem:[#allocation45_spill] sm:$0xff] }
 0x307   : > { %v3756_v38 = vpop.f32.mrf.mxu0  ;;  %v10200_v9 = vpop.f32.mrf.mxu1  ;;  %v12340_v4 = vmax.f32 %v12338_v14, %v12339_v21  ;;  %v7093_v14 = vld [vmem:[%s7203_s27 + $0x5fc] sm:$0xff]  }
 0x308   : > { %12331 = vst [vmem:[#allocation37_spill] sm:$0xff] %v10198_v29  ;;  %12332 = vst [vmem:[#allocation32_spill] sm:$0xff] %v10200_v9  ;;  %v10207_v41 = vmax.f32 %v12335_v42, %v3756_v38 }
 0x309   : > { %v3760_v58 = vpop.f32.mrf.mxu0  ;;  %v10209_v60 = vpop.f32.mrf.mxu1  ;;  %6769 = vmatmul.mubr.msk.bf16.gmra.mxu0 %vm296_vm0, %v7090_v3  ;;  %6820 = vmatmul.mubr.msk.bf16.gmra.mxu1 %vm296_vm0, %v7091_v31  ;;  %v12344_v31 = vld [vmem:[#allocation46_spill] sm:$0xff] }
 0x30a   : > { %12336 = vst [vmem:[#allocation36_spill] sm:$0xff] %v10207_v41  ;;  %12337 = vst [vmem:[#allocation34_spill] sm:$0xff] %v10209_v60  ;;  %v10218_v8 = vmax.f32 %v12340_v4, %v3760_v58  ;;  %5104 = vmatprep.mubr.bf16.mxu0 %v11622_v13  ;;  %5443 = vmatprep.mubr.bf16.mxu1 %v11622_v13  ;;  %v12345_v42 = vmax.f32 %v12343_v6, %v12344_v31  ;;  %v7092_v58 = vld [vmem:[%s7203_s27 + $0x598] sm:$0xff]   ;;  %v12349_v41 = vld [vmem:[#allocation48_spill] sm:$0xff] }
 0x30b   : > { %v3762_v38 = vpop.f32.mrf.mxu0  ;;  %v10222_v56 = vpop.f32.mrf.mxu1  ;;  %v12348_v4 = vld [vmem:[#allocation49_spill] sm:$0xff]  ;;  %v12353_v6 = vld [vmem:[#allocation52_spill] sm:$0xff]  ;;  %v12354_v31 = vld [vmem:[#allocation50_spill] sm:$0xff] }
 0x30c   : > { %12341 = vst [vmem:[#allocation39_spill] sm:$0xff] %v10218_v8  ;;  %12342 = vst [vmem:[#allocation38_spill] sm:$0xff] %v10222_v56  ;;  %v10229_v54 = vmax.f32 %v12345_v42, %v3762_v38  ;;  %v12350_v29 = vmax.f32 %v12348_v4, %v12349_v41  ;;  %v12355_v42 = vmax.f32 %v12353_v6, %v12354_v31  ;;  %v12358_v41 = vld [vmem:[#allocation53_spill] sm:$0xff]  ;;  %v12363_v31 = vld [vmem:[#allocation56_spill] sm:$0xff] }
 0x30d   : > { %v3764_v22 = vpop.f32.mrf.mxu0  ;;  %v10231_v9 = vpop.f32.mrf.mxu1 }
 0x30e   : > { %12346 = vst [vmem:[#allocation41_spill] sm:$0xff] %v10229_v54  ;;  %12347 = vst [vmem:[#allocation40_spill] sm:$0xff] %v10231_v9  ;;  %v10240_v51 = vmax.f32 %v12350_v29, %v3764_v22  ;;  %v12359_v22 = vld [vmem:[#allocation51_spill] sm:$0xff] }
 0x30f   : > { %v3766_v53 = vpop.f32.mrf.mxu0  ;;  %v10242_v3 = vpop.f32.mrf.mxu1  ;;  %v12360_v4 = vmax.f32 %v12358_v41, %v12359_v22  ;;  %v7095_v41 = vld [vmem:[%s7203_s27 + $0x604] sm:$0xff]  }
 0x310   : > { %12351 = vst [vmem:[#allocation43_spill] sm:$0xff] %v10240_v51  ;;  %12352 = vst [vmem:[#allocation42_spill] sm:$0xff] %v10242_v3  ;;  %v10249_v60 = vmax.f32 %v12355_v42, %v3766_v53 }
 0x311   : > { %v3770_v8 = vpop.f32.mrf.mxu0  ;;  %v10251_v21 = vpop.f32.mrf.mxu1  ;;  %6770 = vmatmul.mubr.msk.bf16.gmra.mxu0 %vm296_vm0, %v7092_v58  ;;  %6821 = vmatmul.mubr.msk.bf16.gmra.mxu1 %vm296_vm0, %v7093_v14  ;;  %v12364_v14 = vld [vmem:[#allocation54_spill] sm:$0xff] }
 0x312   : > { %12356 = vst [vmem:[#allocation44_spill] sm:$0xff] %v10249_v60  ;;  %12357 = vst [vmem:[#allocation45_spill] sm:$0xff] %v10251_v21  ;;  %v10260_v38 = vmax.f32 %v12360_v4, %v3770_v8  ;;  %5114 = vmatprep.mubr.bf16.mxu0 %v11622_v13  ;;  %5453 = vmatprep.mubr.bf16.mxu1 %v11622_v13  ;;  %v12365_v42 = vmax.f32 %v12363_v31, %v12364_v14  ;;  %v7094_v8 = vld [vmem:[%s7203_s27 + $0x5a0] sm:$0xff]   ;;  %v12368_v4 = vld [vmem:[#allocation60_spill] sm:$0xff] }
 0x313   : > { %v3772_v53 = vpop.f32.mrf.mxu0  ;;  %v10264_v6 = vpop.f32.mrf.mxu1  ;;  %v12369_v60 = vld [vmem:[#allocation55_spill] sm:$0xff]  ;;  %v12373_v31 = vld [vmem:[#allocation62_spill] sm:$0xff]  ;;  %v12374_v14 = vld [vmem:[#allocation57_spill] sm:$0xff] }
 0x314   : > { %12361 = vst [vmem:[#allocation47_spill] sm:$0xff] %v10260_v38  ;;  %12362 = vst [vmem:[#allocation46_spill] sm:$0xff] %v10264_v6  ;;  %v10271_v9 = vmax.f32 %v12365_v42, %v3772_v53  ;;  %v12370_v51 = vmax.f32 %v12368_v4, %v12369_v60  ;;  %v12375_v42 = vmax.f32 %v12373_v31, %v12374_v14  ;;  %v12378_v60 = vld [vmem:[#allocation59_spill] sm:$0xff] }
 0x315   : > { %v3774_v29 = vpop.f32.mrf.mxu0  ;;  %v10273_v3 = vpop.f32.mrf.mxu1  ;;  %v12383_v14 = vld [vmem:[#allocation3_spill] sm:$0xff] }
 0x316   : > { %12366 = vst [vmem:[#allocation49_spill] sm:$0xff] %v10271_v9  ;;  %12367 = vst [vmem:[#allocation48_spill] sm:$0xff] %v10273_v3  ;;  %v10282_v56 = vmax.f32 %v12370_v51, %v3774_v29  ;;  %v12379_v29 = vld [vmem:[#allocation58_spill] sm:$0xff] }
 0x317   : > { %v3776_v54 = vpop.f32.mrf.mxu0  ;;  %v10284_v58 = vpop.f32.mrf.mxu1  ;;  %v12380_v4 = vmax.f32 %v12378_v60, %v12379_v29  ;;  %v7097_v60 = vld [vmem:[%s7203_s27 + $0x60c] sm:$0xff]  }
 0x318   : > { %12371 = vst [vmem:[#allocation52_spill] sm:$0xff] %v10282_v56  ;;  %12372 = vst [vmem:[#allocation50_spill] sm:$0xff] %v10284_v58  ;;  %v10291_v21 = vmax.f32 %v12375_v42, %v3776_v54 }
 0x319   : > { %v3780_v38 = vpop.f32.mrf.mxu0  ;;  %v10293_v22 = vpop.f32.mrf.mxu1  ;;  %6771 = vmatmul.mubr.msk.bf16.gmra.mxu0 %vm296_vm0, %v7094_v8  ;;  %6822 = vmatmul.mubr.msk.bf16.gmra.mxu1 %vm296_vm0, %v7095_v41  ;;  %v12384_v41 = vld [vmem:[#allocation61_spill] sm:$0xff] }
 0x31a   : > { %12376 = vst [vmem:[#allocation53_spill] sm:$0xff] %v10291_v21  ;;  %12377 = vst [vmem:[#allocation51_spill] sm:$0xff] %v10293_v22  ;;  %v10302_v53 = vmax.f32 %v12380_v4, %v3780_v38  ;;  %5124 = vmatprep.mubr.bf16.mxu0 %v11622_v13  ;;  %5463 = vmatprep.mubr.bf16.mxu1 %v11622_v13  ;;  %v12385_v42 = vmax.f32 %v12383_v14, %v12384_v41  ;;  %v7096_v38 = vld [vmem:[%s7203_s27 + $0x5a8] sm:$0xff]   ;;  %v12387_v4 = vld [vmem:[#allocation5_spill] sm:$0xff] }
 0x31b   : > { %v3782_v54 = vpop.f32.mrf.mxu0  ;;  %v10306_v31 = vpop.f32.mrf.mxu1  ;;  %v12388_v21 = vld [vmem:[#allocation63_spill] sm:$0xff]  ;;  %v12393_v41 = vld [vmem:[#allocation64_spill] sm:$0xff] }
 0x31c   : > { %12381 = vst [vmem:[#allocation56_spill] sm:$0xff] %v10302_v53  ;;  %12382 = vst [vmem:[#allocation54_spill] sm:$0xff] %v10306_v31  ;;  %v10313_v3 = vmax.f32 %v12385_v42, %v3782_v54  ;;  %v12389_v56 = vmax.f32 %v12387_v4, %v12388_v21  ;;  %v12392_v14 = vld [vmem:[#allocation7_spill] sm:$0xff]  ;;  %v12397_v21 = vld [vmem:[#allocation9_spill] sm:$0xff] }
 0x31d   : > { %v3784_v51 = vpop.f32.mrf.mxu0  ;;  %v10315_v58 = vpop.f32.mrf.mxu1  ;;  %v12394_v42 = vmax.f32 %v12392_v14, %v12393_v41 }
 0x31e   : > { %12386 = vst [vmem:[#allocation60_spill] sm:$0xff] %v10315_v58  ;;  %v10324_v6 = vmax.f32 %v12389_v56, %v3784_v51  ;;  %v12398_v51 = vld [vmem:[#allocation2_spill] sm:$0xff] }
 0x31f   : > { %v3786_v9 = vpop.f32.mrf.mxu0  ;;  %v10326_v8 = vpop.f32.mrf.mxu1  ;;  %v12399_v4 = vmax.f32 %v12397_v21, %v12398_v51  ;;  %v7099_v21 = vld [vmem:[%s7203_s27 + $0x614] sm:$0xff]  }
 0x320   : > { %12390 = vst [vmem:[#allocation55_spill] sm:$0xff] %v10324_v6  ;;  %12391 = vst [vmem:[#allocation62_spill] sm:$0xff] %v10326_v8  ;;  %v10333_v22 = vmax.f32 %v12394_v42, %v3786_v9 }
 0x321   : > { %v3790_v53 = vpop.f32.mrf.mxu0  ;;  %v10335_v29 = vpop.f32.mrf.mxu1  ;;  %6772 = vmatmul.mubr.msk.bf16.gmra.mxu0 %vm296_vm0, %v7096_v38  ;;  %6823 = vmatmul.mubr.msk.bf16.gmra.mxu1 %vm296_vm0, %v7097_v60  ;;  %v12401_v60 = vld [vmem:[#allocation4_spill] sm:$0xff] }
 0x322   : > { %12395 = vst [vmem:[#allocation57_spill] sm:$0xff] %v10333_v22  ;;  %12396 = vst [vmem:[#allocation59_spill] sm:$0xff] %v10335_v29  ;;  %v10344_v54 = vmax.f32 %v12399_v4, %v3790_v53  ;;  %5134 = vmatprep.mubr.bf16.mxu0 %v11622_v13  ;;  %5473 = vmatprep.mubr.bf16.mxu1 %v11622_v13  ;;  %v12402_v41 = vmax.f32 %v9827_v16, %v12401_v60  ;;  %v7098_v53 = vld [vmem:[%s7203_s27 + $0x5b0] sm:$0xff]   ;;  %v12403_v4 = vld [vmem:[#allocation6_spill] sm:$0xff] }
 0x323   : > { %v3792_v9 = vpop.f32.mrf.mxu0  ;;  %v10348_v14 = vpop.f32.mrf.mxu1  ;;  %v12404_v22 = vld [vmem:[#allocation11_spill] sm:$0xff]  ;;  %v12408_v60 = vld [vmem:[#allocation13_spill] sm:$0xff] }
 0x324   : > { %12400 = vst [vmem:[#allocation58_spill] sm:$0xff] %v10344_v54  ;;  %v10355_v42 = vmax.f32 %v12402_v41, %v3792_v9  ;;  %v12405_v58 = vmax.f32 %v12403_v4, %v12404_v22  ;;  %v12407_v9 = vld [vmem:[#allocation8_spill] sm:$0xff]  ;;  %v12412_v22 = vld [vmem:[#allocation10_spill] sm:$0xff] }
 0x325   : > { %v3794_v56 = vpop.f32.mrf.mxu0  ;;  %v10357_v8 = vpop.f32.mrf.mxu1  ;;  %v12409_v41 = vmax.f32 %v12407_v9, %v12408_v60 }
 0x326   : > { %v10366_v6 = vmax.f32 %v12405_v58, %v3794_v56  ;;  %v12413_v56 = vld [vmem:[#allocation15_spill] sm:$0xff] }
 0x327   : > { %v3796_v31 = vpop.f32.mrf.mxu0  ;;  %v10368_v38 = vpop.f32.mrf.mxu1  ;;  %v12414_v4 = vmax.f32 %v12412_v22, %v12413_v56  ;;  %v7101_v22 = vld [vmem:[%s7203_s27 + $0x61c] sm:$0xff]  }
 0x328   : > { %12406 = vst [vmem:[#allocation3_spill] sm:$0xff] %v10368_v38  ;;  %v10375_v29 = vmax.f32 %v12409_v41, %v3796_v31 }
 0x329   : > { %v3800_v54 = vpop.f32.mrf.mxu0  ;;  %v10377_v51 = vpop.f32.mrf.mxu1  ;;  %6773 = vmatmul.mubr.msk.bf16.gmra.mxu0 %vm296_vm0, %v7098_v53  ;;  %6824 = vmatmul.mubr.msk.bf16.gmra.mxu1 %vm296_vm0, %v7099_v21  ;;  %v12416_v21 = vmax.f32 %v9869_v26, %v9862_v39  ;;  %v12419_v26 = vld [vmem:[#allocation12_spill] sm:$0xff] }
 0x32a   : > { %12410 = vst [vmem:[#allocation61_spill] sm:$0xff] %v10375_v29  ;;  %12411 = vst [vmem:[#allocation5_spill] sm:$0xff] %v10377_v51  ;;  %v10386_v16 = vmax.f32 %v12414_v4, %v3800_v54  ;;  %5144 = vmatprep.mubr.bf16.mxu0 %v11622_v13  ;;  %5483 = vmatprep.mubr.bf16.mxu1 %v11622_v13  ;;  %v7100_v54 = vld [vmem:[%s7203_s27 + $0x5b8] sm:$0xff]   ;;  %v12417_v4 = vmax.f32 %v9880_v46, %v9871_v50  ;;  %v12424_v50 = vld [vmem:[#allocation14_spill] sm:$0xff] }
 0x32b   : > { %v3802_v31 = vpop.f32.mrf.mxu0  ;;  %v10390_v9 = vpop.f32.mrf.mxu1 }
 0x32c   : > { %12415 = vst [vmem:[#allocation63_spill] sm:$0xff] %v10386_v16  ;;  %v10397_v60 = vmax.f32 %v12416_v21, %v3802_v31  ;;  %v12420_v31 = vld [vmem:[#allocation17_spill] sm:$0xff] }
 0x32d   : > { %v3804_v41 = vpop.f32.mrf.mxu0  ;;  %v10399_v58 = vpop.f32.mrf.mxu1  ;;  %v12421_v21 = vmax.f32 %v12419_v26, %v12420_v31 }
 0x32e   : > { %v10408_v38 = vmax.f32 %v12417_v4, %v3804_v41  ;;  %v12425_v41 = vld [vmem:[#allocation19_spill] sm:$0xff] }
 0x32f   : > { %v3806_v29 = vpop.f32.mrf.mxu0  ;;  %v10410_v53 = vpop.f32.mrf.mxu1  ;;  %v12426_v4 = vmax.f32 %v12424_v50, %v12425_v41  ;;  %v7103_v50 = vld [vmem:[%s7203_s27 + $0x624] sm:$0xff]  }
 0x330   : > { %12418 = vst [vmem:[#allocation7_spill] sm:$0xff] %v10410_v53  ;;  %v10417_v51 = vmax.f32 %v12421_v21, %v3806_v29 }
 0x331   : > { %v3810_v16 = vpop.f32.mrf.mxu0  ;;  %v10419_v56 = vpop.f32.mrf.mxu1  ;;  %6774 = vmatmul.mubr.msk.bf16.gmra.mxu0 %vm296_vm0, %v7100_v54  ;;  %6825 = vmatmul.mubr.msk.bf16.gmra.mxu1 %vm296_vm0, %v7101_v22  ;;  %v12427_v22 = vmax.f32 %v9911_v33, %v9904_v35  ;;  %v12430_v33 = vld [vmem:[#allocation21_spill] sm:$0xff] }
 0x332   : > { %12422 = vst [vmem:[#allocation64_spill] sm:$0xff] %v10417_v51  ;;  %12423 = vst [vmem:[#allocation9_spill] sm:$0xff] %v10419_v56  ;;  %v10428_v39 = vmax.f32 %v12426_v4, %v3810_v16  ;;  %5154 = vmatprep.mubr.bf16.mxu0 %v11622_v13  ;;  %5493 = vmatprep.mubr.bf16.mxu1 %v11622_v13  ;;  %v7102_v16 = vld [vmem:[%s7203_s27 + $0x5c0] sm:$0xff]   ;;  %v12428_v4 = vmax.f32 %v9922_v45, %v9913_v59  ;;  %v12433_v59 = vld [vmem:[#allocation16_spill] sm:$0xff] }
 0x333   : > { %v3812_v29 = vpop.f32.mrf.mxu0  ;;  %v10432_v26 = vpop.f32.mrf.mxu1 }
 0x334   : > { %v10439_v31 = vmax.f32 %v12427_v22, %v3812_v29  ;;  %v12431_v29 = vmax.f32 %v9931_v7, %v12430_v33 }
 0x335   : > { %v3814_v21 = vpop.f32.mrf.mxu0  ;;  %v10441_v46 = vpop.f32.mrf.mxu1 }
 0x336   : > { %v10450_v53 = vmax.f32 %v12428_v4, %v3814_v21  ;;  %v12434_v21 = vmax.f32 %v9942_v19, %v12433_v59  ;;  %v7104_v19 = vld [vmem:[%s7203_s27 + $0x5c8] sm:$0xff]  }
 0x337   : > { %v3816_v51 = vpop.f32.mrf.mxu0  ;;  %v10452_v54 = vpop.f32.mrf.mxu1 }
 0x338   : > { %12429 = vst [vmem:[#allocation2_spill] sm:$0xff] %v10452_v54  ;;  %v10459_v22 = vmax.f32 %v12431_v29, %v3816_v51 }
 0x339   : > { %v3820_v56 = vpop.f32.mrf.mxu0  ;;  %v10461_v41 = vpop.f32.mrf.mxu1  ;;  %6775 = vmatmul.mubr.msk.bf16.gmra.mxu0 %vm296_vm0, %v7102_v16  ;;  %6826 = vmatmul.mubr.msk.bf16.gmra.mxu1 %vm296_vm0, %v7103_v50  ;;  %v12435_v50 = vmax.f32 %v9953_v12, %v9946_v5  ;;  %v12438_v12 = vld [vmem:[#allocation23_spill] sm:$0xff] }
 0x33a   : > { %12432 = vst [vmem:[#allocation4_spill] sm:$0xff] %v10461_v41  ;;  %v10470_v4 = vmax.f32 %v12434_v21, %v3820_v56  ;;  %5164 = vmatprep.mubr.bf16.mxu0 %v11622_v13  ;;  %5503 = vmatprep.mubr.bf16.mxu1 %v11622_v13  ;;  %v7105_v56 = vld [vmem:[%s7203_s27 + $0x62c] sm:$0xff]   ;;  %v12436_v21 = vmax.f32 %v9964_v10, %v9955_v27 }
 0x33b   : > { %v3822_v7 = vpop.f32.mrf.mxu0  ;;  %v10474_v51 = vpop.f32.mrf.mxu1  ;;  %v12440_v27 = vmax.f32 %v9984_v17, %v9975_v23  ;;  %v7106_v23 = vld [vmem:[%s7203_s27 + $0x5d0] sm:$0xff]  }
 0x33c   : > { %v10481_v33 = vmax.f32 %v12435_v50, %v3822_v7  ;;  %v12439_v7 = vmax.f32 %v9973_v36, %v12438_v12  ;;  %v7107_v17 = vld [vmem:[%s7203_s27 + $0x634] sm:$0xff]  }
 0x33d   : > { %v3824_v29 = vpop.f32.mrf.mxu0  ;;  %v10483_v45 = vpop.f32.mrf.mxu1 }
 0x33e   : > { %v10492_v35 = vmax.f32 %v12436_v21, %v3824_v29 }
 0x33f   : > { %v3826_v54 = vpop.f32.mrf.mxu0  ;;  %v10494_v16 = vpop.f32.mrf.mxu1 }
 0x340   : > { %12437 = vst [vmem:[#allocation6_spill] sm:$0xff] %v10494_v16  ;;  %v10501_v50 = vmax.f32 %v12439_v7, %v3826_v54 }
 0x341   : > { %v3830_v41 = vpop.f32.mrf.mxu0  ;;  %v10503_v59 = vpop.f32.mrf.mxu1  ;;  %6776 = vmatmul.mubr.msk.bf16.gmra.mxu0 %vm296_vm0, %v7104_v19  ;;  %6827 = vmatmul.mubr.msk.bf16.gmra.mxu1 %vm296_vm0, %v7105_v56  ;;  %v12441_v56 = vmax.f32 %v9995_v24, %v9988_v18  ;;  %v12442_v18 = vmax.f32 %v10008_v40, %v10001_v28  ;;  %v7108_v28 = vld [vmem:[%s7203_s27 + $0x5d8] ss:$0 sps:$4 sm:$0x77]   ;;  %v7109_v40 = vld [vmem:[%s7203_s27 + $0x63c] ss:$0 sps:$4 sm:$0x77]  }
 0x342   : > { %v10512_v29 = vmax.f32 %v12440_v27, %v3830_v41  ;;  %5174 = vmatprep.mubr.bf16.mxu0 %v11622_v13  ;;  %5513 = vmatprep.mubr.bf16.mxu1 %v11622_v13 }
 0x343   : > { %v3832_v36 = vpop.f32.mrf.mxu0  ;;  %v10516_v54 = vpop.f32.mrf.mxu1 }
 0x344   : > { %v10523_v21 = vmax.f32 %v12441_v56, %v3832_v36 }
 0x345   : > { %v3834_v12 = vpop.f32.mrf.mxu0  ;;  %v4173_v7 = vpop.f32.mrf.mxu1 }
 0x346   : > { %v12443_v12 = vmax.f32 %v10019_v32, %v10012_v0  ;;  %v12445_v32 = vmax.f32 %v10039_v11, %v10032_v55  ;;  %v12447_v11 = vmax.f32 %v10061_v37, %v10054_v1  ;;  %v12449_v1 = vmax.f32 %v10081_v48, %v10074_v34 }
 0x347   : > { %v3835_v27 = vpop.f32.mrf.mxu0  ;;  %v4174_v10 = vpop.f32.mrf.mxu1  ;;  %v12451_v34 = vmax.f32 %v10103_v57, %v10096_v61  ;;  %v12455_v61 = vmax.f32 %v10123_v20, %v10116_v52  ;;  %v12463_v52 = vld [vmem:[#allocation25_spill] sm:$0xff]  ;;  %v12464_v20 = vld [vmem:[#allocation22_spill] sm:$0xff] }
 0x349   : > { %v4388_v5 = vpop.f32.mrf.mxu0  ;;  %v10529_v16 = vpop.f32.mrf.mxu1  ;;  %6777 = vmatmul.mubr.msk.bf16.gmra.mxu0 %vm296_vm0, %v7106_v23  ;;  %6828 = vmatmul.mubr.msk.bf16.gmra.mxu1 %vm296_vm0, %v7107_v17 }
 0x34a   : > { %v10536_v24 = vmax.f32 %v12442_v18, %v4388_v5  ;;  %5184 = vmatprep.mubr.bf16.mxu0 %v11622_v13  ;;  %5523 = vmatprep.mubr.bf16.mxu1 %v11622_v13  ;;  %v12444_v13 = vmax.f32 %v10030_v63, %v10021_v30  ;;  %v12446_v63 = vmax.f32 %v10050_v44, %v10041_v2 }
 0x34b   : > { %v4390_v36 = vpop.f32.mrf.mxu0  ;;  %v10540_v56 = vpop.f32.mrf.mxu1  ;;  %v12448_v2 = vmax.f32 %v10072_v15, %v10063_v43  ;;  %v12450_v15 = vmax.f32 %v10092_v62, %v10083_v47  ;;  %v12453_v47 = vmax.f32 %v10114_v25, %v10105_v49  ;;  %v12458_v25 = vld [vmem:[#allocation20_spill] sm:$0xff]  ;;  %v12459_v49 = vld [vmem:[#allocation18_spill] sm:$0xff] }
 0x34c   : > { %v10547_v7 = vmax.f32 %v12443_v12, %v4390_v36 }
 0x34d   : > { %v4392_v23 = vpop.f32.mrf.mxu0  ;;  %v10549_v17 = vpop.f32.mrf.mxu1 }
 0x34e   : > { %v10558_v27 = vmax.f32 %v12444_v13, %v4392_v23 }
 0x34f   : > { %v4394_v18 = vpop.f32.mrf.mxu0  ;;  %v10560_v10 = vpop.f32.mrf.mxu1 }
 0x350   : > { %v10567_v36 = vmax.f32 %v12445_v32, %v4394_v18 }
 0x351   : > { %v4398_v12 = vpop.f32.mrf.mxu0  ;;  %v10569_v41 = vpop.f32.mrf.mxu1  ;;  %6778 = vmatmul.mubr.msk.bf16.gmra.mxu0 %vm296_vm0, %v7108_v28  ;;  %6829 = vmatmul.mubr.msk.bf16.gmra.mxu1 %vm296_vm0, %v7109_v40 }
 0x352   : > { %v10578_v23 = vmax.f32 %v12446_v63, %v4398_v12 }
 0x353   : > { %v4400_v13 = vpop.f32.mrf.mxu0  ;;  %v10580_v0 = vpop.f32.mrf.mxu1 }
 0x354   : > { %v10587_v28 = vmax.f32 %v12447_v11, %v4400_v13 }
 0x355   : > { %v4402_v40 = vpop.f32.mrf.mxu0  ;;  %v10589_v18 = vpop.f32.mrf.mxu1 }
 0x356   : > { %v10596_v44 = vmax.f32 %v12448_v2, %v4402_v40 }
 0x357   : > { %v4404_v12 = vpop.f32.mrf.mxu0  ;;  %v10598_v63 = vpop.f32.mrf.mxu1 }
 0x358   : > { %v10605_v37 = vmax.f32 %v12449_v1, %v4404_v12 }
 0x359   : > { %v4408_v13 = vpop.f32.mrf.mxu0  ;;  %v10607_v11 = vpop.f32.mrf.mxu1 }
 0x35a   : > { %v10614_v43 = vmax.f32 %v12450_v15, %v4408_v13 }
 0x35b   : > { %v4410_v40 = vpop.f32.mrf.mxu0  ;;  %v10616_v2 = vpop.f32.mrf.mxu1 }
 0x35c   : > { %v10623_v48 = vmax.f32 %v12451_v34, %v4410_v40 }
 0x35d   : > { %v4412_v12 = vpop.f32.mrf.mxu0  ;;  %v10625_v1 = vpop.f32.mrf.mxu1 }
 0x35e   : > { %12452 = vst [vmem:[#allocation11_spill] sm:$0xff] %v10625_v1  ;;  %v10632_v62 = vmax.f32 %v12453_v47, %v4412_v12  ;;  %v12460_v12 = vmax.f32 %v12458_v25, %v12459_v49  ;;  %v12468_v25 = vld [vmem:[#allocation27_spill] sm:$0xff] }
 0x35f   : > { %v4414_v13 = vpop.f32.mrf.mxu0  ;;  %v10634_v15 = vpop.f32.mrf.mxu1 }
 0x360   : > { %12454 = vst [vmem:[#allocation8_spill] sm:$0xff] %v10634_v15  ;;  %v10641_v57 = vmax.f32 %v12455_v61, %v4414_v13  ;;  %v12465_v13 = vmax.f32 %v12463_v52, %v12464_v20  ;;  %v12473_v52 = vld [vmem:[#allocation29_spill] sm:$0xff] }
 0x361   : > { %v4418_v40 = vpop.f32.mrf.mxu0  ;;  %v10643_v34 = vpop.f32.mrf.mxu1 }
 0x362   : > { %12456 = vst [vmem:[#allocation13_spill] sm:$0xff] %v10641_v57  ;;  %12457 = vst [vmem:[#allocation10_spill] sm:$0xff] %v10643_v34  ;;  %v10650_v47 = vmax.f32 %v12460_v12, %v4418_v40  ;;  %v12469_v40 = vld [vmem:[#allocation24_spill] sm:$0xff] }
 0x363   : > { %v4420_v30 = vpop.f32.mrf.mxu0  ;;  %v10652_v5 = vpop.f32.mrf.mxu1  ;;  %v12470_v49 = vmax.f32 %v12468_v25, %v12469_v40  ;;  %v12478_v25 = vld [vmem:[#allocation31_spill] sm:$0xff] }
 0x364   : > { %12461 = vst [vmem:[#allocation15_spill] sm:$0xff] %v10650_v47  ;;  %12462 = vst [vmem:[#allocation12_spill] sm:$0xff] %v10652_v5  ;;  %v10659_v61 = vmax.f32 %v12465_v13, %v4420_v30  ;;  %v12474_v30 = vld [vmem:[#allocation26_spill] sm:$0xff] }
 0x365   : > { %v4422_v19 = vpop.f32.mrf.mxu0  ;;  %v10661_v1 = vpop.f32.mrf.mxu1  ;;  %v12475_v20 = vmax.f32 %v12473_v52, %v12474_v30  ;;  %v12483_v52 = vld [vmem:[#allocation30_spill] sm:$0xff] }
 0x366   : > { %12466 = vst [vmem:[#allocation17_spill] sm:$0xff] %v10659_v61  ;;  %12467 = vst [vmem:[#allocation14_spill] sm:$0xff] %v10661_v1  ;;  %v10668_v12 = vmax.f32 %v12470_v49, %v4422_v19  ;;  %v12479_v19 = vld [vmem:[#allocation28_spill] sm:$0xff] }
 0x367   : > { %v4424_v15 = vpop.f32.mrf.mxu0  ;;  %v10670_v57 = vpop.f32.mrf.mxu1  ;;  %v12480_v40 = vmax.f32 %v12478_v25, %v12479_v19  ;;  %v12488_v25 = vld [vmem:[#allocation37_spill] sm:$0xff] }
 0x368   : > { %12471 = vst [vmem:[#allocation19_spill] sm:$0xff] %v10668_v12  ;;  %12472 = vst [vmem:[#allocation21_spill] sm:$0xff] %v10670_v57  ;;  %v10677_v13 = vmax.f32 %v12475_v20, %v4424_v15  ;;  %v12484_v15 = vld [vmem:[#allocation33_spill] sm:$0xff] }
 0x369   : > { %v4428_v34 = vpop.f32.mrf.mxu0  ;;  %v10679_v47 = vpop.f32.mrf.mxu1  ;;  %v12485_v30 = vmax.f32 %v12483_v52, %v12484_v15  ;;  %v12493_v52 = vld [vmem:[#allocation36_spill] sm:$0xff] }
 0x36a   : > { %12476 = vst [vmem:[#allocation16_spill] sm:$0xff] %v10677_v13  ;;  %12477 = vst [vmem:[#allocation23_spill] sm:$0xff] %v10679_v47  ;;  %v10686_v49 = vmax.f32 %v12480_v40, %v4428_v34  ;;  %v12489_v34 = vld [vmem:[#allocation35_spill] sm:$0xff] }
 0x36b   : > { %v4430_v5 = vpop.f32.mrf.mxu0  ;;  %v10688_v61 = vpop.f32.mrf.mxu1  ;;  %v12490_v19 = vmax.f32 %v12488_v25, %v12489_v34  ;;  %v12498_v25 = vld [vmem:[#allocation39_spill] sm:$0xff] }
 0x36c   : > { %12481 = vst [vmem:[#allocation20_spill] sm:$0xff] %v10686_v49  ;;  %12482 = vst [vmem:[#allocation18_spill] sm:$0xff] %v10688_v61  ;;  %v10695_v20 = vmax.f32 %v12485_v30, %v4430_v5  ;;  %v12494_v5 = vld [vmem:[#allocation32_spill] sm:$0xff] }
 0x36d   : > { %v4432_v1 = vpop.f32.mrf.mxu0  ;;  %v10697_v12 = vpop.f32.mrf.mxu1  ;;  %v12495_v15 = vmax.f32 %v12493_v52, %v12494_v5  ;;  %v12503_v52 = vld [vmem:[#allocation41_spill] sm:$0xff] }
 0x36e   : > { %12486 = vst [vmem:[#allocation25_spill] sm:$0xff] %v10695_v20  ;;  %12487 = vst [vmem:[#allocation22_spill] sm:$0xff] %v10697_v12  ;;  %v10704_v40 = vmax.f32 %v12490_v19, %v4432_v1  ;;  %v12499_v1 = vld [vmem:[#allocation34_spill] sm:$0xff] }
 0x36f   : > { %v4434_v57 = vpop.f32.mrf.mxu0  ;;  %v10706_v13 = vpop.f32.mrf.mxu1  ;;  %v12500_v34 = vmax.f32 %v12498_v25, %v12499_v1  ;;  %v12508_v25 = vld [vmem:[#allocation43_spill] sm:$0xff] }
 0x370   : > { %12491 = vst [vmem:[#allocation27_spill] sm:$0xff] %v10704_v40  ;;  %12492 = vst [vmem:[#allocation24_spill] sm:$0xff] %v10706_v13  ;;  %v10713_v30 = vmax.f32 %v12495_v15, %v4434_v57  ;;  %v12504_v57 = vld [vmem:[#allocation38_spill] sm:$0xff] }
 0x371   : > { %v4438_v47 = vpop.f32.mrf.mxu0  ;;  %v10715_v49 = vpop.f32.mrf.mxu1  ;;  %v12505_v5 = vmax.f32 %v12503_v52, %v12504_v57  ;;  %v12513_v52 = vld [vmem:[#allocation44_spill] sm:$0xff] }
 0x372   : > { %12496 = vst [vmem:[#allocation29_spill] sm:$0xff] %v10713_v30  ;;  %12497 = vst [vmem:[#allocation26_spill] sm:$0xff] %v10715_v49  ;;  %v10722_v19 = vmax.f32 %v12500_v34, %v4438_v47  ;;  %v12509_v47 = vld [vmem:[#allocation40_spill] sm:$0xff] }
 0x373   : > { %v4440_v61 = vpop.f32.mrf.mxu0  ;;  %v10724_v20 = vpop.f32.mrf.mxu1  ;;  %v12510_v1 = vmax.f32 %v12508_v25, %v12509_v47  ;;  %v12518_v25 = vld [vmem:[#allocation47_spill] sm:$0xff] }
 0x374   : > { %12501 = vst [vmem:[#allocation31_spill] sm:$0xff] %v10722_v19  ;;  %12502 = vst [vmem:[#allocation28_spill] sm:$0xff] %v10724_v20  ;;  %v10731_v15 = vmax.f32 %v12505_v5, %v4440_v61  ;;  %v12514_v61 = vld [vmem:[#allocation42_spill] sm:$0xff] }
 0x375   : > { %v4442_v12 = vpop.f32.mrf.mxu0  ;;  %v10733_v40 = vpop.f32.mrf.mxu1  ;;  %v12515_v57 = vmax.f32 %v12513_v52, %v12514_v61  ;;  %v12523_v52 = vld [vmem:[#allocation49_spill] sm:$0xff] }
 0x376   : > { %12506 = vst [vmem:[#allocation30_spill] sm:$0xff] %v10731_v15  ;;  %12507 = vst [vmem:[#allocation33_spill] sm:$0xff] %v10733_v40  ;;  %v10740_v34 = vmax.f32 %v12510_v1, %v4442_v12  ;;  %v12519_v12 = vld [vmem:[#allocation45_spill] sm:$0xff] }
 0x377   : > { %v4444_v13 = vpop.f32.mrf.mxu0  ;;  %v10742_v30 = vpop.f32.mrf.mxu1  ;;  %v12520_v47 = vmax.f32 %v12518_v25, %v12519_v12  ;;  %v12528_v25 = vld [vmem:[#allocation52_spill] sm:$0xff] }
 0x378   : > { %12511 = vst [vmem:[#allocation37_spill] sm:$0xff] %v10740_v34  ;;  %12512 = vst [vmem:[#allocation35_spill] sm:$0xff] %v10742_v30  ;;  %v10749_v5 = vmax.f32 %v12515_v57, %v4444_v13  ;;  %v12524_v13 = vld [vmem:[#allocation46_spill] sm:$0xff] }
 0x379   : > { %v4448_v49 = vpop.f32.mrf.mxu0  ;;  %v10751_v19 = vpop.f32.mrf.mxu1  ;;  %v12525_v61 = vmax.f32 %v12523_v52, %v12524_v13  ;;  %v12532_v52 = vld [vmem:[#allocation53_spill] sm:$0xff] }
 0x37a   : > { %12516 = vst [vmem:[#allocation36_spill] sm:$0xff] %v10749_v5  ;;  %12517 = vst [vmem:[#allocation32_spill] sm:$0xff] %v10751_v19  ;;  %v10758_v1 = vmax.f32 %v12520_v47, %v4448_v49  ;;  %v12529_v49 = vld [vmem:[#allocation48_spill] sm:$0xff] }
 0x37b   : > { %v4450_v20 = vpop.f32.mrf.mxu0  ;;  %v10760_v15 = vpop.f32.mrf.mxu1  ;;  %v12530_v12 = vmax.f32 %v12528_v25, %v12529_v49  ;;  %v12537_v25 = vld [vmem:[#allocation56_spill] sm:$0xff] }
 0x37c   : > { %12521 = vst [vmem:[#allocation39_spill] sm:$0xff] %v10758_v1  ;;  %12522 = vst [vmem:[#allocation34_spill] sm:$0xff] %v10760_v15  ;;  %v10767_v57 = vmax.f32 %v12525_v61, %v4450_v20  ;;  %v12533_v20 = vld [vmem:[#allocation50_spill] sm:$0xff] }
 0x37d   : > { %v4452_v40 = vpop.f32.mrf.mxu0  ;;  %v10769_v34 = vpop.f32.mrf.mxu1  ;;  %v12534_v13 = vmax.f32 %v12532_v52, %v12533_v20 }
 0x37e   : > { %12526 = vst [vmem:[#allocation41_spill] sm:$0xff] %v10767_v57  ;;  %12527 = vst [vmem:[#allocation38_spill] sm:$0xff] %v10769_v34  ;;  %v10776_v47 = vmax.f32 %v12530_v12, %v4452_v40  ;;  %v12538_v40 = vld [vmem:[#allocation51_spill] sm:$0xff] }
 0x37f   : > { %v4454_v30 = vpop.f32.mrf.mxu0  ;;  %v10778_v5 = vpop.f32.mrf.mxu1  ;;  %v12539_v49 = vmax.f32 %v12537_v25, %v12538_v40  ;;  %v12545_v25 = vld [vmem:[#allocation55_spill] sm:$0xff] }
 0x380   : > { %12531 = vst [vmem:[#allocation43_spill] sm:$0xff] %v10778_v5  ;;  %v10785_v61 = vmax.f32 %v12534_v13, %v4454_v30  ;;  %v12542_v30 = vld [vmem:[#allocation54_spill] sm:$0xff] }
 0x381   : > { %v4458_v19 = vpop.f32.mrf.mxu0  ;;  %v10787_v1 = vpop.f32.mrf.mxu1  ;;  %v12543_v52 = vmax.f32 %v10313_v3, %v12542_v30  ;;  %v12548_v3 = vld [vmem:[#allocation57_spill] sm:$0xff] }
 0x382   : > { %12535 = vst [vmem:[#allocation40_spill] sm:$0xff] %v10785_v61  ;;  %12536 = vst [vmem:[#allocation44_spill] sm:$0xff] %v10787_v1  ;;  %v10794_v12 = vmax.f32 %v12539_v49, %v4458_v19  ;;  %v12546_v19 = vld [vmem:[#allocation60_spill] sm:$0xff] }
 0x383   : > { %v4460_v15 = vpop.f32.mrf.mxu0  ;;  %v10796_v57 = vpop.f32.mrf.mxu1  ;;  %v12547_v40 = vmax.f32 %v12545_v25, %v12546_v19  ;;  %v12552_v25 = vld [vmem:[#allocation58_spill] sm:$0xff] }
 0x384   : > { %12540 = vst [vmem:[#allocation42_spill] sm:$0xff] %v10794_v12  ;;  %12541 = vst [vmem:[#allocation47_spill] sm:$0xff] %v10796_v57  ;;  %v10803_v20 = vmax.f32 %v12543_v52, %v4460_v15  ;;  %v12549_v15 = vld [vmem:[#allocation62_spill] sm:$0xff] }
 0x385   : > { %v4462_v13 = vpop.f32.mrf.mxu0  ;;  %v10805_v34 = vpop.f32.mrf.mxu1  ;;  %v12550_v30 = vmax.f32 %v12548_v3, %v12549_v15 }
 0x386   : > { %12544 = vst [vmem:[#allocation45_spill] sm:$0xff] %v10803_v20  ;;  %v10812_v49 = vmax.f32 %v12547_v40, %v4462_v13  ;;  %v12553_v13 = vld [vmem:[#allocation59_spill] sm:$0xff] }
 0x387   : > { %v4464_v5 = vpop.f32.mrf.mxu0  ;;  %v10814_v61 = vpop.f32.mrf.mxu1  ;;  %v12554_v19 = vmax.f32 %v12552_v25, %v12553_v13 }
 0x388   : > { %v10821_v52 = vmax.f32 %v12550_v30, %v4464_v5  ;;  %v12557_v5 = vmax.f32 %v10355_v42, %v10348_v14  ;;  %v12560_v14 = vld [vmem:[#allocation61_spill] sm:$0xff]  ;;  %v12561_v42 = vld [vmem:[#allocation3_spill] sm:$0xff] }
 0x389   : > { %v4468_v1 = vpop.f32.mrf.mxu0  ;;  %v10823_v12 = vpop.f32.mrf.mxu1 }
 0x38a   : > { %12551 = vst [vmem:[#allocation49_spill] sm:$0xff] %v10823_v12  ;;  %v10830_v40 = vmax.f32 %v12554_v19, %v4468_v1  ;;  %v12559_v1 = vmax.f32 %v10366_v6, %v10357_v8  ;;  %v12564_v6 = vld [vmem:[#allocation63_spill] sm:$0xff]  ;;  %v12565_v8 = vld [vmem:[#allocation5_spill] sm:$0xff] }
 0x38b   : > { %v4470_v57 = vpop.f32.mrf.mxu0  ;;  %v10832_v20 = vpop.f32.mrf.mxu1 }
 0x38c   : > { %12555 = vst [vmem:[#allocation46_spill] sm:$0xff] %v10830_v40  ;;  %12556 = vst [vmem:[#allocation52_spill] sm:$0xff] %v10832_v20  ;;  %v10839_v3 = vmax.f32 %v12557_v5, %v4470_v57  ;;  %v12562_v57 = vmax.f32 %v12560_v14, %v12561_v42 }
 0x38d   : > { %v4472_v15 = vpop.f32.mrf.mxu0  ;;  %v10841_v30 = vpop.f32.mrf.mxu1 }
 0x38e   : > { %12558 = vst [vmem:[#allocation48_spill] sm:$0xff] %v10839_v3  ;;  %v10848_v25 = vmax.f32 %v12559_v1, %v4472_v15  ;;  %v12566_v15 = vmax.f32 %v12564_v6, %v12565_v8 }
 0x38f   : > { %v4474_v13 = vpop.f32.mrf.mxu0  ;;  %v10850_v19 = vpop.f32.mrf.mxu1 }
 0x390   : > { %v10857_v5 = vmax.f32 %v12562_v57, %v4474_v13  ;;  %v12569_v13 = vmax.f32 %v10397_v60, %v10390_v9  ;;  %v12571_v9 = vld [vmem:[#allocation64_spill] sm:$0xff]  ;;  %v12572_v60 = vld [vmem:[#allocation7_spill] sm:$0xff] }
 0x391   : > { %v4478_v12 = vpop.f32.mrf.mxu0  ;;  %v10859_v40 = vpop.f32.mrf.mxu1 }
 0x392   : > { %12563 = vst [vmem:[#allocation53_spill] sm:$0xff] %v10859_v40  ;;  %v10866_v1 = vmax.f32 %v12566_v15, %v4478_v12  ;;  %v12570_v12 = vmax.f32 %v10408_v38, %v10399_v58  ;;  %v12575_v38 = vld [vmem:[#allocation9_spill] sm:$0xff] }
 0x393   : > { %v4480_v20 = vpop.f32.mrf.mxu0  ;;  %v10868_v3 = vpop.f32.mrf.mxu1  ;;  %v12576_v58 = vmax.f32 %v10428_v39, %v12575_v38  ;;  %v12579_v39 = vmax.f32 %v10450_v53, %v10441_v46  ;;  %v12584_v53 = vld [vmem:[#allocation4_spill] sm:$0xff] }
 0x394   : > { %12567 = vst [vmem:[#allocation50_spill] sm:$0xff] %v10866_v1  ;;  %12568 = vst [vmem:[#allocation56_spill] sm:$0xff] %v10868_v3  ;;  %v10875_v14 = vmax.f32 %v12569_v13, %v4480_v20  ;;  %v12573_v20 = vmax.f32 %v12571_v9, %v12572_v60  ;;  %v12585_v46 = vmax.f32 %v10470_v4, %v12584_v53  ;;  %v5584_v53 = vlaneseq }
 0x395   : > { %v4482_v42 = vpop.f32.mrf.mxu0  ;;  %v10877_v57 = vpop.f32.mrf.mxu1  ;;  %v12588_v4 = vmax.f32 %v10492_v35, %v10483_v45  ;;  %v12593_v45 = vmax.f32 %v10512_v29, %v10503_v59 }
 0x396   : > { %v10884_v6 = vmax.f32 %v12570_v12, %v4482_v42 }
 0x397   : > { %v4484_v8 = vpop.f32.mrf.mxu0  ;;  %v10886_v15 = vpop.f32.mrf.mxu1 }
 0x398   : > { %v10893_v13 = vmax.f32 %v12573_v20, %v4484_v8  ;;  %v12578_v8 = vmax.f32 %v10439_v31, %v10432_v26  ;;  %v12581_v26 = vld [vmem:[#allocation2_spill] sm:$0xff] }
 0x399   : > { %v4488_v40 = vpop.f32.mrf.mxu0  ;;  %v10895_v1 = vpop.f32.mrf.mxu1  ;;  %v12582_v31 = vmax.f32 %v10459_v22, %v12581_v26  ;;  %v12587_v22 = vmax.f32 %v10481_v33, %v10474_v51  ;;  %v12590_v33 = vld [vmem:[#allocation6_spill] sm:$0xff] }
 0x39a   : > { %12574 = vst [vmem:[#allocation51_spill] sm:$0xff] %v10895_v1  ;;  %v10902_v42 = vmax.f32 %v12576_v58, %v4488_v40 }
 0x39b   : > { %v4490_v12 = vpop.f32.mrf.mxu0  ;;  %v10904_v3 = vpop.f32.mrf.mxu1 }
 0x39c   : > { %12577 = vst [vmem:[#allocation54_spill] sm:$0xff] %v10904_v3  ;;  %v10911_v9 = vmax.f32 %v12578_v8, %v4490_v12 }
 0x39d   : > { %v4492_v60 = vpop.f32.mrf.mxu0  ;;  %v10913_v20 = vpop.f32.mrf.mxu1 }
 0x39e   : > { %v10920_v40 = vmax.f32 %v12579_v39, %v4492_v60 }
 0x39f   : > { %v4494_v38 = vpop.f32.mrf.mxu0  ;;  %v10922_v58 = vpop.f32.mrf.mxu1 }
 0x3a0   : > { %12580 = vst [vmem:[#allocation55_spill] sm:$0xff] %v10922_v58  ;;  %v10929_v12 = vmax.f32 %v12582_v31, %v4494_v38 }
 0x3a1   : > { %v4498_v8 = vpop.f32.mrf.mxu0  ;;  %v10931_v1 = vpop.f32.mrf.mxu1 }
 0x3a2   : > { %12583 = vst [vmem:[#allocation60_spill] sm:$0xff] %v10931_v1  ;;  %v10938_v60 = vmax.f32 %v12585_v46, %v4498_v8 }
 0x3a3   : > { %v4500_v39 = vpop.f32.mrf.mxu0  ;;  %v10940_v3 = vpop.f32.mrf.mxu1 }
 0x3a4   : > { %12586 = vst [vmem:[#allocation57_spill] sm:$0xff] %v10940_v3  ;;  %v10947_v38 = vmax.f32 %v12587_v22, %v4500_v39  ;;  %v12591_v39 = vmax.f32 %v10501_v50, %v12590_v33 }
 0x3a5   : > { %v4502_v26 = vpop.f32.mrf.mxu0  ;;  %v10949_v31 = vpop.f32.mrf.mxu1 }
 0x3a6   : > { %v10956_v8 = vmax.f32 %v12588_v4, %v4502_v26  ;;  %v5585_v4 = vshrl.u32 %v5584_v53, 7  ;;  %v5582_v53 = vld [vmem:[%s11230_s2] sm:$0x3] }
 0x3a7   : > { %v4504_v46 = vpop.f32.mrf.mxu0  ;;  %v10958_v58 = vpop.f32.mrf.mxu1 }
 0x3a8   : > { %12589 = vst [vmem:[#allocation62_spill] sm:$0xff] %v10958_v58  ;;  %v10965_v22 = vmax.f32 %v12591_v39, %v4504_v46  ;;  %v12595_v46 = vmax.f32 %v10523_v21, %v10516_v54  ;;  %v5586_v59 = vsub.s32 0, %v5585_v4  ;;  %v12597_v54 = vmax.f32 %v10536_v24, %v10529_v16 }
 0x3a9   : > { %v4508_v55 = vpop.f32.mrf.mxu0  ;;  %v10967_v1 = vpop.f32.mrf.mxu1  ;;  %v12599_v16 = vmax.f32 %v10558_v27, %v10549_v17  ;;  %v12601_v27 = vmax.f32 %v10578_v23, %v10569_v41 }
 0x3aa   : > { %12592 = vst [vmem:[#allocation58_spill] sm:$0xff] %v10967_v1  ;;  %v10974_v26 = vmax.f32 %v12593_v45, %v4508_v55  ;;  %v5590_v45 = vsub.s32 1, %v5585_v4 }
 0x3ab   : > { %v4510_v32 = vpop.f32.mrf.mxu0  ;;  %v10976_v3 = vpop.f32.mrf.mxu1 }
 0x3ac   : > { %12594 = vst [vmem:[#allocation59_spill] sm:$0xff] %v10976_v3  ;;  %v10983_v33 = vmax.f32 %v12595_v46, %v4510_v32  ;;  %v10993_v32 = vrot.slane %v5582_v53, %v5586_v59  ;;  %v10998_v35 = vrot.slane %v5582_v53, %v5590_v45 }
 0x3ad   : > { %v4512_v39 = vpop.f32.mrf.mxu0  ;;  %v4851_v51 = vpop.f32.mrf.mxu1 }
 0x3ae   : > { %12596 = vst [vmem:[#allocation61_spill] sm:$0xff] %v10983_v33 }
 0x3af   : > { %v4513_v29 = vpop.f32.mrf.mxu0  ;;  %v4852_v55 = vpop.f32.mrf.mxu1 }
 0x3b0   : > { %v12598_v29 = vmax.f32 %v10547_v7, %v10540_v56  ;;  %v12600_v56 = vmax.f32 %v10567_v36, %v10560_v10  ;;  %v12602_v36 = vmax.f32 %v10587_v28, %v10580_v0 }
 0x3b1   : > { %v5066_v58 = vpop.f32.mrf.mxu0  ;;  %v5405_v50 = vpop.f32.mrf.mxu1 }
 0x3b2   : > { %v5193_v21 = vmax.f32 %v12597_v54, %v5066_v58 }
 0x3b3   : > { %v5068_v51 = vpop.f32.mrf.mxu0  ;;  %v5407_v46 = vpop.f32.mrf.mxu1 }
 0x3b4   : > { %v5532_v39 = vmax.f32 %v5193_v21, %v5405_v50  ;;  %v5194_v55 = vmax.f32 %v12598_v29, %v5068_v51 }
 0x3b5   : > { %v5070_v3 = vpop.f32.mrf.mxu0  ;;  %v5409_v4 = vpop.f32.mrf.mxu1 }
 0x3b6   : > { %v5594_v33 = vadd.f32 %v10993_v32, %v5532_v39  ;;  %v5533_v1 = vmax.f32 %v5194_v55, %v5407_v46  ;;  %v5195_v24 = vmax.f32 %v12599_v16, %v5070_v3 }
 0x3b7   : > { %v5072_v58 = vpop.f32.mrf.mxu0  ;;  %v5411_v59 = vpop.f32.mrf.mxu1 }
 0x3b8   : > { %v5694_v54 = vmul.f32 0.01, %v5594_v33  ;;  %v5595_v50 = vadd.f32 %v10998_v35, %v5533_v1  ;;  %v5534_v21 = vmax.f32 %v5195_v24, %v5409_v4  ;;  %vm5644_vm1 = vcmp.ge.f32.partialorder %v5594_v33, 0.0 }
 0x3b9   : > { %v5196_v7 = vmax.f32 %v12600_v56, %v5072_v58  ;;  %v5076_v53 = vpop.f32.mrf.mxu0  ;;  %v5415_v45 = vpop.f32.mrf.mxu1 }
 0x3ba   : > { %vm5645_vm2 = vcmp.ge.f32.partialorder %v5595_v50, 0.0  ;;  %v5695_v51 = vmul.f32 0.01, %v5595_v50  ;;  %v5596_v46 = vadd.f32 %v10993_v32, %v5534_v21  ;;  %v5197_v3 = vmax.f32 %v12601_v27, %v5076_v53 }
 0x3bb   : > { %v5535_v17 = vmax.f32 %v5196_v7, %v5411_v59  ;;  %v5078_v39 = vpop.f32.mrf.mxu0  ;;  %v5417_v29 = vpop.f32.mrf.mxu1  ;;  %v5744_v1 = vsel %vm5644_vm1, %v5594_v33, %v5694_v54  ;;  %v12603_v59 = vmax.f32 %v10596_v44, %v10589_v18  ;;  %v12604_v53 = vmax.f32 %v10605_v37, %v10598_v63 }
 0x3bc   : > { %v5745_v10 = vsel %vm5645_vm2, %v5595_v50, %v5695_v51  ;;  %v5198_v55 = vmax.f32 %v12602_v36, %v5078_v39  ;;  %v5696_v16 = vmul.f32 0.01, %v5596_v46  ;;  %v5536_v41 = vmax.f32 %v5197_v3, %v5415_v45 }
 0x3bd   : > { %v6857_v4 = vpack.c.bf16 %v5745_v10, %v5744_v1  ;;  %v5597_v24 = vadd.f32 %v10998_v35, %v5535_v17  ;;  %v5080_v23 = vpop.f32.mrf.mxu0  ;;  %v5419_v58 = vpop.f32.mrf.mxu1  ;;  %vm5646_vm3 = vcmp.ge.f32.partialorder %v5596_v46, 0.0  ;;  %v12605_v10 = vmax.f32 %v10614_v43, %v10607_v11  ;;  %v12607_v43 = vld [vmem:[#allocation11_spill] sm:$0xff] }
 0x3be   : > { %v5537_v33 = vmax.f32 %v5198_v55, %v5417_v29  ;;  %v5199_v54 = vmax.f32 %v12603_v59, %v5080_v23  ;;  %v5598_v21 = vadd.f32 %v10993_v32, %v5536_v41  ;;  %v5746_v51 = vsel %vm5646_vm3, %v5596_v46, %v5696_v16 }
 0x3bf   : > { %5946 = vst [vmem:[%s11016_s18] sm:$0xff] %v6857_v4  ;;  %vm5647_vm4 = vcmp.ge.f32.partialorder %v5597_v24, 0.0  ;;  %v5697_v50 = vmul.f32 0.01, %v5597_v24  ;;  %v5082_v0 = vpop.f32.mrf.mxu0  ;;  %v5421_v28 = vpop.f32.mrf.mxu1  ;;  %v12606_v4 = vmax.f32 %v10623_v48, %v10616_v2 }
 0x3c0   : > { %v5599_v56 = vadd.f32 %v10998_v35, %v5537_v33  ;;  %v5538_v7 = vmax.f32 %v5199_v54, %v5419_v58  ;;  %v5200_v45 = vmax.f32 %v12604_v53, %v5082_v0  ;;  %vm5648_vm5 = vcmp.ge.f32.partialorder %v5598_v21, 0.0  ;;  %v12610_v53 = vld [vmem:[#allocation8_spill] sm:$0xff] }
 0x3c1   : > { %v5747_v17 = vsel %vm5647_vm4, %v5597_v24, %v5697_v50  ;;  %v5698_v18 = vmul.f32 0.01, %v5598_v21  ;;  %v5086_v44 = vpop.f32.mrf.mxu0  ;;  %v5425_v27 = vpop.f32.mrf.mxu1  ;;  %v12608_v54 = vmax.f32 %v10632_v62, %v12607_v43 }
 0x3c2   : > { %v6858_v3 = vpack.c.bf16 %v5747_v17, %v5746_v51  ;;  %vm5649_vm6 = vcmp.ge.f32.partialorder %v5599_v56, 0.0  ;;  %v5699_v39 = vmul.f32 0.01, %v5599_v56  ;;  %v5600_v29 = vadd.f32 %v10993_v32, %v5538_v7  ;;  %v12609_v7 = vld [vmem:[#allocation13_spill] sm:$0xff] }
 0x3c3   : > { %v5539_v1 = vmax.f32 %v5200_v45, %v5421_v28  ;;  %v5201_v36 = vmax.f32 %v12605_v10, %v5086_v44  ;;  %v5088_v63 = vpop.f32.mrf.mxu0  ;;  %v5427_v37 = vpop.f32.mrf.mxu1  ;;  %v5748_v46 = vsel %vm5648_vm5, %v5598_v21, %v5698_v18  ;;  %v12611_v45 = vmax.f32 %v12609_v7, %v12610_v53 }
 0x3c4   : > { %5947 = vst [vmem:[%s11016_s18 + $0x8] sm:$0xff] %v6858_v3  ;;  %v5749_v55 = vsel %vm5649_vm6, %v5599_v56, %v5699_v39  ;;  %v5202_v16 = vmax.f32 %v12606_v4, %v5088_v63  ;;  %v5700_v41 = vmul.f32 0.01, %v5600_v29  ;;  %vm5650_vm7 = vcmp.ge.f32.partialorder %v5600_v29, 0.0  ;;  %v12613_v63 = vld [vmem:[#allocation10_spill] sm:$0xff] }
 0x3c5   : > { %v6859_v24 = vpack.c.bf16 %v5749_v55, %v5748_v46  ;;  %v5601_v23 = vadd.f32 %v10998_v35, %v5539_v1  ;;  %v5540_v58 = vmax.f32 %v5201_v36, %v5425_v27  ;;  %v5090_v33 = vpop.f32.mrf.mxu0  ;;  %v5429_v59 = vpop.f32.mrf.mxu1  ;;  %v12612_v36 = vld [vmem:[#allocation15_spill] sm:$0xff] }
 0x3c6   : > { %v5541_v11 = vmax.f32 %v5202_v16, %v5427_v37  ;;  %v5203_v50 = vmax.f32 %v12608_v54, %v5090_v33  ;;  %v5750_v17 = vsel %vm5650_vm7, %v5600_v29, %v5700_v41  ;;  %v12614_v37 = vmax.f32 %v12612_v36, %v12613_v63  ;;  %v12616_v41 = vld [vmem:[#allocation12_spill] sm:$0xff] }
 0x3c7   : > { %5948 = vst [vmem:[%s11016_s18 + $0x10] sm:$0xff] %v6859_v24  ;;  %vm5651_vm8 = vcmp.ge.f32.partialorder %v5601_v23, 0.0  ;;  %v5701_v21 = vmul.f32 0.01, %v5601_v23  ;;  %v5602_v0 = vadd.f32 %v10993_v32, %v5540_v58  ;;  %v5092_v2 = vpop.f32.mrf.mxu0  ;;  %v5431_v48 = vpop.f32.mrf.mxu1  ;;  %v12615_v24 = vld [vmem:[#allocation17_spill] sm:$0xff] }
 0x3c8   : > { %v5603_v28 = vadd.f32 %v10998_v35, %v5541_v11  ;;  %v5542_v56 = vmax.f32 %v5203_v50, %v5429_v59  ;;  %v5204_v51 = vmax.f32 %v12611_v45, %v5092_v2  ;;  %v12618_v2 = vld [vmem:[#allocation19_spill] sm:$0xff] }
 0x3c9   : > { %v5751_v18 = vsel %vm5651_vm8, %v5601_v23, %v5701_v21  ;;  %vm5652_vm9 = vcmp.ge.f32.partialorder %v5602_v0, 0.0  ;;  %v5702_v62 = vmul.f32 0.01, %v5602_v0  ;;  %v5096_v44 = vpop.f32.mrf.mxu0  ;;  %v5435_v27 = vpop.f32.mrf.mxu1  ;;  %v12617_v23 = vmax.f32 %v12615_v24, %v12616_v41 }
 0x3ca   : > { %v6860_v3 = vpack.c.bf16 %v5751_v18, %v5750_v17  ;;  %vm5653_vm10 = vcmp.ge.f32.partialorder %v5603_v28, 0.0  ;;  %v5703_v39 = vmul.f32 0.01, %v5603_v28  ;;  %v5604_v1 = vadd.f32 %v10993_v32, %v5542_v56  ;;  %v12621_v18 = vld [vmem:[#allocation16_spill] sm:$0xff] }
 0x3cb   : > { %v5543_v10 = vmax.f32 %v5204_v51, %v5431_v48  ;;  %v5205_v46 = vmax.f32 %v12614_v37, %v5096_v44  ;;  %v5098_v55 = vpop.f32.mrf.mxu0  ;;  %v5437_v4 = vpop.f32.mrf.mxu1  ;;  %v5752_v29 = vsel %vm5652_vm9, %v5602_v0, %v5702_v62  ;;  %v12619_v48 = vld [vmem:[#allocation14_spill] sm:$0xff]  ;;  %v12622_v62 = vld [vmem:[#allocation21_spill] sm:$0xff] }
 0x3cc   : > { %5949 = vst [vmem:[%s11016_s18 + $0x18] sm:$0xff] %v6860_v3  ;;  %v5753_v16 = vsel %vm5653_vm10, %v5603_v28, %v5703_v39  ;;  %v5206_v58 = vmax.f32 %v12617_v23, %v5098_v55  ;;  %v5704_v59 = vmul.f32 0.01, %v5604_v1  ;;  %vm5654_vm11 = vcmp.ge.f32.partialorder %v5604_v1, 0.0 }
 0x3cd   : > { %v6861_v33 = vpack.c.bf16 %v5753_v16, %v5752_v29  ;;  %v5605_v11 = vadd.f32 %v10998_v35, %v5543_v10  ;;  %v5544_v43 = vmax.f32 %v5205_v46, %v5435_v27  ;;  %v5100_v54 = vpop.f32.mrf.mxu0  ;;  %v5439_v50 = vpop.f32.mrf.mxu1  ;;  %v12620_v56 = vmax.f32 %v12618_v2, %v12619_v48  ;;  %v12624_v29 = vld [vmem:[#allocation20_spill] sm:$0xff]  ;;  %v12625_v16 = vld [vmem:[#allocation23_spill] sm:$0xff] }
 0x3ce   : > { %v5545_v21 = vmax.f32 %v5206_v58, %v5437_v4  ;;  %v12623_v44 = vmax.f32 %v12621_v18, %v12622_v62  ;;  %v5754_v3 = vsel %vm5654_vm11, %v5604_v1, %v5704_v59  ;;  %v12626_v24 = vmax.f32 %v12624_v29, %v12625_v16  ;;  %v12627_v59 = vld [vmem:[#allocation25_spill] sm:$0xff] }
 0x3cf   : > { %v5207_v7 = vmax.f32 %v12620_v56, %v5100_v54  ;;  %5950 = vst [vmem:[%s11016_s18 + $0x20] sm:$0xff] %v6861_v33  ;;  %vm5655_vm12 = vcmp.ge.f32.partialorder %v5605_v11, 0.0  ;;  %v5705_v0 = vmul.f32 0.01, %v5605_v11  ;;  %v5606_v28 = vadd.f32 %v10993_v32, %v5544_v43  ;;  %v5102_v53 = vpop.f32.mrf.mxu0  ;;  %v5441_v45 = vpop.f32.mrf.mxu1 }
 0x3d0   : > { %v5607_v51 = vadd.f32 %v10998_v35, %v5545_v21  ;;  %v5208_v27 = vmax.f32 %v12623_v44, %v5102_v53  ;;  %v12630_v53 = vld [vmem:[#allocation27_spill] sm:$0xff] }
 0x3d1   : > { %v5546_v17 = vmax.f32 %v5207_v7, %v5439_v50  ;;  %v5755_v39 = vsel %vm5655_vm12, %v5605_v11, %v5705_v0  ;;  %vm5656_vm13 = vcmp.ge.f32.partialorder %v5606_v28, 0.0  ;;  %v5706_v10 = vmul.f32 0.01, %v5606_v28  ;;  %v5106_v36 = vpop.f32.mrf.mxu0  ;;  %v5445_v63 = vpop.f32.mrf.mxu1  ;;  %v12628_v11 = vld [vmem:[#allocation18_spill] sm:$0xff] }
 0x3d2   : > { %v6862_v37 = vpack.c.bf16 %v5755_v39, %v5754_v3  ;;  %vm5657_vm14 = vcmp.ge.f32.partialorder %v5607_v51, 0.0  ;;  %v5707_v46 = vmul.f32 0.01, %v5607_v51  ;;  %v5547_v4 = vmax.f32 %v5208_v27, %v5441_v45  ;;  %v12631_v45 = vld [vmem:[#allocation22_spill] sm:$0xff]  ;;  %v12633_v39 = vld [vmem:[#allocation29_spill] sm:$0xff] }
 0x3d3   : > { %v5608_v55 = vadd.f32 %v10993_v32, %v5546_v17  ;;  %v5209_v41 = vmax.f32 %v12626_v24, %v5106_v36  ;;  %v5108_v23 = vpop.f32.mrf.mxu0  ;;  %v5447_v58 = vpop.f32.mrf.mxu1  ;;  %v5756_v1 = vsel %vm5656_vm13, %v5606_v28, %v5706_v10  ;;  %v12629_v43 = vmax.f32 %v12627_v59, %v12628_v11  ;;  %v12634_v10 = vld [vmem:[#allocation24_spill] sm:$0xff] }
 0x3d4   : > { %5951 = vst [vmem:[%s11016_s18 + $0x28] sm:$0xff] %v6862_v37  ;;  %v5757_v33 = vsel %vm5657_vm14, %v5607_v51, %v5707_v46  ;;  %v5609_v2 = vadd.f32 %v10998_v35, %v5547_v4  ;;  %v12632_v17 = vmax.f32 %v12630_v53, %v12631_v45  ;;  %v12635_v36 = vmax.f32 %v12633_v39, %v12634_v10 }
 0x3d5   : > { %v5210_v54 = vmax.f32 %v12629_v43, %v5108_v23  ;;  %v6863_v50 = vpack.c.bf16 %v5757_v33, %v5756_v1  ;;  %v5708_v21 = vmul.f32 0.01, %v5608_v55  ;;  %v5548_v48 = vmax.f32 %v5209_v41, %v5445_v63  ;;  %v5110_v56 = vpop.f32.mrf.mxu0  ;;  %v5449_v7 = vpop.f32.mrf.mxu1  ;;  %v12636_v1 = vld [vmem:[#allocation31_spill] sm:$0xff]  ;;  %v12637_v33 = vld [vmem:[#allocation26_spill] sm:$0xff] }
 0x3d6   : > { %vm5658_vm15 = vcmp.ge.f32.partialorder %v5608_v55, 0.0  ;;  %v5211_v18 = vmax.f32 %v12632_v17, %v5110_v56  ;;  %vm5659_vm0 = vcmp.ge.f32.partialorder %v5609_v2, 0.0  ;;  %v5709_v28 = vmul.f32 0.01, %v5609_v2 }
 0x3d7   : > { %v5549_v0 = vmax.f32 %v5210_v54, %v5447_v58  ;;  %5952 = vst [vmem:[%s11016_s18 + $0x30] sm:$0xff] %v6863_v50  ;;  %v5610_v51 = vadd.f32 %v10993_v32, %v5548_v48  ;;  %v5112_v62 = vpop.f32.mrf.mxu0  ;;  %v5451_v44 = vpop.f32.mrf.mxu1  ;;  %v5758_v37 = vsel %vm5658_vm15, %v5608_v55, %v5708_v21  ;;  %v12638_v59 = vmax.f32 %v12636_v1, %v12637_v33  ;;  %v12639_v21 = vld [vmem:[#allocation30_spill] sm:$0xff] }
 0x3d8   : > { %v5550_v3 = vmax.f32 %v5211_v18, %v5449_v7  ;;  %v5212_v63 = vmax.f32 %v12635_v36, %v5112_v62  ;;  %v5759_v46 = vsel %vm5659_vm0, %v5609_v2, %v5709_v28  ;;  %v12640_v2 = vld [vmem:[#allocation28_spill] sm:$0xff]  ;;  %v12642_v62 = vld [vmem:[#allocation37_spill] sm:$0xff] }
 0x3d9   : > { %v5611_v27 = vadd.f32 %v10998_v35, %v5549_v0  ;;  %vm5660_vm1 = vcmp.ge.f32.partialorder %v5610_v51, 0.0  ;;  %v5710_v4 = vmul.f32 0.01, %v5610_v51  ;;  %v5116_v29 = vpop.f32.mrf.mxu0  ;;  %v5455_v16 = vpop.f32.mrf.mxu1  ;;  %v6864_v24 = vpack.c.bf16 %v5759_v46, %v5758_v37  ;;  %v12645_v46 = vld [vmem:[#allocation36_spill] sm:$0xff] }
 0x3da   : > { %v5612_v23 = vadd.f32 %v10993_v32, %v5550_v3  ;;  %v5551_v58 = vmax.f32 %v5212_v63, %v5451_v44  ;;  %v5213_v11 = vmax.f32 %v12638_v59, %v5116_v29  ;;  %v12641_v48 = vmax.f32 %v12639_v21, %v12640_v2  ;;  %v12643_v44 = vld [vmem:[#allocation33_spill] sm:$0xff] }
 0x3db   : > { %vm5661_vm2 = vcmp.ge.f32.partialorder %v5611_v27, 0.0  ;;  %v5711_v41 = vmul.f32 0.01, %v5611_v27  ;;  %v5118_v43 = vpop.f32.mrf.mxu0  ;;  %v5457_v54 = vpop.f32.mrf.mxu1  ;;  %5953 = vst [vmem:[%s11016_s18 + $0x38] sm:$0xff] %v6864_v24  ;;  %v5760_v55 = vsel %vm5660_vm1, %v5610_v51, %v5710_v4  ;;  %v12644_v3 = vmax.f32 %v12642_v62, %v12643_v44  ;;  %v12646_v4 = vld [vmem:[#allocation35_spill] sm:$0xff] }
 0x3dc   : > { %v5214_v56 = vmax.f32 %v12641_v48, %v5118_v43  ;;  %v5712_v0 = vmul.f32 0.01, %v5612_v23  ;;  %v5613_v53 = vadd.f32 %v10998_v35, %v5551_v58  ;;  %v5552_v45 = vmax.f32 %v5213_v11, %v5455_v16 }
 0x3dd   : > { %v5761_v50 = vsel %vm5661_vm2, %v5611_v27, %v5711_v41  ;;  %v5120_v17 = vpop.f32.mrf.mxu0  ;;  %v5459_v18 = vpop.f32.mrf.mxu1  ;;  %vm5662_vm3 = vcmp.ge.f32.partialorder %v5612_v23, 0.0  ;;  %v12647_v29 = vmax.f32 %v12645_v46, %v12646_v4 }
 0x3de   : > { %v6865_v7 = vpack.c.bf16 %v5761_v50, %v5760_v55  ;;  %v5553_v28 = vmax.f32 %v5214_v56, %v5457_v54  ;;  %v5215_v39 = vmax.f32 %v12644_v3, %v5120_v17  ;;  %vm5663_vm4 = vcmp.ge.f32.partialorder %v5613_v53, 0.0  ;;  %v12648_v55 = vld [vmem:[#allocation39_spill] sm:$0xff]  ;;  %v12649_v50 = vld [vmem:[#allocation32_spill] sm:$0xff] }
 0x3df   : > { %v5713_v51 = vmul.f32 0.01, %v5613_v53  ;;  %v5614_v27 = vadd.f32 %v10993_v32, %v5552_v45  ;;  %v5122_v10 = vpop.f32.mrf.mxu0  ;;  %v5461_v36 = vpop.f32.mrf.mxu1  ;;  %v5762_v24 = vsel %vm5662_vm3, %v5612_v23, %v5712_v0  ;;  %v12650_v21 = vmax.f32 %v12648_v55, %v12649_v50  ;;  %v12651_v0 = vld [vmem:[#allocation41_spill] sm:$0xff] }
 0x3e0   : > { %5954 = vst [vmem:[%s11016_s18 + $0x40] sm:$0xff] %v6865_v7  ;;  %v5615_v63 = vadd.f32 %v10998_v35, %v5553_v28  ;;  %v5554_v37 = vmax.f32 %v5215_v39, %v5459_v18  ;;  %v5216_v16 = vmax.f32 %v12647_v29, %v5122_v10  ;;  %v12654_v10 = vld [vmem:[#allocation38_spill] sm:$0xff] }
 0x3e1   : > { %v5763_v41 = vsel %vm5663_vm4, %v5613_v53, %v5713_v51  ;;  %vm5664_vm5 = vcmp.ge.f32.partialorder %v5614_v27, 0.0  ;;  %v5714_v58 = vmul.f32 0.01, %v5614_v27  ;;  %v5126_v1 = vpop.f32.mrf.mxu0  ;;  %v5465_v33 = vpop.f32.mrf.mxu1  ;;  %v12652_v53 = vld [vmem:[#allocation34_spill] sm:$0xff] }
 0x3e2   : > { %v6866_v59 = vpack.c.bf16 %v5763_v41, %v5762_v24  ;;  %vm5665_vm6 = vcmp.ge.f32.partialorder %v5615_v63, 0.0  ;;  %v5715_v11 = vmul.f32 0.01, %v5615_v63  ;;  %v5616_v43 = vadd.f32 %v10993_v32, %v5554_v37  ;;  %v12656_v24 = vld [vmem:[#allocation40_spill] sm:$0xff]  ;;  %v12657_v41 = vld [vmem:[#allocation43_spill] sm:$0xff] }
 0x3e3   : > { %v5555_v54 = vmax.f32 %v5216_v16, %v5461_v36  ;;  %v5217_v2 = vmax.f32 %v12650_v21, %v5126_v1  ;;  %v5128_v48 = vpop.f32.mrf.mxu0  ;;  %v5467_v56 = vpop.f32.mrf.mxu1  ;;  %v5764_v23 = vsel %vm5664_vm5, %v5614_v27, %v5714_v58  ;;  %v12653_v45 = vmax.f32 %v12651_v0, %v12652_v53 }
 0x3e4   : > { %5955 = vst [vmem:[%s11016_s18 + $0x48] sm:$0xff] %v6866_v59  ;;  %v5765_v7 = vsel %vm5665_vm6, %v5615_v63, %v5715_v11  ;;  %v5716_v28 = vmul.f32 0.01, %v5616_v43  ;;  %vm5666_vm7 = vcmp.ge.f32.partialorder %v5616_v43, 0.0  ;;  %v12655_v36 = vmax.f32 %v10776_v47, %v12654_v10 }
 0x3e5   : > { %v5218_v17 = vmax.f32 %v12653_v45, %v5128_v48  ;;  %v6867_v18 = vpack.c.bf16 %v5765_v7, %v5764_v23  ;;  %v5617_v62 = vadd.f32 %v10998_v35, %v5555_v54  ;;  %v5556_v44 = vmax.f32 %v5217_v2, %v5465_v33  ;;  %v5130_v3 = vpop.f32.mrf.mxu0  ;;  %v5469_v39 = vpop.f32.mrf.mxu1  ;;  %v12659_v48 = vld [vmem:[#allocation42_spill] sm:$0xff] }
 0x3e6   : > { %v5219_v37 = vmax.f32 %v12655_v36, %v5130_v3  ;;  %v12658_v58 = vmax.f32 %v12656_v24, %v12657_v41  ;;  %v5766_v33 = vsel %vm5666_vm7, %v5616_v43, %v5716_v28 }
 0x3e7   : > { %v5557_v51 = vmax.f32 %v5218_v17, %v5467_v56  ;;  %5956 = vst [vmem:[%s11016_s18 + $0x50] sm:$0xff] %v6867_v18  ;;  %vm5667_vm8 = vcmp.ge.f32.partialorder %v5617_v62, 0.0  ;;  %v5717_v27 = vmul.f32 0.01, %v5617_v62  ;;  %v5618_v63 = vadd.f32 %v10993_v32, %v5556_v44  ;;  %v5132_v46 = vpop.f32.mrf.mxu0  ;;  %v5471_v4 = vpop.f32.mrf.mxu1  ;;  %v12660_v56 = vld [vmem:[#allocation44_spill] sm:$0xff]  ;;  %v12662_v17 = vld [vmem:[#allocation45_spill] sm:$0xff] }
 0x3e8   : > { %v5558_v16 = vmax.f32 %v5219_v37, %v5469_v39  ;;  %v5220_v1 = vmax.f32 %v12658_v58, %v5132_v46  ;;  %v12661_v23 = vmax.f32 %v12659_v48, %v12660_v56  ;;  %v12663_v18 = vld [vmem:[#allocation47_spill] sm:$0xff]  ;;  %v12666_v58 = vmax.f32 %v10821_v52, %v10814_v61  ;;  %v12668_v48 = vld [vmem:[#allocation49_spill] sm:$0xff] }
 0x3e9   : > { %v5619_v29 = vadd.f32 %v10998_v35, %v5557_v51  ;;  %v5767_v59 = vsel %vm5667_vm8, %v5617_v62, %v5717_v27  ;;  %vm5668_vm9 = vcmp.ge.f32.partialorder %v5618_v63, 0.0  ;;  %v5718_v47 = vmul.f32 0.01, %v5618_v63  ;;  %v5136_v11 = vpop.f32.mrf.mxu0  ;;  %v5475_v54 = vpop.f32.mrf.mxu1 }
 0x3ea   : > { %v6868_v55 = vpack.c.bf16 %v5767_v59, %v5766_v33  ;;  %v5620_v21 = vadd.f32 %v10993_v32, %v5558_v16  ;;  %v5559_v2 = vmax.f32 %v5220_v1, %v5471_v4  ;;  %v5221_v7 = vmax.f32 %v12661_v23, %v5136_v11 }
 0x3eb   : > { %vm5669_vm10 = vcmp.ge.f32.partialorder %v5619_v29, 0.0  ;;  %v5719_v50 = vmul.f32 0.01, %v5619_v29  ;;  %v5138_v0 = vpop.f32.mrf.mxu0  ;;  %v5477_v53 = vpop.f32.mrf.mxu1  ;;  %v5768_v43 = vsel %vm5668_vm9, %v5618_v63, %v5718_v47  ;;  %v12664_v28 = vmax.f32 %v12662_v17, %v12663_v18 }
 0x3ec   : > { %5957 = vst [vmem:[%s11016_s18 + $0x58] sm:$0xff] %v6868_v55  ;;  %v5720_v3 = vmul.f32 0.01, %v5620_v21  ;;  %v5621_v39 = vadd.f32 %v10998_v35, %v5559_v2  ;;  %v5560_v51 = vmax.f32 %v5221_v7, %v5475_v54  ;;  %vm5670_vm11 = vcmp.ge.f32.partialorder %v5620_v21, 0.0  ;;  %v12667_v2 = vld [vmem:[#allocation46_spill] sm:$0xff] }
 0x3ed   : > { %v5769_v45 = vsel %vm5669_vm10, %v5619_v29, %v5719_v50  ;;  %v5222_v62 = vmax.f32 %v12664_v28, %v5138_v0  ;;  %v5140_v10 = vpop.f32.mrf.mxu0  ;;  %v5479_v36 = vpop.f32.mrf.mxu1  ;;  %v12665_v27 = vmax.f32 %v10812_v49, %v10805_v34  ;;  %v12669_v56 = vmax.f32 %v12667_v2, %v12668_v48  ;;  %v12670_v0 = vld [vmem:[#allocation48_spill] sm:$0xff] }
 0x3ee   : > { %v6869_v44 = vpack.c.bf16 %v5769_v45, %v5768_v43  ;;  %vm5671_vm12 = vcmp.ge.f32.partialorder %v5621_v39, 0.0  ;;  %v5721_v63 = vmul.f32 0.01, %v5621_v39  ;;  %v5622_v4 = vadd.f32 %v10993_v32, %v5560_v51  ;;  %v12678_v2 = vld [vmem:[#allocation56_spill] sm:$0xff] }
 0x3ef   : > { %v5561_v37 = vmax.f32 %v5222_v62, %v5477_v53  ;;  %v5223_v46 = vmax.f32 %v12665_v27, %v5140_v10  ;;  %v5142_v29 = vpop.f32.mrf.mxu0  ;;  %v5481_v16 = vpop.f32.mrf.mxu1  ;;  %v5770_v33 = vsel %vm5670_vm11, %v5620_v21, %v5720_v3  ;;  %v12671_v53 = vld [vmem:[#allocation52_spill] sm:$0xff]  ;;  %v12673_v51 = vmax.f32 %v10848_v25, %v10841_v30 }
 0x3f0   : > { %5958 = vst [vmem:[%s11016_s18 + $0x60] sm:$0xff] %v6869_v44  ;;  %v5224_v1 = vmax.f32 %v12666_v58, %v5142_v29  ;;  %v5771_v59 = vsel %vm5671_vm12, %v5621_v39, %v5721_v63  ;;  %vm5672_vm13 = vcmp.ge.f32.partialorder %v5622_v4, 0.0  ;;  %v5722_v34 = vmul.f32 0.01, %v5622_v4 }
 0x3f1   : > { %v5623_v24 = vadd.f32 %v10998_v35, %v5561_v37  ;;  %v5562_v41 = vmax.f32 %v5223_v46, %v5479_v36  ;;  %v5146_v49 = vpop.f32.mrf.mxu0  ;;  %v5485_v47 = vpop.f32.mrf.mxu1  ;;  %v6870_v11 = vpack.c.bf16 %v5771_v59, %v5770_v33  ;;  %v12672_v43 = vmax.f32 %v12670_v0, %v12671_v53 }
 0x3f2   : > { %v5563_v50 = vmax.f32 %v5224_v1, %v5481_v16  ;;  %v5225_v23 = vmax.f32 %v12669_v56, %v5146_v49  ;;  %v5772_v21 = vsel %vm5672_vm13, %v5622_v4, %v5722_v34  ;;  %v12674_v29 = vmax.f32 %v10857_v5, %v10850_v19  ;;  %v12675_v49 = vld [vmem:[#allocation50_spill] sm:$0xff] }
 0x3f3   : > { %vm5673_vm14 = vcmp.ge.f32.partialorder %v5623_v24, 0.0  ;;  %v5723_v54 = vmul.f32 0.01, %v5623_v24  ;;  %v5624_v55 = vadd.f32 %v10993_v32, %v5562_v41  ;;  %v5148_v61 = vpop.f32.mrf.mxu0  ;;  %v5487_v52 = vpop.f32.mrf.mxu1  ;;  %5959 = vst [vmem:[%s11016_s18 + $0x68] sm:$0xff] %v6870_v11  ;;  %v12679_v48 = vmax.f32 %v10875_v14, %v12678_v2 }
 0x3f4   : > { %v5226_v45 = vmax.f32 %v12672_v43, %v5148_v61  ;;  %v5625_v28 = vadd.f32 %v10998_v35, %v5563_v50  ;;  %v5564_v62 = vmax.f32 %v5225_v23, %v5485_v47  ;;  %v12676_v47 = vld [vmem:[#allocation53_spill] sm:$0xff]  ;;  %v12680_v43 = vmax.f32 %v10884_v6, %v10877_v57 }
 0x3f5   : > { %v5773_v7 = vsel %vm5673_vm14, %v5623_v24, %v5723_v54  ;;  %v5724_v18 = vmul.f32 0.01, %v5624_v55  ;;  %v5150_v44 = vpop.f32.mrf.mxu0  ;;  %v5489_v3 = vpop.f32.mrf.mxu1  ;;  %vm5674_vm15 = vcmp.ge.f32.partialorder %v5624_v55, 0.0  ;;  %v12677_v11 = vmax.f32 %v12675_v49, %v12676_v47 }
 0x3f6   : > { %v6871_v17 = vpack.c.bf16 %v5773_v7, %v5772_v21  ;;  %v5565_v39 = vmax.f32 %v5226_v45, %v5487_v52  ;;  %v5227_v10 = vmax.f32 %v12673_v51, %v5150_v44  ;;  %vm5675_vm0 = vcmp.ge.f32.partialorder %v5625_v28, 0.0 }
 0x3f7   : > { %v5725_v36 = vmul.f32 0.01, %v5625_v28  ;;  %v5626_v37 = vadd.f32 %v10993_v32, %v5564_v62  ;;  %v5152_v27 = vpop.f32.mrf.mxu0  ;;  %v5491_v46 = vpop.f32.mrf.mxu1  ;;  %v5774_v24 = vsel %vm5674_vm15, %v5624_v55, %v5724_v18 }
 0x3f8   : > { %5960 = vst [vmem:[%s11016_s18 + $0x70] sm:$0xff] %v6871_v17  ;;  %v5627_v63 = vadd.f32 %v10998_v35, %v5565_v39  ;;  %v5566_v4 = vmax.f32 %v5227_v10, %v5489_v3  ;;  %v5228_v16 = vmax.f32 %v12674_v29, %v5152_v27  ;;  %v12681_v3 = vmax.f32 %v10893_v13, %v10886_v15 }
 0x3f9   : > { %v5775_v41 = vsel %vm5675_vm0, %v5625_v28, %v5725_v36  ;;  %vm5676_vm1 = vcmp.ge.f32.partialorder %v5626_v37, 0.0  ;;  %v5726_v30 = vmul.f32 0.01, %v5626_v37  ;;  %v5156_v25 = vpop.f32.mrf.mxu0  ;;  %v5495_v58 = vpop.f32.mrf.mxu1 }
 0x3fa   : > { %v6872_v1 = vpack.c.bf16 %v5775_v41, %v5774_v24  ;;  %vm5677_vm2 = vcmp.ge.f32.partialorder %v5627_v63, 0.0  ;;  %v5727_v33 = vmul.f32 0.01, %v5627_v63  ;;  %v5628_v59 = vadd.f32 %v10993_v32, %v5566_v4  ;;  %v12682_v4 = vld [vmem:[#allocation51_spill] sm:$0xff] }
 0x3fb   : > { %v5567_v34 = vmax.f32 %v5228_v16, %v5491_v46  ;;  %v5229_v54 = vmax.f32 %v12677_v11, %v5156_v25  ;;  %v5158_v19 = vpop.f32.mrf.mxu0  ;;  %v5497_v5 = vpop.f32.mrf.mxu1  ;;  %v5776_v55 = vsel %vm5676_vm1, %v5626_v37, %v5726_v30  ;;  %v12683_v29 = vmax.f32 %v10902_v42, %v12682_v4  ;;  %v12684_v30 = vld [vmem:[#allocation54_spill] sm:$0xff] }
 0x3fc   : > { %5961 = vst [vmem:[%s11016_s18 + $0x78] sm:$0xff] %v6872_v1  ;;  %v5777_v50 = vsel %vm5677_vm2, %v5627_v63, %v5727_v33  ;;  %v5230_v56 = vmax.f32 %v12679_v48, %v5158_v19  ;;  %v5728_v61 = vmul.f32 0.01, %v5628_v59  ;;  %vm5678_vm3 = vcmp.ge.f32.partialorder %v5628_v59, 0.0  ;;  %v12687_v48 = vld [vmem:[#allocation55_spill] sm:$0xff] }
 0x3fd   : > { %v6873_v23 = vpack.c.bf16 %v5777_v50, %v5776_v55  ;;  %v5629_v52 = vadd.f32 %v10998_v35, %v5567_v34  ;;  %v5568_v21 = vmax.f32 %v5229_v54, %v5495_v58  ;;  %v5160_v7 = vpop.f32.mrf.mxu0  ;;  %v5499_v0 = vpop.f32.mrf.mxu1  ;;  %v12685_v25 = vmax.f32 %v10911_v9, %v12684_v30 }
 0x3fe   : > { %v5569_v53 = vmax.f32 %v5230_v56, %v5497_v5  ;;  %v5231_v45 = vmax.f32 %v12680_v43, %v5160_v7  ;;  %v5778_v51 = vsel %vm5678_vm3, %v5628_v59, %v5728_v61  ;;  %v12686_v11 = vmax.f32 %v10920_v40, %v10913_v20 }
 0x3ff   : > { %5962 = vst [vmem:[%s11016_s18 + $0x80] sm:$0xff] %v6873_v23  ;;  %vm5679_vm4 = vcmp.ge.f32.partialorder %v5629_v52, 0.0  ;;  %v5729_v17 = vmul.f32 0.01, %v5629_v52  ;;  %v5630_v18 = vadd.f32 %v10993_v32, %v5568_v21  ;;  %v5162_v14 = vpop.f32.mrf.mxu0  ;;  %v5501_v28 = vpop.f32.mrf.mxu1  ;;  %v12688_v56 = vmax.f32 %v10929_v12, %v12687_v48 }
 0x400   : > { %v5631_v62 = vadd.f32 %v10998_v35, %v5569_v53  ;;  %v5570_v44 = vmax.f32 %v5231_v45, %v5499_v0  ;;  %v5232_v39 = vmax.f32 %v12681_v3, %v5162_v14  ;;  %v12689_v45 = vld [vmem:[#allocation60_spill] sm:$0xff] }
 0x401   : > { %v5779_v10 = vsel %vm5679_vm4, %v5629_v52, %v5729_v17  ;;  %vm5680_vm5 = vcmp.ge.f32.partialorder %v5630_v18, 0.0  ;;  %v5730_v57 = vmul.f32 0.01, %v5630_v18  ;;  %v5166_v6 = vpop.f32.mrf.mxu0  ;;  %v5505_v36 = vpop.f32.mrf.mxu1  ;;  %v12690_v17 = vmax.f32 %v10938_v60, %v12689_v45 }
 0x402   : > { %v6874_v37 = vpack.c.bf16 %v5779_v10, %v5778_v51  ;;  %vm5681_vm6 = vcmp.ge.f32.partialorder %v5631_v62, 0.0  ;;  %v5731_v27 = vmul.f32 0.01, %v5631_v62  ;;  %v5632_v46 = vadd.f32 %v10993_v32, %v5570_v44  ;;  %v12691_v44 = vld [vmem:[#allocation57_spill] sm:$0xff] }
 0x403   : > { %v5571_v63 = vmax.f32 %v5232_v39, %v5501_v28  ;;  %v5233_v16 = vmax.f32 %v12683_v29, %v5166_v6  ;;  %v5168_v15 = vpop.f32.mrf.mxu0  ;;  %v5507_v13 = vpop.f32.mrf.mxu1  ;;  %v5780_v24 = vsel %vm5680_vm5, %v5630_v18, %v5730_v57  ;;  %v12692_v3 = vmax.f32 %v10947_v38, %v12691_v44 }
 0x404   : > { %5963 = vst [vmem:[%s11016_s18 + $0x88] sm:$0xff] %v6874_v37  ;;  %v5781_v41 = vsel %vm5681_vm6, %v5631_v62, %v5731_v27  ;;  %v5234_v58 = vmax.f32 %v12685_v25, %v5168_v15  ;;  %v5732_v33 = vmul.f32 0.01, %v5632_v46  ;;  %vm5682_vm7 = vcmp.ge.f32.partialorder %v5632_v46, 0.0 }
 0x405   : > { %v6875_v1 = vpack.c.bf16 %v5781_v41, %v5780_v24  ;;  %v5633_v59 = vadd.f32 %v10998_v35, %v5571_v63  ;;  %v5572_v34 = vmax.f32 %v5233_v16, %v5505_v36  ;;  %v5170_v49 = vpop.f32.mrf.mxu0  ;;  %v5509_v47 = vpop.f32.mrf.mxu1  ;;  %v12693_v27 = vmax.f32 %v10956_v8, %v10949_v31 }
 0x406   : > { %v5573_v42 = vmax.f32 %v5234_v58, %v5507_v13  ;;  %v5235_v54 = vmax.f32 %v12686_v11, %v5170_v49  ;;  %v5782_v61 = vsel %vm5682_vm7, %v5632_v46, %v5732_v33  ;;  %v12694_v13 = vld [vmem:[#allocation62_spill] sm:$0xff] }
 0x407   : > { %5964 = vst [vmem:[%s11016_s18 + $0x90] sm:$0xff] %v6875_v1  ;;  %vm5683_vm8 = vcmp.ge.f32.partialorder %v5633_v59, 0.0  ;;  %v5733_v19 = vmul.f32 0.01, %v5633_v59  ;;  %v5634_v5 = vadd.f32 %v10993_v32, %v5572_v34  ;;  %v5172_v9 = vpop.f32.mrf.mxu0  ;;  %v5511_v55 = vpop.f32.mrf.mxu1  ;;  %v12695_v24 = vmax.f32 %v10965_v22, %v12694_v13  ;;  %v12696_v49 = vld [vmem:[#allocation58_spill] sm:$0xff] }
 0x408   : > { %v5635_v50 = vadd.f32 %v10998_v35, %v5573_v42  ;;  %v5574_v2 = vmax.f32 %v5235_v54, %v5509_v47  ;;  %v5236_v23 = vmax.f32 %v12688_v56, %v5172_v9  ;;  %v12697_v47 = vmax.f32 %v10974_v26, %v12696_v49  ;;  %v12699_v9 = vld [vmem:[#allocation59_spill] sm:$0xff] }
 0x409   : > { %v5783_v52 = vsel %vm5683_vm8, %v5633_v59, %v5733_v19  ;;  %vm5684_vm9 = vcmp.ge.f32.partialorder %v5634_v5, 0.0  ;;  %v5734_v20 = vmul.f32 0.01, %v5634_v5  ;;  %v5176_v40 = vpop.f32.mrf.mxu0  ;;  %v5515_v21 = vpop.f32.mrf.mxu1 }
 0x40a   : > { %v6876_v7 = vpack.c.bf16 %v5783_v52, %v5782_v61  ;;  %vm5685_vm10 = vcmp.ge.f32.partialorder %v5635_v50, 0.0  ;;  %v5735_v0 = vmul.f32 0.01, %v5635_v50  ;;  %v5636_v53 = vadd.f32 %v10993_v32, %v5574_v2 }
 0x40b   : > { %v5575_v43 = vmax.f32 %v5236_v23, %v5511_v55  ;;  %v5237_v18 = vmax.f32 %v12690_v17, %v5176_v40  ;;  %v5178_v12 = vpop.f32.mrf.mxu0  ;;  %v5517_v14 = vpop.f32.mrf.mxu1  ;;  %v5784_v28 = vsel %vm5684_vm9, %v5634_v5, %v5734_v20  ;;  %v12698_v5 = vld [vmem:[#allocation61_spill] sm:$0xff] }
 0x40c   : > { %5965 = vst [vmem:[%s11016_s18 + $0x98] sm:$0xff] %v6876_v7  ;;  %v5785_v62 = vsel %vm5685_vm10, %v5635_v50, %v5735_v0  ;;  %v5238_v39 = vmax.f32 %v12692_v3, %v5178_v12  ;;  %v5736_v10 = vmul.f32 0.01, %v5636_v53  ;;  %vm5686_vm11 = vcmp.ge.f32.partialorder %v5636_v53, 0.0 }
 0x40d   : > { %v6877_v51 = vpack.c.bf16 %v5785_v62, %v5784_v28  ;;  %v5637_v57 = vadd.f32 %v10998_v35, %v5575_v43  ;;  %v5576_v6 = vmax.f32 %v5237_v18, %v5515_v21  ;;  %v5180_v36 = vpop.f32.mrf.mxu0  ;;  %v5519_v37 = vpop.f32.mrf.mxu1  ;;  %v12700_v55 = vmax.f32 %v12698_v5, %v12699_v9 }
 0x40e   : > { %v5577_v60 = vmax.f32 %v5238_v39, %v5517_v14  ;;  %v5239_v46 = vmax.f32 %v12693_v27, %v5180_v36  ;;  %v5786_v30 = vsel %vm5686_vm11, %v5636_v53, %v5736_v10 }
 0x40f   : > { %5966 = vst [vmem:[%s11016_s18 + $0xa0] sm:$0xff] %v6877_v51  ;;  %vm5687_vm12 = vcmp.ge.f32.partialorder %v5637_v57, 0.0  ;;  %v5737_v63 = vmul.f32 0.01, %v5637_v57  ;;  %v5638_v4 = vadd.f32 %v10993_v32, %v5576_v6  ;;  %v5182_v38 = vpop.f32.mrf.mxu0  ;;  %v5521_v29 = vpop.f32.mrf.mxu1 }
 0x410   : > { %v5639_v16 = vadd.f32 %v10998_v35, %v5577_v60  ;;  %v5578_v15 = vmax.f32 %v5239_v46, %v5519_v37  ;;  %v5240_v41 = vmax.f32 %v12695_v24, %v5182_v38 }
 0x411   : > { %v5787_v25 = vsel %vm5687_vm12, %v5637_v57, %v5737_v63  ;;  %vm5688_vm13 = vcmp.ge.f32.partialorder %v5638_v4, 0.0  ;;  %v5738_v31 = vmul.f32 0.01, %v5638_v4  ;;  %v5186_v8 = vpop.f32.mrf.mxu0  ;;  %v5525_v58 = vpop.f32.mrf.mxu1 }
 0x412   : > { %v6878_v1 = vpack.c.bf16 %v5787_v25, %v5786_v30  ;;  %vm5689_vm14 = vcmp.ge.f32.partialorder %v5639_v16, 0.0  ;;  %v5739_v33 = vmul.f32 0.01, %v5639_v16  ;;  %v5640_v59 = vadd.f32 %v10993_v32, %v5578_v15 }
 0x413   : > { %v5579_v34 = vmax.f32 %v5240_v41, %v5521_v29  ;;  %v5241_v42 = vmax.f32 %v12697_v47, %v5186_v8  ;;  %v5188_v22 = vpop.f32.mrf.mxu0  ;;  %v5527_v11 = vpop.f32.mrf.mxu1  ;;  %v5788_v54 = vsel %vm5688_vm13, %v5638_v4, %v5738_v31 }
 0x414   : > { %5967 = vst [vmem:[%s11016_s18 + $0xa8] sm:$0xff] %v6878_v1  ;;  %v5789_v19 = vsel %vm5689_vm14, %v5639_v16, %v5739_v33  ;;  %v5242_v50 = vmax.f32 %v12700_v55, %v5188_v22  ;;  %v5740_v48 = vmul.f32 0.01, %v5640_v59  ;;  %vm5690_vm15 = vcmp.ge.f32.partialorder %v5640_v59, 0.0 }
 0x415   : > { %v6879_v2 = vpack.c.bf16 %v5789_v19, %v5788_v54  ;;  %v5641_v56 = vadd.f32 %v10998_v35, %v5579_v34  ;;  %v5580_v23 = vmax.f32 %v5241_v42, %v5525_v58  ;;  %v5190_v61 = vpop.f32.mrf.mxu0  ;;  %v5529_v52 = vpop.f32.mrf.mxu1 }
 0x416   : > { %v5581_v26 = vmax.f32 %v5242_v50, %v5527_v11  ;;  %v5790_v53 = vsel %vm5690_vm15, %v5640_v59, %v5740_v48 }
 0x417   : > { %5968 = vst [vmem:[%s11016_s18 + $0xb0] sm:$0xff] %v6879_v2  ;;  %vm5691_vm0 = vcmp.ge.f32.partialorder %v5641_v56, 0.0  ;;  %v5741_v20 = vmul.f32 0.01, %v5641_v56  ;;  %v5642_v40 = vadd.f32 %v10993_v32, %v5580_v23  ;;  %v5191_v21 = vpop.f32.mrf.mxu0  ;;  %v5530_v7 = vpop.f32.mrf.mxu1 }
 0x418   : > { %v5643_v0 = vadd.f32 %v10998_v35, %v5581_v26 }
 0x419   : > { %v5791_v43 = vsel %vm5691_vm0, %v5641_v56, %v5741_v20  ;;  %vm5692_vm1 = vcmp.ge.f32.partialorder %v5642_v40, 0.0  ;;  %v5742_v45 = vmul.f32 0.01, %v5642_v40 }
 0x41a   : > { %v6880_v17 = vpack.c.bf16 %v5791_v43, %v5790_v53  ;;  %vm5693_vm2 = vcmp.ge.f32.partialorder %v5643_v0, 0.0  ;;  %v5743_v18 = vmul.f32 0.01, %v5643_v0 }
 0x41b   : > { %v5792_v12 = vsel %vm5692_vm1, %v5642_v40, %v5742_v45 }
 0x41c   : > { %5969 = vst [vmem:[%s11016_s18 + $0xb8] sm:$0xff] %v6880_v17  ;;  %v5793_v14 = vsel %vm5693_vm2, %v5643_v0, %v5743_v18 }
 0x41d   : > { %v6881_v28 = vpack.c.bf16 %v5793_v14, %v5792_v12 }
 0x41f   : > { %5970 = vst [vmem:[%s11016_s18 + $0xc0] sm:$0x77] %v6881_v28 }
 0x420 PF: > { %s13_s12 = sadd.s32 1, %s7133_s12  }
 0x421   : > { %p10_p4 = scmp.ge.s32.totalorder %s13_s12, 4  }
 0x423   :  { %12 = sbr.rel (!%p10_p4) target bundleno = 1 (0x1), region = 77 }

// kernel: _lambda_.3
= control target key start
LH: loop header
LB: loop body
LE: loop exit
PB: predicated region body
PF: predicated region fallthrough
CT: control target
= control target key end

     0   :  { %s11247_s0 = inlined_call_operand.vmem [shape: bf16[2,88,256], index: 0, kind: input, shape index: {}]   ;;  %s11248_s1 = inlined_call_operand.vmem [shape: bf16[2,88,256], index: 1, kind: input, shape index: {}]   ;;  %s11249_s2 = inlined_call_operand.vmem [shape: bf16[2,88,256], index: 2, kind: input, shape index: {}]   ;;  %s11250_s3 = inlined_call_operand.vmem [shape: bf16[2,88,256], index: 3, kind: input, shape index: {}]   ;;  %s11251_s4 = inlined_call_operand.vmem [shape: bf16[4,4,256,256], index: 4, kind: input, shape index: {}]   ;;  %s11252_s5 = inlined_call_operand.vmem [shape: f32[1,256], index: 5, kind: input, shape index: {}]   ;;  %s11253_s6 = inlined_call_operand.vmem [shape: bf16[256,128], index: 6, kind: input, shape index: {}]   ;;  %s11254_s7 = inlined_call_operand.vmem [shape: bf16[256,128], index: 7, kind: input, shape index: {}]   ;;  %s11255_s8 = inlined_call_operand.vmem [shape: f32[1,128], index: 8, kind: input, shape index: {}]   ;;  %s11256_s9 = inlined_call_operand.vmem [shape: bf16[128,10], index: 9, kind: input, shape index: {}]   ;;  %s11257_s10 = inlined_call_operand.vmem [shape: f32[1,10], index: 10, kind: input, shape index: {}]   ;;  %s11258_s11 = inlined_call_operand.hbm [shape: f32[2,1,10], index: 11, kind: output, shape index: {}]  }
   0x1   :  { %11262 = sst [smem:[#allocation17_spill]] %s11247_s0 }
   0x2   :  { %11263 = sst [smem:[#allocation18_spill]] %s11248_s1 }
   0x3   :  { %16 = vsyncpa [#allocation3], 0 }
   0x4   :  { %18 = vsyncpa [#allocation3 + $0x1], 0  ;;  %s8720_s17 = smov 0   ;;  %s8722_s18 = smov 0  }
   0x5   :  { %s8724_s19 = smov 0   ;;  %s8726_s20 = smov 0  }
   0x6 LB: > { %11264 = sst [smem:[#allocation5_spill]] %s8651_s19  ;;  %s8741_s21 = sadd.s32 4294967295, %s8655_s20   ;;  %s8655_s20 = sphi %s8726_s20, %s11295_s20   ;;  %s8651_s19 = sphi %s8724_s19, %s11292_s19   ;;  %s8647_s18 = sphi %s8722_s18, %s11294_s18   ;;  %s8643_s17 = sphi %s8720_s17, %s11293_s17  }
   0x7   : > { %s6337_s22 = sadd.s32 4294967294, %s8655_s20   ;;  %s8745_s23 = sadd.s32 1, %s8655_s20  }
   0x8   : > { %s282_s24 = sadd.s32 1, %s8651_s19  ;;  %s279_s25 = ssub.s32 %s8655_s20, %s8745_s23 }
   0x9   : > { %p292_p0 = scmp.ne.s32.totalorder %s8651_s19, %s8647_s18  ;;  %p280_p1 = scmp.eq.s32.totalorder %s279_s25, 0 }
   0xa   : > { %p293_p2 = scmp.eq.s32.totalorder %s8741_s21, 1  ;;  %p298_p3 = scmp.ne.s32.totalorder %s8647_s18, %s8643_s17 }
   0xb   : > { %p299_p4 = scmp.eq.s32.totalorder %s6337_s22, 1  ;;  %p6340_p7 = scmp.ge.s32.totalorder %s8655_s20, 1 }
   0xc   : > { %s8756_s26 = scalar_select %p280_p1, %s8651_s19, %s282_s24  }
   0xd   : > { %p8758_p5 = por %p293_p2, %p292_p0  ;;  %p8762_p6 = por %p299_p4, %p298_p3 }
   0xe   : > { %11265 = sst [smem:[#allocation6_spill]] %s8756_s26  ;;  %p370_p8 = scmp.lt.s32.totalorder %s8655_s20, 3 }
  0x10   : > { %p371_p9 = pnand %p6340_p7, %p370_p8 }
  0x12   : > { %374 = sbr.rel (%p371_p9) target bundleno = 1516 (0x5ec), region = 64 }
  0x17   : > { %v7623_v0 = vld [vmem:[%s11251_s4 + $0x174] ss:$8 sps:$4 sm:$0xff]   ;;  %v7627_v2 = vld [vmem:[%s11251_s4 + $0x170] ss:$8 sps:$4 sm:$0xff]   ;;  %v7629_v4 = vld [vmem:[%s11251_s4 + $0x164] ss:$8 sps:$4 sm:$0xff]  }
  0x18   : > { %v7625_v1 = vld [vmem:[%s11251_s4 + $0x74] ss:$8 sps:$4 sm:$0xff]   ;;  %726 = vmatprep.subr.bf16.mxu0 %v7623_v0  ;;  %v7628_v3 = vld [vmem:[%s11251_s4 + $0x70] ss:$8 sps:$4 sm:$0xff]   ;;  %v7631_v5 = vld [vmem:[%s11251_s4 + $0x64] ss:$8 sps:$4 sm:$0xff]  }
  0x19   : > { %999 = vmatprep.subr.bf16.mxu1 %v7625_v1  ;;  %727 = vmatpush1.bf16.msra.mxu0 %v7627_v2  ;;  %v7633_v6 = vld [vmem:[%s11251_s4 + $0x160] ss:$8 sps:$4 sm:$0xff]   ;;  %v7635_v8 = vld [vmem:[%s11251_s4 + $0x154] ss:$8 sps:$4 sm:$0xff]   ;;  %v7639_v10 = vld [vmem:[%s11251_s4 + $0x150] ss:$8 sps:$4 sm:$0xff]  }
  0x1a   : > { %1000 = vmatpush1.bf16.msra.mxu1 %v7628_v3  ;;  %728 = vmatprep.subr.bf16.mxu0 %v7629_v4  ;;  %v7634_v7 = vld [vmem:[%s11251_s4 + $0x60] ss:$8 sps:$4 sm:$0xff]   ;;  %v7637_v9 = vld [vmem:[%s11251_s4 + $0x54] ss:$8 sps:$4 sm:$0xff]   ;;  %v7640_v11 = vld [vmem:[%s11251_s4 + $0x50] ss:$8 sps:$4 sm:$0xff]  }
  0x1b   : > { %1001 = vmatprep.subr.bf16.mxu1 %v7631_v5  ;;  %v7641_v12 = vld [vmem:[%s11251_s4 + $0x144] ss:$8 sps:$4 sm:$0xff]   ;;  %v7645_v14 = vld [vmem:[%s11251_s4 + $0x140] ss:$8 sps:$4 sm:$0xff]   ;;  %v7647_v16 = vld [vmem:[%s11251_s4 + $0x134] ss:$8 sps:$4 sm:$0xff]  }
  0x1c   : > { %v7643_v13 = vld [vmem:[%s11251_s4 + $0x44] ss:$8 sps:$4 sm:$0xff]   ;;  %v7646_v15 = vld [vmem:[%s11251_s4 + $0x40] ss:$8 sps:$4 sm:$0xff]   ;;  %v7649_v17 = vld [vmem:[%s11251_s4 + $0x34] ss:$8 sps:$4 sm:$0xff]  }
  0x1d   : > { %729 = vmatpush1.bf16.msra.mxu0 %v7633_v6  ;;  %v7651_v18 = vld [vmem:[%s11251_s4 + $0x130] ss:$8 sps:$4 sm:$0xff]   ;;  %v7653_v20 = vld [vmem:[%s11251_s4 + $0x124] ss:$8 sps:$4 sm:$0xff]   ;;  %v7657_v22 = vld [vmem:[%s11251_s4 + $0x120] ss:$8 sps:$4 sm:$0xff]  }
  0x1e   : > { %1002 = vmatpush1.bf16.msra.mxu1 %v7634_v7  ;;  %730 = vmatprep.subr.bf16.mxu0 %v7635_v8  ;;  %v7652_v19 = vld [vmem:[%s11251_s4 + $0x30] ss:$8 sps:$4 sm:$0xff]   ;;  %v7655_v21 = vld [vmem:[%s11251_s4 + $0x24] ss:$8 sps:$4 sm:$0xff]   ;;  %v7658_v23 = vld [vmem:[%s11251_s4 + $0x20] ss:$8 sps:$4 sm:$0xff]  }
  0x1f   : > { %1003 = vmatprep.subr.bf16.mxu1 %v7637_v9  ;;  %v7659_v24 = vld [vmem:[%s11251_s4 + $0x114] ss:$8 sps:$4 sm:$0xff]   ;;  %v7663_v26 = vld [vmem:[%s11251_s4 + $0x110] ss:$8 sps:$4 sm:$0xff]   ;;  %v7665_v28 = vld [vmem:[%s11251_s4 + $0x104] ss:$8 sps:$4 sm:$0xff]  }
  0x20   : > { %v7661_v25 = vld [vmem:[%s11251_s4 + $0x14] ss:$8 sps:$4 sm:$0xff]   ;;  %v7664_v27 = vld [vmem:[%s11251_s4 + $0x10] ss:$8 sps:$4 sm:$0xff]   ;;  %v7667_v29 = vld [vmem:[%s11251_s4 + $0x4] ss:$8 sps:$4 sm:$0xff]  }
  0x21   : > { %731 = vmatpush1.bf16.msra.mxu0 %v7639_v10  ;;  %v7669_v30 = vld [vmem:[%s11251_s4 + $0x100] ss:$8 sps:$4 sm:$0xff]   ;;  %p424_p10 = scmp.lt.s32.totalorder %s8741_s21, 1  ;;  %v7671_v32 = vld [vmem:[%s11251_s4 + $0x1f4] ss:$8 sps:$4 sm:$0xff]   ;;  %s11268_s1 = sld [smem:[#allocation18_spill]] }
  0x22   : > { %1004 = vmatpush1.bf16.msra.mxu1 %v7640_v11  ;;  %732 = vmatprep.subr.bf16.mxu0 %v7641_v12  ;;  %v7670_v31 = vld [vmem:[%s11251_s4] ss:$8 sps:$4 sm:$0xff]   ;;  %v7673_v33 = vld [vmem:[%s11251_s4 + $0xf4] ss:$8 sps:$4 sm:$0xff]   ;;  %v7675_v34 = vld [vmem:[%s11251_s4 + $0x1f0] ss:$8 sps:$4 sm:$0xff]  }
  0x23   : > { %1005 = vmatprep.subr.bf16.mxu1 %v7643_v13  ;;  %v7676_v35 = vld [vmem:[%s11251_s4 + $0xf0] ss:$8 sps:$4 sm:$0xff]   ;;  %s425_s12 = scalar_select %p424_p10, %s8741_s21, 1  ;;  %v7677_v36 = vld [vmem:[%s11251_s4 + $0x1e4] ss:$8 sps:$4 sm:$0xff]   ;;  %vm8658_vm4 = vmmov 0  }
  0x24   : > { %v7679_v37 = vld [vmem:[%s11251_s4 + $0xe4] ss:$8 sps:$4 sm:$0xff]   ;;  %v7681_v38 = vld [vmem:[%s11251_s4 + $0x1e0] ss:$8 sps:$4 sm:$0xff]   ;;  %v7683_v40 = vld [vmem:[%s11251_s4 + $0x1d4] ss:$8 sps:$4 sm:$0xff]  }
  0x25   : > { %733 = vmatpush1.bf16.msra.mxu0 %v7645_v14  ;;  %s8887_s25 = smul.u32 88, %s425_s12  ;;  %v7682_v39 = vld [vmem:[%s11251_s4 + $0xe0] ss:$8 sps:$4 sm:$0xff]   ;;  %v7685_v41 = vld [vmem:[%s11251_s4 + $0xd4] ss:$8 sps:$4 sm:$0xff]   ;;  %s11269_s0 = sld [smem:[#allocation17_spill]] }
  0x26   : > { %1006 = vmatpush1.bf16.msra.mxu1 %v7646_v15  ;;  %734 = vmatprep.subr.bf16.mxu0 %v7647_v16  ;;  %v7687_v42 = vld [vmem:[%s11251_s4 + $0x1d0] ss:$8 sps:$4 sm:$0xff]   ;;  %v7689_v44 = vld [vmem:[%s11251_s4 + $0x1c4] ss:$8 sps:$4 sm:$0xff]   ;;  %v7693_v46 = vld [vmem:[%s11251_s4 + $0x1c0] ss:$8 sps:$4 sm:$0xff]  }
  0x27   : > { %1007 = vmatprep.subr.bf16.mxu1 %v7649_v17  ;;  %v7688_v43 = vld [vmem:[%s11251_s4 + $0xd0] ss:$8 sps:$4 sm:$0xff]   ;;  %s8908_s19 = scalar_lea.vmem %s11268_s1, %s8887_s25  ;;  %v7691_v45 = vld [vmem:[%s11251_s4 + $0xc4] ss:$8 sps:$4 sm:$0xff]   ;;  %v7694_v47 = vld [vmem:[%s11251_s4 + $0xc0] ss:$8 sps:$4 sm:$0xff]   ;;  %s9152_s15 = scalar_lea.vmem %s11249_s2, %s8887_s25 }
  0x28   : > { %v485_v48 = vld [vmem:[%s8908_s19] sm:$0xff]  ;;  %v8930_v49 = vld [vmem:[%s8908_s19 + $0x8] sm:$0xff]  ;;  %v7695_v52 = vld [vmem:[%s11251_s4 + $0x1b4] ss:$8 sps:$4 sm:$0xff]   ;;  %s9161_s29 = scalar_lea.vmem %s11250_s3, %s8887_s25  ;;  %vm6219_vm6 = vcmask 73728   ;;  %s8659_s13 = smov [#allocation2]  }
  0x29   : > { %735 = vmatpush1.bf16.msra.mxu0 %v7651_v18  ;;  %v6378_v53 = vcombine.high %v485_v48, %v8930_v49  ;;  %v7697_v54 = vld [vmem:[%s11251_s4 + $0xb4] ss:$8 sps:$4 sm:$0xff]   ;;  %v7699_v56 = vld [vmem:[%s11251_s4 + $0x1b0] ss:$8 sps:$4 sm:$0xff]   ;;  %v7701_v58 = vld [vmem:[%s11251_s4 + $0x1a4] ss:$8 sps:$4 sm:$0xff]   ;;  %v6377_v8 = vcombine.low %v485_v48, %v8930_v49 }
  0x2a   : > { %1008 = vmatpush1.bf16.msra.mxu1 %v7652_v19  ;;  %736 = vmatprep.subr.bf16.mxu0 %v7653_v20  ;;  %v7700_v57 = vld [vmem:[%s11251_s4 + $0xb0] ss:$8 sps:$4 sm:$0xff]   ;;  %v7703_v59 = vld [vmem:[%s11251_s4 + $0xa4] ss:$8 sps:$4 sm:$0xff]   ;;  %v7705_v60 = vld [vmem:[%s11251_s4 + $0x1a0] ss:$8 sps:$4 sm:$0xff]  }
  0x2b   : > { %1009 = vmatprep.subr.bf16.mxu1 %v7655_v21  ;;  %s8917_s12 = scalar_lea.vmem %s11269_s0, %s8887_s25  ;;  %758 = vmatprep.mubr.bf16.mxu0 %v6378_v53  ;;  %v7706_v61 = vld [vmem:[%s11251_s4 + $0xa0] ss:$8 sps:$4 sm:$0xff]   ;;  %v7707_v62 = vld [vmem:[%s11251_s4 + $0x194] ss:$8 sps:$4 sm:$0xff]   ;;  %v7711_v0 = vld [vmem:[%s11251_s4 + $0x190] ss:$8 sps:$4 sm:$0xff]  }
  0x2c   : > { %v445_v50 = vld [vmem:[%s8917_s12] sm:$0xff]  ;;  %v8934_v51 = vld [vmem:[%s8917_s12 + $0x8] sm:$0xff]  ;;  %v7709_v63 = vld [vmem:[%s11251_s4 + $0x94] ss:$8 sps:$4 sm:$0xff]   ;;  %s8599_s14 = sshll.u32 %s8659_s13, 4  ;;  %s8600_s14 = int_to_ptr.vmem [resolvable:$false] %s8599_s14 }
  0x2d   : > { %737 = vmatpush1.bf16.msra.mxu0 %v7657_v22  ;;  %v6418_v55 = vcombine.high %v445_v50, %v8934_v51  ;;  %v7712_v1 = vld [vmem:[%s11251_s4 + $0x90] ss:$8 sps:$4 sm:$0xff]   ;;  %v7713_v2 = vld [vmem:[%s11251_s4 + $0x184] ss:$8 sps:$4 sm:$0xff]   ;;  %v7717_v4 = vld [vmem:[%s11251_s4 + $0x180] ss:$8 sps:$4 sm:$0xff]   ;;  %v6417_v9 = vcombine.low %v445_v50, %v8934_v51 }
  0x2e   : > { %1010 = vmatpush1.bf16.msra.mxu1 %v7658_v23  ;;  %738 = vmatprep.subr.bf16.mxu0 %v7659_v24  ;;  %v7715_v3 = vld [vmem:[%s11251_s4 + $0x84] ss:$8 sps:$4 sm:$0xff]   ;;  %v7718_v5 = vld [vmem:[%s11251_s4 + $0x80] ss:$8 sps:$4 sm:$0xff]   ;;  %v7725_v6 = vld [vmem:[%s11251_s4 + $0x274] ss:$8 sps:$4 sm:$0xff]  }
  0x2f   : > { %1011 = vmatprep.subr.bf16.mxu1 %v7661_v25  ;;  %1031 = vmatprep.mubr.bf16.mxu1 %v6418_v55  ;;  %v7728_v7 = vld [vmem:[%s11251_s4 + $0x374] ss:$8 sps:$4 sm:$0xff]   ;;  %v7723_v10 = vld [vmem:[%s11251_s4 + $0x270] ss:$8 sps:$4 sm:$0xff]   ;;  %v7731_v12 = vld [vmem:[%s11251_s4 + $0x264] ss:$8 sps:$4 sm:$0xff]  }
  0x30   : > { %v7726_v11 = vld [vmem:[%s11251_s4 + $0x370] ss:$8 sps:$4 sm:$0xff]   ;;  %v7734_v13 = vld [vmem:[%s11251_s4 + $0x364] ss:$8 sps:$4 sm:$0xff]   ;;  %v7729_v14 = vld [vmem:[%s11251_s4 + $0x260] ss:$8 sps:$4 sm:$0xff]  }
  0x31   : > { %739 = vmatpush1.bf16.msra.mxu0 %v7663_v26  ;;  %v7732_v15 = vld [vmem:[%s11251_s4 + $0x360] ss:$8 sps:$4 sm:$0xff]   ;;  %v7737_v16 = vld [vmem:[%s11251_s4 + $0x254] ss:$8 sps:$4 sm:$0xff]   ;;  %v7747_v48 = vld [vmem:[%s11251_s4 + $0x230] ss:$8 sps:$4 sm:$0xff]  }
  0x32   : > { %1012 = vmatpush1.bf16.msra.mxu1 %v7664_v27  ;;  %740 = vmatprep.subr.bf16.mxu0 %v7665_v28  ;;  %v7740_v17 = vld [vmem:[%s11251_s4 + $0x354] ss:$8 sps:$4 sm:$0xff]   ;;  %v7735_v27 = vld [vmem:[%s11251_s4 + $0x250] ss:$8 sps:$4 sm:$0xff]   ;;  %v7758_v55 = vld [vmem:[%s11251_s4 + $0x324] ss:$8 sps:$4 sm:$0xff]  }
  0x33   : > { %1013 = vmatprep.subr.bf16.mxu1 %v7667_v29  ;;  %v9019_v18 = vld [vmem:[%s8908_s19 + $0x10] sm:$0xff]  ;;  %v9022_v19 = vld [vmem:[%s8908_s19 + $0x18] sm:$0xff] }
  0x34   : > { %v9025_v20 = vld [vmem:[%s8917_s12 + $0x10] sm:$0xff]  ;;  %v6380_v21 = vcombine.high %v9019_v18, %v9022_v19  ;;  %v9030_v22 = vld [vmem:[%s8917_s12 + $0x18] sm:$0xff]  ;;  %v6705_v26 = vcombine.low %v8930_v49, %v9019_v18  ;;  %v6379_v29 = vcombine.low %v9019_v18, %v9022_v19 }
  0x35   : > { %741 = vmatpush1.bf16.msra.mxu0 %v7669_v30  ;;  %v6633_v23 = vcombine.low %v8934_v51, %v9025_v20  ;;  %v6420_v24 = vcombine.high %v9025_v20, %v9030_v22  ;;  %v6634_v25 = vcombine.high %v8934_v51, %v9025_v20  ;;  %v7738_v28 = vld [vmem:[%s11251_s4 + $0x350] ss:$8 sps:$4 sm:$0xff]   ;;  %v6419_v30 = vcombine.low %v9025_v20, %v9030_v22  ;;  %v7963_v51 = vld [vmem:[%s11251_s4 + $0x654] ss:$8 sps:$4 sm:$0xff]  }
  0x36   : > { %1014 = vmatpush1.bf16.msra.mxu1 %v7670_v31  ;;  %742 = vmatprep.subr.bf16.mxu0 %v7671_v32  ;;  %v6706_v31 = vcombine.high %v8930_v49, %v9019_v18  ;;  %v7743_v32 = vld [vmem:[%s11251_s4 + $0x244] ss:$8 sps:$4 sm:$0xff]   ;;  %v7750_v50 = vld [vmem:[%s11251_s4 + $0x330] ss:$8 sps:$4 sm:$0xff]   ;;  %v7966_v49 = vld [vmem:[%s11251_s4 + $0x754] ss:$8 sps:$4 sm:$0xff]  }
  0x37   : > { %1015 = vmatprep.subr.bf16.mxu1 %v7673_v33  ;;  %v7746_v33 = vld [vmem:[%s11251_s4 + $0x344] ss:$8 sps:$4 sm:$0xff]   ;;  %v7961_v18 = vld [vmem:[%s11251_s4 + $0x650] ss:$8 sps:$4 sm:$0xff]  }
  0x38   : > { %v7964_v20 = vld [vmem:[%s11251_s4 + $0x750] ss:$8 sps:$4 sm:$0xff]  }
  0x39   : > { %743 = vmatpush2.bf16.msra.mxu0 %v7675_v34  ;;  %v7741_v34 = vld [vmem:[%s11251_s4 + $0x240] ss:$8 sps:$4 sm:$0xff]  }
  0x3a   : > { %1016 = vmatpush2.bf16.msra.mxu1 %v7676_v35  ;;  %744 = vmatprep.subr.bf16.mxu0 %v7677_v36  ;;  %v7744_v35 = vld [vmem:[%s11251_s4 + $0x340] ss:$8 sps:$4 sm:$0xff]  }
  0x3b   : > { %1017 = vmatprep.subr.bf16.mxu1 %v7679_v37  ;;  %v9065_v36 = vld [vmem:[%s8908_s19 + $0x20] sm:$0xff]  ;;  %v9068_v37 = vld [vmem:[%s8908_s19 + $0x28] sm:$0xff] }
  0x3d   : > { %745 = vmatpush2.bf16.msra.mxu0 %v7681_v38  ;;  %v9071_v38 = vld [vmem:[%s8917_s12 + $0x20] sm:$0xff] }
  0x3e   : > { %1018 = vmatpush2.bf16.msra.mxu1 %v7682_v39  ;;  %746 = vmatprep.subr.bf16.mxu0 %v7683_v40  ;;  %v9074_v39 = vld [vmem:[%s8917_s12 + $0x28] sm:$0xff]  ;;  %v6708_v40 = vcombine.high %v9022_v19, %v9065_v36 }
  0x3f   : > { %1019 = vmatprep.subr.bf16.mxu1 %v7685_v41  ;;  %v6707_v41 = vcombine.low %v9022_v19, %v9065_v36  ;;  %v6421_v53 = vcombine.low %v9071_v38, %v9074_v39  ;;  %v7982_v19 = vld [vmem:[%s11251_s4 + $0x734] ss:$8 sps:$4 sm:$0xff]  }
  0x41   : > { %747 = vmatpush2.bf16.msra.mxu0 %v7687_v42  ;;  %v7749_v42 = vld [vmem:[%s11251_s4 + $0x234] ss:$8 sps:$4 sm:$0xff]  }
  0x42   : > { %1020 = vmatpush2.bf16.msra.mxu1 %v7688_v43  ;;  %748 = vmatprep.subr.bf16.mxu0 %v7689_v44  ;;  %v6382_v43 = vcombine.high %v9065_v36, %v9068_v37  ;;  %v6422_v44 = vcombine.high %v9071_v38, %v9074_v39 }
  0x43   : > { %1021 = vmatprep.subr.bf16.mxu1 %v7691_v45  ;;  %v7752_v45 = vld [vmem:[%s11251_s4 + $0x334] ss:$8 sps:$4 sm:$0xff]  }
  0x45   : > { %749 = vmatpush2.bf16.msra.mxu0 %v7693_v46  ;;  %v6636_v46 = vcombine.high %v9030_v22, %v9071_v38 }
  0x46   : > { %1022 = vmatpush2.bf16.msra.mxu1 %v7694_v47  ;;  %750 = vmatprep.subr.bf16.mxu0 %v7695_v52  ;;  %v6635_v47 = vcombine.low %v9030_v22, %v9071_v38  ;;  %v6381_v52 = vcombine.low %v9065_v36, %v9068_v37  ;;  %v7979_v22 = vld [vmem:[%s11251_s4 + $0x634] ss:$8 sps:$4 sm:$0xff]   ;;  %v7977_v36 = vld [vmem:[%s11251_s4 + $0x630] ss:$8 sps:$4 sm:$0xff]  }
  0x47   : > { %1023 = vmatprep.subr.bf16.mxu1 %v7697_v54  ;;  %v7755_v54 = vld [vmem:[%s11251_s4 + $0x224] ss:$8 sps:$4 sm:$0xff]   ;;  %v7980_v38 = vld [vmem:[%s11251_s4 + $0x730] ss:$8 sps:$4 sm:$0xff]  }
  0x49   : > { %751 = vmatpush2.bf16.msra.mxu0 %v7699_v56  ;;  %v9111_v56 = vld [vmem:[%s8908_s19 + $0x30] sm:$0xff] }
  0x4a   : > { %1024 = vmatpush2.bf16.msra.mxu1 %v7700_v57  ;;  %752 = vmatprep.subr.bf16.mxu0 %v7701_v58  ;;  %v492_v57 = vld [vmem:[%s8908_s19 + $0x38] sm:$0xff] }
  0x4b   : > { %1025 = vmatprep.subr.bf16.mxu1 %v7703_v59  ;;  %v6384_v58 = vcombine.high %v9111_v56, %v492_v57  ;;  %v9116_v59 = vld [vmem:[%s8917_s12 + $0x30] sm:$0xff] }
  0x4d   : > { %753 = vmatpush2.bf16.msra.mxu0 %v7705_v60  ;;  %v452_v60 = vld [vmem:[%s8917_s12 + $0x38] sm:$0xff] }
  0x4e   : > { %1026 = vmatpush2.bf16.msra.mxu1 %v7706_v61  ;;  %754 = vmatprep.subr.bf16.mxu0 %v7707_v62  ;;  %v6710_v61 = vcombine.high %v9068_v37, %v9111_v56  ;;  %v7753_v62 = vld [vmem:[%s11251_s4 + $0x220] ss:$8 sps:$4 sm:$0xff]  }
  0x4f   : > { %1027 = vmatprep.subr.bf16.mxu1 %v7709_v63  ;;  %v7756_v63 = vld [vmem:[%s11251_s4 + $0x320] ss:$8 sps:$4 sm:$0xff]  }
  0x51   : > { %755 = vmatpush2.bf16.msra.mxu0 %v7711_v0  ;;  %v6424_v0 = vcombine.high %v9116_v59, %v452_v60 }
  0x52   : > { %1028 = vmatpush2.bf16.msra.mxu1 %v7712_v1  ;;  %756 = vmatprep.subr.bf16.mxu0 %v7713_v2  ;;  %v6638_v1 = vcombine.high %v9074_v39, %v9116_v59  ;;  %v7761_v2 = vld [vmem:[%s11251_s4 + $0x214] ss:$8 sps:$4 sm:$0xff]  }
  0x53   : > { %1029 = vmatprep.subr.bf16.mxu1 %v7715_v3  ;;  %v6637_v3 = vcombine.low %v9074_v39, %v9116_v59 }
  0x55   : > { %757 = vmatpush2.bf16.msra.mxu0 %v7717_v4  ;;  %v6709_v4 = vcombine.low %v9068_v37, %v9111_v56  ;;  %v7998_v37 = vld [vmem:[%s11251_s4 + $0x714] ss:$8 sps:$4 sm:$0xff]  }
  0x56   : > { %1030 = vmatpush2.bf16.msra.mxu1 %v7718_v5  ;;  %1313 = vmatprep.subr.bf16.mxu0 %v7725_v6  ;;  %v7764_v5 = vld [vmem:[%s11251_s4 + $0x314] ss:$8 sps:$4 sm:$0xff]   ;;  %v7759_v6 = vld [vmem:[%s11251_s4 + $0x210] ss:$8 sps:$4 sm:$0xff]  }
  0x57   : > { %1643 = vmatprep.subr.bf16.mxu1 %v7728_v7  ;;  %v7762_v7 = vld [vmem:[%s11251_s4 + $0x310] ss:$8 sps:$4 sm:$0xff]  }
  0x58   : > { %759 = vmatmul.mubr.bf16.vlgmr.msra.gmra.mxu0 %v6377_v8  ;;  %v6383_v8 = vcombine.low %v9111_v56, %v492_v57  ;;  %v7803_v57 = vld [vmem:[%s11251_s4 + $0x2b0] ss:$8 sps:$4 sm:$0xff]  }
  0x59   : > { %1032 = vmatmul.mubr.bf16.vlgmr.msra.gmra.mxu1 %v6417_v9  ;;  %1314 = vmatpush1.bf16.msra.mxu0 %v7723_v10  ;;  %v6423_v9 = vcombine.low %v9116_v59, %v452_v60  ;;  %v7767_v10 = vld [vmem:[%s11251_s4 + $0x204] ss:$8 sps:$4 sm:$0xff]   ;;  %v7993_v56 = vld [vmem:[%s11251_s4 + $0x610] ss:$8 sps:$4 sm:$0xff]  }
  0x5a   : > { %1644 = vmatpush1.bf16.msra.mxu1 %v7726_v11  ;;  %1315 = vmatprep.subr.bf16.mxu0 %v7731_v12  ;;  %v7770_v11 = vld [vmem:[%s11251_s4 + $0x304] ss:$8 sps:$4 sm:$0xff]   ;;  %v7765_v12 = vld [vmem:[%s11251_s4 + $0x200] ss:$8 sps:$4 sm:$0xff]   ;;  %v7996_v59 = vld [vmem:[%s11251_s4 + $0x710] ss:$8 sps:$4 sm:$0xff]  }
  0x5b   : > { %1645 = vmatprep.subr.bf16.mxu1 %v7734_v13  ;;  %768 = vmatprep.mubr.bf16.mxu0 %v6380_v21  ;;  %v7768_v13 = vld [vmem:[%s11251_s4 + $0x300] ss:$8 sps:$4 sm:$0xff]   ;;  %v7773_v21 = vld [vmem:[%s11251_s4 + $0x2f4] ss:$8 sps:$4 sm:$0xff]   ;;  %v7815_v60 = vld [vmem:[%s11251_s4 + $0x2a4] ss:$8 sps:$4 sm:$0xff]  }
  0x5c   : > { %1041 = vmatprep.mubr.bf16.mxu1 %v6420_v24 }
  0x5d   : > { %1316 = vmatpush1.bf16.msra.mxu0 %v7729_v14  ;;  %v9173_v14 = vld [vmem:[%s9152_s15] sm:$0xff] }
  0x5e   : > { %1646 = vmatpush1.bf16.msra.mxu1 %v7732_v15  ;;  %1317 = vmatprep.subr.bf16.mxu0 %v7737_v16  ;;  %v9176_v15 = vld [vmem:[%s9152_s15 + $0x8] sm:$0xff]  ;;  %v9179_v16 = vld [vmem:[%s9161_s29] sm:$0xff] }
  0x5f   : > { %1647 = vmatprep.subr.bf16.mxu1 %v7740_v17  ;;  %v9182_v17 = vld [vmem:[%s9161_s29 + $0x8] sm:$0xff]  ;;  %v6490_v24 = vcombine.high %v9173_v14, %v9176_v15 }
  0x60   : > { %769 = vmatmul.mubr.bf16.gmra.mxu0 %v6379_v29  ;;  %v7771_v29 = vld [vmem:[%s11251_s4 + $0x2f0] ss:$8 sps:$4 sm:$0xff]  }
  0x61   : > { %1042 = vmatmul.mubr.bf16.gmra.mxu1 %v6419_v30  ;;  %1318 = vmatpush1.bf16.msra.mxu0 %v7735_v27  ;;  %v7776_v27 = vld [vmem:[%s11251_s4 + $0x3f4] ss:$8 sps:$4 sm:$0xff]   ;;  %v7774_v30 = vld [vmem:[%s11251_s4 + $0x3f0] ss:$8 sps:$4 sm:$0xff]  }
  0x62   : > { %1648 = vmatpush1.bf16.msra.mxu1 %v7738_v28  ;;  %1319 = vmatprep.subr.bf16.mxu0 %v7743_v32  ;;  %v6562_v28 = vcombine.high %v9179_v16, %v9182_v17  ;;  %v7783_v32 = vld [vmem:[%s11251_s4 + $0x2e4] ss:$8 sps:$4 sm:$0xff]  }
  0x63   : > { %1649 = vmatprep.subr.bf16.mxu1 %v7746_v33  ;;  %778 = vmatprep.mubr.bf16.mxu0 %v6382_v43  ;;  %v7786_v33 = vld [vmem:[%s11251_s4 + $0x3e4] ss:$8 sps:$4 sm:$0xff]   ;;  %v7792_v43 = vld [vmem:[%s11251_s4 + $0x3d4] ss:$8 sps:$4 sm:$0xff]  }
  0x64   : > { %1051 = vmatprep.mubr.bf16.mxu1 %v6422_v44  ;;  %v7787_v44 = vld [vmem:[%s11251_s4 + $0x2d0] ss:$8 sps:$4 sm:$0xff]  }
  0x65   : > { %1320 = vmatpush1.bf16.msra.mxu0 %v7741_v34  ;;  %v7781_v34 = vld [vmem:[%s11251_s4 + $0x2e0] ss:$8 sps:$4 sm:$0xff]  }
  0x66   : > { %1650 = vmatpush1.bf16.msra.mxu1 %v7744_v35  ;;  %1321 = vmatprep.subr.bf16.mxu0 %v7749_v42  ;;  %v7784_v35 = vld [vmem:[%s11251_s4 + $0x3e0] ss:$8 sps:$4 sm:$0xff]   ;;  %v7789_v42 = vld [vmem:[%s11251_s4 + $0x2d4] ss:$8 sps:$4 sm:$0xff]  }
  0x67   : > { %1651 = vmatprep.subr.bf16.mxu1 %v7752_v45  ;;  %v7790_v45 = vld [vmem:[%s11251_s4 + $0x3d0] ss:$8 sps:$4 sm:$0xff]  }
  0x68   : > { %779 = vmatmul.mubr.bf16.gmra.mxu0 %v6381_v52  ;;  %v7797_v52 = vld [vmem:[%s11251_s4 + $0x2c0] ss:$8 sps:$4 sm:$0xff]  }
  0x69   : > { %1052 = vmatmul.mubr.bf16.gmra.mxu1 %v6421_v53  ;;  %1322 = vmatpush1.bf16.msra.mxu0 %v7747_v48  ;;  %v7799_v48 = vld [vmem:[%s11251_s4 + $0x2c4] ss:$8 sps:$4 sm:$0xff]   ;;  %v7800_v53 = vld [vmem:[%s11251_s4 + $0x3c0] ss:$8 sps:$4 sm:$0xff]  }
  0x6a   : > { %1652 = vmatpush1.bf16.msra.mxu1 %v7750_v50  ;;  %1323 = vmatprep.subr.bf16.mxu0 %v7755_v54  ;;  %v7802_v50 = vld [vmem:[%s11251_s4 + $0x3c4] ss:$8 sps:$4 sm:$0xff]   ;;  %v7805_v54 = vld [vmem:[%s11251_s4 + $0x2b4] ss:$8 sps:$4 sm:$0xff]  }
  0x6b   : > { %1653 = vmatprep.subr.bf16.mxu1 %v7758_v55  ;;  %788 = vmatprep.mubr.bf16.mxu0 %v6384_v58  ;;  %v7808_v55 = vld [vmem:[%s11251_s4 + $0x3b4] ss:$8 sps:$4 sm:$0xff]   ;;  %v7806_v58 = vld [vmem:[%s11251_s4 + $0x3b0] ss:$8 sps:$4 sm:$0xff]  }
  0x6c   : > { %1061 = vmatprep.mubr.bf16.mxu1 %v6424_v0  ;;  %v7816_v0 = vld [vmem:[%s11251_s4 + $0x3a0] ss:$8 sps:$4 sm:$0xff]  }
  0x6d   : > { %1324 = vmatpush1.bf16.msra.mxu0 %v7753_v62  ;;  %v7818_v62 = vld [vmem:[%s11251_s4 + $0x3a4] ss:$8 sps:$4 sm:$0xff]  }
  0x6e   : > { %1654 = vmatpush1.bf16.msra.mxu1 %v7756_v63  ;;  %1325 = vmatprep.subr.bf16.mxu0 %v7761_v2  ;;  %v7813_v63 = vld [vmem:[%s11251_s4 + $0x2a0] ss:$8 sps:$4 sm:$0xff]   ;;  %v7821_v2 = vld [vmem:[%s11251_s4 + $0x294] ss:$8 sps:$4 sm:$0xff]  }
  0x6f   : > { %1655 = vmatprep.subr.bf16.mxu1 %v7764_v5  ;;  %v7824_v5 = vld [vmem:[%s11251_s4 + $0x394] ss:$8 sps:$4 sm:$0xff]  }
  0x70   : > { %789 = vmatmul.mubr.bf16.gmra.mxu0 %v6383_v8  ;;  %v7827_v8 = vld [vmem:[%s11251_s4 + $0x284] ss:$8 sps:$4 sm:$0xff]  }
  0x71   : > { %1062 = vmatmul.mubr.bf16.gmra.mxu1 %v6423_v9  ;;  %1326 = vmatpush1.bf16.msra.mxu0 %v7759_v6  ;;  %v7819_v6 = vld [vmem:[%s11251_s4 + $0x290] ss:$8 sps:$4 sm:$0xff]   ;;  %v7830_v9 = vld [vmem:[%s11251_s4 + $0x384] ss:$8 sps:$4 sm:$0xff]  }
  0x72   : > { %1656 = vmatpush1.bf16.msra.mxu1 %v7762_v7  ;;  %1327 = vmatprep.subr.bf16.mxu0 %v7767_v10  ;;  %v7822_v7 = vld [vmem:[%s11251_s4 + $0x390] ss:$8 sps:$4 sm:$0xff]   ;;  %v7825_v10 = vld [vmem:[%s11251_s4 + $0x280] ss:$8 sps:$4 sm:$0xff]  }
  0x73   : > { %1657 = vmatprep.subr.bf16.mxu1 %v7770_v11  ;;  %1345 = vmatprep.mubr.bf16.mxu0 %v6490_v24  ;;  %v7828_v11 = vld [vmem:[%s11251_s4 + $0x380] ss:$8 sps:$4 sm:$0xff]   ;;  %v7838_v24 = vld [vmem:[%s11251_s4 + $0x570] ss:$8 sps:$4 sm:$0xff]  }
  0x74   : > { %1675 = vmatprep.mubr.bf16.mxu1 %v6562_v28  ;;  %v9300_v28 = vld [vmem:[%s9152_s15 + $0x18] sm:$0xff] }
  0x75   : > { %1328 = vmatpush1.bf16.msra.mxu0 %v7765_v12  ;;  %v7837_v12 = vld [vmem:[%s11251_s4 + $0x474] ss:$8 sps:$4 sm:$0xff]  }
  0x76   : > { %1658 = vmatpush1.bf16.msra.mxu1 %v7768_v13  ;;  %1329 = vmatprep.subr.bf16.mxu0 %v7773_v21  ;;  %v7840_v13 = vld [vmem:[%s11251_s4 + $0x574] ss:$8 sps:$4 sm:$0xff]   ;;  %v7835_v21 = vld [vmem:[%s11251_s4 + $0x470] ss:$8 sps:$4 sm:$0xff]  }
  0x77   : > { %1659 = vmatprep.subr.bf16.mxu1 %v7776_v27  ;;  %v9297_v27 = vld [vmem:[%s9152_s15 + $0x10] sm:$0xff] }
  0x79   : > { %1330 = vmatpush2.bf16.msra.mxu0 %v7771_v29  ;;  %v6489_v29 = vcombine.low %v9173_v14, %v9176_v15 }
  0x7a   : > { %1660 = vmatpush2.bf16.msra.mxu1 %v7774_v30  ;;  %1331 = vmatprep.subr.bf16.mxu0 %v7783_v32  ;;  %v6561_v30 = vcombine.low %v9179_v16, %v9182_v17  ;;  %v9307_v32 = vld [vmem:[%s9161_s29 + $0x10] sm:$0xff]  ;;  %v7846_v16 = vld [vmem:[%s11251_s4 + $0x564] ss:$8 sps:$4 sm:$0xff]  }
  0x7b   : > { %1661 = vmatprep.subr.bf16.mxu1 %v7786_v33  ;;  %v9310_v33 = vld [vmem:[%s9161_s29 + $0x18] sm:$0xff]  ;;  %v6849_v14 = vcombine.low %v9182_v17, %v9307_v32 }
  0x7d   : > { %1332 = vmatpush2.bf16.msra.mxu0 %v7781_v34  ;;  %v7843_v34 = vld [vmem:[%s11251_s4 + $0x464] ss:$8 sps:$4 sm:$0xff]  }
  0x7e   : > { %1662 = vmatpush2.bf16.msra.mxu1 %v7784_v35  ;;  %1333 = vmatprep.subr.bf16.mxu0 %v7789_v42  ;;  %v6777_v35 = vcombine.low %v9176_v15, %v9297_v27  ;;  %v6778_v42 = vcombine.high %v9176_v15, %v9297_v27  ;;  %v8075_v15 = vld [vmem:[%s11251_s4 + $0x854] ss:$8 sps:$4 sm:$0xff]  }
  0x7f   : > { %1663 = vmatprep.subr.bf16.mxu1 %v7792_v43  ;;  %v6850_v43 = vcombine.high %v9182_v17, %v9307_v32  ;;  %v8078_v17 = vld [vmem:[%s11251_s4 + $0x954] ss:$8 sps:$4 sm:$0xff]  }
  0x81   : > { %1334 = vmatpush2.bf16.msra.mxu0 %v7787_v44  ;;  %v6492_v44 = vcombine.high %v9297_v27, %v9300_v28 }
  0x82   : > { %1664 = vmatpush2.bf16.msra.mxu1 %v7790_v45  ;;  %1335 = vmatprep.subr.bf16.mxu0 %v7799_v48  ;;  %v6564_v45 = vcombine.high %v9307_v32, %v9310_v33  ;;  %v7841_v48 = vld [vmem:[%s11251_s4 + $0x460] ss:$8 sps:$4 sm:$0xff]  }
  0x83   : > { %1665 = vmatprep.subr.bf16.mxu1 %v7802_v50  ;;  %v7844_v50 = vld [vmem:[%s11251_s4 + $0x560] ss:$8 sps:$4 sm:$0xff]  }
  0x85   : > { %1336 = vmatpush2.bf16.msra.mxu0 %v7797_v52  ;;  %v7851_v52 = vld [vmem:[%s11251_s4 + $0x454] ss:$8 sps:$4 sm:$0xff]  }
  0x86   : > { %1666 = vmatpush2.bf16.msra.mxu1 %v7800_v53  ;;  %1337 = vmatprep.subr.bf16.mxu0 %v7805_v54  ;;  %v7854_v53 = vld [vmem:[%s11251_s4 + $0x554] ss:$8 sps:$4 sm:$0xff]   ;;  %v7849_v54 = vld [vmem:[%s11251_s4 + $0x450] ss:$8 sps:$4 sm:$0xff]  }
  0x87   : > { %1667 = vmatprep.subr.bf16.mxu1 %v7808_v55  ;;  %v7852_v55 = vld [vmem:[%s11251_s4 + $0x550] ss:$8 sps:$4 sm:$0xff]  }
  0x89   : > { %1338 = vmatpush2.bf16.msra.mxu0 %v7803_v57  ;;  %v9349_v57 = vld [vmem:[%s9152_s15 + $0x20] sm:$0xff] }
  0x8a   : > { %1668 = vmatpush2.bf16.msra.mxu1 %v7806_v58  ;;  %1339 = vmatprep.subr.bf16.mxu0 %v7815_v60  ;;  %v9352_v58 = vld [vmem:[%s9152_s15 + $0x28] sm:$0xff]  ;;  %v6491_v60 = vcombine.low %v9297_v27, %v9300_v28 }
  0x8b   : > { %1669 = vmatprep.subr.bf16.mxu1 %v7818_v62  ;;  %v6563_v62 = vcombine.low %v9307_v32, %v9310_v33 }
  0x8d   : > { %1340 = vmatpush2.bf16.msra.mxu0 %v7813_v63  ;;  %v9359_v63 = vld [vmem:[%s9161_s29 + $0x20] sm:$0xff] }
  0x8e   : > { %1670 = vmatpush2.bf16.msra.mxu1 %v7816_v0  ;;  %1341 = vmatprep.subr.bf16.mxu0 %v7821_v2  ;;  %v9362_v0 = vld [vmem:[%s9161_s29 + $0x28] sm:$0xff] }
  0x8f   : > { %1671 = vmatprep.subr.bf16.mxu1 %v7824_v5  ;;  %v7859_v2 = vld [vmem:[%s11251_s4 + $0x444] ss:$8 sps:$4 sm:$0xff]   ;;  %v6780_v5 = vcombine.high %v9300_v28, %v9349_v57 }
  0x91   : > { %1342 = vmatpush2.bf16.msra.mxu0 %v7819_v6  ;;  %v7862_v6 = vld [vmem:[%s11251_s4 + $0x544] ss:$8 sps:$4 sm:$0xff]  }
  0x92   : > { %1672 = vmatpush2.bf16.msra.mxu1 %v7822_v7  ;;  %1343 = vmatprep.subr.bf16.mxu0 %v7827_v8  ;;  %v6779_v7 = vcombine.low %v9300_v28, %v9349_v57  ;;  %v6494_v8 = vcombine.high %v9349_v57, %v9352_v58  ;;  %v8091_v28 = vld [vmem:[%s11251_s4 + $0x834] ss:$8 sps:$4 sm:$0xff]  }
  0x93   : > { %1673 = vmatprep.subr.bf16.mxu1 %v7830_v9  ;;  %v6566_v9 = vcombine.high %v9359_v63, %v9362_v0 }
  0x95   : > { %1344 = vmatpush2.bf16.msra.mxu0 %v7825_v10  ;;  %v6852_v10 = vcombine.high %v9310_v33, %v9359_v63 }
  0x96   : > { %1674 = vmatpush2.bf16.msra.mxu1 %v7828_v11  ;;  %1973 = vmatprep.subr.bf16.mxu0 %v7837_v12  ;;  %v7857_v11 = vld [vmem:[%s11251_s4 + $0x440] ss:$8 sps:$4 sm:$0xff]  }
  0x97   : > { %2303 = vmatprep.subr.bf16.mxu1 %v7840_v13  ;;  %v7860_v12 = vld [vmem:[%s11251_s4 + $0x540] ss:$8 sps:$4 sm:$0xff]   ;;  %v6851_v13 = vcombine.low %v9310_v33, %v9359_v63 }
  0x98   : > { %1346 = vmatmul.mubr.bf16.vlgmr.msra.gmra.mxu0 %v6489_v29  ;;  %v7865_v29 = vld [vmem:[%s11251_s4 + $0x430] ss:$8 sps:$4 sm:$0xff]  }
  0x99   : > { %1676 = vmatmul.mubr.bf16.vlgmr.msra.gmra.mxu1 %v6561_v30  ;;  %1974 = vmatpush1.bf16.msra.mxu0 %v7835_v21  ;;  %v7867_v21 = vld [vmem:[%s11251_s4 + $0x434] ss:$8 sps:$4 sm:$0xff]   ;;  %v7868_v30 = vld [vmem:[%s11251_s4 + $0x530] ss:$8 sps:$4 sm:$0xff]  }
  0x9a   : > { %2304 = vmatpush1.bf16.msra.mxu1 %v7838_v24  ;;  %1975 = vmatprep.subr.bf16.mxu0 %v7843_v34  ;;  %v7870_v24 = vld [vmem:[%s11251_s4 + $0x534] ss:$8 sps:$4 sm:$0xff]  }
  0x9b   : > { %2305 = vmatprep.subr.bf16.mxu1 %v7846_v16  ;;  %1355 = vmatprep.mubr.bf16.mxu0 %v6492_v44  ;;  %v9401_v34 = vld [vmem:[%s9152_s15 + $0x30] sm:$0xff]  ;;  %v1079_v16 = vld [vmem:[%s9152_s15 + $0x38] sm:$0xff]  ;;  %v6493_v44 = vcombine.low %v9349_v57, %v9352_v58 }
  0x9c   : > { %1685 = vmatprep.mubr.bf16.mxu1 %v6564_v45  ;;  %v6565_v45 = vcombine.low %v9359_v63, %v9362_v0  ;;  %v8094_v57 = vld [vmem:[%s11251_s4 + $0x934] ss:$8 sps:$4 sm:$0xff]  }
  0x9d   : > { %1976 = vmatpush1.bf16.msra.mxu0 %v7841_v48  ;;  %v9409_v48 = vld [vmem:[%s9161_s29 + $0x30] sm:$0xff] }
  0x9e   : > { %2306 = vmatpush1.bf16.msra.mxu1 %v7844_v50  ;;  %1977 = vmatprep.subr.bf16.mxu0 %v7851_v52  ;;  %v1409_v50 = vld [vmem:[%s9161_s29 + $0x38] sm:$0xff]  ;;  %v7875_v52 = vld [vmem:[%s11251_s4 + $0x424] ss:$8 sps:$4 sm:$0xff]  }
  0x9f   : > { %2307 = vmatprep.subr.bf16.mxu1 %v7854_v53  ;;  %v6782_v53 = vcombine.high %v9352_v58, %v9401_v34 }
  0xa0   : > { %1356 = vmatmul.mubr.bf16.gmra.mxu0 %v6491_v60  ;;  %v6496_v60 = vcombine.high %v9401_v34, %v1079_v16 }
  0xa1   : > { %1686 = vmatmul.mubr.bf16.gmra.mxu1 %v6563_v62  ;;  %1978 = vmatpush1.bf16.msra.mxu0 %v7849_v54  ;;  %v6781_v54 = vcombine.low %v9352_v58, %v9401_v34  ;;  %v6568_v62 = vcombine.high %v9409_v48, %v1409_v50  ;;  %v8107_v58 = vld [vmem:[%s11251_s4 + $0x814] ss:$8 sps:$4 sm:$0xff]  }
  0xa2   : > { %2308 = vmatpush1.bf16.msra.mxu1 %v7852_v55  ;;  %1979 = vmatprep.subr.bf16.mxu0 %v7859_v2  ;;  %v7878_v55 = vld [vmem:[%s11251_s4 + $0x524] ss:$8 sps:$4 sm:$0xff]   ;;  %v6854_v2 = vcombine.high %v9362_v0, %v9409_v48 }
  0xa3   : > { %2309 = vmatprep.subr.bf16.mxu1 %v7862_v6  ;;  %1365 = vmatprep.mubr.bf16.mxu0 %v6494_v8  ;;  %v7873_v6 = vld [vmem:[%s11251_s4 + $0x420] ss:$8 sps:$4 sm:$0xff]  }
  0xa4   : > { %1695 = vmatprep.mubr.bf16.mxu1 %v6566_v9  ;;  %v7876_v8 = vld [vmem:[%s11251_s4 + $0x520] ss:$8 sps:$4 sm:$0xff]   ;;  %v6853_v9 = vcombine.low %v9362_v0, %v9409_v48  ;;  %v8110_v0 = vld [vmem:[%s11251_s4 + $0x914] ss:$8 sps:$4 sm:$0xff]  }
  0xa5   : > { %1980 = vmatpush1.bf16.msra.mxu0 %v7857_v11  ;;  %v7883_v11 = vld [vmem:[%s11251_s4 + $0x414] ss:$8 sps:$4 sm:$0xff]  }
  0xa6   : > { %2310 = vmatpush1.bf16.msra.mxu1 %v7860_v12  ;;  %1981 = vmatprep.subr.bf16.mxu0 %v7867_v21  ;;  %v7886_v12 = vld [vmem:[%s11251_s4 + $0x514] ss:$8 sps:$4 sm:$0xff]   ;;  %v6495_v21 = vcombine.low %v9401_v34, %v1079_v16  ;;  %v7894_v16 = vld [vmem:[%s11251_s4 + $0x504] ss:$8 sps:$4 sm:$0xff]  }
  0xa7   : > { %2311 = vmatprep.subr.bf16.mxu1 %v7870_v24  ;;  %v7881_v24 = vld [vmem:[%s11251_s4 + $0x410] ss:$8 sps:$4 sm:$0xff]  }
  0xa8   : > { %1366 = vmatmul.mubr.bf16.gmra.mxu0 %v6493_v44  ;;  %v7891_v44 = vld [vmem:[%s11251_s4 + $0x404] ss:$8 sps:$4 sm:$0xff]  }
  0xa9   : > { %1696 = vmatmul.mubr.bf16.gmra.mxu1 %v6565_v45  ;;  %1982 = vmatpush1.bf16.msra.mxu0 %v7865_v29  ;;  %v7884_v29 = vld [vmem:[%s11251_s4 + $0x510] ss:$8 sps:$4 sm:$0xff]   ;;  %v7889_v45 = vld [vmem:[%s11251_s4 + $0x400] ss:$8 sps:$4 sm:$0xff]  }
  0xaa   : > { %2312 = vmatpush1.bf16.msra.mxu1 %v7868_v30  ;;  %1983 = vmatprep.subr.bf16.mxu0 %v7875_v52  ;;  %v6567_v30 = vcombine.low %v9409_v48, %v1409_v50  ;;  %v7892_v50 = vld [vmem:[%s11251_s4 + $0x500] ss:$8 sps:$4 sm:$0xff]   ;;  %v7897_v52 = vld [vmem:[%s11251_s4 + $0x4f4] ss:$8 sps:$4 sm:$0xff]  }
  0xab   : > { %2313 = vmatprep.subr.bf16.mxu1 %v7878_v55  ;;  %1375 = vmatprep.mubr.bf16.mxu0 %v6496_v60  ;;  %v7900_v55 = vld [vmem:[%s11251_s4 + $0x5f4] ss:$8 sps:$4 sm:$0xff]   ;;  %v7895_v60 = vld [vmem:[%s11251_s4 + $0x4f0] ss:$8 sps:$4 sm:$0xff]  }
  0xac   : > { %1705 = vmatprep.mubr.bf16.mxu1 %v6568_v62  ;;  %v7898_v62 = vld [vmem:[%s11251_s4 + $0x5f0] ss:$8 sps:$4 sm:$0xff]  }
  0xad   : > { %1984 = vmatpush1.bf16.msra.mxu0 %v7873_v6  ;;  %v7901_v6 = vld [vmem:[%s11251_s4 + $0x4e0] ss:$8 sps:$4 sm:$0xff]  }
  0xae   : > { %2314 = vmatpush1.bf16.msra.mxu1 %v7876_v8  ;;  %1985 = vmatprep.subr.bf16.mxu0 %v7883_v11  ;;  %v7904_v8 = vld [vmem:[%s11251_s4 + $0x5e0] ss:$8 sps:$4 sm:$0xff]   ;;  %v7909_v11 = vld [vmem:[%s11251_s4 + $0x4d4] ss:$8 sps:$4 sm:$0xff]  }
  0xaf   : > { %2315 = vmatprep.subr.bf16.mxu1 %v7886_v12  ;;  %v7912_v12 = vld [vmem:[%s11251_s4 + $0x5d4] ss:$8 sps:$4 sm:$0xff]  }
  0xb0   : > { %1376 = vmatmul.mubr.bf16.gmra.mxu0 %v6495_v21  ;;  %v7907_v21 = vld [vmem:[%s11251_s4 + $0x4d0] ss:$8 sps:$4 sm:$0xff]  }
  0xb1   : > { %1706 = vmatmul.mubr.bf16.gmra.mxu1 %v6567_v30  ;;  %1986 = vmatpush1.bf16.msra.mxu0 %v7881_v24  ;;  %v7910_v24 = vld [vmem:[%s11251_s4 + $0x5d0] ss:$8 sps:$4 sm:$0xff]   ;;  %v7918_v30 = vld [vmem:[%s11251_s4 + $0x5c4] ss:$8 sps:$4 sm:$0xff]  }
  0xb2   : > { %2316 = vmatpush1.bf16.msra.mxu1 %v7884_v29  ;;  %1987 = vmatprep.subr.bf16.mxu0 %v7891_v44  ;;  %v7915_v29 = vld [vmem:[%s11251_s4 + $0x4c4] ss:$8 sps:$4 sm:$0xff]   ;;  %v7913_v44 = vld [vmem:[%s11251_s4 + $0x4c0] ss:$8 sps:$4 sm:$0xff]  }
  0xb3   : > { %2317 = vmatprep.subr.bf16.mxu1 %v7894_v16  ;;  %2005 = vmatprep.mubr.bf16.mxu0 %v6634_v25  ;;  %v7903_v25 = vld [vmem:[%s11251_s4 + $0x4e4] ss:$8 sps:$4 sm:$0xff]   ;;  %v7916_v16 = vld [vmem:[%s11251_s4 + $0x5c0] ss:$8 sps:$4 sm:$0xff]  }
  0xb4   : > { %2335 = vmatprep.mubr.bf16.mxu1 %v6706_v31  ;;  %v7906_v31 = vld [vmem:[%s11251_s4 + $0x5e4] ss:$8 sps:$4 sm:$0xff]  }
  0xb5   : > { %1988 = vmatpush1.bf16.msra.mxu0 %v7889_v45  ;;  %v7921_v45 = vld [vmem:[%s11251_s4 + $0x4b4] ss:$8 sps:$4 sm:$0xff]  }
  0xb6   : > { %2318 = vmatpush1.bf16.msra.mxu1 %v7892_v50  ;;  %1989 = vmatprep.subr.bf16.mxu0 %v7897_v52  ;;  %v7924_v50 = vld [vmem:[%s11251_s4 + $0x5b4] ss:$8 sps:$4 sm:$0xff]   ;;  %v7919_v52 = vld [vmem:[%s11251_s4 + $0x4b0] ss:$8 sps:$4 sm:$0xff]  }
  0xb7   : > { %2319 = vmatprep.subr.bf16.mxu1 %v7900_v55  ;;  %v7922_v55 = vld [vmem:[%s11251_s4 + $0x5b0] ss:$8 sps:$4 sm:$0xff]  }
  0xb9   : > { %1990 = vmatpush2.bf16.msra.mxu0 %v7895_v60  ;;  %v7927_v60 = vld [vmem:[%s11251_s4 + $0x4a4] ss:$8 sps:$4 sm:$0xff]  }
  0xba   : > { %2320 = vmatpush2.bf16.msra.mxu1 %v7898_v62  ;;  %1991 = vmatprep.subr.bf16.mxu0 %v7903_v25  ;;  %v7930_v62 = vld [vmem:[%s11251_s4 + $0x5a4] ss:$8 sps:$4 sm:$0xff]   ;;  %v7925_v25 = vld [vmem:[%s11251_s4 + $0x4a0] ss:$8 sps:$4 sm:$0xff]  }
  0xbb   : > { %2321 = vmatprep.subr.bf16.mxu1 %v7906_v31  ;;  %v7928_v31 = vld [vmem:[%s11251_s4 + $0x5a0] ss:$8 sps:$4 sm:$0xff]  }
  0xbd   : > { %1992 = vmatpush2.bf16.msra.mxu0 %v7901_v6  ;;  %v7933_v6 = vld [vmem:[%s11251_s4 + $0x494] ss:$8 sps:$4 sm:$0xff]  }
  0xbe   : > { %2322 = vmatpush2.bf16.msra.mxu1 %v7904_v8  ;;  %1993 = vmatprep.subr.bf16.mxu0 %v7909_v11  ;;  %v7936_v8 = vld [vmem:[%s11251_s4 + $0x594] ss:$8 sps:$4 sm:$0xff]   ;;  %v7931_v11 = vld [vmem:[%s11251_s4 + $0x490] ss:$8 sps:$4 sm:$0xff]  }
  0xbf   : > { %2323 = vmatprep.subr.bf16.mxu1 %v7912_v12  ;;  %v7934_v12 = vld [vmem:[%s11251_s4 + $0x590] ss:$8 sps:$4 sm:$0xff]  }
  0xc1   : > { %1994 = vmatpush2.bf16.msra.mxu0 %v7907_v21  ;;  %v7939_v21 = vld [vmem:[%s11251_s4 + $0x484] ss:$8 sps:$4 sm:$0xff]  }
  0xc2   : > { %2324 = vmatpush2.bf16.msra.mxu1 %v7910_v24  ;;  %1995 = vmatprep.subr.bf16.mxu0 %v7915_v29  ;;  %v7942_v24 = vld [vmem:[%s11251_s4 + $0x584] ss:$8 sps:$4 sm:$0xff]   ;;  %v7937_v29 = vld [vmem:[%s11251_s4 + $0x480] ss:$8 sps:$4 sm:$0xff]  }
  0xc3   : > { %2325 = vmatprep.subr.bf16.mxu1 %v7918_v30  ;;  %v7940_v30 = vld [vmem:[%s11251_s4 + $0x580] ss:$8 sps:$4 sm:$0xff]  }
  0xc5   : > { %1996 = vmatpush2.bf16.msra.mxu0 %v7913_v44  ;;  %v7949_v44 = vld [vmem:[%s11251_s4 + $0x674] ss:$8 sps:$4 sm:$0xff]  }
  0xc6   : > { %2326 = vmatpush2.bf16.msra.mxu1 %v7916_v16  ;;  %1997 = vmatprep.subr.bf16.mxu0 %v7921_v45  ;;  %v7952_v16 = vld [vmem:[%s11251_s4 + $0x774] ss:$8 sps:$4 sm:$0xff]   ;;  %v7947_v45 = vld [vmem:[%s11251_s4 + $0x670] ss:$8 sps:$4 sm:$0xff]  }
  0xc7   : > { %2327 = vmatprep.subr.bf16.mxu1 %v7924_v50  ;;  %v7950_v50 = vld [vmem:[%s11251_s4 + $0x770] ss:$8 sps:$4 sm:$0xff]  }
  0xc9   : > { %1998 = vmatpush2.bf16.msra.mxu0 %v7919_v52  ;;  %v7955_v52 = vld [vmem:[%s11251_s4 + $0x664] ss:$8 sps:$4 sm:$0xff]  }
  0xca   : > { %2328 = vmatpush2.bf16.msra.mxu1 %v7922_v55  ;;  %1999 = vmatprep.subr.bf16.mxu0 %v7927_v60  ;;  %v7958_v55 = vld [vmem:[%s11251_s4 + $0x764] ss:$8 sps:$4 sm:$0xff]   ;;  %v7953_v60 = vld [vmem:[%s11251_s4 + $0x660] ss:$8 sps:$4 sm:$0xff]  }
  0xcb   : > { %2329 = vmatprep.subr.bf16.mxu1 %v7930_v62  ;;  %v7956_v62 = vld [vmem:[%s11251_s4 + $0x760] ss:$8 sps:$4 sm:$0xff]  }
  0xcd   : > { %2000 = vmatpush2.bf16.msra.mxu0 %v7925_v25  ;;  %v7990_v25 = vld [vmem:[%s11251_s4 + $0x724] ss:$8 sps:$4 sm:$0xff]  }
  0xce   : > { %2330 = vmatpush2.bf16.msra.mxu1 %v7928_v31  ;;  %2001 = vmatprep.subr.bf16.mxu0 %v7933_v6  ;;  %v8591_v31 = vld [vmem:[%s8917_s12 + $0x38] sm:$0xff] }
  0xcf   : > { %2331 = vmatprep.subr.bf16.mxu1 %v7936_v8  ;;  %v8592_v8 = vld [vmem:[%s8908_s19 + $0x38] sm:$0xff] }
  0xd1   : > { %2002 = vmatpush2.bf16.msra.mxu0 %v7931_v11 }
  0xd2   : > { %2332 = vmatpush2.bf16.msra.mxu1 %v7934_v12  ;;  %2003 = vmatprep.subr.bf16.mxu0 %v7939_v21  ;;  %v7988_v12 = vld [vmem:[%s11251_s4 + $0x720] ss:$8 sps:$4 sm:$0xff]   ;;  %v7995_v21 = vld [vmem:[%s11251_s4 + $0x614] ss:$8 sps:$4 sm:$0xff]  }
  0xd3   : > { %2333 = vmatprep.subr.bf16.mxu1 %v7942_v24  ;;  %v8006_v24 = vld [vmem:[%s11251_s4 + $0x704] ss:$8 sps:$4 sm:$0xff]  }
  0xd5   : > { %2004 = vmatpush2.bf16.msra.mxu0 %v7937_v29  ;;  %v8001_v29 = vld [vmem:[%s11251_s4 + $0x600] ss:$8 sps:$4 sm:$0xff]  }
  0xd6   : > { %2334 = vmatpush2.bf16.msra.mxu1 %v7940_v30  ;;  %2633 = vmatprep.subr.bf16.mxu0 %v7949_v44  ;;  %v8004_v30 = vld [vmem:[%s11251_s4 + $0x700] ss:$8 sps:$4 sm:$0xff]   ;;  %v8009_v44 = vld [vmem:[%s11251_s4 + $0x6f4] ss:$8 sps:$4 sm:$0xff]  }
  0xd7   : > { %2963 = vmatprep.subr.bf16.mxu1 %v7952_v16  ;;  %v8012_v16 = vld [vmem:[%s11251_s4 + $0x7f4] ss:$8 sps:$4 sm:$0xff]  }
  0xd8   : > { %2006 = vmatmul.mubr.bf16.vlgmr.msra.gmra.mxu0 %v6633_v23  ;;  %v7971_v23 = vld [vmem:[%s11251_s4 + $0x644] ss:$8 sps:$4 sm:$0xff]  }
  0xd9   : > { %2336 = vmatmul.mubr.bf16.vlgmr.msra.gmra.mxu1 %v6705_v26  ;;  %2634 = vmatpush1.bf16.msra.mxu0 %v7947_v45  ;;  %v7974_v26 = vld [vmem:[%s11251_s4 + $0x744] ss:$8 sps:$4 sm:$0xff]   ;;  %v8007_v45 = vld [vmem:[%s11251_s4 + $0x6f0] ss:$8 sps:$4 sm:$0xff]  }
  0xda   : > { %2964 = vmatpush1.bf16.msra.mxu1 %v7950_v50  ;;  %2635 = vmatprep.subr.bf16.mxu0 %v7955_v52  ;;  %v8010_v50 = vld [vmem:[%s11251_s4 + $0x7f0] ss:$8 sps:$4 sm:$0xff]   ;;  %v8015_v52 = vld [vmem:[%s11251_s4 + $0x6e4] ss:$8 sps:$4 sm:$0xff]  }
  0xdb   : > { %2965 = vmatprep.subr.bf16.mxu1 %v7958_v55  ;;  %2015 = vmatprep.mubr.bf16.mxu0 %v6636_v46  ;;  %v7972_v46 = vld [vmem:[%s11251_s4 + $0x740] ss:$8 sps:$4 sm:$0xff]  }
  0xdc   : > { %2345 = vmatprep.mubr.bf16.mxu1 %v6708_v40  ;;  %v7969_v40 = vld [vmem:[%s11251_s4 + $0x640] ss:$8 sps:$4 sm:$0xff]  }
  0xdd   : > { %2636 = vmatpush1.bf16.msra.mxu0 %v7953_v60  ;;  %v8016_v55 = vld [vmem:[%s11251_s4 + $0x7e0] ss:$8 sps:$4 sm:$0xff]   ;;  %v8021_v60 = vld [vmem:[%s11251_s4 + $0x6d4] ss:$8 sps:$4 sm:$0xff]  }
  0xde   : > { %2966 = vmatpush1.bf16.msra.mxu1 %v7956_v62  ;;  %2637 = vmatprep.subr.bf16.mxu0 %v7963_v51  ;;  %v8024_v62 = vld [vmem:[%s11251_s4 + $0x7d4] ss:$8 sps:$4 sm:$0xff]   ;;  %v8019_v51 = vld [vmem:[%s11251_s4 + $0x6d0] ss:$8 sps:$4 sm:$0xff]  }
  0xdf   : > { %2967 = vmatprep.subr.bf16.mxu1 %v7966_v49  ;;  %v8022_v49 = vld [vmem:[%s11251_s4 + $0x7d0] ss:$8 sps:$4 sm:$0xff]  }
  0xe0   : > { %2016 = vmatmul.mubr.bf16.gmra.mxu0 %v6635_v47  ;;  %v2069_v47 = vld [vmem:[%s8908_s19 + $0x40] sm:$0xff] }
  0xe1   : > { %2346 = vmatmul.mubr.bf16.gmra.mxu1 %v6707_v41  ;;  %2638 = vmatpush1.bf16.msra.mxu0 %v7961_v18  ;;  %v1739_v41 = vld [vmem:[%s8917_s12 + $0x40] sm:$0xff]  ;;  %v6712_v11 = vcombine.high %v8592_v8, %v2069_v47 }
  0xe2   : > { %2968 = vmatpush1.bf16.msra.mxu1 %v7964_v20  ;;  %2639 = vmatprep.subr.bf16.mxu0 %v7971_v23  ;;  %v6640_v6 = vcombine.high %v8591_v31, %v1739_v41  ;;  %v6639_v39 = vcombine.low %v8591_v31, %v1739_v41  ;;  %v8027_v18 = vld [vmem:[%s11251_s4 + $0x6c4] ss:$8 sps:$4 sm:$0xff]   ;;  %v8025_v23 = vld [vmem:[%s11251_s4 + $0x6c0] ss:$8 sps:$4 sm:$0xff]   ;;  %v8043_v31 = vld [vmem:[%s11251_s4 + $0x690] ss:$8 sps:$4 sm:$0xff]  }
  0xe3   : > { %2969 = vmatprep.subr.bf16.mxu1 %v7974_v26  ;;  %2025 = vmatprep.mubr.bf16.mxu0 %v6638_v1  ;;  %v7987_v1 = vld [vmem:[%s11251_s4 + $0x624] ss:$8 sps:$4 sm:$0xff]   ;;  %v8028_v26 = vld [vmem:[%s11251_s4 + $0x7c0] ss:$8 sps:$4 sm:$0xff]  }
  0xe4   : > { %2355 = vmatprep.mubr.bf16.mxu1 %v6710_v61  ;;  %v7985_v61 = vld [vmem:[%s11251_s4 + $0x620] ss:$8 sps:$4 sm:$0xff]   ;;  %v8030_v20 = vld [vmem:[%s11251_s4 + $0x7c4] ss:$8 sps:$4 sm:$0xff]  }
  0xe5   : > { %2640 = vmatpush1.bf16.msra.mxu0 %v7969_v40  ;;  %v8033_v40 = vld [vmem:[%s11251_s4 + $0x6b4] ss:$8 sps:$4 sm:$0xff]   ;;  %v8037_v41 = vld [vmem:[%s11251_s4 + $0x6a0] ss:$8 sps:$4 sm:$0xff]  }
  0xe6   : > { %2970 = vmatpush1.bf16.msra.mxu1 %v7972_v46  ;;  %2641 = vmatprep.subr.bf16.mxu0 %v7979_v22  ;;  %v8036_v46 = vld [vmem:[%s11251_s4 + $0x7b4] ss:$8 sps:$4 sm:$0xff]   ;;  %v8031_v22 = vld [vmem:[%s11251_s4 + $0x6b0] ss:$8 sps:$4 sm:$0xff]  }
  0xe7   : > { %2971 = vmatprep.subr.bf16.mxu1 %v7982_v19  ;;  %v8034_v19 = vld [vmem:[%s11251_s4 + $0x7b0] ss:$8 sps:$4 sm:$0xff]  }
  0xe8   : > { %2026 = vmatmul.mubr.bf16.gmra.mxu0 %v6637_v3  ;;  %v6711_v3 = vcombine.low %v8592_v8, %v2069_v47  ;;  %v8040_v47 = vld [vmem:[%s11251_s4 + $0x7a0] ss:$8 sps:$4 sm:$0xff]   ;;  %v8051_v8 = vld [vmem:[%s11251_s4 + $0x684] ss:$8 sps:$4 sm:$0xff]  }
  0xe9   : > { %2356 = vmatmul.mubr.bf16.gmra.mxu1 %v6709_v4  ;;  %2642 = vmatpush1.bf16.msra.mxu0 %v7977_v36  ;;  %v8003_v4 = vld [vmem:[%s11251_s4 + $0x604] ss:$8 sps:$4 sm:$0xff]  }
  0xea   : > { %2972 = vmatpush1.bf16.msra.mxu1 %v7980_v38  ;;  %2643 = vmatprep.subr.bf16.mxu0 %v7987_v1  ;;  %v8039_v36 = vld [vmem:[%s11251_s4 + $0x6a4] ss:$8 sps:$4 sm:$0xff]   ;;  %v8045_v1 = vld [vmem:[%s11251_s4 + $0x694] ss:$8 sps:$4 sm:$0xff]  }
  0xeb   : > { %2973 = vmatprep.subr.bf16.mxu1 %v7990_v25  ;;  %2035 = vmatprep.mubr.bf16.mxu0 %v6640_v6  ;;  %v8042_v38 = vld [vmem:[%s11251_s4 + $0x7a4] ss:$8 sps:$4 sm:$0xff]   ;;  %v8048_v25 = vld [vmem:[%s11251_s4 + $0x794] ss:$8 sps:$4 sm:$0xff]   ;;  %v8046_v6 = vld [vmem:[%s11251_s4 + $0x790] ss:$8 sps:$4 sm:$0xff]  }
  0xec   : > { %2365 = vmatprep.mubr.bf16.mxu1 %v6712_v11  ;;  %v8054_v11 = vld [vmem:[%s11251_s4 + $0x784] ss:$8 sps:$4 sm:$0xff]  }
  0xed   : > { %2644 = vmatpush1.bf16.msra.mxu0 %v7985_v61  ;;  %v8049_v61 = vld [vmem:[%s11251_s4 + $0x680] ss:$8 sps:$4 sm:$0xff]  }
  0xee   : > { %2974 = vmatpush1.bf16.msra.mxu1 %v7988_v12  ;;  %2645 = vmatprep.subr.bf16.mxu0 %v7995_v21  ;;  %v8052_v12 = vld [vmem:[%s11251_s4 + $0x780] ss:$8 sps:$4 sm:$0xff]   ;;  %v8061_v21 = vld [vmem:[%s11251_s4 + $0x874] ss:$8 sps:$4 sm:$0xff]  }
  0xef   : > { %2975 = vmatprep.subr.bf16.mxu1 %v7998_v37  ;;  %v8064_v37 = vld [vmem:[%s11251_s4 + $0x974] ss:$8 sps:$4 sm:$0xff]  }
  0xf0   : > { %2036 = vmatmul.mubr.bf16.gmra.mxu0 %v6639_v39  ;;  %v8059_v39 = vld [vmem:[%s11251_s4 + $0x870] ss:$8 sps:$4 sm:$0xff]  }
  0xf1   : > { %2366 = vmatmul.mubr.bf16.gmra.mxu1 %v6711_v3  ;;  %2646 = vmatpush1.bf16.msra.mxu0 %v7993_v56  ;;  %v8062_v56 = vld [vmem:[%s11251_s4 + $0x970] ss:$8 sps:$4 sm:$0xff]   ;;  %v8070_v3 = vld [vmem:[%s11251_s4 + $0x964] ss:$8 sps:$4 sm:$0xff]  }
  0xf2   : > { %2976 = vmatpush1.bf16.msra.mxu1 %v7996_v59  ;;  %2647 = vmatprep.subr.bf16.mxu0 %v8003_v4  ;;  %v8067_v59 = vld [vmem:[%s11251_s4 + $0x864] ss:$8 sps:$4 sm:$0xff]  }
  0xf3   : > { %2977 = vmatprep.subr.bf16.mxu1 %v8006_v24  ;;  %2665 = vmatprep.mubr.bf16.mxu0 %v6778_v42  ;;  %v8018_v42 = vld [vmem:[%s11251_s4 + $0x7e4] ss:$8 sps:$4 sm:$0xff]  }
  0xf4   : > { %2995 = vmatprep.mubr.bf16.mxu1 %v6850_v43  ;;  %v8013_v43 = vld [vmem:[%s11251_s4 + $0x6e0] ss:$8 sps:$4 sm:$0xff]  }
  0xf5   : > { %2648 = vmatpush1.bf16.msra.mxu0 %v8001_v29  ;;  %v8065_v29 = vld [vmem:[%s11251_s4 + $0x860] ss:$8 sps:$4 sm:$0xff]  }
  0xf6   : > { %2978 = vmatpush1.bf16.msra.mxu1 %v8004_v30  ;;  %2649 = vmatprep.subr.bf16.mxu0 %v8009_v44  ;;  %v8068_v30 = vld [vmem:[%s11251_s4 + $0x960] ss:$8 sps:$4 sm:$0xff]  }
  0xf7   : > { %2979 = vmatprep.subr.bf16.mxu1 %v8012_v16 }
  0xf9   : > { %2650 = vmatpush2.bf16.msra.mxu0 %v8007_v45  ;;  %v8073_v45 = vld [vmem:[%s11251_s4 + $0x850] ss:$8 sps:$4 sm:$0xff]  }
  0xfa   : > { %2980 = vmatpush2.bf16.msra.mxu1 %v8010_v50  ;;  %2651 = vmatprep.subr.bf16.mxu0 %v8015_v52  ;;  %v8076_v50 = vld [vmem:[%s11251_s4 + $0x950] ss:$8 sps:$4 sm:$0xff]  }
  0xfb   : > { %2981 = vmatprep.subr.bf16.mxu1 %v8018_v42 }
  0xfd   : > { %2652 = vmatpush2.bf16.msra.mxu0 %v8013_v43  ;;  %v8086_v43 = vld [vmem:[%s11251_s4 + $0x944] ss:$8 sps:$4 sm:$0xff]  }
  0xfe   : > { %2982 = vmatpush2.bf16.msra.mxu1 %v8016_v55  ;;  %2653 = vmatprep.subr.bf16.mxu0 %v8021_v60  ;;  %v8081_v55 = vld [vmem:[%s11251_s4 + $0x840] ss:$8 sps:$4 sm:$0xff]  }
  0xff   : > { %2983 = vmatprep.subr.bf16.mxu1 %v8024_v62  ;;  %v8084_v60 = vld [vmem:[%s11251_s4 + $0x940] ss:$8 sps:$4 sm:$0xff]  }
 0x101   : > { %2654 = vmatpush2.bf16.msra.mxu0 %v8019_v51 }
 0x102   : > { %2984 = vmatpush2.bf16.msra.mxu1 %v8022_v49  ;;  %2655 = vmatprep.subr.bf16.mxu0 %v8027_v18  ;;  %v8092_v49 = vld [vmem:[%s11251_s4 + $0x930] ss:$8 sps:$4 sm:$0xff]  }
 0x103   : > { %2985 = vmatprep.subr.bf16.mxu1 %v8030_v20  ;;  %v2399_v20 = vld [vmem:[%s9152_s15 + $0x40] sm:$0xff] }
 0x105   : > { %2656 = vmatpush2.bf16.msra.mxu0 %v8025_v23  ;;  %v2729_v23 = vld [vmem:[%s9161_s29 + $0x40] sm:$0xff] }
 0x106   : > { %2986 = vmatpush2.bf16.msra.mxu1 %v8028_v26  ;;  %2657 = vmatprep.subr.bf16.mxu0 %v8033_v40  ;;  %v8099_v40 = vld [vmem:[%s11251_s4 + $0x824] ss:$8 sps:$4 sm:$0xff]  }
 0x107   : > { %2987 = vmatprep.subr.bf16.mxu1 %v8036_v46 }
 0x109   : > { %2658 = vmatpush2.bf16.msra.mxu0 %v8031_v22 }
 0x10a   : > { %2988 = vmatpush2.bf16.msra.mxu1 %v8034_v19  ;;  %2659 = vmatprep.subr.bf16.mxu0 %v8039_v36  ;;  %v8593_v36 = vld [vmem:[%s9152_s15 + $0x38] sm:$0xff] }
 0x10b   : > { %2989 = vmatprep.subr.bf16.mxu1 %v8042_v38  ;;  %v6784_v38 = vcombine.high %v8593_v36, %v2399_v20 }
 0x10d   : > { %2660 = vmatpush2.bf16.msra.mxu0 %v8037_v41  ;;  %v8594_v41 = vld [vmem:[%s9161_s29 + $0x38] sm:$0xff] }
 0x10e   : > { %2990 = vmatpush2.bf16.msra.mxu1 %v8040_v47  ;;  %2661 = vmatprep.subr.bf16.mxu0 %v8045_v1  ;;  %v6856_v47 = vcombine.high %v8594_v41, %v2729_v23  ;;  %v8097_v1 = vld [vmem:[%s11251_s4 + $0x820] ss:$8 sps:$4 sm:$0xff]  }
 0x10f   : > { %2991 = vmatprep.subr.bf16.mxu1 %v8048_v25  ;;  %v8100_v25 = vld [vmem:[%s11251_s4 + $0x920] ss:$8 sps:$4 sm:$0xff]  }
 0x111   : > { %2662 = vmatpush2.bf16.msra.mxu0 %v8043_v31 }
 0x112   : > { %2992 = vmatpush2.bf16.msra.mxu1 %v8046_v6  ;;  %2663 = vmatprep.subr.bf16.mxu0 %v8051_v8  ;;  %v6783_v8 = vcombine.low %v8593_v36, %v2399_v20  ;;  %v8131_v20 = vld [vmem:[%s11251_s4 + $0x8d0] ss:$8 sps:$4 sm:$0xff]   ;;  %v8145_v36 = vld [vmem:[%s11251_s4 + $0x8b4] ss:$8 sps:$4 sm:$0xff]  }
 0x113   : > { %2993 = vmatprep.subr.bf16.mxu1 %v8054_v11  ;;  %v8105_v11 = vld [vmem:[%s11251_s4 + $0x810] ss:$8 sps:$4 sm:$0xff]  }
 0x115   : > { %2664 = vmatpush2.bf16.msra.mxu0 %v8049_v61  ;;  %v8108_v61 = vld [vmem:[%s11251_s4 + $0x910] ss:$8 sps:$4 sm:$0xff]  }
 0x116   : > { %2994 = vmatpush2.bf16.msra.mxu1 %v8052_v12  ;;  %3293 = vmatprep.subr.bf16.mxu0 %v8061_v21  ;;  %v6855_v12 = vcombine.low %v8594_v41, %v2729_v23  ;;  %v8134_v23 = vld [vmem:[%s11251_s4 + $0x9d0] ss:$8 sps:$4 sm:$0xff]  }
 0x117   : > { %3623 = vmatprep.subr.bf16.mxu1 %v8064_v37  ;;  %v8143_v41 = vld [vmem:[%s11251_s4 + $0x8b0] ss:$8 sps:$4 sm:$0xff]  }
 0x118   : > { %v760_v4 = vpop.f32.mrf.mxu0  ;;  %2666 = vmatmul.mubr.bf16.vlgmr.msra.gmra.mxu0 %v6777_v35 }
 0x119   : > { %v1033_v24 = vpop.f32.mrf.mxu1  ;;  %2996 = vmatmul.mubr.bf16.vlgmr.msra.gmra.mxu1 %v6849_v14  ;;  %3294 = vmatpush1.bf16.msra.mxu0 %v8059_v39  ;;  %v8115_v39 = vld [vmem:[%s11251_s4 + $0x804] ss:$8 sps:$4 sm:$0xff]  }
 0x11a   : > { %v9824_v44 = vadd.f32 %v1033_v24, %v760_v4  ;;  %3624 = vmatpush1.bf16.msra.mxu1 %v8062_v56  ;;  %v762_v27 = vpop.f32.mrf.mxu0  ;;  %3295 = vmatprep.subr.bf16.mxu0 %v8067_v59  ;;  %v8118_v59 = vld [vmem:[%s11251_s4 + $0x904] ss:$8 sps:$4 sm:$0xff]   ;;  %v8169_v24 = vld [vmem:[%s8917_s12 + $0x14] ss:$8 sps:$4 sm:$0xff]  }
 0x11b   : > { %v1035_v35 = vpop.f32.mrf.mxu1  ;;  %3625 = vmatprep.subr.bf16.mxu1 %v8070_v3  ;;  %2675 = vmatprep.mubr.bf16.mxu0 %v6780_v5  ;;  %v8083_v5 = vld [vmem:[%s11251_s4 + $0x844] ss:$8 sps:$4 sm:$0xff]  }
 0x11c   : > { %v9832_v32 = vadd.f32 %v1035_v35, %v762_v27  ;;  %3005 = vmatprep.mubr.bf16.mxu1 %v6852_v10  ;;  %v764_v14 = vpop.f32.mrf.mxu0 }
 0x11d   : > { %v1037_v16 = vpop.f32.mrf.mxu1  ;;  %3296 = vmatpush1.bf16.msra.mxu0 %v8065_v29  ;;  %v8172_v29 = vld [vmem:[%s8908_s19 + $0x14] ss:$8 sps:$4 sm:$0xff]  }
 0x11e   : > { %v9846_v52 = vadd.f32 %v1037_v16, %v764_v14  ;;  %3626 = vmatpush1.bf16.msra.mxu1 %v8068_v30  ;;  %v9851_v42 = vpop.f32.mrf.mxu0  ;;  %3297 = vmatprep.subr.bf16.mxu0 %v8075_v15  ;;  %v8113_v30 = vld [vmem:[%s11251_s4 + $0x800] ss:$8 sps:$4 sm:$0xff]   ;;  %v8124_v16 = vld [vmem:[%s11251_s4 + $0x9f4] ss:$8 sps:$4 sm:$0xff]  }
 0x11f   : > { %v9853_v10 = vpop.f32.mrf.mxu1  ;;  %3627 = vmatprep.subr.bf16.mxu1 %v8078_v17  ;;  %v8116_v15 = vld [vmem:[%s11251_s4 + $0x900] ss:$8 sps:$4 sm:$0xff]   ;;  %v8121_v17 = vld [vmem:[%s11251_s4 + $0x8f4] ss:$8 sps:$4 sm:$0xff]  }
 0x120   : > { %2676 = vmatmul.mubr.bf16.gmra.mxu0 %v6779_v7  ;;  %v770_v62 = vpop.f32.mrf.mxu0 }
 0x121   : > { %3006 = vmatmul.mubr.bf16.gmra.mxu1 %v6851_v13  ;;  %v1043_v51 = vpop.f32.mrf.mxu1  ;;  %3298 = vmatpush1.bf16.msra.mxu0 %v8073_v45  ;;  %v8089_v13 = vld [vmem:[%s11251_s4 + $0x830] ss:$8 sps:$4 sm:$0xff]  }
 0x122   : > { %3628 = vmatpush1.bf16.msra.mxu1 %v8076_v50  ;;  %v9873_v33 = vadd.f32 %v1043_v51, %v770_v62  ;;  %3299 = vmatprep.subr.bf16.mxu0 %v8083_v5  ;;  %v772_v63 = vpop.f32.mrf.mxu0  ;;  %v8127_v51 = vld [vmem:[%s11251_s4 + $0x8e4] ss:$8 sps:$4 sm:$0xff]  }
 0x123   : > { %3629 = vmatprep.subr.bf16.mxu1 %v8086_v43  ;;  %v1045_v7 = vpop.f32.mrf.mxu1  ;;  %2685 = vmatprep.mubr.bf16.mxu0 %v6782_v53  ;;  %v8119_v43 = vld [vmem:[%s11251_s4 + $0x8f0] ss:$8 sps:$4 sm:$0xff]  }
 0x124   : > { %3015 = vmatprep.mubr.bf16.mxu1 %v6854_v2  ;;  %v9890_v18 = vadd.f32 %v1045_v7, %v772_v63  ;;  %v774_v26 = vpop.f32.mrf.mxu0  ;;  %v8102_v2 = vld [vmem:[%s11251_s4 + $0x924] ss:$8 sps:$4 sm:$0xff]   ;;  %v8125_v63 = vld [vmem:[%s11251_s4 + $0x8e0] ss:$8 sps:$4 sm:$0xff]  }
 0x125   : > { %v1047_v53 = vpop.f32.mrf.mxu1  ;;  %3300 = vmatpush1.bf16.msra.mxu0 %v8081_v55  ;;  %v8122_v55 = vld [vmem:[%s11251_s4 + $0x9f0] ss:$8 sps:$4 sm:$0xff]   ;;  %v8128_v7 = vld [vmem:[%s11251_s4 + $0x9e0] ss:$8 sps:$4 sm:$0xff]  }
 0x126   : > { %3630 = vmatpush1.bf16.msra.mxu1 %v8084_v60  ;;  %v9897_v46 = vadd.f32 %v1047_v53, %v774_v26  ;;  %3301 = vmatprep.subr.bf16.mxu0 %v8091_v28  ;;  %v9902_v22 = vpop.f32.mrf.mxu0  ;;  %v8139_v26 = vld [vmem:[%s11251_s4 + $0x8c4] ss:$8 sps:$4 sm:$0xff]  }
 0x127   : > { %3631 = vmatprep.subr.bf16.mxu1 %v8094_v57  ;;  %v9904_v19 = vpop.f32.mrf.mxu1  ;;  %v8130_v57 = vld [vmem:[%s11251_s4 + $0x9e4] ss:$8 sps:$4 sm:$0xff]  }
 0x128   : > { %2686 = vmatmul.mubr.bf16.gmra.mxu0 %v6781_v54  ;;  %v780_v31 = vpop.f32.mrf.mxu0  ;;  %v8142_v53 = vld [vmem:[%s11251_s4 + $0x9c4] ss:$8 sps:$4 sm:$0xff]  }
 0x129   : > { %3016 = vmatmul.mubr.bf16.gmra.mxu1 %v6853_v9  ;;  %v1053_v6 = vpop.f32.mrf.mxu1  ;;  %3302 = vmatpush1.bf16.msra.mxu0 %v8089_v13  ;;  %v8133_v13 = vld [vmem:[%s11251_s4 + $0x8d4] ss:$8 sps:$4 sm:$0xff]  }
 0x12a   : > { %3632 = vmatpush1.bf16.msra.mxu1 %v8092_v49  ;;  %v9923_v34 = vadd.f32 %v1053_v6, %v780_v31  ;;  %3303 = vmatprep.subr.bf16.mxu0 %v8099_v40  ;;  %v782_v48 = vpop.f32.mrf.mxu0  ;;  %v8136_v49 = vld [vmem:[%s11251_s4 + $0x9d4] ss:$8 sps:$4 sm:$0xff]   ;;  %v8137_v40 = vld [vmem:[%s11251_s4 + $0x8c0] ss:$8 sps:$4 sm:$0xff]  }
 0x12b   : > { %3633 = vmatprep.subr.bf16.mxu1 %v8102_v2  ;;  %v1055_v54 = vpop.f32.mrf.mxu1  ;;  %2695 = vmatprep.mubr.bf16.mxu0 %v6784_v38  ;;  %v8140_v2 = vld [vmem:[%s11251_s4 + $0x9c0] ss:$8 sps:$4 sm:$0xff]   ;;  %v8148_v38 = vld [vmem:[%s11251_s4 + $0x9b4] ss:$8 sps:$4 sm:$0xff]  }
 0x12c   : > { %3025 = vmatprep.mubr.bf16.mxu1 %v6856_v47  ;;  %v9928_v9 = vadd.f32 %v1055_v54, %v782_v48  ;;  %v784_v21 = vpop.f32.mrf.mxu0  ;;  %v8146_v47 = vld [vmem:[%s11251_s4 + $0x9b0] ss:$8 sps:$4 sm:$0xff]   ;;  %v8149_v31 = vld [vmem:[%s11251_s4 + $0x8a0] ss:$8 sps:$4 sm:$0xff]  }
 0x12d   : > { %v1057_v37 = vpop.f32.mrf.mxu1  ;;  %3304 = vmatpush1.bf16.msra.mxu0 %v8097_v1  ;;  %v8151_v1 = vld [vmem:[%s11251_s4 + $0x8a4] ss:$8 sps:$4 sm:$0xff]   ;;  %v8152_v6 = vld [vmem:[%s11251_s4 + $0x9a0] ss:$8 sps:$4 sm:$0xff]   ;;  %v8155_v48 = vld [vmem:[%s11251_s4 + $0x890] ss:$8 sps:$4 sm:$0xff]  }
 0x12e   : > { %3634 = vmatpush1.bf16.msra.mxu1 %v8100_v25  ;;  %v9939_v56 = vadd.f32 %v1057_v37, %v784_v21  ;;  %3305 = vmatprep.subr.bf16.mxu0 %v8107_v58  ;;  %v9944_v3 = vpop.f32.mrf.mxu0  ;;  %v8154_v25 = vld [vmem:[%s11251_s4 + $0x9a4] ss:$8 sps:$4 sm:$0xff]   ;;  %v8157_v58 = vld [vmem:[%s11251_s4 + $0x894] ss:$8 sps:$4 sm:$0xff]   ;;  %v8158_v54 = vld [vmem:[%s11251_s4 + $0x990] ss:$8 sps:$4 sm:$0xff]  }
 0x12f   : > { %3635 = vmatprep.subr.bf16.mxu1 %v8110_v0  ;;  %v9946_v4 = vpop.f32.mrf.mxu1  ;;  %v8160_v0 = vld [vmem:[%s11251_s4 + $0x994] ss:$8 sps:$4 sm:$0xff]  }
 0x130   : > { %2696 = vmatmul.mubr.bf16.gmra.mxu0 %v6783_v8  ;;  %v790_v27 = vpop.f32.mrf.mxu0  ;;  %v8163_v8 = vld [vmem:[%s11251_s4 + $0x884] ss:$8 sps:$4 sm:$0xff]   ;;  %v8175_v21 = vld [vmem:[%s11251_s4 + $0xa74] ss:$8 sps:$4 sm:$0xff]  }
 0x131   : > { %3026 = vmatmul.mubr.bf16.gmra.mxu1 %v6855_v12  ;;  %v1063_v35 = vpop.f32.mrf.mxu1  ;;  %3306 = vmatpush1.bf16.msra.mxu0 %v8105_v11  ;;  %v8166_v11 = vld [vmem:[%s11251_s4 + $0x984] ss:$8 sps:$4 sm:$0xff]   ;;  %v8164_v12 = vld [vmem:[%s11251_s4 + $0x980] ss:$8 sps:$4 sm:$0xff]   ;;  %v8178_v37 = vld [vmem:[%s11251_s4 + $0xb74] ss:$8 sps:$4 sm:$0xff]  }
 0x132   : > { %3636 = vmatpush1.bf16.msra.mxu1 %v8108_v61  ;;  %v9959_v14 = vadd.f32 %v1063_v35, %v790_v27  ;;  %3307 = vmatprep.subr.bf16.mxu0 %v8115_v39  ;;  %v792_v45 = vpop.f32.mrf.mxu0  ;;  %v8161_v61 = vld [vmem:[%s11251_s4 + $0x880] ss:$8 sps:$4 sm:$0xff]   ;;  %v8167_v39 = vld [vmem:[%s8917_s12 + $0x10] ss:$8 sps:$4 sm:$0xff]   ;;  %v8184_v35 = vld [vmem:[%s11251_s4 + $0xb64] ss:$8 sps:$4 sm:$0xff]  }
 0x133   : > { %3637 = vmatprep.subr.bf16.mxu1 %v8118_v59  ;;  %v1065_v50 = vpop.f32.mrf.mxu1  ;;  %3325 = vmatprep.mubr.bf16.mxu0 %v8169_v24  ;;  %v8170_v59 = vld [vmem:[%s8908_s19 + $0x10] ss:$8 sps:$4 sm:$0xff]  }
 0x134   : > { %v9964_v5 = vadd.f32 %v1065_v50, %v792_v45  ;;  %3655 = vmatprep.mubr.bf16.mxu1 %v8172_v29  ;;  %v794_v60 = vpop.f32.mrf.mxu0  ;;  %v8173_v24 = vld [vmem:[%s11251_s4 + $0xa70] ss:$8 sps:$4 sm:$0xff]  }
 0x135   : > { %v1067_v62 = vpop.f32.mrf.mxu1  ;;  %3308 = vmatpush1.bf16.msra.mxu0 %v8113_v30  ;;  %v8176_v29 = vld [vmem:[%s11251_s4 + $0xb70] ss:$8 sps:$4 sm:$0xff]   ;;  %v8181_v30 = vld [vmem:[%s11251_s4 + $0xa64] ss:$8 sps:$4 sm:$0xff]  }
 0x136   : > { %3638 = vmatpush1.bf16.msra.mxu1 %v8116_v15  ;;  %v9975_v28 = vadd.f32 %v1067_v62, %v794_v60  ;;  %3309 = vmatprep.subr.bf16.mxu0 %v8121_v17  ;;  %v10075_v15 = vpop.f32.mrf.mxu0  ;;  %v8185_v17 = vld [vmem:[%s8917_s12 + $0x24] ss:$8 sps:$4 sm:$0xff]   ;;  %v8190_v62 = vld [vmem:[%s11251_s4 + $0xa54] ss:$8 sps:$4 sm:$0xff]  }
 0x137   : > { %3639 = vmatprep.subr.bf16.mxu1 %v8124_v16  ;;  %v10077_v27 = vpop.f32.mrf.mxu1  ;;  %v8194_v16 = vld [vmem:[%s8908_s19 + $0x24] ss:$8 sps:$4 sm:$0xff]  }
 0x139   : > { %3310 = vmatpush2.bf16.msra.mxu0 %v8119_v43  ;;  %v8179_v43 = vld [vmem:[%s11251_s4 + $0xa60] ss:$8 sps:$4 sm:$0xff]  }
 0x13a   : > { %3640 = vmatpush2.bf16.msra.mxu1 %v8122_v55  ;;  %3311 = vmatprep.subr.bf16.mxu0 %v8127_v51  ;;  %v8182_v55 = vld [vmem:[%s11251_s4 + $0xb60] ss:$8 sps:$4 sm:$0xff]  }
 0x13b   : > { %3641 = vmatprep.subr.bf16.mxu1 %v8130_v57 }
 0x13d   : > { %3312 = vmatpush2.bf16.msra.mxu0 %v8125_v63  ;;  %v8193_v63 = vld [vmem:[%s11251_s4 + $0xb54] ss:$8 sps:$4 sm:$0xff]  }
 0x13e   : > { %3642 = vmatpush2.bf16.msra.mxu1 %v8128_v7  ;;  %3313 = vmatprep.subr.bf16.mxu0 %v8133_v13 }
 0x13f   : > { %3643 = vmatprep.subr.bf16.mxu1 %v8136_v49  ;;  %v8188_v49 = vld [vmem:[%s11251_s4 + $0xa50] ss:$8 sps:$4 sm:$0xff]  }
 0x141   : > { %3314 = vmatpush2.bf16.msra.mxu0 %v8131_v20 }
 0x142   : > { %3644 = vmatpush2.bf16.msra.mxu1 %v8134_v23  ;;  %3315 = vmatprep.subr.bf16.mxu0 %v8139_v26  ;;  %v8191_v26 = vld [vmem:[%s11251_s4 + $0xb50] ss:$8 sps:$4 sm:$0xff]  }
 0x143   : > { %3645 = vmatprep.subr.bf16.mxu1 %v8142_v53  ;;  %v8196_v53 = vld [vmem:[%s8908_s19 + $0x20] ss:$8 sps:$4 sm:$0xff]  }
 0x145   : > { %3316 = vmatpush2.bf16.msra.mxu0 %v8137_v40 }
 0x146   : > { %3646 = vmatpush2.bf16.msra.mxu1 %v8140_v2  ;;  %3317 = vmatprep.subr.bf16.mxu0 %v8145_v36  ;;  %v8199_v2 = vld [vmem:[%s11251_s4 + $0xa44] ss:$8 sps:$4 sm:$0xff]  }
 0x147   : > { %3647 = vmatprep.subr.bf16.mxu1 %v8148_v38 }
 0x149   : > { %3318 = vmatpush2.bf16.msra.mxu0 %v8143_v41  ;;  %v8202_v41 = vld [vmem:[%s11251_s4 + $0xb44] ss:$8 sps:$4 sm:$0xff]  }
 0x14a   : > { %3648 = vmatpush2.bf16.msra.mxu1 %v8146_v47  ;;  %3319 = vmatprep.subr.bf16.mxu0 %v8151_v1  ;;  %v8203_v1 = vld [vmem:[%s8917_s12 + $0x34] ss:$8 sps:$4 sm:$0xff]  }
 0x14b   : > { %3649 = vmatprep.subr.bf16.mxu1 %v8154_v25 }
 0x14d   : > { %3320 = vmatpush2.bf16.msra.mxu0 %v8149_v31 }
 0x14e   : > { %3650 = vmatpush2.bf16.msra.mxu1 %v8152_v6  ;;  %3321 = vmatprep.subr.bf16.mxu0 %v8157_v58  ;;  %v8197_v6 = vld [vmem:[%s11251_s4 + $0xa40] ss:$8 sps:$4 sm:$0xff]  }
 0x14f   : > { %3651 = vmatprep.subr.bf16.mxu1 %v8160_v0  ;;  %v8200_v58 = vld [vmem:[%s11251_s4 + $0xb40] ss:$8 sps:$4 sm:$0xff]  }
 0x151   : > { %3322 = vmatpush2.bf16.msra.mxu0 %v8155_v48  ;;  %v8208_v48 = vld [vmem:[%s11251_s4 + $0xa34] ss:$8 sps:$4 sm:$0xff]  }
 0x152   : > { %3652 = vmatpush2.bf16.msra.mxu1 %v8158_v54  ;;  %3323 = vmatprep.subr.bf16.mxu0 %v8163_v8 }
 0x153   : > { %3653 = vmatprep.subr.bf16.mxu1 %v8166_v11  ;;  %v8211_v11 = vld [vmem:[%s11251_s4 + $0xb34] ss:$8 sps:$4 sm:$0xff]  }
 0x155   : > { %3324 = vmatpush2.bf16.msra.mxu0 %v8161_v61 }
 0x156   : > { %3654 = vmatpush2.bf16.msra.mxu1 %v8164_v12  ;;  %3953 = vmatprep.subr.bf16.mxu0 %v8175_v21  ;;  %v8206_v21 = vld [vmem:[%s11251_s4 + $0xa30] ss:$8 sps:$4 sm:$0xff]  }
 0x157   : > { %4283 = vmatprep.subr.bf16.mxu1 %v8178_v37 }
 0x158   : > { %v1347_v45 = vpop.f32.mrf.mxu0  ;;  %3326 = vmatmul.mubr.bf16.vlgmr.msra.gmra.mxu0 %v8167_v39 }
 0x159   : > { %v1677_v50 = vpop.f32.mrf.mxu1  ;;  %3656 = vmatmul.mubr.bf16.vlgmr.msra.gmra.mxu1 %v8170_v59  ;;  %v1386_v60 = vadd.f32 %v1347_v45, %v9824_v44  ;;  %3954 = vmatpush1.bf16.msra.mxu0 %v8173_v24  ;;  %v8187_v44 = vld [vmem:[%s8917_s12 + $0x20] ss:$8 sps:$4 sm:$0xff]   ;;  %v8209_v59 = vld [vmem:[%s11251_s4 + $0xb30] ss:$8 sps:$4 sm:$0xff]  }
 0x15a   : > { %4284 = vmatpush1.bf16.msra.mxu1 %v8176_v29  ;;  %v1349_v51 = vpop.f32.mrf.mxu0  ;;  %3955 = vmatprep.subr.bf16.mxu0 %v8181_v30  ;;  %v8214_v24 = vld [vmem:[%s8908_s19 + $0x30] ss:$8 sps:$4 sm:$0xff]   ;;  %v8217_v30 = vld [vmem:[%s11251_s4 + $0xa24] ss:$8 sps:$4 sm:$0xff]  }
 0x15b   : > { %v1679_v57 = vpop.f32.mrf.mxu1  ;;  %4285 = vmatprep.subr.bf16.mxu1 %v8184_v35  ;;  %v10097_v7 = vadd.f32 %v1677_v50, %v1386_v60  ;;  %v1387_v13 = vadd.f32 %v1349_v51, %v9832_v32  ;;  %3335 = vmatprep.mubr.bf16.mxu0 %v8185_v17  ;;  %v8230_v50 = vld [vmem:[%s8908_s19 + $0x44] ss:$8 sps:$4 sm:$0xff]   ;;  %v8215_v60 = vld [vmem:[%s11251_s4 + $0xa20] ss:$8 sps:$4 sm:$0xff]  }
 0x15c   : > { %3665 = vmatprep.mubr.bf16.mxu1 %v8194_v16  ;;  %v1351_v20 = vpop.f32.mrf.mxu0  ;;  %v8220_v16 = vld [vmem:[%s11251_s4 + $0xb24] ss:$8 sps:$4 sm:$0xff]  }
 0x15d   : > { %v1681_v23 = vpop.f32.mrf.mxu1  ;;  %v10108_v40 = vadd.f32 %v1679_v57, %v1387_v13  ;;  %v1388_v32 = vadd.f32 %v1351_v20, %v9846_v52  ;;  %3956 = vmatpush1.bf16.msra.mxu0 %v8179_v43  ;;  %v8212_v52 = vld [vmem:[%s8908_s19 + $0x34] ss:$8 sps:$4 sm:$0xff]  }
 0x15e   : > { %4286 = vmatpush1.bf16.msra.mxu1 %v8182_v55  ;;  %v10114_v36 = vpop.f32.mrf.mxu0  ;;  %3957 = vmatprep.subr.bf16.mxu0 %v8190_v62  ;;  %v8218_v62 = vld [vmem:[%s11251_s4 + $0xb20] ss:$8 sps:$4 sm:$0xff]   ;;  %v8226_v57 = vld [vmem:[%s11251_s4 + $0xa14] ss:$8 sps:$4 sm:$0xff]  }
 0x15f   : > { %v10116_v38 = vpop.f32.mrf.mxu1  ;;  %4287 = vmatprep.subr.bf16.mxu1 %v8193_v63  ;;  %v10121_v47 = vadd.f32 %v1681_v23, %v1388_v32  ;;  %v8224_v23 = vld [vmem:[%s11251_s4 + $0xa10] ss:$8 sps:$4 sm:$0xff]  }
 0x160   : > { %v1357_v25 = vpop.f32.mrf.mxu0  ;;  %3336 = vmatmul.mubr.bf16.gmra.mxu0 %v8187_v44  ;;  %v8229_v44 = vld [vmem:[%s11251_s4 + $0xb14] ss:$8 sps:$4 sm:$0xff]   ;;  %v8227_v32 = vld [vmem:[%s11251_s4 + $0xb10] ss:$8 sps:$4 sm:$0xff]  }
 0x161   : > { %v1687_v31 = vpop.f32.mrf.mxu1  ;;  %3666 = vmatmul.mubr.bf16.gmra.mxu1 %v8196_v53  ;;  %v1390_v0 = vadd.f32 %v1357_v25, %v9873_v33  ;;  %3958 = vmatpush1.bf16.msra.mxu0 %v8188_v49  ;;  %v8205_v33 = vld [vmem:[%s8917_s12 + $0x30] ss:$8 sps:$4 sm:$0xff]  }
 0x162   : > { %4288 = vmatpush1.bf16.msra.mxu1 %v8191_v26  ;;  %v1359_v54 = vpop.f32.mrf.mxu0  ;;  %3959 = vmatprep.subr.bf16.mxu0 %v8199_v2  ;;  %v8232_v2 = vld [vmem:[%s8908_s19 + $0x40] ss:$8 sps:$4 sm:$0xff]  }
 0x163   : > { %v1689_v8 = vpop.f32.mrf.mxu1  ;;  %4289 = vmatprep.subr.bf16.mxu1 %v8202_v41  ;;  %v1391_v61 = vadd.f32 %v1359_v54, %v9890_v18  ;;  %v10139_v12 = vadd.f32 %v1687_v31, %v1390_v0  ;;  %3345 = vmatprep.mubr.bf16.mxu0 %v8203_v1  ;;  %v8233_v54 = vld [vmem:[%s11251_s4 + $0xa00] ss:$8 sps:$4 sm:$0xff]  }
 0x164   : > { %3675 = vmatprep.mubr.bf16.mxu1 %v8212_v52  ;;  %v1361_v37 = vpop.f32.mrf.mxu0  ;;  %v8235_v52 = vld [vmem:[%s11251_s4 + $0xa04] ss:$8 sps:$4 sm:$0xff]  }
 0x165   : > { %v1691_v39 = vpop.f32.mrf.mxu1  ;;  %v1392_v18 = vadd.f32 %v1361_v37, %v9897_v46  ;;  %v10150_v29 = vadd.f32 %v1689_v8, %v1391_v61  ;;  %3960 = vmatpush1.bf16.msra.mxu0 %v8197_v6  ;;  %v8221_v46 = vld [vmem:[%s8917_s12 + $0x44] ss:$8 sps:$4 sm:$0xff]   ;;  %v8236_v8 = vld [vmem:[%s11251_s4 + $0xb00] ss:$8 sps:$4 sm:$0xff]  }
 0x166   : > { %4290 = vmatpush1.bf16.msra.mxu1 %v8200_v58  ;;  %v10155_v35 = vpop.f32.mrf.mxu0  ;;  %3961 = vmatprep.subr.bf16.mxu0 %v8208_v48  ;;  %v8238_v6 = vld [vmem:[%s11251_s4 + $0xb04] ss:$8 sps:$4 sm:$0xff]  }
 0x167   : > { %v10157_v17 = vpop.f32.mrf.mxu1  ;;  %4291 = vmatprep.subr.bf16.mxu1 %v8211_v11  ;;  %v10162_v45 = vadd.f32 %v1691_v39, %v1392_v18  ;;  %v8244_v39 = vld [vmem:[%s11251_s4 + $0xbf4] ss:$8 sps:$4 sm:$0xff]  }
 0x168   : > { %v1367_v43 = vpop.f32.mrf.mxu0  ;;  %3346 = vmatmul.mubr.bf16.gmra.mxu0 %v8205_v33  ;;  %v8241_v33 = vld [vmem:[%s11251_s4 + $0xaf4] ss:$8 sps:$4 sm:$0xff]  }
 0x169   : > { %v1697_v55 = vpop.f32.mrf.mxu1  ;;  %3676 = vmatmul.mubr.bf16.gmra.mxu1 %v8214_v24  ;;  %v1394_v51 = vadd.f32 %v1367_v43, %v9923_v34  ;;  %3962 = vmatpush1.bf16.msra.mxu0 %v8206_v21  ;;  %v8223_v34 = vld [vmem:[%s8917_s12 + $0x40] ss:$8 sps:$4 sm:$0xff]   ;;  %v8247_v43 = vld [vmem:[%s11251_s4 + $0xae4] ss:$8 sps:$4 sm:$0xff]  }
 0x16a   : > { %4292 = vmatpush1.bf16.msra.mxu1 %v8209_v59  ;;  %v1369_v63 = vpop.f32.mrf.mxu0  ;;  %3963 = vmatprep.subr.bf16.mxu0 %v8217_v30  ;;  %v8239_v30 = vld [vmem:[%s11251_s4 + $0xaf0] ss:$8 sps:$4 sm:$0xff]  }
 0x16b   : > { %v1699_v13 = vpop.f32.mrf.mxu1  ;;  %4293 = vmatprep.subr.bf16.mxu1 %v8220_v16  ;;  %v1395_v49 = vadd.f32 %v1369_v63, %v9928_v9  ;;  %v10180_v20 = vadd.f32 %v1697_v55, %v1394_v51  ;;  %3355 = vmatprep.mubr.bf16.mxu0 %v8221_v46  ;;  %v1060_v9 = vadd.f32 %v9946_v4, %v9944_v3  ;;  %v8292_v4 = vld [vmem:[%s9161_s29 + $0x14] ss:$8 sps:$4 sm:$0xff]   ;;  %v8242_v16 = vld [vmem:[%s11251_s4 + $0xbf0] ss:$8 sps:$4 sm:$0xff]  }
 0x16c   : > { %3685 = vmatprep.mubr.bf16.mxu1 %v8230_v50  ;;  %v1371_v26 = vpop.f32.mrf.mxu0  ;;  %v1070_v46 = vadd.f32 %v10077_v27, %v10075_v15  ;;  %v8248_v27 = vld [vmem:[%s11251_s4 + $0xbe0] ss:$8 sps:$4 sm:$0xff]   ;;  %v8253_v63 = vld [vmem:[%s11251_s4 + $0xad4] ss:$8 sps:$4 sm:$0xff]  }
 0x16d   : > { %v1701_v53 = vpop.f32.mrf.mxu1  ;;  %v1396_v41 = vadd.f32 %v1371_v26, %v9939_v56  ;;  %v10193_v1 = vadd.f32 %v1699_v13, %v1395_v49  ;;  %3964 = vmatpush1.bf16.msra.mxu0 %v8215_v60  ;;  %v8289_v56 = vld [vmem:[%s9152_s15 + $0x14] ss:$8 sps:$4 sm:$0xff]   ;;  %v8254_v49 = vld [vmem:[%s11251_s4 + $0xbd0] ss:$8 sps:$4 sm:$0xff]   ;;  %v8257_v26 = vld [vmem:[%s11251_s4 + $0xac0] ss:$8 sps:$4 sm:$0xff]  }
 0x16e   : > { %4294 = vmatpush1.bf16.msra.mxu1 %v8218_v62  ;;  %v1373_v25 = vpop.f32.mrf.mxu0  ;;  %3965 = vmatprep.subr.bf16.mxu0 %v8226_v57  ;;  %v8250_v62 = vld [vmem:[%s11251_s4 + $0xbe4] ss:$8 sps:$4 sm:$0xff]   ;;  %v8256_v13 = vld [vmem:[%s11251_s4 + $0xbd4] ss:$8 sps:$4 sm:$0xff]  }
 0x16f   : > { %v1703_v31 = vpop.f32.mrf.mxu1  ;;  %4295 = vmatprep.subr.bf16.mxu1 %v8229_v44  ;;  %v1397_v58 = vadd.f32 %v1373_v25, %v1060_v9  ;;  %v10201_v3 = vadd.f32 %v1701_v53, %v1396_v41  ;;  %v8251_v44 = vld [vmem:[%s11251_s4 + $0xad0] ss:$8 sps:$4 sm:$0xff]   ;;  %v8260_v53 = vld [vmem:[%s11251_s4 + $0xbc0] ss:$8 sps:$4 sm:$0xff]   ;;  %v8274_v25 = vld [vmem:[%s11251_s4 + $0xba4] ss:$8 sps:$4 sm:$0xff]  }
 0x170   : > { %v1377_v0 = vpop.f32.mrf.mxu0  ;;  %3356 = vmatmul.mubr.bf16.gmra.mxu0 %v8223_v34  ;;  %v8259_v34 = vld [vmem:[%s11251_s4 + $0xac4] ss:$8 sps:$4 sm:$0xff]   ;;  %v8263_v9 = vld [vmem:[%s11251_s4 + $0xab0] ss:$8 sps:$4 sm:$0xff]  }
 0x171   : > { %v1707_v48 = vpop.f32.mrf.mxu1  ;;  %3686 = vmatmul.mubr.bf16.gmra.mxu1 %v8232_v2  ;;  %v1398_v11 = vadd.f32 %v1377_v0, %v9959_v14  ;;  %v10212_v61 = vadd.f32 %v1703_v31, %v1397_v58  ;;  %3966 = vmatpush1.bf16.msra.mxu0 %v8224_v23  ;;  %v8262_v23 = vld [vmem:[%s11251_s4 + $0xbc4] ss:$8 sps:$4 sm:$0xff]   ;;  %v8268_v2 = vld [vmem:[%s11251_s4 + $0xbb4] ss:$8 sps:$4 sm:$0xff]   ;;  %v8266_v41 = vld [vmem:[%s11251_s4 + $0xbb0] ss:$8 sps:$4 sm:$0xff]  }
 0x172   : > { %4296 = vmatpush1.bf16.msra.mxu1 %v8227_v32  ;;  %v1379_v21 = vpop.f32.mrf.mxu0  ;;  %3967 = vmatprep.subr.bf16.mxu0 %v8235_v52  ;;  %v8265_v32 = vld [vmem:[%s11251_s4 + $0xab4] ss:$8 sps:$4 sm:$0xff]   ;;  %v8271_v52 = vld [vmem:[%s11251_s4 + $0xaa4] ss:$8 sps:$4 sm:$0xff]   ;;  %v8269_v31 = vld [vmem:[%s11251_s4 + $0xaa0] ss:$8 sps:$4 sm:$0xff]  }
 0x173   : > { %v1709_v37 = vpop.f32.mrf.mxu1  ;;  %4297 = vmatprep.subr.bf16.mxu1 %v8238_v6  ;;  %v1399_v59 = vadd.f32 %v1379_v21, %v9964_v5  ;;  %v10221_v24 = vadd.f32 %v1707_v48, %v1398_v11  ;;  %3985 = vmatprep.mubr.bf16.mxu0 %v8289_v56  ;;  %v8272_v6 = vld [vmem:[%s11251_s4 + $0xba0] ss:$8 sps:$4 sm:$0xff]   ;;  %v8277_v58 = vld [vmem:[%s11251_s4 + $0xa94] ss:$8 sps:$4 sm:$0xff]   ;;  %v8278_v0 = vld [vmem:[%s11251_s4 + $0xb90] ss:$8 sps:$4 sm:$0xff]  }
 0x174   : > { %4315 = vmatprep.mubr.bf16.mxu1 %v8292_v4  ;;  %v1381_v14 = vpop.f32.mrf.mxu0  ;;  %v8280_v56 = vld [vmem:[%s11251_s4 + $0xb94] ss:$8 sps:$4 sm:$0xff]   ;;  %v8275_v4 = vld [vmem:[%s11251_s4 + $0xa90] ss:$8 sps:$4 sm:$0xff]   ;;  %v8283_v48 = vld [vmem:[%s11251_s4 + $0xa84] ss:$8 sps:$4 sm:$0xff]  }
 0x175   : > { %v1711_v18 = vpop.f32.mrf.mxu1  ;;  %v1400_v50 = vadd.f32 %v1381_v14, %v9975_v28  ;;  %v10232_v5 = vadd.f32 %v1709_v37, %v1399_v59  ;;  %3968 = vmatpush1.bf16.msra.mxu0 %v8233_v54  ;;  %v8245_v28 = vld [vmem:[%s11251_s4 + $0xae0] ss:$8 sps:$4 sm:$0xff]   ;;  %v8286_v54 = vld [vmem:[%s11251_s4 + $0xb84] ss:$8 sps:$4 sm:$0xff]   ;;  %v8298_v21 = vld [vmem:[%s11251_s4 + $0xd74] ss:$8 sps:$4 sm:$0xff]  }
 0x176   : > { %4298 = vmatpush1.bf16.msra.mxu1 %v8236_v8  ;;  %v1383_v55 = vpop.f32.mrf.mxu0  ;;  %3969 = vmatprep.subr.bf16.mxu0 %v8241_v33  ;;  %v8281_v8 = vld [vmem:[%s11251_s4 + $0xa80] ss:$8 sps:$4 sm:$0xff]   ;;  %v8295_v33 = vld [vmem:[%s11251_s4 + $0xc74] ss:$8 sps:$4 sm:$0xff]   ;;  %v8287_v37 = vld [vmem:[%s9152_s15 + $0x10] ss:$8 sps:$4 sm:$0xff]  }
 0x177   : > { %v1713_v60 = vpop.f32.mrf.mxu1  ;;  %4299 = vmatprep.subr.bf16.mxu1 %v8244_v39  ;;  %v1401_v51 = vadd.f32 %v1383_v55, %v1070_v46  ;;  %v10240_v15 = vadd.f32 %v1711_v18, %v1400_v50  ;;  %v8284_v11 = vld [vmem:[%s11251_s4 + $0xb80] ss:$8 sps:$4 sm:$0xff]   ;;  %v8290_v39 = vld [vmem:[%s9161_s29 + $0x10] ss:$8 sps:$4 sm:$0xff]   ;;  %v8301_v18 = vld [vmem:[%s11251_s4 + $0xc64] ss:$8 sps:$4 sm:$0xff]  }
 0x178   : > { %v8293_v59 = vld [vmem:[%s11251_s4 + $0xc70] ss:$8 sps:$4 sm:$0xff]   ;;  %v8299_v46 = vld [vmem:[%s11251_s4 + $0xc60] ss:$8 sps:$4 sm:$0xff]   ;;  %v8314_v55 = vld [vmem:[%s9161_s29 + $0x24] ss:$8 sps:$4 sm:$0xff]  }
 0x179   : > { %v10248_v57 = vadd.f32 %v1713_v60, %v1401_v51  ;;  %3970 = vmatpush2.bf16.msra.mxu0 %v8239_v30  ;;  %v8296_v14 = vld [vmem:[%s11251_s4 + $0xd70] ss:$8 sps:$4 sm:$0xff]   ;;  %v8304_v30 = vld [vmem:[%s11251_s4 + $0xd64] ss:$8 sps:$4 sm:$0xff]   ;;  %v8302_v50 = vld [vmem:[%s11251_s4 + $0xd60] ss:$8 sps:$4 sm:$0xff]  }
 0x17a   : > { %4300 = vmatpush2.bf16.msra.mxu1 %v8242_v16  ;;  %3971 = vmatprep.subr.bf16.mxu0 %v8247_v43  ;;  %v1040_v16 = vadd.f32 %v9853_v10, %v9851_v42  ;;  %v8305_v43 = vld [vmem:[%s9152_s15 + $0x24] ss:$8 sps:$4 sm:$0xff]   ;;  %v8310_v42 = vld [vmem:[%s11251_s4 + $0xc54] ss:$8 sps:$4 sm:$0xff]  }
 0x17b   : > { %4301 = vmatprep.subr.bf16.mxu1 %v8250_v62  ;;  %v8313_v10 = vld [vmem:[%s11251_s4 + $0xd54] ss:$8 sps:$4 sm:$0xff]  }
 0x17c   : > { %v1389_v51 = vadd.f32 %v10114_v36, %v1040_v16 }
 0x17d   : > { %3972 = vmatpush2.bf16.msra.mxu0 %v8245_v28 }
 0x17e   : > { %4302 = vmatpush2.bf16.msra.mxu1 %v8248_v27  ;;  %3973 = vmatprep.subr.bf16.mxu0 %v8253_v63 }
 0x17f   : > { %4303 = vmatprep.subr.bf16.mxu1 %v8256_v13  ;;  %v8307_v13 = vld [vmem:[%s9152_s15 + $0x20] ss:$8 sps:$4 sm:$0xff]  }
 0x181   : > { %3974 = vmatpush2.bf16.msra.mxu0 %v8251_v44  ;;  %v8316_v44 = vld [vmem:[%s9161_s29 + $0x20] ss:$8 sps:$4 sm:$0xff]  }
 0x182   : > { %4304 = vmatpush2.bf16.msra.mxu1 %v8254_v49  ;;  %3975 = vmatprep.subr.bf16.mxu0 %v8259_v34 }
 0x183   : > { %4305 = vmatprep.subr.bf16.mxu1 %v8262_v23  ;;  %v8308_v23 = vld [vmem:[%s11251_s4 + $0xc50] ss:$8 sps:$4 sm:$0xff]  }
 0x185   : > { %3976 = vmatpush2.bf16.msra.mxu0 %v8257_v26 }
 0x186   : > { %4306 = vmatpush2.bf16.msra.mxu1 %v8260_v53  ;;  %3977 = vmatprep.subr.bf16.mxu0 %v8265_v32  ;;  %v1719_v53 = vadd.f32 %v10116_v38, %v1389_v51  ;;  %v8332_v38 = vld [vmem:[%s9161_s29 + $0x34] ss:$8 sps:$4 sm:$0xff]  }
 0x187   : > { %4307 = vmatprep.subr.bf16.mxu1 %v8268_v2  ;;  %v8319_v2 = vld [vmem:[%s11251_s4 + $0xc44] ss:$8 sps:$4 sm:$0xff]  }
 0x189   : > { %3978 = vmatpush2.bf16.msra.mxu0 %v8263_v9  ;;  %v8322_v9 = vld [vmem:[%s11251_s4 + $0xd44] ss:$8 sps:$4 sm:$0xff]  }
 0x18a   : > { %4308 = vmatpush2.bf16.msra.mxu1 %v8266_v41  ;;  %3979 = vmatprep.subr.bf16.mxu0 %v8271_v52 }
 0x18b   : > { %4309 = vmatprep.subr.bf16.mxu1 %v8274_v25  ;;  %v8323_v25 = vld [vmem:[%s9152_s15 + $0x34] ss:$8 sps:$4 sm:$0xff]  }
 0x18d   : > { %3980 = vmatpush2.bf16.msra.mxu0 %v8269_v31  ;;  %v1050_v31 = vadd.f32 %v9904_v19, %v9902_v22  ;;  %v8328_v22 = vld [vmem:[%s11251_s4 + $0xc34] ss:$8 sps:$4 sm:$0xff]  }
 0x18e   : > { %4310 = vmatpush2.bf16.msra.mxu1 %v8272_v6  ;;  %3981 = vmatprep.subr.bf16.mxu0 %v8277_v58  ;;  %v8317_v58 = vld [vmem:[%s11251_s4 + $0xc40] ss:$8 sps:$4 sm:$0xff]   ;;  %v8331_v19 = vld [vmem:[%s11251_s4 + $0xd34] ss:$8 sps:$4 sm:$0xff]  }
 0x18f   : > { %4311 = vmatprep.subr.bf16.mxu1 %v8280_v56  ;;  %v8320_v56 = vld [vmem:[%s11251_s4 + $0xd40] ss:$8 sps:$4 sm:$0xff]  }
 0x191   : > { %3982 = vmatpush2.bf16.msra.mxu0 %v8275_v4 }
 0x192   : > { %4312 = vmatpush2.bf16.msra.mxu1 %v8278_v0  ;;  %3983 = vmatprep.subr.bf16.mxu0 %v8283_v48  ;;  %v1393_v48 = vadd.f32 %v10155_v35, %v1050_v31 }
 0x193   : > { %4313 = vmatprep.subr.bf16.mxu1 %v8286_v54 }
 0x195   : > { %3984 = vmatpush2.bf16.msra.mxu0 %v8281_v8 }
 0x196   : > { %4314 = vmatpush2.bf16.msra.mxu1 %v8284_v11  ;;  %4613 = vmatprep.subr.bf16.mxu0 %v8295_v33 }
 0x197   : > { %4943 = vmatprep.subr.bf16.mxu1 %v8298_v21  ;;  %v8325_v21 = vld [vmem:[%s9152_s15 + $0x30] ss:$8 sps:$4 sm:$0xff]  }
 0x198   : > { %v2007_v60 = vpop.f32.mrf.mxu0  ;;  %3986 = vmatmul.mubr.bf16.vlgmr.msra.gmra.mxu0 %v8287_v37  ;;  %v8334_v37 = vld [vmem:[%s9161_s29 + $0x30] ss:$8 sps:$4 sm:$0xff]  }
 0x199   : > { %v2337_v62 = vpop.f32.mrf.mxu1  ;;  %4316 = vmatmul.mubr.bf16.vlgmr.msra.gmra.mxu1 %v8290_v39  ;;  %v2046_v28 = vadd.f32 %v2007_v60, %v10097_v7  ;;  %4614 = vmatpush1.bf16.msra.mxu0 %v8293_v59  ;;  %v8311_v7 = vld [vmem:[%s11251_s4 + $0xd50] ss:$8 sps:$4 sm:$0xff]   ;;  %v10406_v39 = vld [vmem:[%s9152_s15 + $0x40] sm:$0xff]  ;;  %v10409_v59 = vld [vmem:[%s9152_s15 + $0x48] sm:$0xff] }
 0x19a   : > { %4944 = vmatpush1.bf16.msra.mxu1 %v8296_v14  ;;  %v2009_v27 = vpop.f32.mrf.mxu0  ;;  %4615 = vmatprep.subr.bf16.mxu0 %v8301_v18  ;;  %v8329_v18 = vld [vmem:[%s11251_s4 + $0xd30] ss:$8 sps:$4 sm:$0xff]  }
 0x19b   : > { %v2339_v63 = vpop.f32.mrf.mxu1  ;;  %4945 = vmatprep.subr.bf16.mxu1 %v8304_v30  ;;  %v10362_v49 = vadd.f32 %v2337_v62, %v2046_v28  ;;  %v2047_v34 = vadd.f32 %v2009_v27, %v10108_v40  ;;  %3995 = vmatprep.mubr.bf16.mxu0 %v8305_v43  ;;  %v4049_v43 = vld [vmem:[%s9161_s29 + $0x48] sm:$0xff] }
 0x19c   : > { %4325 = vmatprep.mubr.bf16.mxu1 %v8314_v55  ;;  %v2011_v36 = vpop.f32.mrf.mxu0  ;;  %v1723_v55 = vadd.f32 %v10157_v17, %v1393_v48  ;;  %v8335_v27 = vld [vmem:[%s11251_s4 + $0xc20] ss:$8 sps:$4 sm:$0xff]  }
 0x19d   : > { %v2341_v26 = vpop.f32.mrf.mxu1  ;;  %v10372_v32 = vadd.f32 %v2339_v63, %v2047_v34  ;;  %v2048_v40 = vadd.f32 %v2011_v36, %v10121_v47  ;;  %4616 = vmatpush1.bf16.msra.mxu0 %v8299_v46  ;;  %v8337_v46 = vld [vmem:[%s11251_s4 + $0xc24] ss:$8 sps:$4 sm:$0xff]   ;;  %v8338_v17 = vld [vmem:[%s11251_s4 + $0xd20] ss:$8 sps:$4 sm:$0xff]   ;;  %v8345_v34 = vld [vmem:[%s11251_s4 + $0xc14] ss:$8 sps:$4 sm:$0xff]  }
 0x19e   : > { %4946 = vmatpush1.bf16.msra.mxu1 %v8302_v50  ;;  %v2013_v41 = vpop.f32.mrf.mxu0  ;;  %4617 = vmatprep.subr.bf16.mxu0 %v8310_v42  ;;  %v10427_v50 = vld [vmem:[%s9161_s29 + $0x40] sm:$0xff] }
 0x19f   : > { %v2343_v52 = vpop.f32.mrf.mxu1  ;;  %4947 = vmatprep.subr.bf16.mxu1 %v8313_v10  ;;  %v10385_v47 = vadd.f32 %v2341_v26, %v2048_v40  ;;  %v2049_v6 = vadd.f32 %v2013_v41, %v1719_v53  ;;  %v7144_v63 = vcombine.high %v10427_v50, %v4049_v43  ;;  %v8351_v48 = vld [vmem:[%s11251_s4 + $0xc00] ss:$8 sps:$4 sm:$0xff]  }
 0x1a0   : > { %v2017_v4 = vpop.f32.mrf.mxu0  ;;  %3996 = vmatmul.mubr.bf16.gmra.mxu0 %v8307_v13 }
 0x1a1   : > { %v2347_v0 = vpop.f32.mrf.mxu1  ;;  %4326 = vmatmul.mubr.bf16.gmra.mxu1 %v8316_v44  ;;  %v10400_v54 = vadd.f32 %v2343_v52, %v2049_v6  ;;  %v2050_v8 = vadd.f32 %v2017_v4, %v10139_v12  ;;  %4618 = vmatpush1.bf16.msra.mxu0 %v8308_v23  ;;  %v8326_v12 = vld [vmem:[%s11251_s4 + $0xc30] ss:$8 sps:$4 sm:$0xff]   ;;  %v8348_v23 = vld [vmem:[%s11251_s4 + $0xd14] ss:$8 sps:$4 sm:$0xff]   ;;  %v8353_v6 = vld [vmem:[%s11251_s4 + $0xc04] ss:$8 sps:$4 sm:$0xff]  }
 0x1a2   : > { %4948 = vmatpush1.bf16.msra.mxu1 %v8311_v7  ;;  %v2019_v11 = vpop.f32.mrf.mxu0  ;;  %4619 = vmatprep.subr.bf16.mxu0 %v8319_v2 }
 0x1a3   : > { %v2349_v33 = vpop.f32.mrf.mxu1  ;;  %4949 = vmatprep.subr.bf16.mxu1 %v8322_v9  ;;  %v2051_v35 = vadd.f32 %v2019_v11, %v10150_v29  ;;  %v10412_v14 = vadd.f32 %v2347_v0, %v2050_v8  ;;  %4005 = vmatprep.mubr.bf16.mxu0 %v8323_v25  ;;  %v8340_v29 = vld [vmem:[%s11251_s4 + $0xd24] ss:$8 sps:$4 sm:$0xff]   ;;  %v8343_v9 = vld [vmem:[%s11251_s4 + $0xc10] ss:$8 sps:$4 sm:$0xff]   ;;  %v7071_v25 = vcombine.low %v10406_v39, %v10409_v59  ;;  %v8354_v8 = vld [vmem:[%s11251_s4 + $0xd00] ss:$8 sps:$4 sm:$0xff]  }
 0x1a4   : > { %4335 = vmatprep.mubr.bf16.mxu1 %v8332_v38  ;;  %v2021_v30 = vpop.f32.mrf.mxu0  ;;  %v8407_v0 = vld [vmem:[%s8917_s12 + $0x1c] ss:$8 sps:$4 sm:$0xff]  }
 0x1a5   : > { %v2351_v16 = vpop.f32.mrf.mxu1  ;;  %v2052_v60 = vadd.f32 %v2021_v30, %v10162_v45  ;;  %v10432_v62 = vadd.f32 %v2349_v33, %v2051_v35  ;;  %4620 = vmatpush1.bf16.msra.mxu0 %v8317_v58  ;;  %v7072_v45 = vcombine.high %v10406_v39, %v10409_v59  ;;  %v8356_v58 = vld [vmem:[%s11251_s4 + $0xd04] ss:$8 sps:$4 sm:$0xff]  }
 0x1a6   : > { %4950 = vmatpush1.bf16.msra.mxu1 %v8320_v56  ;;  %v2023_v42 = vpop.f32.mrf.mxu0  ;;  %4621 = vmatprep.subr.bf16.mxu0 %v8328_v22  ;;  %v8410_v22 = vld [vmem:[%s8908_s19 + $0x1c] ss:$8 sps:$4 sm:$0xff]  }
 0x1a7   : > { %v2353_v10 = vpop.f32.mrf.mxu1  ;;  %4951 = vmatprep.subr.bf16.mxu1 %v8331_v19  ;;  %v2053_v51 = vadd.f32 %v2023_v42, %v1723_v55  ;;  %v10434_v28 = vadd.f32 %v2351_v16, %v2052_v60  ;;  %v8357_v16 = vld [vmem:[%s11251_s4 + $0xcf0] ss:$8 sps:$4 sm:$0xff]  }
 0x1a8   : > { %v2027_v13 = vpop.f32.mrf.mxu0  ;;  %4006 = vmatmul.mubr.bf16.gmra.mxu0 %v8325_v21  ;;  %v8359_v21 = vld [vmem:[%s11251_s4 + $0xcf4] ss:$8 sps:$4 sm:$0xff]  }
 0x1a9   : > { %v2357_v44 = vpop.f32.mrf.mxu1  ;;  %4336 = vmatmul.mubr.bf16.gmra.mxu1 %v8334_v37  ;;  %v2054_v7 = vadd.f32 %v2027_v13, %v10180_v20  ;;  %v10452_v36 = vadd.f32 %v2353_v10, %v2053_v51  ;;  %4622 = vmatpush1.bf16.msra.mxu0 %v8326_v12  ;;  %v8346_v20 = vld [vmem:[%s11251_s4 + $0xd10] ss:$8 sps:$4 sm:$0xff]  }
 0x1aa   : > { %4952 = vmatpush1.bf16.msra.mxu1 %v8329_v18  ;;  %v2029_v26 = vpop.f32.mrf.mxu0  ;;  %4623 = vmatprep.subr.bf16.mxu0 %v8337_v46  ;;  %v8369_v13 = vld [vmem:[%s11251_s4 + $0xcd0] ss:$8 sps:$4 sm:$0xff]  }
 0x1ab   : > { %v2359_v53 = vpop.f32.mrf.mxu1  ;;  %4953 = vmatprep.subr.bf16.mxu1 %v8340_v29  ;;  %v2055_v40 = vadd.f32 %v2029_v26, %v10193_v1  ;;  %v10455_v2 = vadd.f32 %v2357_v44, %v2054_v7  ;;  %4015 = vmatprep.mubr.bf16.mxu0 %v7072_v45  ;;  %v7143_v1 = vcombine.low %v10427_v50, %v4049_v43  ;;  %v8365_v43 = vld [vmem:[%s11251_s4 + $0xce4] ss:$8 sps:$4 sm:$0xff]   ;;  %v8366_v45 = vld [vmem:[%s11251_s4 + $0xde0] ss:$8 sps:$4 sm:$0xff]   ;;  %v8372_v44 = vld [vmem:[%s11251_s4 + $0xdd0] ss:$8 sps:$4 sm:$0xff]  }
 0x1ac   : > { %4345 = vmatprep.mubr.bf16.mxu1 %v7144_v63  ;;  %v2031_v41 = vpop.f32.mrf.mxu0  ;;  %v8374_v63 = vld [vmem:[%s11251_s4 + $0xdd4] ss:$8 sps:$4 sm:$0xff]   ;;  %v8375_v7 = vld [vmem:[%s11251_s4 + $0xcc0] ss:$8 sps:$4 sm:$0xff]  }
 0x1ad   : > { %v2361_v52 = vpop.f32.mrf.mxu1  ;;  %v2056_v38 = vadd.f32 %v2031_v41, %v10201_v3  ;;  %v10467_v31 = vadd.f32 %v2359_v53, %v2055_v40  ;;  %4624 = vmatpush1.bf16.msra.mxu0 %v8335_v27  ;;  %v8378_v26 = vld [vmem:[%s11251_s4 + $0xdc0] ss:$8 sps:$4 sm:$0xff]   ;;  %v8383_v53 = vld [vmem:[%s11251_s4 + $0xcb4] ss:$8 sps:$4 sm:$0xff]   ;;  %v8389_v41 = vld [vmem:[%s11251_s4 + $0xca4] ss:$8 sps:$4 sm:$0xff]  }
 0x1ae   : > { %4954 = vmatpush1.bf16.msra.mxu1 %v8338_v17  ;;  %v2033_v56 = vpop.f32.mrf.mxu0  ;;  %4625 = vmatprep.subr.bf16.mxu0 %v8345_v34  ;;  %v8377_v34 = vld [vmem:[%s11251_s4 + $0xcc4] ss:$8 sps:$4 sm:$0xff]   ;;  %v8386_v40 = vld [vmem:[%s11251_s4 + $0xdb4] ss:$8 sps:$4 sm:$0xff]  }
 0x1af   : > { %v2363_v4 = vpop.f32.mrf.mxu1  ;;  %4955 = vmatprep.subr.bf16.mxu1 %v8348_v23  ;;  %v2057_v3 = vadd.f32 %v2033_v56, %v10212_v61  ;;  %v10478_v19 = vadd.f32 %v2361_v52, %v2056_v38  ;;  %v8362_v61 = vld [vmem:[%s11251_s4 + $0xdf4] ss:$8 sps:$4 sm:$0xff]   ;;  %v8380_v23 = vld [vmem:[%s11251_s4 + $0xdc4] ss:$8 sps:$4 sm:$0xff]   ;;  %v8396_v56 = vld [vmem:[%s11251_s4 + $0xd90] ss:$8 sps:$4 sm:$0xff]  }
 0x1b0   : > { %v2037_v11 = vpop.f32.mrf.mxu0  ;;  %4016 = vmatmul.mubr.bf16.gmra.mxu0 %v7071_v25  ;;  %v8392_v52 = vld [vmem:[%s11251_s4 + $0xda4] ss:$8 sps:$4 sm:$0xff]   ;;  %v8387_v25 = vld [vmem:[%s11251_s4 + $0xca0] ss:$8 sps:$4 sm:$0xff]   ;;  %v8395_v38 = vld [vmem:[%s11251_s4 + $0xc94] ss:$8 sps:$4 sm:$0xff]  }
 0x1b1   : > { %v2367_v33 = vpop.f32.mrf.mxu1  ;;  %4346 = vmatmul.mubr.bf16.gmra.mxu1 %v7143_v1  ;;  %v2058_v37 = vadd.f32 %v2037_v11, %v10221_v24  ;;  %v10493_v59 = vadd.f32 %v2363_v4, %v2057_v3  ;;  %4626 = vmatpush1.bf16.msra.mxu0 %v8343_v9  ;;  %v8360_v24 = vld [vmem:[%s11251_s4 + $0xdf0] ss:$8 sps:$4 sm:$0xff]   ;;  %v8390_v1 = vld [vmem:[%s11251_s4 + $0xda0] ss:$8 sps:$4 sm:$0xff]   ;;  %v8401_v4 = vld [vmem:[%s11251_s4 + $0xc84] ss:$8 sps:$4 sm:$0xff]  }
 0x1b2   : > { %4956 = vmatpush1.bf16.msra.mxu1 %v8346_v20  ;;  %v2039_v35 = vpop.f32.mrf.mxu0  ;;  %4627 = vmatprep.subr.bf16.mxu0 %v8353_v6  ;;  %v8381_v9 = vld [vmem:[%s11251_s4 + $0xcb0] ss:$8 sps:$4 sm:$0xff]   ;;  %v8398_v6 = vld [vmem:[%s11251_s4 + $0xd94] ss:$8 sps:$4 sm:$0xff]   ;;  %v8402_v3 = vld [vmem:[%s11251_s4 + $0xd80] ss:$8 sps:$4 sm:$0xff]  }
 0x1b3   : > { %v2369_v12 = vpop.f32.mrf.mxu1  ;;  %4957 = vmatprep.subr.bf16.mxu1 %v8356_v58  ;;  %v2059_v18 = vadd.f32 %v2039_v35, %v10232_v5  ;;  %v10496_v30 = vadd.f32 %v2367_v33, %v2058_v37  ;;  %4645 = vmatprep.mubr.bf16.mxu0 %v8407_v0  ;;  %v8368_v5 = vld [vmem:[%s11251_s4 + $0xde4] ss:$8 sps:$4 sm:$0xff]   ;;  %v8384_v20 = vld [vmem:[%s11251_s4 + $0xdb0] ss:$8 sps:$4 sm:$0xff]  }
 0x1b4   : > { %4975 = vmatprep.mubr.bf16.mxu1 %v8410_v22  ;;  %v2041_v46 = vpop.f32.mrf.mxu0  ;;  %v8393_v58 = vld [vmem:[%s11251_s4 + $0xc90] ss:$8 sps:$4 sm:$0xff]   ;;  %v8404_v0 = vld [vmem:[%s11251_s4 + $0xd84] ss:$8 sps:$4 sm:$0xff]   ;;  %v8399_v22 = vld [vmem:[%s11251_s4 + $0xc80] ss:$8 sps:$4 sm:$0xff]  }
 0x1b5   : > { %v2371_v29 = vpop.f32.mrf.mxu1  ;;  %v2060_v55 = vadd.f32 %v2041_v46, %v10240_v15  ;;  %v10511_v60 = vadd.f32 %v2369_v12, %v2059_v18  ;;  %4628 = vmatpush1.bf16.msra.mxu0 %v8351_v48  ;;  %v8363_v15 = vld [vmem:[%s11251_s4 + $0xce0] ss:$8 sps:$4 sm:$0xff]   ;;  %v8413_v48 = vld [vmem:[%s11251_s4 + $0xe74] ss:$8 sps:$4 sm:$0xff]   ;;  %v8419_v37 = vld [vmem:[%s11251_s4 + $0xe64] ss:$8 sps:$4 sm:$0xff]  }
 0x1b6   : > { %4958 = vmatpush1.bf16.msra.mxu1 %v8354_v8  ;;  %v2043_v42 = vpop.f32.mrf.mxu0  ;;  %4629 = vmatprep.subr.bf16.mxu0 %v8359_v21  ;;  %v8416_v8 = vld [vmem:[%s11251_s4 + $0xf74] ss:$8 sps:$4 sm:$0xff]   ;;  %v8405_v11 = vld [vmem:[%s8917_s12 + $0x18] ss:$8 sps:$4 sm:$0xff]   ;;  %v8422_v35 = vld [vmem:[%s11251_s4 + $0xf64] ss:$8 sps:$4 sm:$0xff]  }
 0x1b7   : > { %v2373_v10 = vpop.f32.mrf.mxu1  ;;  %4959 = vmatprep.subr.bf16.mxu1 %v8362_v61  ;;  %v2061_v51 = vadd.f32 %v2043_v42, %v10248_v57  ;;  %v10514_v27 = vadd.f32 %v2371_v29, %v2060_v55  ;;  %v8371_v57 = vld [vmem:[%s11251_s4 + $0xcd4] ss:$8 sps:$4 sm:$0xff]   ;;  %v8408_v33 = vld [vmem:[%s8908_s19 + $0x18] ss:$8 sps:$4 sm:$0xff]  }
 0x1b8   : > { %v8411_v21 = vld [vmem:[%s11251_s4 + $0xe70] ss:$8 sps:$4 sm:$0xff]   ;;  %v8423_v12 = vld [vmem:[%s8917_s12 + $0x2c] ss:$8 sps:$4 sm:$0xff]   ;;  %v8417_v29 = vld [vmem:[%s11251_s4 + $0xe60] ss:$8 sps:$4 sm:$0xff]  }
 0x1b9   : > { %v10516_v17 = vadd.f32 %v2373_v10, %v2061_v51  ;;  %4630 = vmatpush2.bf16.msra.mxu0 %v8357_v16  ;;  %v8414_v61 = vld [vmem:[%s11251_s4 + $0xf70] ss:$8 sps:$4 sm:$0xff]   ;;  %v8432_v18 = vld [vmem:[%s8908_s19 + $0x2c] ss:$8 sps:$4 sm:$0xff]  }
 0x1ba   : > { %4960 = vmatpush2.bf16.msra.mxu1 %v8360_v24  ;;  %4631 = vmatprep.subr.bf16.mxu0 %v8365_v43  ;;  %v8420_v43 = vld [vmem:[%s11251_s4 + $0xf60] ss:$8 sps:$4 sm:$0xff]   ;;  %v8431_v42 = vld [vmem:[%s11251_s4 + $0xf54] ss:$8 sps:$4 sm:$0xff]  }
 0x1bb   : > { %4961 = vmatprep.subr.bf16.mxu1 %v8368_v5 }
 0x1bd   : > { %4632 = vmatpush2.bf16.msra.mxu0 %v8363_v15 }
 0x1be   : > { %4962 = vmatpush2.bf16.msra.mxu1 %v8366_v45  ;;  %4633 = vmatprep.subr.bf16.mxu0 %v8371_v57  ;;  %v8425_v57 = vld [vmem:[%s8917_s12 + $0x28] ss:$8 sps:$4 sm:$0xff]  }
 0x1bf   : > { %4963 = vmatprep.subr.bf16.mxu1 %v8374_v63  ;;  %v8434_v63 = vld [vmem:[%s8908_s19 + $0x28] ss:$8 sps:$4 sm:$0xff]  }
 0x1c1   : > { %4634 = vmatpush2.bf16.msra.mxu0 %v8369_v13 }
 0x1c2   : > { %4964 = vmatpush2.bf16.msra.mxu1 %v8372_v44  ;;  %4635 = vmatprep.subr.bf16.mxu0 %v8377_v34  ;;  %v8426_v34 = vld [vmem:[%s11251_s4 + $0xe50] ss:$8 sps:$4 sm:$0xff]  }
 0x1c3   : > { %4965 = vmatprep.subr.bf16.mxu1 %v8380_v23 }
 0x1c5   : > { %4636 = vmatpush2.bf16.msra.mxu0 %v8375_v7 }
 0x1c6   : > { %4966 = vmatpush2.bf16.msra.mxu1 %v8378_v26  ;;  %4637 = vmatprep.subr.bf16.mxu0 %v8383_v53  ;;  %v8437_v26 = vld [vmem:[%s11251_s4 + $0xe44] ss:$8 sps:$4 sm:$0xff]  }
 0x1c7   : > { %4967 = vmatprep.subr.bf16.mxu1 %v8386_v40 }
 0x1c9   : > { %4638 = vmatpush2.bf16.msra.mxu0 %v8381_v9  ;;  %v8441_v9 = vld [vmem:[%s8917_s12 + $0x3c] ss:$8 sps:$4 sm:$0xff]  }
 0x1ca   : > { %4968 = vmatpush2.bf16.msra.mxu1 %v8384_v20  ;;  %4639 = vmatprep.subr.bf16.mxu0 %v8389_v41  ;;  %v8450_v20 = vld [vmem:[%s8908_s19 + $0x3c] ss:$8 sps:$4 sm:$0xff]  }
 0x1cb   : > { %4969 = vmatprep.subr.bf16.mxu1 %v8392_v52 }
 0x1cd   : > { %4640 = vmatpush2.bf16.msra.mxu0 %v8387_v25 }
 0x1ce   : > { %4970 = vmatpush2.bf16.msra.mxu1 %v8390_v1  ;;  %4641 = vmatprep.subr.bf16.mxu0 %v8395_v38  ;;  %v8435_v38 = vld [vmem:[%s11251_s4 + $0xe40] ss:$8 sps:$4 sm:$0xff]  }
 0x1cf   : > { %4971 = vmatprep.subr.bf16.mxu1 %v8398_v6 }
 0x1d1   : > { %4642 = vmatpush2.bf16.msra.mxu0 %v8393_v58 }
 0x1d2   : > { %4972 = vmatpush2.bf16.msra.mxu1 %v8396_v56  ;;  %4643 = vmatprep.subr.bf16.mxu0 %v8401_v4  ;;  %v8449_v56 = vld [vmem:[%s11251_s4 + $0xf34] ss:$8 sps:$4 sm:$0xff]  }
 0x1d3   : > { %4973 = vmatprep.subr.bf16.mxu1 %v8404_v0 }
 0x1d5   : > { %4644 = vmatpush2.bf16.msra.mxu0 %v8399_v22 }
 0x1d6   : > { %4974 = vmatpush2.bf16.msra.mxu1 %v8402_v3  ;;  %5273 = vmatprep.subr.bf16.mxu0 %v8413_v48  ;;  %v8443_v48 = vld [vmem:[%s8917_s12 + $0x38] ss:$8 sps:$4 sm:$0xff]  }
 0x1d7   : > { %5603 = vmatprep.subr.bf16.mxu1 %v8416_v8  ;;  %v8452_v8 = vld [vmem:[%s8908_s19 + $0x38] ss:$8 sps:$4 sm:$0xff]  }
 0x1d8   : > { %v2667_v16 = vpop.f32.mrf.mxu0  ;;  %4646 = vmatmul.mubr.bf16.vlgmr.msra.gmra.mxu0 %v8405_v11 }
 0x1d9   : > { %v2997_v24 = vpop.f32.mrf.mxu1  ;;  %4976 = vmatmul.mubr.bf16.vlgmr.msra.gmra.mxu1 %v8408_v33  ;;  %v2706_v46 = vadd.f32 %v2667_v16, %v10362_v49  ;;  %5274 = vmatpush1.bf16.msra.mxu0 %v8411_v21  ;;  %v8428_v49 = vld [vmem:[%s11251_s4 + $0xe54] ss:$8 sps:$4 sm:$0xff]   ;;  %v8447_v21 = vld [vmem:[%s11251_s4 + $0xf30] ss:$8 sps:$4 sm:$0xff]  }
 0x1da   : > { %5604 = vmatpush1.bf16.msra.mxu1 %v8414_v61  ;;  %v2669_v5 = vpop.f32.mrf.mxu0  ;;  %5275 = vmatprep.subr.bf16.mxu0 %v8419_v37  ;;  %v8459_v16 = vld [vmem:[%s8917_s12 + $0x4c] ss:$8 sps:$4 sm:$0xff]  }
 0x1db   : > { %v2999_v55 = vpop.f32.mrf.mxu1  ;;  %5605 = vmatprep.subr.bf16.mxu1 %v8422_v35  ;;  %v10631_v10 = vadd.f32 %v2997_v24, %v2706_v46  ;;  %v2707_v51 = vadd.f32 %v2669_v5, %v10372_v32  ;;  %4655 = vmatprep.mubr.bf16.mxu0 %v8423_v12  ;;  %v8429_v32 = vld [vmem:[%s11251_s4 + $0xf50] ss:$8 sps:$4 sm:$0xff]   ;;  %v8458_v35 = vld [vmem:[%s11251_s4 + $0xf24] ss:$8 sps:$4 sm:$0xff]  }
 0x1dc   : > { %4985 = vmatprep.mubr.bf16.mxu1 %v8432_v18  ;;  %v2671_v15 = vpop.f32.mrf.mxu0  ;;  %v8468_v24 = vld [vmem:[%s8908_s19 + $0x4c] ss:$8 sps:$4 sm:$0xff]  }
 0x1dd   : > { %v3001_v45 = vpop.f32.mrf.mxu1  ;;  %v10636_v13 = vadd.f32 %v2999_v55, %v2707_v51  ;;  %v2708_v44 = vadd.f32 %v2671_v15, %v10385_v47  ;;  %5276 = vmatpush1.bf16.msra.mxu0 %v8417_v29  ;;  %v8440_v47 = vld [vmem:[%s11251_s4 + $0xf44] ss:$8 sps:$4 sm:$0xff]   ;;  %v8456_v55 = vld [vmem:[%s11251_s4 + $0xf20] ss:$8 sps:$4 sm:$0xff]   ;;  %v8467_v51 = vld [vmem:[%s11251_s4 + $0xf14] ss:$8 sps:$4 sm:$0xff]  }
 0x1de   : > { %5606 = vmatpush1.bf16.msra.mxu1 %v8420_v43  ;;  %v2673_v23 = vpop.f32.mrf.mxu0  ;;  %5277 = vmatprep.subr.bf16.mxu0 %v8428_v49 }
 0x1df   : > { %v3003_v7 = vpop.f32.mrf.mxu1  ;;  %5607 = vmatprep.subr.bf16.mxu1 %v8431_v42  ;;  %v10651_v53 = vadd.f32 %v3001_v45, %v2708_v44  ;;  %v2709_v40 = vadd.f32 %v2673_v23, %v10400_v54  ;;  %v8438_v54 = vld [vmem:[%s11251_s4 + $0xf40] ss:$8 sps:$4 sm:$0xff]  }
 0x1e0   : > { %v2677_v41 = vpop.f32.mrf.mxu0  ;;  %4656 = vmatmul.mubr.bf16.gmra.mxu0 %v8425_v57  ;;  %v8461_v44 = vld [vmem:[%s8917_s12 + $0x48] ss:$8 sps:$4 sm:$0xff]   ;;  %s7505_s12 = sshll.u32 %s8741_s21, 4  ;;  %s8601_s21 = scalar_lea.vmem %s8600_s14, 32 }
 0x1e1   : > { %v3007_v52 = vpop.f32.mrf.mxu1  ;;  %4986 = vmatmul.mubr.bf16.gmra.mxu1 %v8434_v63  ;;  %v10656_v25 = vadd.f32 %v3003_v7, %v2709_v40  ;;  %v2710_v1 = vadd.f32 %v2677_v41, %v10412_v14  ;;  %5278 = vmatpush1.bf16.msra.mxu0 %v8426_v34  ;;  %v8446_v14 = vld [vmem:[%s11251_s4 + $0xe34] ss:$8 sps:$4 sm:$0xff]   ;;  %v8470_v34 = vld [vmem:[%s8908_s19 + $0x48] ss:$8 sps:$4 sm:$0xff]   ;;  %v8476_v40 = vld [vmem:[%s11251_s4 + $0xf04] ss:$8 sps:$4 sm:$0xff]   ;;  %s6244_s24 = scalar_lea.hbm %s11258_s11, %s7505_s12 }
 0x1e2   : > { %5608 = vmatpush1.bf16.msra.mxu1 %v8429_v32  ;;  %v2679_v6 = vpop.f32.mrf.mxu0  ;;  %5279 = vmatprep.subr.bf16.mxu0 %v8437_v26  ;;  %v8465_v7 = vld [vmem:[%s11251_s4 + $0xf10] ss:$8 sps:$4 sm:$0xff]   ;;  %v8527_v41 = vld [vmem:[%s9152_s15 + $0x1c] ss:$8 sps:$4 sm:$0xff]   ;;  %s422_s19 = sand.u32 1, %s8647_s18  }
 0x1e3   : > { %v3009_v58 = vpop.f32.mrf.mxu1  ;;  %5609 = vmatprep.subr.bf16.mxu1 %v8440_v47  ;;  %v2711_v4 = vadd.f32 %v2679_v6, %v10432_v62  ;;  %v10672_v0 = vadd.f32 %v3007_v52, %v2710_v1  ;;  %4665 = vmatprep.mubr.bf16.mxu0 %v8441_v9  ;;  %v8444_v62 = vld [vmem:[%s11251_s4 + $0xe30] ss:$8 sps:$4 sm:$0xff]   ;;  %v8530_v52 = vld [vmem:[%s9161_s29 + $0x1c] ss:$8 sps:$4 sm:$0xff]   ;;  %s423_s25 = scalar_lea.vmem [#allocation2], %s422_s19  ;;  %s6234_s0 = scalar_lea.sflag [#allocation3], %s422_s19 }
 0x1e4   : > { %4995 = vmatprep.mubr.bf16.mxu1 %v8450_v20  ;;  %v2681_v22 = vpop.f32.mrf.mxu0  ;;  %s6246_s26 = sshll.u32 %s423_s25, 4  ;;  %s6247_s26 = int_to_ptr.vmem [resolvable:$true] %s6246_s26 }
 0x1e5   : > { %v3011_v3 = vpop.f32.mrf.mxu1  ;;  %v2712_v11 = vadd.f32 %v2681_v22, %v10434_v28  ;;  %v10677_v33 = vadd.f32 %v3009_v58, %v2711_v4  ;;  %5280 = vmatpush1.bf16.msra.mxu0 %v8435_v38  ;;  %v8455_v28 = vld [vmem:[%s11251_s4 + $0xe24] ss:$8 sps:$4 sm:$0xff]   ;;  %v8471_v58 = vld [vmem:[%s11251_s4 + $0xe00] ss:$8 sps:$4 sm:$0xff]   ;;  %v8482_v4 = vld [vmem:[%s11251_s4 + $0xff4] ss:$8 sps:$4 sm:$0xff]   ;;  %p8602_p0 = scmp.lt.s32.totalorder %s6247_s26, %s8600_s14 }
 0x1e6   : > { %5610 = vmatpush1.bf16.msra.mxu1 %v8438_v54  ;;  %v2683_v61 = vpop.f32.mrf.mxu0  ;;  %5281 = vmatprep.subr.bf16.mxu0 %v8446_v14  ;;  %s8595_s30 = scalar_lea.vmem %s6247_s26, 16 }
 0x1e7   : > { %v3013_v37 = vpop.f32.mrf.mxu1  ;;  %5611 = vmatprep.subr.bf16.mxu1 %v8449_v56  ;;  %v2713_v12 = vadd.f32 %v2683_v61, %v10452_v36  ;;  %v10692_v18 = vadd.f32 %v3011_v3, %v2712_v11  ;;  %v8453_v36 = vld [vmem:[%s11251_s4 + $0xe20] ss:$8 sps:$4 sm:$0xff]   ;;  %p8596_p11 = scmp.ne.s32.totalorder %s6247_s26, %s8595_s30  ;;  %p8603_p1 = scmp.lt.s32.totalorder %s8601_s21, %s8595_s30 }
 0x1e8   : > { %v2687_v46 = vpop.f32.mrf.mxu0  ;;  %4666 = vmatmul.mubr.bf16.gmra.mxu0 %v8443_v48 }
 0x1e9   : > { %v3017_v29 = vpop.f32.mrf.mxu1  ;;  %4996 = vmatmul.mubr.bf16.gmra.mxu1 %v8452_v8  ;;  %v2714_v43 = vadd.f32 %v2687_v46, %v10455_v2  ;;  %v10697_v5 = vadd.f32 %v3013_v37, %v2713_v12  ;;  %5282 = vmatpush1.bf16.msra.mxu0 %v8444_v62  ;;  %v8464_v2 = vld [vmem:[%s11251_s4 + $0xe14] ss:$8 sps:$4 sm:$0xff]   ;;  %v8486_v46 = vld [vmem:[%s11251_s4 + $0xfe0] ss:$8 sps:$4 sm:$0xff]   ;;  %p8597_p12 = pnand %p8596_p11, %p8758_p5  ;;  %p8604_p2 = por %p8603_p1, %p8602_p0 }
 0x1ea   : > { %5612 = vmatpush1.bf16.msra.mxu1 %v8447_v21  ;;  %v2689_v49 = vpop.f32.mrf.mxu0  ;;  %5283 = vmatprep.subr.bf16.mxu0 %v8455_v28  ;;  %v8477_v21 = vld [vmem:[%s11251_s4 + $0xef0] ss:$8 sps:$4 sm:$0xff]   ;;  %v8488_v28 = vld [vmem:[%s11251_s4 + $0xfe4] ss:$8 sps:$4 sm:$0xff]  }
 0x1eb   : > { %v3019_v42 = vpop.f32.mrf.mxu1  ;;  %5613 = vmatprep.subr.bf16.mxu1 %v8458_v35  ;;  %v2715_v15 = vadd.f32 %v2689_v49, %v10467_v31  ;;  %v10712_v45 = vadd.f32 %v3017_v29, %v2714_v43  ;;  %4675 = vmatprep.mubr.bf16.mxu0 %v8459_v16  ;;  %v8462_v31 = vld [vmem:[%s11251_s4 + $0xe10] ss:$8 sps:$4 sm:$0xff]   ;;  %v8494_v29 = vld [vmem:[%s11251_s4 + $0xfd4] ss:$8 sps:$4 sm:$0xff]   ;;  %v8500_v49 = vld [vmem:[%s11251_s4 + $0xfc4] ss:$8 sps:$4 sm:$0xff]   ;;  %p8598_p13 = pneg %p8597_p12 }
 0x1ec   : > { %5005 = vmatprep.mubr.bf16.mxu1 %v8468_v24  ;;  %v2691_v57 = vpop.f32.mrf.mxu0  ;;  %v8483_v24 = vld [vmem:[%s11251_s4 + $0xee0] ss:$8 sps:$4 sm:$0xff]   ;;  %v8489_v43 = vld [vmem:[%s11251_s4 + $0xed0] ss:$8 sps:$4 sm:$0xff]  }
 0x1ed   : > { %v3021_v63 = vpop.f32.mrf.mxu1  ;;  %v2716_v32 = vadd.f32 %v2691_v57, %v10478_v19  ;;  %v10717_v23 = vadd.f32 %v3019_v42, %v2715_v15  ;;  %5284 = vmatpush1.bf16.msra.mxu0 %v8453_v36  ;;  %v8473_v19 = vld [vmem:[%s11251_s4 + $0xe04] ss:$8 sps:$4 sm:$0xff]   ;;  %v8492_v36 = vld [vmem:[%s11251_s4 + $0xfd0] ss:$8 sps:$4 sm:$0xff]   ;;  %v8495_v42 = vld [vmem:[%s11251_s4 + $0xec0] ss:$8 sps:$4 sm:$0xff]   ;;  %p8605_p3 = pnand %p8604_p2, %p8598_p13 }
 0x1ee   : > { %5614 = vmatpush1.bf16.msra.mxu1 %v8456_v55  ;;  %v2693_v26 = vpop.f32.mrf.mxu0  ;;  %5285 = vmatprep.subr.bf16.mxu0 %v8464_v2  ;;  %v8497_v55 = vld [vmem:[%s11251_s4 + $0xec4] ss:$8 sps:$4 sm:$0xff]   ;;  %v8498_v2 = vld [vmem:[%s11251_s4 + $0xfc0] ss:$8 sps:$4 sm:$0xff]   ;;  %v8506_v15 = vld [vmem:[%s11251_s4 + $0xfb4] ss:$8 sps:$4 sm:$0xff]  }
 0x1ef   : > { %v3023_v47 = vpop.f32.mrf.mxu1  ;;  %5615 = vmatprep.subr.bf16.mxu1 %v8467_v51  ;;  %v2717_v9 = vadd.f32 %v2693_v26, %v10493_v59  ;;  %v10732_v20 = vadd.f32 %v3021_v63, %v2716_v32  ;;  %v8474_v59 = vld [vmem:[%s11251_s4 + $0xf00] ss:$8 sps:$4 sm:$0xff]   ;;  %v8503_v51 = vld [vmem:[%s11251_s4 + $0xeb4] ss:$8 sps:$4 sm:$0xff]   ;;  %v8501_v57 = vld [vmem:[%s11251_s4 + $0xeb0] ss:$8 sps:$4 sm:$0xff]  }
 0x1f0   : > { %v2697_v1 = vpop.f32.mrf.mxu0  ;;  %4676 = vmatmul.mubr.bf16.gmra.mxu0 %v8461_v44  ;;  %v8504_v63 = vld [vmem:[%s11251_s4 + $0xfb0] ss:$8 sps:$4 sm:$0xff]   ;;  %v8509_v44 = vld [vmem:[%s11251_s4 + $0xea4] ss:$8 sps:$4 sm:$0xff]   ;;  %v8507_v32 = vld [vmem:[%s11251_s4 + $0xea0] ss:$8 sps:$4 sm:$0xff]  }
 0x1f1   : > { %v3027_v38 = vpop.f32.mrf.mxu1  ;;  %5006 = vmatmul.mubr.bf16.gmra.mxu1 %v8470_v34  ;;  %v2718_v54 = vadd.f32 %v2697_v1, %v10496_v30  ;;  %v10737_v6 = vadd.f32 %v3023_v47, %v2717_v9  ;;  %5286 = vmatpush1.bf16.msra.mxu0 %v8462_v31  ;;  %v8479_v30 = vld [vmem:[%s11251_s4 + $0xef4] ss:$8 sps:$4 sm:$0xff]   ;;  %v8512_v34 = vld [vmem:[%s11251_s4 + $0xfa4] ss:$8 sps:$4 sm:$0xff]   ;;  %v8510_v31 = vld [vmem:[%s11251_s4 + $0xfa0] ss:$8 sps:$4 sm:$0xff]  }
 0x1f2   : > { %5616 = vmatpush1.bf16.msra.mxu1 %v8465_v7  ;;  %v2699_v14 = vpop.f32.mrf.mxu0  ;;  %5287 = vmatprep.subr.bf16.mxu0 %v8473_v19  ;;  %v8515_v7 = vld [vmem:[%s11251_s4 + $0xe94] ss:$8 sps:$4 sm:$0xff]   ;;  %v8513_v47 = vld [vmem:[%s11251_s4 + $0xe90] ss:$8 sps:$4 sm:$0xff]   ;;  %v8524_v9 = vld [vmem:[%s11251_s4 + $0xf84] ss:$8 sps:$4 sm:$0xff]  }
 0x1f3   : > { %v3029_v56 = vpop.f32.mrf.mxu1  ;;  %5617 = vmatprep.subr.bf16.mxu1 %v8476_v40  ;;  %v2719_v22 = vadd.f32 %v2699_v14, %v10511_v60  ;;  %v10752_v3 = vadd.f32 %v3027_v38, %v2718_v54  ;;  %5305 = vmatprep.mubr.bf16.mxu0 %v8527_v41  ;;  %v8480_v60 = vld [vmem:[%s11251_s4 + $0xff0] ss:$8 sps:$4 sm:$0xff]   ;;  %v8518_v26 = vld [vmem:[%s11251_s4 + $0xf94] ss:$8 sps:$4 sm:$0xff]   ;;  %v8521_v40 = vld [vmem:[%s11251_s4 + $0xe84] ss:$8 sps:$4 sm:$0xff]  }
 0x1f4   : > { %5635 = vmatprep.mubr.bf16.mxu1 %v8530_v52  ;;  %v2701_v48 = vpop.f32.mrf.mxu0  ;;  %v8516_v19 = vld [vmem:[%s11251_s4 + $0xf90] ss:$8 sps:$4 sm:$0xff]   ;;  %v8519_v41 = vld [vmem:[%s11251_s4 + $0xe80] ss:$8 sps:$4 sm:$0xff]   ;;  %v8533_v54 = vld [vmem:[%s9152_s15 + $0x2c] ss:$8 sps:$4 sm:$0xff]  }
 0x1f5   : > { %v3031_v8 = vpop.f32.mrf.mxu1  ;;  %v2720_v11 = vadd.f32 %v2701_v48, %v10514_v27  ;;  %v10755_v62 = vadd.f32 %v3029_v56, %v2719_v22  ;;  %5288 = vmatpush1.bf16.msra.mxu0 %v8471_v58  ;;  %v8485_v27 = vld [vmem:[%s11251_s4 + $0xee4] ss:$8 sps:$4 sm:$0xff]   ;;  %v8522_v52 = vld [vmem:[%s11251_s4 + $0xf80] ss:$8 sps:$4 sm:$0xff]   ;;  %v5036_v22 = vld [vmem:[%s9152_s15 + $0x38] sm:$0xff] }
 0x1f6   : > { %5618 = vmatpush1.bf16.msra.mxu1 %v8474_v59  ;;  %v2703_v61 = vpop.f32.mrf.mxu0  ;;  %5289 = vmatprep.subr.bf16.mxu0 %v8479_v30  ;;  %v8525_v1 = vld [vmem:[%s9152_s15 + $0x18] ss:$8 sps:$4 sm:$0xff]   ;;  %v8536_v58 = vld [vmem:[%s9161_s29 + $0x2c] ss:$8 sps:$4 sm:$0xff]  }
 0x1f7   : > { %v3033_v37 = vpop.f32.mrf.mxu1  ;;  %5619 = vmatprep.subr.bf16.mxu1 %v8482_v4  ;;  %v2721_v35 = vadd.f32 %v2703_v61, %v10516_v17  ;;  %v10770_v12 = vadd.f32 %v3031_v8, %v2720_v11  ;;  %v8491_v17 = vld [vmem:[%s11251_s4 + $0xed4] ss:$8 sps:$4 sm:$0xff]   ;;  %v8528_v38 = vld [vmem:[%s9161_s29 + $0x18] ss:$8 sps:$4 sm:$0xff]   ;;  %v8531_v61 = vld [vmem:[%s9152_s15 + $0x28] ss:$8 sps:$4 sm:$0xff]  }
 0x1f8   : > { %v5366_v48 = vld [vmem:[%s9161_s29 + $0x38] sm:$0xff] }
 0x1f9   : > { %v10772_v16 = vadd.f32 %v3033_v37, %v2721_v35  ;;  %5290 = vmatpush2.bf16.msra.mxu0 %v8477_v21  ;;  %v8534_v37 = vld [vmem:[%s9161_s29 + $0x28] ss:$8 sps:$4 sm:$0xff]   ;;  %v7430_v35 = vcombine.high %v5366_v48, %v10427_v50 }
 0x1fa   : > { %5620 = vmatpush2.bf16.msra.mxu1 %v8480_v60  ;;  %5291 = vmatprep.subr.bf16.mxu0 %v8485_v27 }
 0x1fb   : > { %5621 = vmatprep.subr.bf16.mxu1 %v8488_v28 }
 0x1fd   : > { %5292 = vmatpush2.bf16.msra.mxu0 %v8483_v24 }
 0x1fe   : > { %5622 = vmatpush2.bf16.msra.mxu1 %v8486_v46  ;;  %5293 = vmatprep.subr.bf16.mxu0 %v8491_v17 }
 0x1ff   : > { %5623 = vmatprep.subr.bf16.mxu1 %v8494_v29 }
 0x201   : > { %5294 = vmatpush2.bf16.msra.mxu0 %v8489_v43 }
 0x202   : > { %5624 = vmatpush2.bf16.msra.mxu1 %v8492_v36  ;;  %5295 = vmatprep.subr.bf16.mxu0 %v8497_v55 }
 0x203   : > { %5625 = vmatprep.subr.bf16.mxu1 %v8500_v49 }
 0x205   : > { %5296 = vmatpush2.bf16.msra.mxu0 %v8495_v42 }
 0x206   : > { %5626 = vmatpush2.bf16.msra.mxu1 %v8498_v2  ;;  %5297 = vmatprep.subr.bf16.mxu0 %v8503_v51 }
 0x207   : > { %5627 = vmatprep.subr.bf16.mxu1 %v8506_v15  ;;  %v7357_v15 = vcombine.low %v5036_v22, %v10406_v39 }
 0x209   : > { %5298 = vmatpush2.bf16.msra.mxu0 %v8501_v57  ;;  %v7429_v57 = vcombine.low %v5366_v48, %v10427_v50 }
 0x20a   : > { %5628 = vmatpush2.bf16.msra.mxu1 %v8504_v63  ;;  %5299 = vmatprep.subr.bf16.mxu0 %v8509_v44 }
 0x20b   : > { %5629 = vmatprep.subr.bf16.mxu1 %v8512_v34  ;;  %v8543_v34 = vld [vmem:[%s9152_s15 + $0x4c] ss:$8 sps:$4 sm:$0xff]  }
 0x20d   : > { %5300 = vmatpush2.bf16.msra.mxu0 %v8507_v32 }
 0x20e   : > { %5630 = vmatpush2.bf16.msra.mxu1 %v8510_v31  ;;  %5301 = vmatprep.subr.bf16.mxu0 %v8515_v7 }
 0x20f   : > { %5631 = vmatprep.subr.bf16.mxu1 %v8518_v26 }
 0x211   : > { %5302 = vmatpush2.bf16.msra.mxu0 %v8513_v47 }
 0x212   : > { %5632 = vmatpush2.bf16.msra.mxu1 %v8516_v19  ;;  %5303 = vmatprep.subr.bf16.mxu0 %v8521_v40 }
 0x213   : > { %5633 = vmatprep.subr.bf16.mxu1 %v8524_v9 }
 0x215   : > { %5304 = vmatpush2.bf16.msra.mxu0 %v8519_v41 }
 0x216   : > { %5634 = vmatpush2.bf16.msra.mxu1 %v8522_v52  ;;  %v8541_v52 = vld [vmem:[%s9152_s15 + $0x48] ss:$8 sps:$4 sm:$0xff]  }
 0x218   : > { %v3327_v59 = vpop.f32.mrf.mxu0  ;;  %5306 = vmatmul.mubr.bf16.vlgmr.msra.gmra.mxu0 %v8525_v1  ;;  %v8544_v1 = vld [vmem:[%s9161_s29 + $0x48] ss:$8 sps:$4 sm:$0xff]  }
 0x219   : > { %v3657_v14 = vpop.f32.mrf.mxu1  ;;  %5636 = vmatmul.mubr.bf16.vlgmr.msra.gmra.mxu1 %v8528_v38  ;;  %v3366_v56 = vadd.f32 %v3327_v59, %v10631_v10  ;;  %5315 = vmatprep.mubr.bf16.mxu0 %v8533_v54  ;;  %v7358_v10 = vcombine.high %v5036_v22, %v10406_v39 }
 0x21a   : > { %5645 = vmatprep.mubr.bf16.mxu1 %v8536_v58  ;;  %v3329_v30 = vpop.f32.mrf.mxu0 }
 0x21b   : > { %v3659_v4 = vpop.f32.mrf.mxu1  ;;  %v10859_v8 = vadd.f32 %v3657_v14, %v3366_v56  ;;  %v3367_v11 = vadd.f32 %v3329_v30, %v10636_v13 }
 0x21c   : > { %v3331_v21 = vpop.f32.mrf.mxu0 }
 0x21d   : > { %v3661_v60 = vpop.f32.mrf.mxu1  ;;  %v10864_v27 = vadd.f32 %v3659_v4, %v3367_v11  ;;  %v3368_v28 = vadd.f32 %v3331_v21, %v10651_v53 }
 0x21e   : > { %v3333_v24 = vpop.f32.mrf.mxu0 }
 0x21f   : > { %v3663_v46 = vpop.f32.mrf.mxu1  ;;  %v10869_v17 = vadd.f32 %v3661_v60, %v3368_v28  ;;  %v3369_v29 = vadd.f32 %v3333_v24, %v10656_v25 }
 0x220   : > { %v3337_v43 = vpop.f32.mrf.mxu0  ;;  %5316 = vmatmul.mubr.bf16.gmra.mxu0 %v8531_v61 }
 0x221   : > { %5646 = vmatmul.mubr.bf16.gmra.mxu1 %v8534_v37  ;;  %v3667_v13 = vpop.f32.mrf.mxu1  ;;  %v10872_v36 = vadd.f32 %v3663_v46, %v3369_v29  ;;  %v3370_v53 = vadd.f32 %v3337_v43, %v10672_v0  ;;  %5325 = vmatprep.mubr.bf16.mxu0 %v7358_v10  ;;  %v8546_v0 = vld [vmem:[%s9161_s29 + $0x4c] ss:$8 sps:$4 sm:$0xff]  }
 0x222   : > { %5655 = vmatprep.mubr.bf16.mxu1 %v7430_v35  ;;  %v3339_v55 = vpop.f32.mrf.mxu0 }
 0x223   : > { %v3669_v49 = vpop.f32.mrf.mxu1  ;;  %v3371_v42 = vadd.f32 %v3339_v55, %v10677_v33  ;;  %v10876_v2 = vadd.f32 %v3667_v13, %v3370_v53 }
 0x224   : > { %v3341_v51 = vpop.f32.mrf.mxu0 }
 0x225   : > { %v3671_v25 = vpop.f32.mrf.mxu1  ;;  %v3372_v63 = vadd.f32 %v3341_v51, %v10692_v18  ;;  %v10881_v44 = vadd.f32 %v3669_v49, %v3371_v42 }
 0x226   : > { %v3343_v32 = vpop.f32.mrf.mxu0 }
 0x227   : > { %v3673_v31 = vpop.f32.mrf.mxu1  ;;  %v3373_v7 = vadd.f32 %v3343_v32, %v10697_v5  ;;  %v10886_v33 = vadd.f32 %v3671_v25, %v3372_v63 }
 0x228   : > { %v3347_v26 = vpop.f32.mrf.mxu0  ;;  %5326 = vmatmul.mubr.bf16.gmra.mxu0 %v7357_v15 }
 0x229   : > { %5656 = vmatmul.mubr.bf16.gmra.mxu1 %v7429_v57  ;;  %v3677_v39 = vpop.f32.mrf.mxu1  ;;  %v3374_v50 = vadd.f32 %v3347_v26, %v10712_v45  ;;  %v10889_v47 = vadd.f32 %v3673_v31, %v3373_v7  ;;  %5335 = vmatprep.mubr.bf16.mxu0 %v8543_v34  ;;  %v8549_v31 = vld [vmem:[%s11253_s6 + $0x70] sm:$0xff]  }
 0x22a   : > { %5665 = vmatprep.mubr.bf16.mxu1 %v8546_v0  ;;  %v3349_v18 = vpop.f32.mrf.mxu0 }
 0x22b   : > { %v3679_v19 = vpop.f32.mrf.mxu1  ;;  %v3375_v40 = vadd.f32 %v3349_v18, %v10717_v23  ;;  %v10892_v9 = vadd.f32 %v3677_v39, %v3374_v50  ;;  %v8550_v39 = vld [vmem:[%s11253_s6 + $0x30] sm:$0xff]  }
 0x22c   : > { %v3351_v5 = vpop.f32.mrf.mxu0 }
 0x22d   : > { %v3681_v41 = vpop.f32.mrf.mxu1  ;;  %v3376_v38 = vadd.f32 %v3351_v5, %v10732_v20  ;;  %v3705_v54 = vadd.f32 %v3679_v19, %v3375_v40  ;;  %v8551_v40 = vld [vmem:[%s11253_s6 + $0x68] sm:$0xff]  }
 0x22e   : > { %v3353_v58 = vpop.f32.mrf.mxu0 }
 0x22f   : > { %v3683_v59 = vpop.f32.mrf.mxu1  ;;  %v3377_v45 = vadd.f32 %v3353_v58, %v10737_v6  ;;  %v10898_v14 = vadd.f32 %v3681_v41, %v3376_v38  ;;  %v8552_v38 = vld [vmem:[%s11253_s6 + $0x28] sm:$0xff]  }
 0x230   : > { %v3357_v56 = vpop.f32.mrf.mxu0  ;;  %5336 = vmatmul.mubr.bf16.gmra.mxu0 %v8541_v52 }
 0x231   : > { %5666 = vmatmul.mubr.bf16.gmra.mxu1 %v8544_v1  ;;  %v3687_v30 = vpop.f32.mrf.mxu1  ;;  %v3378_v23 = vadd.f32 %v3357_v56, %v10752_v3  ;;  %v10901_v4 = vadd.f32 %v3683_v59, %v3377_v45 }
 0x232   : > { %v3359_v22 = vpop.f32.mrf.mxu0 }
 0x233   : > { %v3689_v48 = vpop.f32.mrf.mxu1  ;;  %v3379_v11 = vadd.f32 %v3359_v22, %v10755_v62  ;;  %v10904_v20 = vadd.f32 %v3687_v30, %v3378_v23 }
 0x234   : > { %v3361_v21 = vpop.f32.mrf.mxu0 }
 0x235   : > { %v3691_v60 = vpop.f32.mrf.mxu1  ;;  %v3380_v6 = vadd.f32 %v3361_v21, %v10770_v12  ;;  %v10907_v61 = vadd.f32 %v3689_v48, %v3379_v11  ;;  %v8554_v48 = vld [vmem:[%s11253_s6 + $0x20] sm:$0xff]  }
 0x236   : > { %v3363_v37 = vpop.f32.mrf.mxu0 }
 0x237   : > { %v3693_v28 = vpop.f32.mrf.mxu1  ;;  %v3381_v10 = vadd.f32 %v3363_v37, %v10772_v16  ;;  %v10910_v35 = vadd.f32 %v3691_v60, %v3380_v6  ;;  %v8555_v6 = vld [vmem:[%s11254_s7 + $0x78] sm:$0xff]  }
 0x238   : > { %7508 = vmatprep.subr.bf16.mxu0 %v8555_v6 }
 0x239   : > { %v10912_v3 = vadd.f32 %v3693_v28, %v3381_v10  ;;  %v8556_v28 = vld [vmem:[%s11254_s7 + $0x38] sm:$0xff]   ;;  %v8559_v10 = vld [vmem:[%s11254_s7 + $0x70] sm:$0xff]  }
 0x23a   : > { %7509 = vmatpush3.bf16.msra.mxu0 %v8556_v28 }
 0x23b   : > { %7510 = vmatprep.subr.bf16.mxu0 %v8559_v10 }
 0x258   : > { %v3987_v24 = vpop.f32.mrf.mxu0 }
 0x259   : > { %v4317_v46 = vpop.f32.mrf.mxu1  ;;  %v4026_v62 = vadd.f32 %v3987_v24, %v10859_v8  ;;  %v8561_v24 = vld [vmem:[%s11253_s6 + $0x50] sm:$0xff]  }
 0x25a   : > { %v3989_v29 = vpop.f32.mrf.mxu0 }
 0x25b   : > { %v4319_v43 = vpop.f32.mrf.mxu1  ;;  %v10915_v13 = vadd.f32 %v4317_v46, %v4026_v62  ;;  %v4027_v12 = vadd.f32 %v3989_v29, %v10864_v27  ;;  %v8547_v27 = vld [vmem:[%s11253_s6 + $0x78] sm:$0xff]   ;;  %v8560_v46 = vld [vmem:[%s11254_s7 + $0x30] sm:$0xff]   ;;  %v8563_v29 = vld [vmem:[%s11254_s7 + $0x68] sm:$0xff]  }
 0x25c   : > { %v3991_v53 = vpop.f32.mrf.mxu0  ;;  %7530 = vmatprep.subr.bf16.mxu1 %v8547_v27  ;;  %v8562_v62 = vld [vmem:[%s11253_s6 + $0x10] sm:$0xff]   ;;  %7511 = vmatpush3.bf16.msra.mxu0 %v8560_v46  ;;  %v8572_v27 = vld [vmem:[%s11254_s7 + $0x18] sm:$0xff]  }
 0x25d   : > { %v4321_v55 = vpop.f32.mrf.mxu1  ;;  %v10918_v49 = vadd.f32 %v4319_v43, %v4027_v12  ;;  %v4028_v16 = vadd.f32 %v3991_v53, %v10869_v17  ;;  %v8548_v17 = vld [vmem:[%s11253_s6 + $0x38] sm:$0xff]   ;;  %v8565_v43 = vld [vmem:[%s11253_s6 + $0x48] sm:$0xff]   ;;  %7512 = vmatprep.subr.bf16.mxu0 %v8563_v29 }
 0x25e   : > { %v3993_v42 = vpop.f32.mrf.mxu0  ;;  %7531 = vmatpush3.bf16.msra.mxu1 %v8548_v17  ;;  %v8564_v12 = vld [vmem:[%s11254_s7 + $0x28] sm:$0xff]   ;;  %v8573_v17 = vld [vmem:[%s11254_s7 + $0x50] sm:$0xff]  }
 0x25f   : > { %v4323_v51 = vpop.f32.mrf.mxu1  ;;  %v10921_v25 = vadd.f32 %v4321_v55, %v4028_v16  ;;  %v4029_v15 = vadd.f32 %v3993_v42, %v10872_v36  ;;  %7532 = vmatprep.subr.bf16.mxu1 %v8549_v31  ;;  %v8566_v53 = vld [vmem:[%s11253_s6 + $0x8] sm:$0xff]   ;;  %v8567_v55 = vld [vmem:[%s11254_s7 + $0x60] sm:$0xff]   ;;  %v8574_v31 = vld [vmem:[%s11254_s7 + $0x10] sm:$0xff]  }
 0x260   : > { %v10924_v57 = vpop.f32.mrf.mxu0  ;;  %7513 = vmatpush3.bf16.msra.mxu0 %v8564_v12  ;;  %v8569_v16 = vld [vmem:[%s11253_s6 + $0x40] sm:$0xff]  }
 0x261   : > { %v10926_v8 = vpop.f32.mrf.mxu1  ;;  %v10928_v63 = vadd.f32 %v4323_v51, %v4029_v15  ;;  %v8568_v42 = vld [vmem:[%s11254_s7 + $0x20] sm:$0xff]   ;;  %7514 = vmatprep.subr.bf16.mxu0 %v8567_v55  ;;  %v8571_v15 = vld [vmem:[%s11254_s7 + $0x58] sm:$0xff]  }
 0x262   : > { %v10933_v34 = vpop.f32.mrf.mxu0  ;;  %7533 = vmatpush3.bf16.msra.mxu1 %v8550_v39  ;;  %v8570_v51 = vld [vmem:[%s11253_s6] sm:$0xff]   ;;  %v8575_v39 = vld [vmem:[%s11254_s7 + $0x48] sm:$0xff]  }
 0x263   : > { %v10935_v0 = vpop.f32.mrf.mxu1  ;;  %7534 = vmatprep.subr.bf16.mxu1 %v8551_v40 }
 0x264   : > { %v10940_v36 = vpop.f32.mrf.mxu0  ;;  %7515 = vmatpush3.bf16.msra.mxu0 %v8568_v42 }
 0x265   : > { %v10942_v32 = vpop.f32.mrf.mxu1  ;;  %7516 = vmatprep.subr.bf16.mxu0 %v8571_v15 }
 0x266   : > { %v10947_v7 = vpop.f32.mrf.mxu0  ;;  %7535 = vmatpush3.bf16.msra.mxu1 %v8552_v38 }
 0x267   : > { %v10949_v26 = vpop.f32.mrf.mxu1 }
 0x268   : > { %v4007_v50 = vpop.f32.mrf.mxu0  ;;  %7517 = vmatpush3.bf16.msra.mxu0 %v8572_v27 }
 0x269   : > { %v4337_v18 = vpop.f32.mrf.mxu1  ;;  %v4034_v19 = vadd.f32 %v4007_v50, %v10892_v9  ;;  %7518 = vmatprep.subr.bf16.mxu0 %v8573_v17  ;;  %v8576_v50 = vld [vmem:[%s11254_s7 + $0x8] sm:$0xff]  }
 0x26a   : > { %v4009_v5 = vpop.f32.mrf.mxu0 }
 0x26b   : > { %v4339_v41 = vpop.f32.mrf.mxu1  ;;  %v4035_v52 = vadd.f32 %v4009_v5, %v3705_v54  ;;  %v10958_v1 = vadd.f32 %v4337_v18, %v4034_v19  ;;  %v8553_v54 = vld [vmem:[%s11253_s6 + $0x60] sm:$0xff]  }
 0x26c   : > { %v4011_v58 = vpop.f32.mrf.mxu0  ;;  %7536 = vmatprep.subr.bf16.mxu1 %v8553_v54  ;;  %7519 = vmatpush3.bf16.msra.mxu0 %v8574_v31  ;;  %v8577_v18 = vld [vmem:[%s11254_s7 + $0x40] sm:$0xff]  }
 0x26d   : > { %v4341_v59 = vpop.f32.mrf.mxu1  ;;  %v4036_v45 = vadd.f32 %v4011_v58, %v10898_v14  ;;  %v10964_v56 = vadd.f32 %v4339_v41, %v4035_v52  ;;  %7537 = vmatpush3.bf16.msra.mxu1 %v8554_v48  ;;  %7520 = vmatprep.subr.bf16.mxu0 %v8575_v39  ;;  %v8578_v19 = vld [vmem:[%s11254_s7] sm:$0xff]   ;;  %v11260_v52 = vmov 0.0  }
 0x26e   : > { %v4013_v9 = vpop.f32.mrf.mxu0 }
 0x26f   : > { %v4343_v30 = vpop.f32.mrf.mxu1  ;;  %v4037_v23 = vadd.f32 %v4013_v9, %v10901_v4  ;;  %v10970_v22 = vadd.f32 %v4341_v59, %v4036_v45  ;;  %v8557_v4 = vld [vmem:[%s11253_s6 + $0x58] sm:$0xff]  }
 0x270   : > { %v4017_v11 = vpop.f32.mrf.mxu0  ;;  %7538 = vmatprep.subr.bf16.mxu1 %v8557_v4  ;;  %7521 = vmatpush3.bf16.msra.mxu0 %v8576_v50  ;;  %v5694_v50 = vlaneseq }
 0x271   : > { %v4347_v21 = vpop.f32.mrf.mxu1  ;;  %v4038_v14 = vadd.f32 %v4017_v11, %v10904_v20  ;;  %v10976_v60 = vadd.f32 %v4343_v30, %v4037_v23  ;;  %v8558_v20 = vld [vmem:[%s11253_s6 + $0x18] sm:$0xff]   ;;  %7522 = vmatprep.subr.bf16.mxu0 %v8577_v18  ;;  %v4030_v18 = vadd.f32 %v10924_v57, %v10876_v2  ;;  %v4033_v2 = vadd.f32 %v10947_v7, %v10889_v47  ;;  %v5692_v47 = vld [vmem:[%s11252_s5] sm:$0x3] }
 0x272   : > { %7539 = vmatpush3.bf16.msra.mxu1 %v8558_v20  ;;  %v11052_v40 = vpop.f32.mrf.mxu0 }
 0x273   : > { %v10984_v37 = vadd.f32 %v4347_v21, %v4038_v14  ;;  %7540 = vmatprep.subr.bf16.mxu1 %v8561_v24  ;;  %v11054_v5 = vpop.f32.mrf.mxu1  ;;  %v4363_v7 = vadd.f32 %v10949_v26, %v4033_v2 }
 0x274   : > { %7523 = vmatpush3.bf16.msra.mxu0 %v8578_v19  ;;  %v11056_v41 = vpop.f32.mrf.mxu0 }
 0x275   : > { %7561 = vmatprep.subr.bf16.mxu0 %v11260_v52  ;;  %v11059_v38 = vpop.f32.mrf.mxu1 }
 0x276   : > { %7541 = vmatpush3.bf16.msra.mxu1 %v8562_v62  ;;  %v11061_v58 = vpop.f32.mrf.mxu0 }
 0x277   : > { %7542 = vmatprep.subr.bf16.mxu1 %v8565_v43  ;;  %v11063_v59 = vpop.f32.mrf.mxu1 }
 0x278   : > { %11270 = vst [vmem:[#allocation7_spill] sm:$0xff] %v11063_v59  ;;  %v4031_v59 = vadd.f32 %v10933_v34, %v10881_v44 }
 0x27a   : > { %7543 = vmatpush3.bf16.msra.mxu1 %v8566_v53 }
 0x27b   : > { %7544 = vmatprep.subr.bf16.mxu1 %v8569_v16 }
 0x27e   : > { %7545 = vmatpush3.bf16.msra.mxu1 %v8570_v51 }
 0x298   : > { %v4647_v45 = vpop.f32.mrf.mxu0 }
 0x299   : > { %v4977_v9 = vpop.f32.mrf.mxu1  ;;  %v4686_v19 = vadd.f32 %v4647_v45, %v10915_v13 }
 0x29a   : > { %v4649_v30 = vpop.f32.mrf.mxu0 }
 0x29b   : > { %v4979_v54 = vpop.f32.mrf.mxu1  ;;  %v5016_v13 = vadd.f32 %v4977_v9, %v4686_v19 }
 0x29c   : > { %v4651_v23 = vpop.f32.mrf.mxu0 }
 0x29d   : > { %v4981_v48 = vpop.f32.mrf.mxu1  ;;  %v4688_v44 = vadd.f32 %v4651_v23, %v10921_v25 }
 0x29e   : > { %v4653_v11 = vpop.f32.mrf.mxu0 }
 0x29f   : > { %v4983_v21 = vpop.f32.mrf.mxu1 }
 0x2a0   : > { %v4657_v14 = vpop.f32.mrf.mxu0 }
 0x2a1   : > { %v4987_v6 = vpop.f32.mrf.mxu1 }
 0x2a2   : > { %v4659_v4 = vpop.f32.mrf.mxu0 }
 0x2a3   : > { %v4989_v28 = vpop.f32.mrf.mxu1 }
 0x2a4   : > { %v4661_v20 = vpop.f32.mrf.mxu0 }
 0x2a5   : > { %v11065_v10 = vpop.f32.mrf.mxu1 }
 0x2a6   : > { %v4663_v24 = vpop.f32.mrf.mxu0 }
 0x2a7   : > { %v11067_v46 = vpop.f32.mrf.mxu1 }
 0x2a8   : > { %v11069_v62 = vpop.f32.mrf.mxu0 }
 0x2a9   : > { %v11071_v29 = vpop.f32.mrf.mxu1 }
 0x2aa   : > { %v11073_v43 = vpop.f32.mrf.mxu0 }
 0x2ab   : > { %v11075_v12 = vpop.f32.mrf.mxu1 }
 0x2ac   : > { %v11077_v53 = vpop.f32.mrf.mxu0 }
 0x2ad   : > { %v11079_v55 = vpop.f32.mrf.mxu1 }
 0x2ae   : > { %11271 = vst [vmem:[#allocation8_spill] sm:$0xff] %v11079_v55  ;;  %v11081_v16 = vpop.f32.mrf.mxu0  ;;  %v4032_v55 = vadd.f32 %v10940_v36, %v10886_v33 }
 0x2af   : > { %v11083_v42 = vpop.f32.mrf.mxu1 }
 0x2b0   : > { %11272 = vst [vmem:[#allocation9_spill] sm:$0xff] %v11083_v42  ;;  %v11085_v51 = vpop.f32.mrf.mxu0  ;;  %v4362_v33 = vadd.f32 %v10942_v32, %v4032_v55 }
 0x2b1   : > { %v11087_v15 = vpop.f32.mrf.mxu1 }
 0x2b2   : > { %11273 = vst [vmem:[#allocation10_spill] sm:$0xff] %v11087_v15  ;;  %v11089_v27 = vpop.f32.mrf.mxu0  ;;  %v4687_v15 = vadd.f32 %v4649_v30, %v10918_v49  ;;  %v4689_v30 = vadd.f32 %v4653_v11, %v10928_v63  ;;  %v4692_v63 = vadd.f32 %v4661_v20, %v4362_v33 }
 0x2b3   : > { %11274 = vst [vmem:[#allocation11_spill] sm:$0xff] %v11089_v27  ;;  %v11091_v17 = vpop.f32.mrf.mxu1 }
 0x2b4   : > { %11275 = vst [vmem:[#allocation12_spill] sm:$0xff] %v11091_v17  ;;  %v11093_v31 = vpop.f32.mrf.mxu0  ;;  %v5017_v49 = vadd.f32 %v4979_v54, %v4687_v15  ;;  %v5018_v54 = vadd.f32 %v4981_v48, %v4688_v44  ;;  %v5019_v11 = vadd.f32 %v4983_v21, %v4689_v30  ;;  %v5022_v48 = vadd.f32 %v11065_v10, %v4692_v63 }
 0x2b5   : > { %11276 = vst [vmem:[#allocation13_spill] sm:$0xff] %v11093_v31  ;;  %v11095_v39 = vpop.f32.mrf.mxu1  ;;  %v5695_v31 = vshrl.u32 %v5694_v50, 7  ;;  %v4694_v21 = vadd.f32 %v11069_v62, %v10958_v1 }
 0x2b6   : > { %11277 = vst [vmem:[#allocation14_spill] sm:$0xff] %v11095_v39  ;;  %v11100_v52 = vpop.f32.mrf.mxu0  ;;  %v4360_v39 = vadd.f32 %v10926_v8, %v4030_v18 }
 0x2b7   : > { %11278 = vst [vmem:[#allocation15_spill] sm:$0xff] %v11100_v52  ;;  %v11102_v42 = vpop.f32.mrf.mxu1  ;;  %v5696_v52 = vsub.s32 0, %v5695_v31 }
 0x2b8   : > { %11279 = vst [vmem:[#allocation16_spill] sm:$0xff] %v11102_v42  ;;  %v4361_v42 = vadd.f32 %v10935_v0, %v4031_v59  ;;  %v4690_v34 = vadd.f32 %v4657_v14, %v4360_v39  ;;  %v5700_v59 = vsub.s32 1, %v5695_v31  ;;  %v4693_v14 = vadd.f32 %v4663_v24, %v4363_v7 }
 0x2ba   : > { %v4691_v36 = vadd.f32 %v4659_v4, %v4361_v42  ;;  %v5020_v23 = vadd.f32 %v4987_v6, %v4690_v34 }
 0x2bc   : > { %v5021_v55 = vadd.f32 %v4989_v28, %v4691_v36  ;;  %v4695_v36 = vadd.f32 %v11073_v43, %v10964_v56 }
 0x2d8   : > { %v5307_v17 = vpop.f32.mrf.mxu0 }
 0x2d9   : > { %v5637_v27 = vpop.f32.mrf.mxu1  ;;  %v5346_v50 = vadd.f32 %v5307_v17, %v5016_v13  ;;  %v11120_v17 = vrot.slane %v5692_v47, %v5696_v52  ;;  %v11122_v13 = vrot.slane %v5692_v47, %v5700_v59  ;;  %v5023_v52 = vadd.f32 %v11067_v46, %v4693_v14 }
 0x2da   : > { %v5309_v57 = vpop.f32.mrf.mxu0  ;;  %v4039_v46 = vadd.f32 %v11052_v40, %v10907_v61  ;;  %v5024_v47 = vadd.f32 %v11071_v29, %v4694_v21  ;;  %v4698_v61 = vadd.f32 %v11085_v51, %v10984_v37 }
 0x2db   : > { %v5639_v45 = vpop.f32.mrf.mxu1  ;;  %v5347_v0 = vadd.f32 %v5309_v57, %v5017_v49  ;;  %v5676_v15 = vadd.f32 %v5637_v27, %v5346_v50 }
 0x2dc   : > { %v5311_v8 = vpop.f32.mrf.mxu0  ;;  %v4369_v63 = vadd.f32 %v11054_v5, %v4039_v46 }
 0x2dd   : > { %v5641_v18 = vpop.f32.mrf.mxu1  ;;  %v5348_v42 = vadd.f32 %v5311_v8, %v5018_v54  ;;  %v5677_v19 = vadd.f32 %v5639_v45, %v5347_v0  ;;  %v5704_v24 = vadd.f32 %v11120_v17, %v5676_v15 }
 0x2de   : > { %v5313_v25 = vpop.f32.mrf.mxu0 }
 0x2df   : > { %v5643_v9 = vpop.f32.mrf.mxu1  ;;  %v5349_v26 = vadd.f32 %v5313_v25, %v5019_v11  ;;  %v5678_v57 = vadd.f32 %v5641_v18, %v5348_v42  ;;  %v5705_v49 = vadd.f32 %v11122_v13, %v5677_v19  ;;  %v4040_v18 = vadd.f32 %v11056_v41, %v10910_v35  ;;  %v11281_v42 = vld [vmem:[#allocation11_spill] sm:$0xff]  ;;  %v11282_v19 = vld [vmem:[#allocation13_spill] sm:$0xff] }
 0x2e0   : > { %v5317_v32 = vpop.f32.mrf.mxu0  ;;  %v4041_v11 = vadd.f32 %v11061_v58, %v10912_v3  ;;  %v11283_v3 = vld [vmem:[#allocation10_spill] sm:$0xff] }
 0x2e1   : > { %v5647_v4 = vpop.f32.mrf.mxu1  ;;  %v5350_v39 = vadd.f32 %v5317_v32, %v5020_v23  ;;  %v5679_v30 = vadd.f32 %v5643_v9, %v5349_v26  ;;  %v5706_v59 = vadd.f32 %v11120_v17, %v5678_v57  ;;  %v4696_v23 = vadd.f32 %v11077_v53, %v10970_v22 }
 0x2e2   : > { %v5319_v31 = vpop.f32.mrf.mxu0  ;;  %v4370_v14 = vadd.f32 %v11059_v38, %v4040_v18  ;;  %v5025_v53 = vadd.f32 %v11075_v12, %v4695_v36  ;;  %v4697_v32 = vadd.f32 %v11081_v16, %v10976_v60  ;;  %v5028_v58 = vadd.f32 %v11283_v3, %v4698_v61  ;;  %v11289_v61 = vld [vmem:[#allocation16_spill] sm:$0xff] }
 0x2e3   : > { %v5649_v2 = vpop.f32.mrf.mxu1  ;;  %v5680_v6 = vadd.f32 %v5647_v4, %v5350_v39  ;;  %v5351_v20 = vadd.f32 %v5319_v31, %v5021_v55  ;;  %v5707_v56 = vadd.f32 %v11122_v13, %v5679_v30  ;;  %v11280_v4 = vld [vmem:[#allocation8_spill] sm:$0xff]  ;;  %v4699_v39 = vadd.f32 %v11281_v42, %v4369_v63  ;;  %v11288_v30 = vld [vmem:[#allocation14_spill] sm:$0xff] }
 0x2e4   : > { %v5321_v28 = vpop.f32.mrf.mxu0  ;;  %v5026_v55 = vadd.f32 %v11280_v4, %v4696_v23  ;;  %v4700_v5 = vadd.f32 %v11282_v19, %v4370_v14 }
 0x2e5   : > { %v5651_v27 = vpop.f32.mrf.mxu1  ;;  %v5708_v45 = vadd.f32 %v11120_v17, %v5680_v6  ;;  %v5681_v44 = vadd.f32 %v5649_v2, %v5351_v20  ;;  %v5352_v34 = vadd.f32 %v5321_v28, %v5022_v48  ;;  %v11284_v6 = vld [vmem:[#allocation7_spill] sm:$0xff] }
 0x2e6   : > { %v5323_v10 = vpop.f32.mrf.mxu0  ;;  %v4371_v12 = vadd.f32 %v11284_v6, %v4041_v11 }
 0x2e7   : > { %v5653_v50 = vpop.f32.mrf.mxu1  ;;  %v5720_v8 = vmax.f32 %v5704_v24, %v5708_v45  ;;  %v5709_v33 = vadd.f32 %v11122_v13, %v5681_v44  ;;  %v5682_v1 = vadd.f32 %v5651_v27, %v5352_v34  ;;  %v5353_v62 = vadd.f32 %v5323_v10, %v5023_v52  ;;  %v11285_v27 = vld [vmem:[#allocation9_spill] sm:$0xff]  ;;  %v11286_v45 = vld [vmem:[#allocation12_spill] sm:$0xff]  ;;  %v11287_v34 = vld [vmem:[#allocation15_spill] sm:$0xff] }
 0x2e8   : > { %v5327_v7 = vpop.f32.mrf.mxu0  ;;  %v5027_v57 = vadd.f32 %v11285_v27, %v4697_v32  ;;  %v5029_v44 = vadd.f32 %v11286_v45, %v4699_v39  ;;  %v5030_v10 = vadd.f32 %v11288_v30, %v4700_v5 }
 0x2e9   : > { %v5657_v0 = vpop.f32.mrf.mxu1  ;;  %v5729_v25 = vmax.f32 %v5705_v49, %v5709_v33  ;;  %v5710_v9 = vadd.f32 %v11120_v17, %v5682_v1  ;;  %v5683_v54 = vadd.f32 %v5653_v50, %v5353_v62  ;;  %v5354_v43 = vadd.f32 %v5327_v7, %v5024_v47 }
 0x2ea   : > { %v5329_v35 = vpop.f32.mrf.mxu0  ;;  %v4701_v49 = vadd.f32 %v11287_v34, %v4371_v12 }
 0x2eb   : > { %v5659_v40 = vpop.f32.mrf.mxu1  ;;  %v5721_v41 = vmax.f32 %v5706_v59, %v5710_v9  ;;  %v5711_v29 = vadd.f32 %v11122_v13, %v5683_v54  ;;  %v5684_v48 = vadd.f32 %v5657_v0, %v5354_v43  ;;  %v5355_v20 = vadd.f32 %v5329_v35, %v5025_v53 }
 0x2ec   : > { %v5331_v15 = vpop.f32.mrf.mxu0  ;;  %v5031_v35 = vadd.f32 %v11289_v61, %v4701_v49 }
 0x2ed   : > { %v5661_v22 = vpop.f32.mrf.mxu1  ;;  %v5722_v37 = vmax.f32 %v5720_v8, %v5721_v41  ;;  %v5730_v51 = vmax.f32 %v5707_v56, %v5711_v29  ;;  %v5356_v21 = vadd.f32 %v5331_v15, %v5026_v55  ;;  %v5712_v62 = vadd.f32 %v11120_v17, %v5684_v48 }
 0x2ee   : > { %v5333_v26 = vpop.f32.mrf.mxu0  ;;  %v5685_v18 = vadd.f32 %v5659_v40, %v5355_v20 }
 0x2ef   : > { %v5663_v31 = vpop.f32.mrf.mxu1  ;;  %v5723_v38 = vrot.slane %v5722_v37, 4  ;;  %v5731_v2 = vmax.f32 %v5729_v25, %v5730_v51  ;;  %v5686_v36 = vadd.f32 %v5661_v22, %v5356_v21  ;;  %v5357_v47 = vadd.f32 %v5333_v26, %v5027_v57 }
 0x2f0   : > { %v5337_v52 = vpop.f32.mrf.mxu0  ;;  %v5713_v40 = vadd.f32 %v11122_v13, %v5685_v18  ;;  %v8582_v18 = vld [vmem:[%s11256_s9 + $0x20] sm:$0xff]  }
 0x2f1   : > { %v5667_v24 = vpop.f32.mrf.mxu1  ;;  %v5724_v60 = vmax.f32 %v5722_v37, %v5723_v38  ;;  %v5732_v16 = vrot.slane %v5731_v2, 4  ;;  %v5358_v28 = vadd.f32 %v5337_v52, %v5028_v58  ;;  %v5687_v14 = vadd.f32 %v5663_v31, %v5357_v47  ;;  %v8584_v47 = vld [vmem:[%s11256_s9 + $0x10] sm:$0xff]  }
 0x2f2   : > { %v5339_v50 = vpop.f32.mrf.mxu0  ;;  %v5714_v37 = vadd.f32 %v11120_v17, %v5686_v36  ;;  %v8583_v36 = vld [vmem:[%s11256_s9 + $0x18] sm:$0xff]  }
 0x2f3   : > { %v5669_v8 = vpop.f32.mrf.mxu1  ;;  %v5725_v33 = vrot.slane %v5724_v60, 2  ;;  %v5733_v1 = vmax.f32 %v5731_v2, %v5732_v16  ;;  %v5688_v46 = vadd.f32 %v5667_v24, %v5358_v28  ;;  %v5359_v7 = vadd.f32 %v5339_v50, %v5029_v44 }
 0x2f4   : > { %v5341_v0 = vpop.f32.mrf.mxu0  ;;  %v5715_v26 = vadd.f32 %v11122_v13, %v5687_v14 }
 0x2f5   : > { %v5726_v59 = vmax.f32 %v5724_v60, %v5725_v33  ;;  %v5734_v25 = vrot.slane %v5733_v1, 2  ;;  %v5716_v9 = vadd.f32 %v11120_v17, %v5688_v46  ;;  %v5360_v54 = vadd.f32 %v5341_v0, %v5030_v10  ;;  %v5671_v23 = vpop.f32.mrf.mxu1  ;;  %v8581_v46 = vld [vmem:[%s11256_s9 + $0x28] sm:$0xff]   ;;  %v8586_v0 = vld [vmem:[%s11256_s9] sm:$0xff]  }
 0x2f6   : > { %v5689_v56 = vadd.f32 %v5669_v8, %v5359_v7  ;;  %v5343_v41 = vpop.f32.mrf.mxu0  ;;  %v8579_v8 = vld [vmem:[%s11256_s9 + $0x38] sm:$0xff]   ;;  %v8585_v7 = vld [vmem:[%s11256_s9 + $0x8] sm:$0xff]  }
 0x2f7   : > { %v5727_v29 = vrot.slane %v5726_v59, 1  ;;  %v5735_v43 = vmax.f32 %v5733_v1, %v5734_v25  ;;  %v5744_v63 = vmax.f32 %v5712_v62, %v5716_v9  ;;  %v5690_v11 = vadd.f32 %v5671_v23, %v5360_v54  ;;  %v5673_v32 = vpop.f32.mrf.mxu1  ;;  %v8580_v62 = vld [vmem:[%s11256_s9 + $0x30] sm:$0xff]  }
 0x2f8   : > { %v5717_v15 = vadd.f32 %v11122_v13, %v5689_v56  ;;  %v5361_v22 = vadd.f32 %v5343_v41, %v5031_v35  ;;  %v11290_v1 = vmov 0.0   ;;  %v6108_v41 = vld [vmem:[%s11255_s8] sm:$0x1] }
 0x2f9   : > { %v5728_v53 = vmax.f32 %v5726_v59, %v5727_v29  ;;  %v5718_v51 = vadd.f32 %v11120_v17, %v5690_v11  ;;  %v5736_v4 = vrot.slane %v5735_v43, 1 }
 0x2fa   : > { %v5753_v55 = vmax.f32 %v5713_v40, %v5717_v15  ;;  %v5691_v42 = vadd.f32 %v5673_v32, %v5361_v22  ;;  %v6130_v22 = vld [vmem:[%s11257_s10] sm:$0x1] }
 0x2fb   : > { %vm5738_vm0 = vcmp.ge.f32.partialorder %v5728_v53, 0.0  ;;  %v5740_v39 = vmul.f32 0.01, %v5728_v53  ;;  %v5745_v19 = vmax.f32 %v5714_v37, %v5718_v51  ;;  %v5737_v5 = vmax.f32 %v5735_v43, %v5736_v4 }
 0x2fc   : > { %v5719_v31 = vadd.f32 %v11122_v13, %v5691_v42 }
 0x2fd   : > { %v5746_v3 = vmax.f32 %v5744_v63, %v5745_v19  ;;  %vm5739_vm1 = vcmp.ge.f32.partialorder %v5737_v5, 0.0  ;;  %v5741_v58 = vmul.f32 0.01, %v5737_v5  ;;  %v5742_v38 = vsel %vm5738_vm0, %v5728_v53, %v5740_v39 }
 0x2fe   : > { %v5754_v2 = vmax.f32 %v5715_v26, %v5719_v31  ;;  %v5768_v20 = vpack.c.bf16 %v5742_v38, %v5742_v38 }
 0x2ff   : > { %v5747_v48 = vrot.slane %v5746_v3, 4  ;;  %v5743_v6 = vsel %vm5739_vm1, %v5737_v5, %v5741_v58 }
 0x300   : > { %v5755_v17 = vmax.f32 %v5753_v55, %v5754_v2  ;;  %v5769_v12 = vpack.c.bf16 %v5743_v6, %v5743_v6 }
 0x301   : > { %v5748_v21 = vmax.f32 %v5746_v3, %v5747_v48 }
 0x302   : > { %v5756_v52 = vrot.slane %v5755_v17, 4  ;;  %6100 = vmatprep.mubr.bf16.mxu1 %v5769_v12 }
 0x303   : > { %v5749_v24 = vrot.slane %v5748_v21, 2  ;;  %6101 = vmatmul.mubr.bf16.vlgmr.msra.gmra.mxu1 %v5768_v20 }
 0x304   : > { %v5757_v60 = vmax.f32 %v5755_v17, %v5756_v52 }
 0x305   : > { %v5750_v16 = vmax.f32 %v5748_v21, %v5749_v24 }
 0x306   : > { %v5758_v28 = vrot.slane %v5757_v60, 2 }
 0x307   : > { %v5751_v27 = vrot.slane %v5750_v16, 1 }
 0x308   : > { %v5759_v13 = vmax.f32 %v5757_v60, %v5758_v28 }
 0x309   : > { %v5752_v57 = vmax.f32 %v5750_v16, %v5751_v27 }
 0x30a   : > { %v5760_v45 = vrot.slane %v5759_v13, 1 }
 0x30b   : > { %v5764_v44 = vmul.f32 0.01, %v5752_v57  ;;  %vm5762_vm2 = vcmp.ge.f32.partialorder %v5752_v57, 0.0 }
 0x30c   : > { %v5761_v34 = vmax.f32 %v5759_v13, %v5760_v45 }
 0x30d   : > { %v5766_v30 = vsel %vm5762_vm2, %v5752_v57, %v5764_v44 }
 0x30e   : > { %vm5763_vm3 = vcmp.ge.f32.partialorder %v5761_v34, 0.0  ;;  %v5765_v49 = vmul.f32 0.01, %v5761_v34  ;;  %v5802_v33 = vpack.c.bf16 %v5766_v30, %v5766_v30 }
 0x310   : > { %v5767_v10 = vsel %vm5763_vm3, %v5761_v34, %v5765_v49 }
 0x311   : > { %v5803_v50 = vpack.c.bf16 %v5767_v10, %v5767_v10 }
 0x313   : > { %5964 = vmatprep.mubr.bf16.mxu0 %v5803_v50 }
 0x314   : > { %5965 = vmatmul.mubr.bf16.vlgmr.msra.gmra.mxu0 %v5802_v33 }
 0x315   : > { %7562 = vmatpush3.bf16.msra.mxu0 %v8579_v8  ;;  %7577 = vmatprep.mubr.msk.bf16.mxu0 %vm8658_vm4, %v11290_v1 }
 0x316   : > { %7563 = vmatprep.subr.bf16.mxu0 %v11290_v1 }
 0x319   : > { %7564 = vmatpush3.bf16.msra.mxu0 %v8580_v62 }
 0x31a   : > { %7565 = vmatprep.subr.bf16.mxu0 %v11290_v1 }
 0x31d   : > { %7566 = vmatpush3.bf16.msra.mxu0 %v8581_v46 }
 0x31e   : > { %7567 = vmatprep.subr.bf16.mxu0 %v11290_v1 }
 0x321   : > { %7568 = vmatpush3.bf16.msra.mxu0 %v8582_v18 }
 0x322   : > { %7569 = vmatprep.subr.bf16.mxu0 %v11290_v1 }
 0x325   : > { %7570 = vmatpush3.bf16.msra.mxu0 %v8583_v36 }
 0x326   : > { %7571 = vmatprep.subr.bf16.mxu0 %v11290_v1 }
 0x329   : > { %7572 = vmatpush3.bf16.msra.mxu0 %v8584_v47 }
 0x32a   : > { %7573 = vmatprep.subr.bf16.mxu0 %v11290_v1 }
 0x32d   : > { %7574 = vmatpush3.bf16.msra.mxu0 %v8585_v7 }
 0x32e   : > { %7575 = vmatprep.subr.bf16.mxu0 %v11290_v1 }
 0x331   : > { %7576 = vmatpush3.bf16.msra.mxu0 %v8586_v0 }
 0x3c3   : > { %v7546_v59 = vpop.f32.mrf.mxu1 }
 0x3c5   : > { %v7547_v25 = vpop.f32.mrf.mxu1 }
 0x3c6   : > { %v7548_v35 = vadd.f32 %v7547_v25, %v7546_v59 }
 0x3c7   : > { %v7549_v9 = vpop.f32.mrf.mxu1 }
 0x3c9   : > { %v7550_v54 = vpop.f32.mrf.mxu1 }
 0x3d4   : > { %v7524_v23 = vpop.f32.mrf.mxu0 }
 0x3d6   : > { %v7525_v61 = vpop.f32.mrf.mxu0 }
 0x3d7   : > { %v7526_v56 = vadd.f32 %v7525_v61, %v7524_v23 }
 0x3d8   : > { %v7527_v29 = vpop.f32.mrf.mxu0 }
 0x3d9   : > { %v6103_v43 = vadd.f32 %v7548_v35, %v7526_v56 }
 0x3da   : > { %v7528_v63 = vpop.f32.mrf.mxu0 }
 0x3db   : > { %v6109_v11 = vadd.f32 %v6108_v41, %v6103_v43 }
 0x3dd   : > { %vm6110_vm5 = vcmp.ge.f32.partialorder %v6109_v11, 0.0  ;;  %v6111_v40 = vmul.f32 0.01, %v6109_v11 }
 0x3df   : > { %v6112_v14 = vsel %vm6110_vm5, %v6109_v11, %v6111_v40 }
 0x3e0   : > { %v6113_v15 = vpack.c.bf16 %v6112_v14, %v6112_v14 }
 0x3e2   : > { %7578 = vmatmul.mubr.bf16.vlgmr.msra.gmra.mxu0 %v6113_v15 }
 0x4a2   : > { %v6213_v53 = vpop.f32.mrf.mxu0 }
 0x4a3   : > { %v6214_v37 = vadd.f32 %v6213_v53, %v6130_v22 }
 0x4a4   : > { %v7579_v51 = vpop.f32.mrf.mxu0 }
 0x4a5   : > { %v6220_v32 = vsel %vm6219_vm6, %v6214_v37, -inf }
 0x4a6   : > { %6221 = vmax.xlane.f32.xlu0 %v6220_v32  ;;  %v6216_v4 = vpop.f32.mrf.mxu0 }
 0x4a8   : > { %v7580_v55 = vpop.f32.mrf.mxu0 }
 0x52f   : > { %v6222_v42 = vpop.xlane.xlu0 %6221 }
 0x530   : > { %v6223_v39 = vsub.f32 %v6214_v37, %v6222_v42 }
 0x532   : > { %v6224_v19 = vmul.f32 1.442695, %v6223_v39 }
 0x534   : > { %8587 = vpow2.f32 %v6224_v19 }
 0x541   : > { %v8588_v5 = vpop.eup %8587 }
 0x542   : > { %v6226_v26 = vsel %vm6219_vm6, %v8588_v5, 0.0 }
 0x543   : > { %6227 = vadd.xlane.f32.xlu0 %v6226_v26 }
 0x5cc   : > { %v6228_v31 = vpop.xlane.xlu0 %6227 }
 0x5cd   : > { %8589 = vlog2.f32 %v6228_v31 }
 0x5da   : > { %v8590_v3 = vpop.eup %8589 }
 0x5db   : > { %v6230_v58 = vmul.f32 0.6931472, %v8590_v3 }
 0x5dd   : > { %v6231_v38 = vsub.f32 %v6223_v39, %v6230_v58 }
 0x5df   : > { %6232 = vst.msk [vmem:[%s423_s25] sm:$0x1] %vm6219_vm6, %v6231_v38 }
 0x5e0   : > { %8608 = shalt.err (!%p8605_p3)
}
 0x5e1   : > { %s8609_s16 = scalar_lea.hbm %s6244_s24, 16  ;;  %s8613_s19 = scalar_lea.hbm %s11258_s11, 32 }
 0x5e2   : > { %p8610_p4 = scmp.ne.s32.totalorder %s6244_s24, %s8609_s16  ;;  %p8614_p9 = scmp.lt.s32.totalorder %s6244_s24, %s11258_s11 }
 0x5e3   : > { %p8615_p10 = scmp.lt.s32.totalorder %s8613_s19, %s8609_s16 }
 0x5e4   : > { %p8611_p7 = pnand %p8610_p4, %p8758_p5 }
 0x5e5   : > { %p8616_p11 = por %p8615_p10, %p8614_p9 }
 0x5e6   : > { %p8612_p8 = pneg %p8611_p7 }
 0x5e8   : > { %p8617_p12 = pnand %p8616_p11, %p8612_p8 }
 0x5ea   : > { %8620 = shalt.err (!%p8617_p12)
}
 0x5eb   : > { %7582 = dma.vmem_to_hbm [thread:$0]  (%p8758_p5), %s6247_s26, 16, %s6244_s24, %s6234_s0  }
 0x5ec PF: > { %p7588_p13 = scmp.ge.s32.totalorder %s8655_s20, 2  ;;  %s6258_s1 = sand.u32 1, %s8643_s17  }
 0x5ed   : > { %s6259_s22 = scalar_lea.sflag [#allocation3], %s6258_s1 }
 0x5ee   : > { %p7585_p0 = pnand %p7588_p13, %p8762_p6 }
 0x5f0   : > { %p7586_p1 = pneg %p7585_p0 }
 0x5f2   : > { %8638 = dma.done.wait (%p7586_p1), %s6259_s22, 16  }
 0x5f3   : > { %8640 = vsyncadd (%p7586_p1), %s6259_s22, 4294967280  ;;  %s11291_s30 = sld [smem:[#allocation5_spill]]  ;;  %p21_p2 = scmp.ge.s32.totalorder %s8745_s23, 4  }
 0x5f4   : > { %s11292_s19 = sld [smem:[#allocation6_spill]]  ;;  %s11293_s17 = smov %s8647_s18 }
 0x5f5   : > { %s11295_s20 = smov %s8745_s23  ;;  %23 = sbr.rel (!%p21_p2) target bundleno = 6 (0x6), region = 123 }
 0x5f9   : > { %s11294_s18 = smov %s11291_s30 }
 0x5fa   :  { %6263 = vsyncpa [#allocation3], 1 }
 0x5fb   :  { %6265 = vsyncpa [#allocation3 + $0x1], 1 }

</bundles_post_ra>
